<compile_context>
chip_gen: v6e
topology: v6e:2x2x1
jax: 0.10.0
libtpu: 0.0.40
codegen_flags: <defaults>
</compile_context>

<pallas_src>
import jax
import jax.numpy as jnp
from jax.experimental import pallas as pl
from jax.experimental.pallas import tpu as pltpu

LAYERS = [2, 20, 20, 20, 20, 20, 20, 1]
DEPTH = len(LAYERS) - 1          # 7 linear layers
PAD = 128                        # lane-padded hidden feature width
TM_CHOICES = (2048, 1024)        # batch tiles (largest first)


def _choose_tm(n):
    """Largest batch tile that still leaves >= 2 grid steps (so the 'parallel'
    batch axis actually splits across v7x's two TensorCores); floor at 1024 so
    per-grid-step overhead stays well amortized."""
    for tm in TM_CHOICES:
        if n >= 2 * tm:
            return tm
    return TM_CHOICES[-1]


def mlp_kernel(x_ref, w_ref, b_ref, o_ref):
    # x_ref: (TM, 2) f32        w_ref: (DEPTH, PAD, PAD) bf16
    # b_ref: (DEPTH, 1, PAD) f32   o_ref: (TM, 1) f32
    x = x_ref[...].astype(jnp.float32)                              # (TM, 2)

    # Layer 0: 2-feature input -> rank-2 broadcast update on the VPU
    # (no matmul, no in-HBM lane padding of x).
    w0 = w_ref[0].astype(jnp.float32)                               # (PAD, PAD)
    h = jnp.tanh(x[:, 0:1] * w0[0:1, :] + x[:, 1:2] * w0[1:2, :] + b_ref[0])

    # Hidden layers 1..DEPTH-2: bf16 MXU matmul, f32 accumulation, f32 tanh.
    # (cast to bf16 only at the MXU boundary; elementwise math stays f32)
    for i in range(1, DEPTH - 1):
        z = jnp.dot(h.astype(jnp.bfloat16), w_ref[i],
                    preferred_element_type=jnp.float32) + b_ref[i]
        h = jnp.tanh(z)

    # Final layer: single valid output column -> VPU multiply + XLU lane
    # reduction.  The weight vector lives along lanes in row 0 of w_ref[-1]
    # (transposed host-side), so this is just a broadcast-mul + sum.
    w_last = w_ref[DEPTH - 1].astype(jnp.float32)                   # (PAD, PAD), row 0 valid
    out = jnp.sum(h * w_last[0:1, :], axis=-1, keepdims=True)       # (TM, 1)
    out = out + b_ref[DEPTH - 1][0:1, 0:1]
    o_ref[...] = out.astype(o_ref.dtype)


def init_params(key):
    """PyTorch nn.Linear default init: U(-1/sqrt(fan_in), +1/sqrt(fan_in)),
    zero-padded to f32 (DEPTH, PAD, PAD) / (DEPTH, 1, PAD) in standard layout."""
    w_pad = jnp.zeros((DEPTH, PAD, PAD), jnp.float32)
    b_pad = jnp.zeros((DEPTH, 1, PAD), jnp.float32)
    for i in range(DEPTH):
        fan_in, fan_out = LAYERS[i], LAYERS[i + 1]
        key, kw, kb = jax.random.split(key, 3)
        bound = 1.0 / jnp.sqrt(float(fan_in))
        w = jax.random.uniform(kw, (fan_in, fan_out), jnp.float32, -bound, bound)
        b = jax.random.uniform(kb, (fan_out,), jnp.float32, -bound, bound)
        w_pad = w_pad.at[i, :fan_in, :fan_out].set(w)
        b_pad = b_pad.at[i, 0, :fan_out].set(b)
    return w_pad, b_pad


def pack_kernel_params(w_pad, b_pad):
    """Kernel-side layout: bf16 weights (MXU-native); the final layer's weight
    column is stored transposed (along lanes, row 0) for the lane reduction."""
    w_k = w_pad.at[DEPTH - 1].set(jnp.transpose(w_pad[DEPTH - 1]))
    return w_k.astype(jnp.bfloat16), b_pad.astype(jnp.float32)


def dnn_forward(x, w_pad, b_pad):
    """Pallas kernel path: x (N, 2) f32 -> (N, 1) f32, matching DNN.forward."""
    n, f_in = x.shape
    assert f_in == LAYERS[0]
    tm = _choose_tm(n)
    n_pad = ((n + tm - 1) // tm) * tm
    # Only pad the batch dim (cheap: n_pad x 2 floats); NO 128-lane padding in HBM.
    x_in = jnp.zeros((n_pad, f_in), jnp.float32).at[:n].set(x.astype(jnp.float32))
    # Cheap repack (cast + one 128x128 transpose); pre-pack once in a training loop.
    w_k, b_k = pack_kernel_params(w_pad, b_pad)

    out = pl.pallas_call(
        mlp_kernel,
        out_shape=jax.ShapeDtypeStruct((n_pad, 1), jnp.float32),
        grid_spec=pltpu.PrefetchScalarGridSpec(
            num_scalar_prefetch=0,
            grid=(n_pad // tm,),
            in_specs=[
                pl.BlockSpec((tm, f_in), lambda m: (m, 0)),            # narrow input stream
                pl.BlockSpec((DEPTH, PAD, PAD), lambda m: (0, 0, 0)),  # resident bf16 weights
                pl.BlockSpec((DEPTH, 1, PAD), lambda m: (0, 0, 0)),    # resident f32 biases
            ],
            out_specs=pl.BlockSpec((tm, 1), lambda m: (m, 0)),         # narrow output stream
        ),
        compiler_params=pltpu.CompilerParams(
            dimension_semantics=("parallel",),   # batch axis shards across TCs on v7x
        ),
    )(x_in, w_k, b_k)

    return out[:n]


def dnn_forward_ref(x, w_pad, b_pad):
    """Pure-JAX f32 reference of the same MLP (also the tiny-batch path)."""
    h = x.astype(jnp.float32)
    for i in range(DEPTH):
        w = w_pad[i, : LAYERS[i], : LAYERS[i + 1]]
        b = b_pad[i, 0, : LAYERS[i + 1]]
        h = h @ w + b
        if i < DEPTH - 1:
            h = jnp.tanh(h)
    return h


def dnn_apply(x, w_pad, b_pad, min_pallas_batch=1024):
    """Dispatch: tiny batches use the plain XLA dense path (launch + padding
    overhead dominates there); large batches use the Pallas kernel."""
    if x.shape[0] < min_pallas_batch:
        return dnn_forward_ref(x, w_pad, b_pad)
    return dnn_forward(x, w_pad, b_pad)


if __name__ == "__main__":
    key = jax.random.PRNGKey(0)
    key, kx = jax.random.split(key)

    w_pad, b_pad = init_params(key)

    # Small deterministic batch, non-multiple of the tile size (exercises padding).
    N = 1000
    x = jax.random.normal(kx, (N, LAYERS[0]), jnp.float32)

    out = jax.block_until_ready(dnn_forward(x, w_pad, b_pad))
    ref = dnn_forward_ref(x, w_pad, b_pad)
    assert out.shape == (N, 1)
    # bf16 MXU operands -> ~1e-3-level relative error vs the pure-f32 reference.
    assert jnp.allclose(out, ref, atol=5e-2, rtol=5e-2), "mismatch vs f32 reference"
    # Tighter check vs a reference using bf16-rounded weights (f32 math).
    ref_bf = dnn_forward_ref(x, w_pad.astype(jnp.bfloat16).astype(jnp.float32), b_pad)
    assert jnp.allclose(out, ref_bf, atol=2e-2, rtol=2e-2), "mismatch vs bf16-weight reference"

    # Larger batch: exercises tm=2048 and a multi-step grid with batch padding.
    key, kx2 = jax.random.split(key)
    N2 = 5000
    x2 = jax.random.normal(kx2, (N2, LAYERS[0]), jnp.float32)
    out2 = jax.block_until_ready(dnn_forward(x2, w_pad, b_pad))
    ref2 = dnn_forward_ref(x2, w_pad, b_pad)
    assert jnp.allclose(out2, ref2, atol=5e-2, rtol=5e-2)

    # Tiny-batch auto-dispatch bypasses the kernel entirely (exact f32 path).
    out_small = jax.block_until_ready(dnn_apply(x[:8], w_pad, b_pad))
    assert jnp.allclose(out_small, ref[:8], atol=1e-4, rtol=1e-4)

    print("KERNEL_OK")
</pallas_src>

<mosaic_0001>
module attributes {stable_mosaic.version = 11 : i64} {
  func.func @mlp_kernel(%arg0: i32, %arg1: memref<1024x2xf32, #tpu.memory_space<vmem>>, %arg2: memref<7x128x128xbf16, #tpu.memory_space<vmem>>, %arg3: memref<7x1x128xf32, #tpu.memory_space<vmem>>, %arg4: memref<1024x1xf32, #tpu.memory_space<vmem>>) attributes {dimension_semantics = [#tpu.dimension_semantics<parallel>], iteration_bounds = array<i64: 1>, scalar_prefetch = 0 : i64, scratch_operands = 0 : i64, tpu.core_type = #tpu.core_type<tc>, window_params = [{transform_indices = @transform_0, window_bounds = array<i64: 1024, 2>}, {pipeline_mode = #tpu.pipeline_mode<synchronous>, transform_indices = @transform_1, window_bounds = array<i64: 7, 128, 128>}, {pipeline_mode = #tpu.pipeline_mode<synchronous>, transform_indices = @transform_2, window_bounds = array<i64: 7, 1, 128>}, {transform_indices = @transform_3, window_bounds = array<i64: 1024, 1>}]} {
    %c0 = arith.constant 0 : index
    %c0_0 = arith.constant 0 : index
    %0 = vector.load %arg1[%c0, %c0_0] : memref<1024x2xf32, #tpu.memory_space<vmem>>, vector<1024x2xf32>
    %c0_1 = arith.constant 0 : index
    %c0_2 = arith.constant 0 : index
    %c0_3 = arith.constant 0 : index
    %1 = vector.load %arg2[%c0_1, %c0_2, %c0_3] : memref<7x128x128xbf16, #tpu.memory_space<vmem>>, vector<1x128x128xbf16>
    %2 = vector.shape_cast %1 : vector<1x128x128xbf16> to vector<128x128xbf16>
    %3 = arith.extf %2 : vector<128x128xbf16> to vector<128x128xf32>
    %4 = vector.extract_strided_slice %0 {offsets = [0, 0], sizes = [1024, 1], strides = [1, 1]} : vector<1024x2xf32> to vector<1024x1xf32>
    %5 = vector.extract_strided_slice %3 {offsets = [0, 0], sizes = [1, 128], strides = [1, 1]} : vector<128x128xf32> to vector<1x128xf32>
    %6 = vector.broadcast %4 : vector<1024x1xf32> to vector<1024x128xf32>
    %7 = vector.broadcast %5 : vector<1x128xf32> to vector<1024x128xf32>
    %8 = arith.mulf %6, %7 : vector<1024x128xf32>
    %9 = vector.extract_strided_slice %0 {offsets = [0, 1], sizes = [1024, 1], strides = [1, 1]} : vector<1024x2xf32> to vector<1024x1xf32>
    %10 = vector.extract_strided_slice %3 {offsets = [1, 0], sizes = [1, 128], strides = [1, 1]} : vector<128x128xf32> to vector<1x128xf32>
    %11 = vector.broadcast %9 : vector<1024x1xf32> to vector<1024x128xf32>
    %12 = vector.broadcast %10 : vector<1x128xf32> to vector<1024x128xf32>
    %13 = arith.mulf %11, %12 : vector<1024x128xf32>
    %14 = arith.addf %8, %13 : vector<1024x128xf32>
    %c0_4 = arith.constant 0 : index
    %c0_5 = arith.constant 0 : index
    %c0_6 = arith.constant 0 : index
    %15 = vector.load %arg3[%c0_4, %c0_5, %c0_6] : memref<7x1x128xf32, #tpu.memory_space<vmem>>, vector<1x1x128xf32>
    %16 = vector.shape_cast %15 : vector<1x1x128xf32> to vector<1x128xf32>
    %17 = vector.broadcast %16 : vector<1x128xf32> to vector<1024x128xf32>
    %18 = arith.addf %14, %17 : vector<1024x128xf32>
    %19 = math.tanh %18 : vector<1024x128xf32>
    %20 = arith.truncf %19 : vector<1024x128xf32> to vector<1024x128xbf16>
    %c1 = arith.constant 1 : index
    %c0_7 = arith.constant 0 : index
    %c0_8 = arith.constant 0 : index
    %21 = vector.load %arg2[%c1, %c0_7, %c0_8] : memref<7x128x128xbf16, #tpu.memory_space<vmem>>, vector<1x128x128xbf16>
    %22 = vector.shape_cast %21 : vector<1x128x128xbf16> to vector<128x128xbf16>
    %cst = arith.constant dense<0.000000e+00> : vector<1024x128xf32>
    %23 = tpu.matmul %20, %22, %cst {dimension_numbers = #tpu.dot_dimension_numbers<[1], [0], [0], [1], [0, 0, 1, 1], [], []>} : vector<1024x128xbf16>, vector<128x128xbf16>, vector<1024x128xf32> -> vector<1024x128xf32>
    %c1_9 = arith.constant 1 : index
    %c0_10 = arith.constant 0 : index
    %c0_11 = arith.constant 0 : index
    %24 = vector.load %arg3[%c1_9, %c0_10, %c0_11] : memref<7x1x128xf32, #tpu.memory_space<vmem>>, vector<1x1x128xf32>
    %25 = vector.shape_cast %24 : vector<1x1x128xf32> to vector<1x128xf32>
    %26 = vector.broadcast %25 : vector<1x128xf32> to vector<1024x128xf32>
    %27 = arith.addf %23, %26 : vector<1024x128xf32>
    %28 = math.tanh %27 : vector<1024x128xf32>
    %29 = arith.truncf %28 : vector<1024x128xf32> to vector<1024x128xbf16>
    %c2 = arith.constant 2 : index
    %c0_12 = arith.constant 0 : index
    %c0_13 = arith.constant 0 : index
    %30 = vector.load %arg2[%c2, %c0_12, %c0_13] : memref<7x128x128xbf16, #tpu.memory_space<vmem>>, vector<1x128x128xbf16>
    %31 = vector.shape_cast %30 : vector<1x128x128xbf16> to vector<128x128xbf16>
    %cst_14 = arith.constant dense<0.000000e+00> : vector<1024x128xf32>
    %32 = tpu.matmul %29, %31, %cst_14 {dimension_numbers = #tpu.dot_dimension_numbers<[1], [0], [0], [1], [0, 0, 1, 1], [], []>} : vector<1024x128xbf16>, vector<128x128xbf16>, vector<1024x128xf32> -> vector<1024x128xf32>
    %c2_15 = arith.constant 2 : index
    %c0_16 = arith.constant 0 : index
    %c0_17 = arith.constant 0 : index
    %33 = vector.load %arg3[%c2_15, %c0_16, %c0_17] : memref<7x1x128xf32, #tpu.memory_space<vmem>>, vector<1x1x128xf32>
    %34 = vector.shape_cast %33 : vector<1x1x128xf32> to vector<1x128xf32>
    %35 = vector.broadcast %34 : vector<1x128xf32> to vector<1024x128xf32>
    %36 = arith.addf %32, %35 : vector<1024x128xf32>
    %37 = math.tanh %36 : vector<1024x128xf32>
    %38 = arith.truncf %37 : vector<1024x128xf32> to vector<1024x128xbf16>
    %c3 = arith.constant 3 : index
    %c0_18 = arith.constant 0 : index
    %c0_19 = arith.constant 0 : index
    %39 = vector.load %arg2[%c3, %c0_18, %c0_19] : memref<7x128x128xbf16, #tpu.memory_space<vmem>>, vector<1x128x128xbf16>
    %40 = vector.shape_cast %39 : vector<1x128x128xbf16> to vector<128x128xbf16>
    %cst_20 = arith.constant dense<0.000000e+00> : vector<1024x128xf32>
    %41 = tpu.matmul %38, %40, %cst_20 {dimension_numbers = #tpu.dot_dimension_numbers<[1], [0], [0], [1], [0, 0, 1, 1], [], []>} : vector<1024x128xbf16>, vector<128x128xbf16>, vector<1024x128xf32> -> vector<1024x128xf32>
    %c3_21 = arith.constant 3 : index
    %c0_22 = arith.constant 0 : index
    %c0_23 = arith.constant 0 : index
    %42 = vector.load %arg3[%c3_21, %c0_22, %c0_23] : memref<7x1x128xf32, #tpu.memory_space<vmem>>, vector<1x1x128xf32>
    %43 = vector.shape_cast %42 : vector<1x1x128xf32> to vector<1x128xf32>
    %44 = vector.broadcast %43 : vector<1x128xf32> to vector<1024x128xf32>
    %45 = arith.addf %41, %44 : vector<1024x128xf32>
    %46 = math.tanh %45 : vector<1024x128xf32>
    %47 = arith.truncf %46 : vector<1024x128xf32> to vector<1024x128xbf16>
    %c4 = arith.constant 4 : index
    %c0_24 = arith.constant 0 : index
    %c0_25 = arith.constant 0 : index
    %48 = vector.load %arg2[%c4, %c0_24, %c0_25] : memref<7x128x128xbf16, #tpu.memory_space<vmem>>, vector<1x128x128xbf16>
    %49 = vector.shape_cast %48 : vector<1x128x128xbf16> to vector<128x128xbf16>
    %cst_26 = arith.constant dense<0.000000e+00> : vector<1024x128xf32>
    %50 = tpu.matmul %47, %49, %cst_26 {dimension_numbers = #tpu.dot_dimension_numbers<[1], [0], [0], [1], [0, 0, 1, 1], [], []>} : vector<1024x128xbf16>, vector<128x128xbf16>, vector<1024x128xf32> -> vector<1024x128xf32>
    %c4_27 = arith.constant 4 : index
    %c0_28 = arith.constant 0 : index
    %c0_29 = arith.constant 0 : index
    %51 = vector.load %arg3[%c4_27, %c0_28, %c0_29] : memref<7x1x128xf32, #tpu.memory_space<vmem>>, vector<1x1x128xf32>
    %52 = vector.shape_cast %51 : vector<1x1x128xf32> to vector<1x128xf32>
    %53 = vector.broadcast %52 : vector<1x128xf32> to vector<1024x128xf32>
    %54 = arith.addf %50, %53 : vector<1024x128xf32>
    %55 = math.tanh %54 : vector<1024x128xf32>
    %56 = arith.truncf %55 : vector<1024x128xf32> to vector<1024x128xbf16>
    %c5 = arith.constant 5 : index
    %c0_30 = arith.constant 0 : index
    %c0_31 = arith.constant 0 : index
    %57 = vector.load %arg2[%c5, %c0_30, %c0_31] : memref<7x128x128xbf16, #tpu.memory_space<vmem>>, vector<1x128x128xbf16>
    %58 = vector.shape_cast %57 : vector<1x128x128xbf16> to vector<128x128xbf16>
    %cst_32 = arith.constant dense<0.000000e+00> : vector<1024x128xf32>
    %59 = tpu.matmul %56, %58, %cst_32 {dimension_numbers = #tpu.dot_dimension_numbers<[1], [0], [0], [1], [0, 0, 1, 1], [], []>} : vector<1024x128xbf16>, vector<128x128xbf16>, vector<1024x128xf32> -> vector<1024x128xf32>
    %c5_33 = arith.constant 5 : index
    %c0_34 = arith.constant 0 : index
    %c0_35 = arith.constant 0 : index
    %60 = vector.load %arg3[%c5_33, %c0_34, %c0_35] : memref<7x1x128xf32, #tpu.memory_space<vmem>>, vector<1x1x128xf32>
    %61 = vector.shape_cast %60 : vector<1x1x128xf32> to vector<1x128xf32>
    %62 = vector.broadcast %61 : vector<1x128xf32> to vector<1024x128xf32>
    %63 = arith.addf %59, %62 : vector<1024x128xf32>
    %64 = math.tanh %63 : vector<1024x128xf32>
    %c6 = arith.constant 6 : index
    %c0_36 = arith.constant 0 : index
    %c0_37 = arith.constant 0 : index
    %65 = vector.load %arg2[%c6, %c0_36, %c0_37] : memref<7x128x128xbf16, #tpu.memory_space<vmem>>, vector<1x128x128xbf16>
    %66 = vector.shape_cast %65 : vector<1x128x128xbf16> to vector<128x128xbf16>
    %67 = arith.extf %66 : vector<128x128xbf16> to vector<128x128xf32>
    %68 = vector.extract_strided_slice %67 {offsets = [0, 0], sizes = [1, 128], strides = [1, 1]} : vector<128x128xf32> to vector<1x128xf32>
    %69 = vector.broadcast %68 : vector<1x128xf32> to vector<1024x128xf32>
    %70 = arith.mulf %64, %69 : vector<1024x128xf32>
    %cst_38 = arith.constant dense<0.000000e+00> : vector<1024xf32>
    %71 = vector.multi_reduction <add>, %70, %cst_38 [1] : vector<1024x128xf32> to vector<1024xf32>
    %72 = vector.shape_cast %71 : vector<1024xf32> to vector<1024x1xf32>
    %c6_39 = arith.constant 6 : index
    %c0_40 = arith.constant 0 : index
    %c0_41 = arith.constant 0 : index
    %73 = vector.load %arg3[%c6_39, %c0_40, %c0_41] : memref<7x1x128xf32, #tpu.memory_space<vmem>>, vector<1x1x128xf32>
    %74 = vector.shape_cast %73 : vector<1x1x128xf32> to vector<1x128xf32>
    %75 = vector.extract_strided_slice %74 {offsets = [0, 0], sizes = [1, 1], strides = [1, 1]} : vector<1x128xf32> to vector<1x1xf32>
    %76 = vector.broadcast %75 : vector<1x1xf32> to vector<1024x1xf32>
    %77 = arith.addf %72, %76 : vector<1024x1xf32>
    %c0_42 = arith.constant 0 : index
    %c0_43 = arith.constant 0 : index
    %78 = vector.load %arg4[%c0_42, %c0_43] : memref<1024x1xf32, #tpu.memory_space<vmem>>, vector<1024x1xf32>
    tpu.vector_store %arg4[%c0_42, %c0_43], %77 {strides = array<i32>} : memref<1024x1xf32, #tpu.memory_space<vmem>>, vector<1024x1xf32>,
    return
  }
  func.func @transform_0(%arg0: i32) -> (i32, i32) {
    %c0_i32 = arith.constant 0 : i32
    %c0_i32_0 = arith.constant 0 : i32
    return %arg0, %c0_i32 : i32, i32
  }
  func.func @transform_1(%arg0: i32) -> (i32, i32, i32) {
    %c0_i32 = arith.constant 0 : i32
    %c0_i32_0 = arith.constant 0 : i32
    %c0_i32_1 = arith.constant 0 : i32
    %c0_i32_2 = arith.constant 0 : i32
    return %c0_i32, %c0_i32_0, %c0_i32_1 : i32, i32, i32
  }
  func.func @transform_2(%arg0: i32) -> (i32, i32, i32) {
    %c0_i32 = arith.constant 0 : i32
    %c0_i32_0 = arith.constant 0 : i32
    %c0_i32_1 = arith.constant 0 : i32
    %c0_i32_2 = arith.constant 0 : i32
    return %c0_i32, %c0_i32_0, %c0_i32_1 : i32, i32, i32
  }
  func.func @transform_3(%arg0: i32) -> (i32, i32) {
    %c0_i32 = arith.constant 0 : i32
    %c0_i32_0 = arith.constant 0 : i32
    return %arg0, %c0_i32 : i32, i32
  }
}

</mosaic_0001>

<bundles_post_ra>
// kernel: tpu_custom_call.1
= control target key start
LH: loop header
LB: loop body
LE: loop exit
PB: predicated region body
PF: predicated region fallthrough
CT: control target
= control target key end

     0   :  { %v12951_v0 = vmov 1   ;;  %v12949_v7 = vmov 0   ;;  %vm6529_vm0 = vcmask 7168   ;;  %s12945_s0 = inlined_call_operand.vmem [shape: f32[1024,2], index: 0, kind: input, shape index: {}]   ;;  %s12946_s1 = inlined_call_operand.vmem [shape: bf16[7,128,128], index: 1, kind: input, shape index: {}]   ;;  %s12947_s2 = inlined_call_operand.vmem [shape: f32[7,1,128], index: 2, kind: input, shape index: {}]   ;;  %s12948_s3 = inlined_call_operand.vmem [shape: f32[1024,1], index: 3, kind: output, shape index: {}]  }
   0x1   :  { %7896 = vset.pattern.permute.xlu0 %v12951_v0  ;;  %7894 = vset.pattern.permute.xlu1 %v12951_v0  ;;  %v9654_v1 = vld [vmem:[%s12945_s0 + $0x10] sm:$0xff]  ;;  %v9659_v2 = vld [vmem:[%s12945_s0] sm:$0xff]  ;;  %v9671_v4 = vld [vmem:[%s12945_s0 + $0x8] sm:$0xff] }
   0x2   :  { %926 = vperm.xlu0 %7896, %v9654_v1   ;;  %918 = vperm.xlu1 %7894, %v9659_v2   ;;  %v9666_v3 = vld [vmem:[%s12945_s0 + $0x30] sm:$0xff]  ;;  %v18_v6 = vld [vmem:[%s12945_s0 + $0x18] sm:$0xff]  ;;  %v19_v10 = vld [vmem:[%s12945_s0 + $0x20] sm:$0xff] }
   0x3   :  { %v9678_v5 = vld [vmem:[%s12945_s0 + $0x50] sm:$0xff]  ;;  %v9723_v14 = vld [vmem:[%s12945_s0 + $0x28] sm:$0xff]  ;;  %v22_v16 = vld [vmem:[%s12945_s0 + $0x38] sm:$0xff] }
   0x4   :  { %v9688_v8 = vld [vmem:[%s12945_s0 + $0x70] sm:$0xff]  ;;  %v23_v19 = vld [vmem:[%s12945_s0 + $0x40] sm:$0xff]  ;;  %v9775_v23 = vld [vmem:[%s12945_s0 + $0x48] sm:$0xff] }
   0x5   :  { %v9695_v9 = vld [vmem:[%s12945_s0 + $0x90] sm:$0xff]  ;;  %v26_v25 = vld [vmem:[%s12945_s0 + $0x58] sm:$0xff]  ;;  %v27_v28 = vld [vmem:[%s12945_s0 + $0x60] sm:$0xff] }
   0x6   :  { %942 = vperm.xlu0 %7896, %v9666_v3   ;;  %922 = vperm.xlu1 %7894, %v9671_v4   ;;  %v9704_v11 = vld [vmem:[%s12945_s0 + $0xb0] sm:$0xff]  ;;  %v9827_v32 = vld [vmem:[%s12945_s0 + $0x68] sm:$0xff]  ;;  %v30_v34 = vld [vmem:[%s12945_s0 + $0x78] sm:$0xff] }
   0x7   :  { %v9710_v12 = vld [vmem:[%s12945_s0 + $0xd0] sm:$0xff]  ;;  %v31_v37 = vld [vmem:[%s12945_s0 + $0x80] sm:$0xff]  ;;  %v9871_v41 = vld [vmem:[%s12945_s0 + $0x88] sm:$0xff] }
   0x8   :  { %v9717_v13 = vld [vmem:[%s12945_s0 + $0xf0] sm:$0xff]  ;;  %v34_v43 = vld [vmem:[%s12945_s0 + $0x98] sm:$0xff]  ;;  %v35_v46 = vld [vmem:[%s12945_s0 + $0xa0] sm:$0xff] }
   0x9   :  { %v9728_v15 = vld [vmem:[%s12945_s0 + $0x110] sm:$0xff]  ;;  %v8024_v49 = vld [vmem:[%s12946_s1 + $0x78] sm:$0xff]   ;;  %v9905_v50 = vld [vmem:[%s12945_s0 + $0xa8] sm:$0xff] }
   0xa   :  { %958 = vperm.xlu0 %7896, %v9678_v5   ;;  %7895 = vset.pattern.permute.xlu1 %v12949_v7  ;;  %v9738_v17 = vld [vmem:[%s12945_s0 + $0x130] sm:$0xff]  ;;  %v8026_v54 = vld [vmem:[%s12946_s1 + $0x68] sm:$0xff]   ;;  %v38_v55 = vld [vmem:[%s12945_s0 + $0xb8] sm:$0xff] }
   0xb   :  { %162 = vperm.xlu1 %7895, %v18_v6   ;;  %v9745_v18 = vld [vmem:[%s12945_s0 + $0x150] sm:$0xff]  ;;  %7156 = vmatprep.subr.bf16.mxu0 %v8024_v49  ;;  %v8027_v58 = vld [vmem:[%s12946_s1 + $0x60] sm:$0xff]   ;;  %v8028_v61 = vld [vmem:[%s12946_s1 + $0x58] sm:$0xff]  }
   0xc   :  { %v9755_v20 = vld [vmem:[%s12945_s0 + $0x170] sm:$0xff]  ;;  %7157 = vmatpush3.bf16.msra.mxu0 %v8024_v49  ;;  %7876 = vmatprep.subr.bf16.mxu1 %v8024_v49  ;;  %v39_v63 = vld [vmem:[%s12945_s0 + $0xc0] sm:$0xff] }
   0xd   :  { %v9763_v21 = vld [vmem:[%s12945_s0 + $0x210] sm:$0xff]  ;;  %7884 = vmatpush3.bf16.msra.mxu1 %v8024_v49  ;;  %v47_v49 = vld [vmem:[%s12945_s0 + $0x100] sm:$0xff] }
   0xe   :  { %974 = vperm.xlu0 %7896, %v9688_v8   ;;  %v9770_v22 = vld [vmem:[%s12945_s0 + $0x190] sm:$0xff] }
   0xf   :  { %7897 = vset.pattern.permute.xlu1 %v12951_v0  ;;  %v9782_v24 = vld [vmem:[%s12945_s0 + $0x230] sm:$0xff] }
  0x10   :  { %930 = vperm.xlu1 %7897, %v18_v6   ;;  %v9792_v26 = vld [vmem:[%s12945_s0 + $0x1b0] sm:$0xff]  ;;  %v8030_v6 = vld [vmem:[%s12946_s1 + $0x48] sm:$0xff]  }
  0x11   :  { %v9799_v27 = vld [vmem:[%s12945_s0 + $0x250] sm:$0xff] }
  0x12   :  { %990 = vperm.xlu0 %7896, %v9695_v9   ;;  %v9808_v29 = vld [vmem:[%s12945_s0 + $0x1d0] sm:$0xff] }
  0x13   :  { %v9815_v30 = vld [vmem:[%s12945_s0 + $0x270] sm:$0xff] }
  0x14   :  { %7898 = vset.pattern.permute.xlu1 %v12949_v7  ;;  %v9822_v31 = vld [vmem:[%s12945_s0 + $0x1f0] sm:$0xff] }
  0x15   :  { %167 = vperm.xlu1 %7898, %v19_v10   ;;  %v9834_v33 = vld [vmem:[%s12945_s0 + $0x290] sm:$0xff] }
  0x16   :  { %1006 = vperm.xlu0 %7896, %v9704_v11   ;;  %v9844_v35 = vld [vmem:[%s12945_s0 + $0x2b0] sm:$0xff] }
  0x17   :  { %v9851_v36 = vld [vmem:[%s12945_s0 + $0x2d0] sm:$0xff] }
  0x18   :  { %v109_v38 = vld [vmem:[%s12945_s0 + $0x2f0] sm:$0xff] }
  0x19   :  { %7899 = vset.pattern.permute.xlu1 %v12951_v0  ;;  %v113_v39 = vld [vmem:[%s12945_s0 + $0x310] sm:$0xff] }
  0x1a   :  { %1022 = vperm.xlu0 %7896, %v9710_v12   ;;  %934 = vperm.xlu1 %7899, %v19_v10   ;;  %v117_v40 = vld [vmem:[%s12945_s0 + $0x330] sm:$0xff] }
  0x1b   :  { %v121_v42 = vld [vmem:[%s12945_s0 + $0x350] sm:$0xff] }
  0x1c   :  { %v125_v44 = vld [vmem:[%s12945_s0 + $0x370] sm:$0xff] }
  0x1d   :  { %v129_v45 = vld [vmem:[%s12945_s0 + $0x390] sm:$0xff] }
  0x1e   :  { %1038 = vperm.xlu0 %7896, %v9717_v13   ;;  %938 = vperm.xlu1 %7899, %v9723_v14   ;;  %v133_v47 = vld [vmem:[%s12945_s0 + $0x3b0] sm:$0xff] }
  0x1f   :  { %v137_v48 = vld [vmem:[%s12945_s0 + $0x3d0] sm:$0xff] }
  0x20   :  { %v8025_v51 = vld [vmem:[%s12946_s1 + $0x70] sm:$0xff]  }
  0x21   :  { %7158 = vmatprep.subr.bf16.mxu0 %v8025_v51  ;;  %7877 = vmatprep.subr.bf16.mxu1 %v8025_v51 }
  0x22   :  { %1054 = vperm.xlu0 %7896, %v9728_v15   ;;  %7900 = vset.pattern.permute.xlu1 %v12949_v7 }
  0x23   :  { %182 = vperm.xlu1 %7900, %v22_v16   ;;  %7159 = vmatpush3.bf16.msra.mxu0 %v8025_v51 }
  0x24   :  { %7885 = vmatpush3.bf16.msra.mxu1 %v8025_v51  ;;  %7160 = vmatprep.subr.bf16.mxu0 %v8026_v54 }
  0x25   :  { %7878 = vmatprep.subr.bf16.mxu1 %v8026_v54 }
  0x26   :  { %1070 = vperm.xlu0 %7896, %v9738_v17  }
  0x27   :  { %7901 = vset.pattern.permute.xlu1 %v12951_v0  ;;  %7161 = vmatpush3.bf16.msra.mxu0 %v8026_v54 }
  0x28   :  { %946 = vperm.xlu1 %7901, %v22_v16   ;;  %7886 = vmatpush3.bf16.msra.mxu1 %v8026_v54  ;;  %v8031_v16 = vld [vmem:[%s12946_s1 + $0x40] sm:$0xff]   ;;  %v48_v54 = vld [vmem:[%s12945_s0 + $0x108] sm:$0xff] }
  0x29   :  { %7162 = vmatprep.subr.bf16.mxu0 %v8027_v58  ;;  %7879 = vmatprep.subr.bf16.mxu1 %v8027_v58 }
  0x2a   :  { %1086 = vperm.xlu0 %7896, %v9745_v18  }
  0x2b   :  { %7163 = vmatpush3.bf16.msra.mxu0 %v8027_v58 }
  0x2c   :  { %7902 = vset.pattern.permute.xlu1 %v12949_v7  ;;  %7164 = vmatprep.subr.bf16.mxu0 %v8028_v61 }
  0x2d   :  { %187 = vperm.xlu1 %7902, %v23_v19   ;;  %7887 = vmatpush3.bf16.msra.mxu1 %v8027_v58 }
  0x2e   :  { %1102 = vperm.xlu0 %7896, %v9755_v20   ;;  %7880 = vmatprep.subr.bf16.mxu1 %v8028_v61 }
  0x2f   :  { %7165 = vmatpush3.bf16.msra.mxu0 %v8028_v61 }
  0x31   :  { %7903 = vset.pattern.permute.xlu1 %v12951_v0  ;;  %7888 = vmatpush3.bf16.msra.mxu1 %v8028_v61 }
  0x32   :  { %1182 = vperm.xlu0 %7896, %v9763_v21   ;;  %950 = vperm.xlu1 %7903, %v23_v19  }
  0x36   :  { %1118 = vperm.xlu0 %7896, %v9770_v22   ;;  %954 = vperm.xlu1 %7903, %v9775_v23  }
  0x3a   :  { %1198 = vperm.xlu0 %7896, %v9782_v24   ;;  %7904 = vset.pattern.permute.xlu1 %v12949_v7 }
  0x3b   :  { %202 = vperm.xlu1 %7904, %v26_v25  }
  0x3e   :  { %1134 = vperm.xlu0 %7896, %v9792_v26  }
  0x3f   :  { %7905 = vset.pattern.permute.xlu1 %v12951_v0 }
  0x40   :  { %962 = vperm.xlu1 %7905, %v26_v25  }
  0x42   :  { %1214 = vperm.xlu0 %7896, %v9799_v27  }
  0x44   :  { %7906 = vset.pattern.permute.xlu1 %v12949_v7 }
  0x45   :  { %207 = vperm.xlu1 %7906, %v27_v28  }
  0x46   :  { %1150 = vperm.xlu0 %7896, %v9808_v29  }
  0x49   :  { %7907 = vset.pattern.permute.xlu1 %v12951_v0 }
  0x4a   :  { %1230 = vperm.xlu0 %7896, %v9815_v30   ;;  %966 = vperm.xlu1 %7907, %v27_v28  }
  0x4e   :  { %1166 = vperm.xlu0 %7896, %v9822_v31   ;;  %970 = vperm.xlu1 %7907, %v9827_v32  }
  0x52   :  { %1246 = vperm.xlu0 %7896, %v9834_v33   ;;  %7908 = vset.pattern.permute.xlu1 %v12949_v7 }
  0x53   :  { %222 = vperm.xlu1 %7908, %v30_v34  }
  0x56   :  { %1262 = vperm.xlu0 %7896, %v9844_v35  }
  0x57   :  { %7909 = vset.pattern.permute.xlu1 %v12951_v0 }
  0x58   :  { %978 = vperm.xlu1 %7909, %v30_v34  }
  0x5a   :  { %1278 = vperm.xlu0 %7896, %v9851_v36  }
  0x5c   :  { %7910 = vset.pattern.permute.xlu1 %v12949_v7 }
  0x5d   :  { %227 = vperm.xlu1 %7910, %v31_v37  }
  0x5e   :  { %1294 = vperm.xlu0 %7896, %v109_v38  }
  0x61   :  { %7911 = vset.pattern.permute.xlu1 %v12951_v0 }
  0x62   :  { %1310 = vperm.xlu0 %7896, %v113_v39   ;;  %982 = vperm.xlu1 %7911, %v31_v37   ;;  %v43_v39 = vld [vmem:[%s12945_s0 + $0xe0] sm:$0xff] }
  0x66   :  { %1326 = vperm.xlu0 %7896, %v117_v40   ;;  %986 = vperm.xlu1 %7911, %v9871_v41  }
  0x6a   :  { %1342 = vperm.xlu0 %7896, %v121_v42   ;;  %7912 = vset.pattern.permute.xlu1 %v12949_v7 }
  0x6b   :  { %242 = vperm.xlu1 %7912, %v34_v43  }
  0x6e   :  { %1358 = vperm.xlu0 %7896, %v125_v44  }
  0x6f   :  { %7913 = vset.pattern.permute.xlu1 %v12951_v0 }
  0x70   :  { %994 = vperm.xlu1 %7913, %v34_v43  }
  0x72   :  { %1374 = vperm.xlu0 %7896, %v129_v45  }
  0x74   :  { %7914 = vset.pattern.permute.xlu1 %v12949_v7 }
  0x75   :  { %247 = vperm.xlu1 %7914, %v35_v46  }
  0x76   :  { %1390 = vperm.xlu0 %7896, %v133_v47  }
  0x79   :  { %7915 = vset.pattern.permute.xlu1 %v12951_v0 }
  0x7a   :  { %1406 = vperm.xlu0 %7896, %v137_v48   ;;  %998 = vperm.xlu1 %7915, %v35_v46  }
  0x7d   :  { %v9910_v52 = vpop.permute.xlu1 %918  ;;  %v9912_v53 = vpop.permute.xlu0 %926 }
  0x7e   :  { %8017 = vset.pattern.permute.xlu0 %v12949_v7  ;;  %1002 = vperm.xlu1 %7915, %v9905_v50  }
  0x7f   :  { %147 = vperm.xlu0 %8017, %v9659_v2   ;;  %v8029_v2 = vld [vmem:[%s12946_s1 + $0x50] sm:$0xff]  }
  0x80   :  { %7166 = vmatprep.subr.bf16.mxu0 %v8029_v2  ;;  %7881 = vmatprep.subr.bf16.mxu1 %v8029_v2 }
  0x81   :  { %v9923_v56 = vpop.permute.xlu1 %922  ;;  %v9925_v57 = vpop.permute.xlu0 %942  ;;  %7167 = vmatpush3.bf16.msra.mxu0 %v8029_v2  ;;  %7889 = vmatpush3.bf16.msra.mxu1 %v8029_v2 }
  0x82   :  { %7916 = vset.pattern.permute.xlu1 %v12949_v7  ;;  %7168 = vmatprep.subr.bf16.mxu0 %v8030_v6 }
  0x83   :  { %152 = vperm.xlu0 %8017, %v9671_v4   ;;  %262 = vperm.xlu1 %7916, %v38_v55  }
  0x84   :  { %7882 = vmatprep.subr.bf16.mxu1 %v8030_v6 }
  0x85   :  { %v9932_v59 = vpop.permute.xlu0 %958  ;;  %7169 = vmatpush3.bf16.msra.mxu0 %v8030_v6  ;;  %7890 = vmatpush3.bf16.msra.mxu1 %v8030_v6 }
  0x86   :  { %v9934_v60 = vpop.permute.xlu1 %162  ;;  %7170 = vmatprep.subr.bf16.mxu0 %v8031_v16  ;;  %7883 = vmatprep.subr.bf16.mxu1 %v8031_v16 }
  0x87   :  { %157 = vperm.xlu0 %8017, %v9654_v1   ;;  %7917 = vset.pattern.permute.xlu1 %v12951_v0 }
  0x88   :  { %1010 = vperm.xlu1 %7917, %v38_v55  }
  0x89   :  { %v9941_v62 = vpop.permute.xlu0 %974  ;;  %7171 = vmatpush3.bf16.msra.mxu0 %v8031_v16  ;;  %7891 = vmatpush3.bf16.msra.mxu1 %v8031_v16 }
  0x8b   :  { %172 = vperm.xlu0 %8017, %v9723_v14   ;;  %v9947_v1 = vpop.permute.xlu1 %930 }
  0x8c   :  { %7918 = vset.pattern.permute.xlu1 %v12949_v7 }
  0x8d   :  { %267 = vperm.xlu1 %7918, %v39_v63   ;;  %v9953_v4 = vpop.permute.xlu0 %990 }
  0x8f   :  { %177 = vperm.xlu0 %8017, %v9666_v3   ;;  %v40_v3 = vld [vmem:[%s12945_s0 + $0xc8] sm:$0xff] }
  0x90   :  { %v9959_v10 = vpop.permute.xlu1 %167 }
  0x91   :  { %7919 = vset.pattern.permute.xlu1 %v12951_v0  ;;  %v9962_v14 = vpop.permute.xlu0 %1006 }
  0x92   :  { %1014 = vperm.xlu1 %7919, %v39_v63   ;;  %v50_v63 = vld [vmem:[%s12945_s0 + $0x118] sm:$0xff] }
  0x93   :  { %192 = vperm.xlu0 %8017, %v9775_v23   ;;  %v42_v23 = vld [vmem:[%s12945_s0 + $0xd8] sm:$0xff] }
  0x95   :  { %v9971_v19 = vpop.permute.xlu1 %934  ;;  %v9973_v25 = vpop.permute.xlu0 %1022 }
  0x96   :  { %1018 = vperm.xlu1 %7919, %v40_v3  }
  0x97   :  { %197 = vperm.xlu0 %8017, %v9678_v5  }
  0x99   :  { %v9979_v28 = vpop.permute.xlu1 %938  ;;  %v9981_v34 = vpop.permute.xlu0 %1038 }
  0x9a   :  { %7920 = vset.pattern.permute.xlu1 %v12949_v7 }
  0x9b   :  { %212 = vperm.xlu0 %8017, %v9827_v32   ;;  %282 = vperm.xlu1 %7920, %v42_v23  }
  0x9d   :  { %v9985_v37 = vpop.permute.xlu0 %1054 }
  0x9e   :  { %v9987_v38 = vpop.permute.xlu1 %182 }
  0x9f   :  { %217 = vperm.xlu0 %8017, %v9688_v8   ;;  %7921 = vset.pattern.permute.xlu1 %v12951_v0 }
  0xa0   :  { %1026 = vperm.xlu1 %7921, %v42_v23  }
  0xa1   :  { %v9991_v5 = vpop.permute.xlu0 %1070 }
  0xa2   :  { %12957 = vst [vmem:[#allocation2_spill] sm:$0xff] %v9991_v5 }
  0xa3   :  { %232 = vperm.xlu0 %8017, %v9871_v41   ;;  %v9997_v40 = vpop.permute.xlu1 %946  ;;  %v44_v41 = vld [vmem:[%s12945_s0 + $0xe8] sm:$0xff] }
  0xa4   :  { %7922 = vset.pattern.permute.xlu1 %v12949_v7 }
  0xa5   :  { %287 = vperm.xlu1 %7922, %v43_v39   ;;  %v10000_v32 = vpop.permute.xlu0 %1086 }
  0xa6   :  { %12958 = vst [vmem:[#allocation3_spill] sm:$0xff] %v10000_v32  ;;  %v10192_v32 = vld [vmem:[%s12947_s2] ss:$0 sm:$0xff] }
  0xa7   :  { %237 = vperm.xlu0 %8017, %v9695_v9   ;;  %v46_v9 = vld [vmem:[%s12945_s0 + $0xf8] sm:$0xff] }
  0xa8   :  { %v10003_v8 = vpop.permute.xlu1 %187 }
  0xa9   :  { %7923 = vset.pattern.permute.xlu1 %v12951_v0  ;;  %v10006_v42 = vpop.permute.xlu0 %1102 }
  0xaa   :  { %12959 = vst [vmem:[#allocation4_spill] sm:$0xff] %v10006_v42  ;;  %1030 = vperm.xlu1 %7923, %v43_v39   ;;  %v51_v39 = vld [vmem:[%s12945_s0 + $0x120] sm:$0xff] }
  0xab   :  { %252 = vperm.xlu0 %8017, %v9905_v50  }
  0xad   :  { %v10012_v43 = vpop.permute.xlu1 %950  ;;  %v10014_v44 = vpop.permute.xlu0 %1182 }
  0xae   :  { %12960 = vst [vmem:[#allocation5_spill] sm:$0xff] %v10014_v44  ;;  %1034 = vperm.xlu1 %7923, %v44_v41  }
  0xaf   :  { %257 = vperm.xlu0 %8017, %v9704_v11  }
  0xb1   :  { %v10020_v45 = vpop.permute.xlu1 %954  ;;  %v10022_v46 = vpop.permute.xlu0 %1118 }
  0xb2   :  { %12961 = vst [vmem:[#allocation6_spill] sm:$0xff] %v10022_v46  ;;  %7924 = vset.pattern.permute.xlu1 %v12949_v7 }
  0xb3   :  { %272 = vperm.xlu0 %8017, %v40_v3   ;;  %302 = vperm.xlu1 %7924, %v46_v9  }
  0xb5   :  { %v10025_v47 = vpop.permute.xlu0 %1198 }
  0xb6   :  { %12962 = vst [vmem:[#allocation7_spill] sm:$0xff] %v10025_v47  ;;  %v10027_v48 = vpop.permute.xlu1 %202 }
  0xb7   :  { %277 = vperm.xlu0 %8017, %v9710_v12   ;;  %7925 = vset.pattern.permute.xlu1 %v12951_v0 }
  0xb8   :  { %1042 = vperm.xlu1 %7925, %v46_v9  }
  0xb9   :  { %v10031_v11 = vpop.permute.xlu0 %1134 }
  0xba   :  { %12963 = vst [vmem:[#allocation8_spill] sm:$0xff] %v10031_v11 }
  0xbb   :  { %292 = vperm.xlu0 %8017, %v44_v41   ;;  %v10036_v50 = vpop.permute.xlu1 %962 }
  0xbc   :  { %7926 = vset.pattern.permute.xlu1 %v12949_v7 }
  0xbd   :  { %307 = vperm.xlu1 %7926, %v47_v49   ;;  %v10039_v51 = vpop.permute.xlu0 %1214 }
  0xbe   :  { %12964 = vst [vmem:[#allocation9_spill] sm:$0xff] %v10039_v51 }
  0xbf   :  { %297 = vperm.xlu0 %8017, %v9717_v13   ;;  %v52_v13 = vld [vmem:[%s12945_s0 + $0x128] sm:$0xff] }
  0xc0   :  { %v10042_v12 = vpop.permute.xlu1 %207 }
  0xc1   :  { %7927 = vset.pattern.permute.xlu1 %v12951_v0  ;;  %v10048_v55 = vpop.permute.xlu0 %1150 }
  0xc2   :  { %12965 = vst [vmem:[#allocation10_spill] sm:$0xff] %v10048_v55  ;;  %1046 = vperm.xlu1 %7927, %v47_v49   ;;  %v10091_v49 = vld [vmem:[%s12945_s0 + $0x168] sm:$0xff] }
  0xc3   :  { %312 = vperm.xlu0 %8017, %v48_v54   ;;  %v10149_v55 = vld [vmem:[%s12945_s0 + $0x228] sm:$0xff] }
  0xc4   :  { %12980 = vst [vmem:[#allocation23_spill] sm:$0xff] %v10149_v55 }
  0xc5   :  { %v10050_v58 = vpop.permute.xlu1 %966  ;;  %v10052_v61 = vpop.permute.xlu0 %1230 }
  0xc6   :  { %12966 = vst [vmem:[#allocation11_spill] sm:$0xff] %v10052_v61  ;;  %1050 = vperm.xlu1 %7927, %v48_v54  }
  0xc7   :  { %317 = vperm.xlu0 %8017, %v9728_v15   ;;  %v56_v15 = vld [vmem:[%s12945_s0 + $0x148] sm:$0xff] }
  0xc9   :  { %v10061_v2 = vpop.permute.xlu1 %970  ;;  %v10063_v6 = vpop.permute.xlu0 %1166 }
  0xca   :  { %12967 = vst [vmem:[#allocation12_spill] sm:$0xff] %v10063_v6  ;;  %7928 = vset.pattern.permute.xlu1 %v12949_v7  ;;  %v785_v6 = vlaneseq }
  0xcb   :  { %332 = vperm.xlu0 %8017, %v52_v13   ;;  %322 = vperm.xlu1 %7928, %v50_v63  }
  0xcd   :  { %v10066_v3 = vpop.permute.xlu0 %1246 }
  0xce   :  { %12968 = vst [vmem:[#allocation13_spill] sm:$0xff] %v10066_v3  ;;  %v10068_v16 = vpop.permute.xlu1 %222  ;;  %v55_v3 = vld [vmem:[%s12945_s0 + $0x140] sm:$0xff] }
  0xcf   :  { %337 = vperm.xlu0 %8017, %v9738_v17   ;;  %7929 = vset.pattern.permute.xlu1 %v12951_v0 }
  0xd0   :  { %1058 = vperm.xlu1 %7929, %v50_v63  }
  0xd1   :  { %v10075_v23 = vpop.permute.xlu0 %1262 }
  0xd2   :  { %12969 = vst [vmem:[#allocation14_spill] sm:$0xff] %v10075_v23  ;;  %v10125_v23 = vld [vmem:[%s12945_s0 + $0x188] sm:$0xff] }
  0xd3   :  { %352 = vperm.xlu0 %8017, %v56_v15   ;;  %v10080_v41 = vpop.permute.xlu1 %978 }
  0xd4   :  { %7930 = vset.pattern.permute.xlu1 %v12949_v7 }
  0xd5   :  { %327 = vperm.xlu1 %7930, %v51_v39   ;;  %v10083_v17 = vpop.permute.xlu0 %1278 }
  0xd6   :  { %12970 = vst [vmem:[#allocation15_spill] sm:$0xff] %v10083_v17  ;;  %v12974_v17 = vmov 0  }
  0xd7   :  { %357 = vperm.xlu0 %8017, %v9745_v18   ;;  %v10105_v18 = vld [vmem:[%s12945_s0 + $0x208] sm:$0xff] }
  0xd8   :  { %v10086_v9 = vpop.permute.xlu1 %227 }
  0xd9   :  { %7931 = vset.pattern.permute.xlu1 %v12951_v0  ;;  %v10094_v54 = vpop.permute.xlu0 %1294  ;;  %v54_v0 = vld [vmem:[%s12945_s0 + $0x138] sm:$0xff] }
  0xda   :  { %12971 = vst [vmem:[#allocation16_spill] sm:$0xff] %v10094_v54  ;;  %1062 = vperm.xlu1 %7931, %v51_v39  }
  0xdb   :  { %372 = vperm.xlu0 %8017, %v10091_v49  }
  0xdd   :  { %v10097_v63 = vpop.permute.xlu1 %982  ;;  %v10099_v7 = vpop.permute.xlu0 %1310 }
  0xde   :  { %12972 = vst [vmem:[#allocation17_spill] sm:$0xff] %v10099_v7  ;;  %1066 = vperm.xlu1 %7931, %v52_v13   ;;  %v12976_v7 = vmov 1  }
  0xdf   :  { %377 = vperm.xlu0 %8017, %v9755_v20  }
  0xe1   :  { %v10110_v54 = vpop.permute.xlu1 %986  ;;  %v10112_v39 = vpop.permute.xlu0 %1326 }
  0xe2   :  { %12973 = vst [vmem:[#allocation18_spill] sm:$0xff] %v10112_v39  ;;  %7932 = vset.pattern.permute.xlu1 %v12974_v17 }
  0xe3   :  { %472 = vperm.xlu0 %8017, %v10105_v18   ;;  %342 = vperm.xlu1 %7932, %v54_v0  }
  0xe5   :  { %v10116_v13 = vpop.permute.xlu0 %1342 }
  0xe6   :  { %12975 = vst [vmem:[#allocation19_spill] sm:$0xff] %v10116_v13  ;;  %v10118_v20 = vpop.permute.xlu1 %242 }
  0xe7   :  { %477 = vperm.xlu0 %8017, %v9763_v21   ;;  %7933 = vset.pattern.permute.xlu1 %v12976_v7  ;;  %v10138_v21 = vshrl.u32 %v785_v6, 7 }
  0xe8   :  { %1074 = vperm.xlu1 %7933, %v54_v0  }
  0xe9   :  { %v10127_v39 = vpop.permute.xlu0 %1358  ;;  %12979 = vst [vmem:[#allocation22_spill] sm:$0xff] %v10138_v21 }
  0xea   :  { %12977 = vst [vmem:[#allocation20_spill] sm:$0xff] %v10127_v39  ;;  %v143_v39 = vld [vmem:[%s12946_s1] sm:$0xf] }
  0xeb   :  { %392 = vperm.xlu0 %8017, %v10125_v23   ;;  %v10133_v13 = vpop.permute.xlu1 %994  ;;  %v144_v6 = vunpack.c.l.bf16 %v143_v39  ;;  %v58_v39 = vld [vmem:[%s12945_s0 + $0x158] sm:$0xff] }
  0xec   :  { %7934 = vset.pattern.permute.xlu1 %v12974_v17 }
  0xed   :  { %347 = vperm.xlu1 %7934, %v55_v3   ;;  %v10136_v0 = vpop.permute.xlu0 %1374 }
  0xee   :  { %12978 = vst [vmem:[#allocation21_spill] sm:$0xff] %v10136_v0  ;;  %v1431_v0 = vsub.s32 1, %v10138_v21 }
  0xef   :  { %397 = vperm.xlu0 %8017, %v9770_v22   ;;  %v12954_v22 = vsub.s32 0, %v10138_v21 }
  0xf0   :  { %v10144_v61 = vpop.permute.xlu1 %247  ;;  %v10161_v46 = vrot.slane %v144_v6, %v1431_v0 }
  0xf1   :  { %7935 = vset.pattern.permute.xlu1 %v12976_v7  ;;  %v10152_v51 = vpop.permute.xlu0 %1390 }
  0xf2   :  { %12981 = vst [vmem:[#allocation24_spill] sm:$0xff] %v10152_v51  ;;  %1078 = vperm.xlu1 %7935, %v55_v3   ;;  %v10167_v3 = vld [vmem:[%s12945_s0 + $0x1a8] sm:$0xff]  ;;  %v10174_v51 = vrot.slane %v144_v6, %v12954_v22  ;;  %v1436_v42 = vmul.f32 %v10161_v46, %v9947_v1  ;;  %v1434_v22 = vmul.f32 %v10161_v46, %v9923_v56 }
  0xf3   :  { %492 = vperm.xlu0 %8017, %v10149_v55   ;;  %12983 = vst [vmem:[#allocation26_spill] sm:$0xff] %v10167_v3  ;;  %v10205_v56 = vld [vmem:[%s12945_s0 + $0x248] sm:$0xff] }
  0xf4   :  { %v792_v1 = vmul.f32 %v10174_v51, %v9934_v60 }
  0xf5   :  { %v10157_v11 = vpop.permute.xlu1 %998  ;;  %v10159_v47 = vpop.permute.xlu0 %1406 }
  0xf6   :  { %12982 = vst [vmem:[#allocation25_spill] sm:$0xff] %v10159_v47  ;;  %1082 = vperm.xlu1 %7935, %v56_v15  }
  0xf7   :  { %497 = vperm.xlu0 %8017, %v9782_v24   ;;  %v1433_v24 = vmul.f32 %v10161_v46, %v9910_v52 }
  0xf9   :  { %v10176_v44 = vpop.permute.xlu1 %1002 }
  0xfa   :  { %v148_v15 = vpop.permute.xlu0 %147  ;;  %7936 = vset.pattern.permute.xlu1 %v12974_v17 }
  0xfb   :  { %v789_v0 = vmul.f32 %v10174_v51, %v148_v15  ;;  %412 = vperm.xlu0 %8017, %v10167_v3   ;;  %362 = vperm.xlu1 %7936, %v58_v39   ;;  %v1437_v15 = vmul.f32 %v10161_v46, %v9971_v19  ;;  %v793_v3 = vmul.f32 %v10174_v51, %v9959_v10  ;;  %v59_v19 = vld [vmem:[%s12945_s0 + $0x160] sm:$0xff] }
  0xfd   :  { %v1561_v47 = vadd.f32 %v1433_v24, %v789_v0  ;;  %v1564_v0 = vadd.f32 %v1436_v42, %v792_v1  ;;  %v1565_v55 = vadd.f32 %v1437_v15, %v793_v3  ;;  %v1438_v1 = vmul.f32 %v10161_v46, %v9979_v28 }
  0xfe   :  { %v153_v21 = vpop.permute.xlu0 %152  ;;  %v10185_v6 = vpop.permute.xlu1 %262  ;;  %v1439_v28 = vmul.f32 %v10161_v46, %v9925_v57 }
  0xff   :  { %v790_v52 = vmul.f32 %v10174_v51, %v153_v21  ;;  %417 = vperm.xlu0 %8017, %v9792_v26   ;;  %7937 = vset.pattern.permute.xlu1 %v12976_v7  ;;  %v1696_v24 = vadd.f32 %v10192_v32, %v1561_v47  ;;  %v1435_v21 = vmul.f32 %v10161_v46, %v9912_v53 }
 0x100   :  { %1090 = vperm.xlu1 %7937, %v58_v39   ;;  %v1440_v53 = vmul.f32 %v10161_v46, %v9997_v40  ;;  %v1699_v42 = vadd.f32 %v10192_v32, %v1564_v0  ;;  %v1700_v40 = vadd.f32 %v10192_v32, %v1565_v55 }
 0x101   :  { %v1562_v26 = vadd.f32 %v1434_v22, %v790_v52  ;;  %8064 = vtanh.f32 %v1696_v24  ;;  %v796_v22 = vmul.f32 %v10174_v51, %v9987_v38  ;;  %v10238_v38 = vld [vmem:[%s12945_s0 + $0x1c8] sm:$0xff] }
 0x102   :  { %v158_v60 = vpop.permute.xlu0 %157 }
 0x103   :  { %v1697_v47 = vadd.f32 %v10192_v32, %v1562_v26  ;;  %v791_v39 = vmul.f32 %v10174_v51, %v158_v60  ;;  %512 = vperm.xlu0 %8017, %v10205_v56   ;;  %v10217_v5 = vpop.permute.xlu1 %1010  ;;  %v1568_v24 = vadd.f32 %v1440_v53, %v796_v22  ;;  %v800_v53 = vmul.f32 %v10174_v51, %v10027_v48 }
 0x104   :  { %7938 = vset.pattern.permute.xlu1 %v12974_v17 }
 0x105   :  { %8066 = vtanh.f32 %v1697_v47  ;;  %v1563_v10 = vadd.f32 %v1435_v21, %v791_v39  ;;  %367 = vperm.xlu1 %7938, %v59_v19   ;;  %v1441_v21 = vmul.f32 %v10161_v46, %v10012_v43  ;;  %v1444_v43 = vmul.f32 %v10161_v46, %v10036_v50 }
 0x106   :  { %v173_v52 = vpop.permute.xlu0 %172  ;;  %v1703_v57 = vadd.f32 %v10192_v32, %v1568_v24 }
 0x107   :  { %v1698_v3 = vadd.f32 %v10192_v32, %v1563_v10  ;;  %v794_v15 = vmul.f32 %v10174_v51, %v173_v52  ;;  %517 = vperm.xlu0 %8017, %v9799_v27   ;;  %v797_v27 = vmul.f32 %v10174_v51, %v10003_v8  ;;  %v1572_v50 = vadd.f32 %v1444_v43, %v800_v53 }
 0x108   :  { %v10233_v26 = vpop.permute.xlu1 %267  ;;  %v1446_v53 = vmul.f32 %v10161_v46, %v10061_v2  ;;  %v10301_v2 = vld [vmem:[%s12945_s0 + $0x1e8] sm:$0xff] }
 0x109   :  { %8068 = vtanh.f32 %v1698_v3  ;;  %v1566_v0 = vadd.f32 %v1438_v1, %v794_v15  ;;  %7939 = vset.pattern.permute.xlu1 %v12976_v7  ;;  %v1569_v39 = vadd.f32 %v1441_v21, %v797_v27  ;;  %v1445_v1 = vmul.f32 %v10161_v46, %v10050_v58  ;;  %v10267_v3 = vld [vmem:[%s12945_s0 + $0x268] sm:$0xff] }
 0x10a   :  { %8070 = vtanh.f32 %v1699_v42  ;;  %v178_v55 = vpop.permute.xlu0 %177  ;;  %1094 = vperm.xlu1 %7939, %v59_v19   ;;  %v1442_v19 = vmul.f32 %v10161_v46, %v10020_v45  ;;  %v62_v45 = vld [vmem:[%s12945_s0 + $0x178] sm:$0xff]  ;;  %v1443_v15 = vmul.f32 %v10161_v46, %v9932_v59  ;;  %v1707_v58 = vadd.f32 %v10192_v32, %v1572_v50 }
 0x10b   :  { %v1701_v60 = vadd.f32 %v10192_v32, %v1566_v0  ;;  %v795_v47 = vmul.f32 %v10174_v51, %v178_v55  ;;  %432 = vperm.xlu0 %8017, %v10238_v38   ;;  %8072 = vtanh.f32 %v1700_v40  ;;  %v1704_v48 = vadd.f32 %v10192_v32, %v1569_v39 }
 0x10c   :  { %v801_v21 = vmul.f32 %v10174_v51, %v10042_v12  ;;  %v1448_v12 = vmul.f32 %v10161_v46, %v10080_v41  ;;  %v804_v41 = vmul.f32 %v10174_v51, %v10068_v16  ;;  %v805_v16 = vmul.f32 %v10174_v51, %v10086_v9 }
 0x10d   :  { %8074 = vtanh.f32 %v1701_v60  ;;  %v1567_v8 = vadd.f32 %v1439_v28, %v795_v47  ;;  %v10253_v10 = vpop.permute.xlu1 %1014  ;;  %v1452_v9 = vmul.f32 %v10161_v46, %v10133_v13 }
 0x10e   :  { %v193_v42 = vpop.permute.xlu0 %192  ;;  %1098 = vperm.xlu1 %7939, %v10091_v49   ;;  %8076 = vtanh.f32 %v1703_v57  ;;  %v8065_v49 = vpop.eup %8064  ;;  %v1573_v43 = vadd.f32 %v1445_v1, %v801_v21 }
 0x10f   :  { %v1702_v22 = vadd.f32 %v10192_v32, %v1567_v8  ;;  %v798_v52 = vmul.f32 %v10174_v51, %v193_v42  ;;  %437 = vperm.xlu0 %8017, %v9808_v29  }
 0x110   :  { %v1708_v42 = vadd.f32 %v10192_v32, %v1573_v43 }
 0x111   :  { %8078 = vtanh.f32 %v1702_v22  ;;  %v1570_v29 = vadd.f32 %v1442_v19, %v798_v52  ;;  %v10274_v40 = vpop.permute.xlu1 %1018  ;;  %v1449_v19 = vmul.f32 %v10161_v46, %v10097_v63 }
 0x112   :  { %v8067_v24 = vpop.eup %8066  ;;  %v198_v28 = vpop.permute.xlu0 %197  ;;  %7940 = vset.pattern.permute.xlu1 %v12974_v17  ;;  %8080 = vtanh.f32 %v1704_v48 }
 0x113   :  { %v1705_v0 = vadd.f32 %v10192_v32, %v1570_v29  ;;  %v799_v27 = vmul.f32 %v10174_v51, %v198_v28  ;;  %532 = vperm.xlu0 %8017, %v10267_v3   ;;  %382 = vperm.xlu1 %7940, %v62_v45   ;;  %v1952_v59 = vpack.c.bf16 %v8067_v24, %v8065_v49 }
 0x114   :  { %v1576_v49 = vadd.f32 %v1448_v12, %v804_v41  ;;  %v1456_v41 = vmul.f32 %v10161_v46, %v10217_v5 }
 0x115   :  { %8082 = vtanh.f32 %v1705_v0  ;;  %v1571_v55 = vadd.f32 %v1443_v15, %v799_v27  ;;  %7172 = vmatprep.mubr.bf16.mxu0 %v1952_v59  ;;  %v808_v59 = vmul.f32 %v10174_v51, %v10118_v20  ;;  %v10334_v20 = vld [vmem:[%s12945_s0 + $0x288] sm:$0xff] }
 0x116   :  { %v8069_v60 = vpop.eup %8068  ;;  %v213_v47 = vpop.permute.xlu0 %212  ;;  %8084 = vtanh.f32 %v1707_v58  ;;  %v1577_v58 = vadd.f32 %v1449_v19, %v805_v16  ;;  %v1711_v27 = vadd.f32 %v10192_v32, %v1576_v49 }
 0x117   :  { %v10285_v57 = vpop.permute.xlu1 %282  ;;  %v8071_v39 = vpop.eup %8070  ;;  %v1706_v8 = vadd.f32 %v10192_v32, %v1571_v55  ;;  %v802_v50 = vmul.f32 %v10174_v51, %v213_v47  ;;  %537 = vperm.xlu0 %8017, %v9815_v30   ;;  %7941 = vset.pattern.permute.xlu1 %v12976_v7  ;;  %v1447_v30 = vmul.f32 %v10161_v46, %v9941_v62 }
 0x118   :  { %1106 = vperm.xlu1 %7941, %v62_v45   ;;  %v1953_v22 = vpack.c.bf16 %v8071_v39, %v8069_v60  ;;  %v8073_v52 = vpop.eup %8072  ;;  %v79_v45 = vld [vmem:[%s12945_s0 + $0x200] sm:$0xff]  ;;  %v1450_v55 = vmul.f32 %v10161_v46, %v10110_v54  ;;  %v1712_v47 = vadd.f32 %v10192_v32, %v1577_v58  ;;  %v1580_v39 = vadd.f32 %v1452_v9, %v808_v59 }
 0x119   :  { %8086 = vtanh.f32 %v1706_v8  ;;  %v1574_v48 = vadd.f32 %v1446_v53, %v802_v50  ;;  %v1453_v53 = vmul.f32 %v10161_v46, %v10157_v11  ;;  %v1451_v50 = vmul.f32 %v10161_v46, %v9953_v4 }
 0x11a   :  { %v8075_v1 = vpop.eup %8074  ;;  %7173 = vmatmul.mubr.bf16.vlgmr.msra.gmra.mxu0 %v1953_v22  ;;  %v218_v63 = vpop.permute.xlu0 %217  ;;  %8088 = vtanh.f32 %v1708_v42  ;;  %v809_v11 = vmul.f32 %v10174_v51, %v10144_v61  ;;  %v812_v61 = vmul.f32 %v10174_v51, %v10185_v6  ;;  %v1457_v9 = vmul.f32 %v10161_v46, %v10253_v10 }
 0x11b   :  { %v1709_v15 = vadd.f32 %v10192_v32, %v1574_v48  ;;  %v803_v29 = vmul.f32 %v10174_v51, %v218_v63  ;;  %452 = vperm.xlu0 %8017, %v10301_v2   ;;  %v10313_v62 = vpop.permute.xlu1 %1026  ;;  %v1954_v24 = vpack.c.bf16 %v8075_v1, %v8073_v52  ;;  %v8077_v21 = vpop.eup %8076  ;;  %v1715_v48 = vadd.f32 %v10192_v32, %v1580_v39 }
 0x11c   :  { %7942 = vset.pattern.permute.xlu1 %v12974_v17  ;;  %v1581_v1 = vadd.f32 %v1453_v53, %v809_v11  ;;  %v1584_v63 = vadd.f32 %v1456_v41, %v812_v61  ;;  %v813_v10 = vmul.f32 %v10174_v51, %v10233_v26  ;;  %v1460_v26 = vmul.f32 %v10161_v46, %v10313_v62 }
 0x11d   :  { %8090 = vtanh.f32 %v1709_v15  ;;  %v1575_v28 = vadd.f32 %v1447_v30, %v803_v29  ;;  %7176 = vmatprep.mubr.bf16.mxu0 %v1954_v24  ;;  %467 = vperm.xlu1 %7942, %v79_v45   ;;  %v1454_v15 = vmul.f32 %v10161_v46, %v10176_v44  ;;  %v82_v44 = vld [vmem:[%s12945_s0 + $0x218] sm:$0xff]  ;;  %v816_v62 = vmul.f32 %v10174_v51, %v10285_v57 }
 0x11e   :  { %v8079_v0 = vpop.eup %8078  ;;  %v233_v43 = vpop.permute.xlu0 %232  ;;  %v1716_v6 = vadd.f32 %v10192_v32, %v1581_v1  ;;  %v1719_v59 = vadd.f32 %v10192_v32, %v1584_v63  ;;  %v63_v1 = vld [vmem:[%s12945_s0 + $0x180] sm:$0xff] }
 0x11f   :  { %v1710_v60 = vadd.f32 %v10192_v32, %v1575_v28  ;;  %v806_v13 = vmul.f32 %v10174_v51, %v233_v43  ;;  %457 = vperm.xlu0 %8017, %v9822_v31   ;;  %v1955_v12 = vpack.c.bf16 %v8077_v21, %v8079_v0  ;;  %v8081_v54 = vpop.eup %8080  ;;  %v1455_v28 = vmul.f32 %v10161_v46, %v9962_v14 }
 0x120   :  { %v10329_v8 = vpop.permute.xlu1 %287 }
 0x121   :  { %8092 = vtanh.f32 %v1710_v60  ;;  %v1578_v31 = vadd.f32 %v1450_v55, %v806_v13  ;;  %7943 = vset.pattern.permute.xlu1 %v12976_v7  ;;  %v1585_v13 = vadd.f32 %v1457_v9, %v813_v10  ;;  %v1463_v10 = vmul.f32 %v10161_v46, %v9981_v34 }
 0x122   :  { %v8083_v42 = vpop.eup %8082  ;;  %8094 = vtanh.f32 %v1711_v27  ;;  %7177 = vmatmul.mubr.bf16.gmra.mxu0 %v1955_v12  ;;  %v238_v19 = vpop.permute.xlu0 %237  ;;  %1174 = vperm.xlu1 %7943, %v79_v45  }
 0x123   :  { %v1713_v22 = vadd.f32 %v10192_v32, %v1578_v31  ;;  %v807_v52 = vmul.f32 %v10174_v51, %v238_v19  ;;  %552 = vperm.xlu0 %8017, %v10334_v20   ;;  %v1956_v4 = vpack.c.bf16 %v8083_v42, %v8081_v54  ;;  %v8085_v30 = vpop.eup %8084  ;;  %8096 = vtanh.f32 %v1712_v47 }
 0x124   :  { %v1720_v11 = vadd.f32 %v10192_v32, %v1585_v13 }
 0x125   :  { %8098 = vtanh.f32 %v1713_v22  ;;  %v1579_v5 = vadd.f32 %v1451_v50, %v807_v52  ;;  %7180 = vmatprep.mubr.bf16.mxu0 %v1956_v4  ;;  %v1031_v49 = vpop.permute.xlu1 %1030  ;;  %v1458_v50 = vmul.f32 %v10161_v46, %v10274_v40  ;;  %v104_v40 = vld [vmem:[%s12945_s0 + $0x2c8] sm:$0xff]  ;;  %v1459_v52 = vmul.f32 %v10161_v46, %v9973_v25 }
 0x126   :  { %v8087_v16 = vpop.eup %8086  ;;  %v253_v45 = vpop.permute.xlu0 %252  ;;  %1178 = vperm.xlu1 %7943, %v10105_v18   ;;  %8100 = vtanh.f32 %v1715_v48  ;;  %v100_v18 = vld [vmem:[%s12945_s0 + $0x2a8] sm:$0xff]  ;;  %v1461_v41 = vmul.f32 %v10161_v46, %v1031_v49  ;;  %v817_v48 = vmul.f32 %v10174_v51, %v10329_v8 }
 0x127   :  { %v1714_v29 = vadd.f32 %v10192_v32, %v1579_v5  ;;  %v810_v24 = vmul.f32 %v10174_v51, %v253_v45  ;;  %557 = vperm.xlu0 %8017, %v9834_v33   ;;  %v1957_v58 = vpack.c.bf16 %v8085_v30, %v8087_v16  ;;  %v8089_v21 = vpop.eup %8088  ;;  %v1588_v30 = vadd.f32 %v1460_v26, %v816_v62 }
 0x128   :  { %v1589_v16 = vadd.f32 %v1461_v41, %v817_v48  ;;  %v112_v41 = vld [vmem:[%s12945_s0 + $0x308] sm:$0xff]  ;;  %v1467_v48 = vmul.f32 %v10161_v46, %v9985_v37 }
 0x129   :  { %8102 = vtanh.f32 %v1714_v29  ;;  %v1582_v33 = vadd.f32 %v1454_v15, %v810_v24  ;;  %v1035_v0 = vpop.permute.xlu1 %1034  ;;  %v1723_v29 = vadd.f32 %v10192_v32, %v1588_v30 }
 0x12a   :  { %v8091_v27 = vpop.eup %8090  ;;  %7181 = vmatmul.mubr.bf16.gmra.mxu0 %v1957_v58  ;;  %v258_v43 = vpop.permute.xlu0 %257  ;;  %7944 = vset.pattern.permute.xlu1 %v12974_v17  ;;  %8104 = vtanh.f32 %v1716_v6  ;;  %v1462_v6 = vmul.f32 %v10161_v46, %v1035_v0 }
 0x12b   :  { %v1717_v55 = vadd.f32 %v10192_v32, %v1582_v33  ;;  %v811_v60 = vmul.f32 %v10174_v51, %v258_v43  ;;  %572 = vperm.xlu0 %8017, %v100_v18   ;;  %482 = vperm.xlu1 %7944, %v82_v44   ;;  %v1958_v14 = vpack.c.bf16 %v8091_v27, %v8089_v21  ;;  %v108_v27 = vld [vmem:[%s12945_s0 + $0x2e8] sm:$0xff] }
 0x12c   :  { %v1724_v21 = vadd.f32 %v10192_v32, %v1589_v16  ;;  %v9601_v16 = vld [vmem:[%s12945_s0 + $0x310] sm:$0xff] }
 0x12d   :  { %8106 = vtanh.f32 %v1717_v55  ;;  %v1583_v12 = vadd.f32 %v1455_v28, %v811_v60  ;;  %7184 = vmatprep.mubr.bf16.mxu0 %v1958_v14 }
 0x12e   :  { %v8093_v47 = vpop.eup %8092  ;;  %v273_v39 = vpop.permute.xlu0 %272  ;;  %8108 = vtanh.f32 %v1719_v59 }
 0x12f   :  { %v303_v53 = vpop.permute.xlu1 %302  ;;  %v8095_v54 = vpop.eup %8094  ;;  %v1718_v31 = vadd.f32 %v10192_v32, %v1583_v12  ;;  %v814_v42 = vmul.f32 %v10174_v51, %v273_v39  ;;  %577 = vperm.xlu0 %8017, %v9844_v35   ;;  %7945 = vset.pattern.permute.xlu1 %v12976_v7 }
 0x130   :  { %1186 = vperm.xlu1 %7945, %v82_v44   ;;  %v1959_v19 = vpack.c.bf16 %v8095_v54, %v8093_v47  ;;  %v8097_v22 = vpop.eup %8096  ;;  %v820_v24 = vmul.f32 %v10174_v51, %v303_v53 }
 0x131   :  { %8110 = vtanh.f32 %v1718_v31  ;;  %v1586_v35 = vadd.f32 %v1458_v50, %v814_v42  ;;  %v9600_v31 = vld [vmem:[%s12945_s0 + $0x2f0] sm:$0xff] }
 0x132   :  { %v8099_v4 = vpop.eup %8098  ;;  %7185 = vmatmul.mubr.bf16.gmra.mxu0 %v1959_v19  ;;  %v278_v57 = vpop.permute.xlu0 %277  ;;  %8112 = vtanh.f32 %v1720_v11 }
 0x133   :  { %v1721_v61 = vadd.f32 %v10192_v32, %v1586_v35  ;;  %v815_v5 = vmul.f32 %v10174_v51, %v278_v57  ;;  %592 = vperm.xlu0 %8017, %v104_v40   ;;  %v1043_v49 = vpop.permute.xlu1 %1042  ;;  %v1960_v25 = vpack.c.bf16 %v8099_v4, %v8097_v22  ;;  %v8101_v8 = vpop.eup %8100 }
 0x134   :  { %v1464_v63 = vmul.f32 %v10161_v46, %v1043_v49  ;;  %7946 = vset.pattern.permute.xlu1 %v12974_v17 }
 0x135   :  { %8114 = vtanh.f32 %v1721_v61  ;;  %v1587_v45 = vadd.f32 %v1459_v52, %v815_v5  ;;  %387 = vperm.xlu1 %7946, %v63_v1   ;;  %7188 = vmatprep.mubr.bf16.mxu0 %v1960_v25 }
 0x136   :  { %v8103_v15 = vpop.eup %8102  ;;  %v293_v58 = vpop.permute.xlu0 %292  ;;  %v1592_v28 = vadd.f32 %v1464_v63, %v820_v24 }
 0x137   :  { %v1722_v9 = vadd.f32 %v10192_v32, %v1587_v45  ;;  %v818_v18 = vmul.f32 %v10174_v51, %v293_v58  ;;  %597 = vperm.xlu0 %8017, %v9851_v36   ;;  %v1961_v44 = vpack.c.bf16 %v8101_v8, %v8103_v15  ;;  %v8105_v59 = vpop.eup %8104  ;;  %v116_v8 = vld [vmem:[%s12945_s0 + $0x328] sm:$0xff] }
 0x138   :  { %v308_v33 = vpop.permute.xlu1 %307  ;;  %v1727_v12 = vadd.f32 %v10192_v32, %v1592_v28 }
 0x139   :  { %8116 = vtanh.f32 %v1722_v9  ;;  %v1590_v0 = vadd.f32 %v1462_v6, %v818_v18  ;;  %7947 = vset.pattern.permute.xlu1 %v12976_v7  ;;  %v821_v39 = vmul.f32 %v10174_v51, %v308_v33  ;;  %v9602_v33 = vld [vmem:[%s12945_s0 + $0x330] sm:$0xff] }
 0x13a   :  { %v8107_v43 = vpop.eup %8106  ;;  %8118 = vtanh.f32 %v1723_v29  ;;  %7189 = vmatmul.mubr.bf16.gmra.mxu0 %v1961_v44  ;;  %v298_v36 = vpop.permute.xlu0 %297  ;;  %1110 = vperm.xlu1 %7947, %v63_v1   ;;  %v83_v29 = vld [vmem:[%s12945_s0 + $0x220] sm:$0xff] }
 0x13b   :  { %v1725_v55 = vadd.f32 %v10192_v32, %v1590_v0  ;;  %v819_v60 = vmul.f32 %v10174_v51, %v298_v36  ;;  %612 = vperm.xlu0 %8017, %v108_v27   ;;  %v1962_v14 = vpack.c.bf16 %v8107_v43, %v8105_v59  ;;  %v8109_v13 = vpop.eup %8108  ;;  %8120 = vtanh.f32 %v1724_v21  ;;  %v120_v0 = vld [vmem:[%s12945_s0 + $0x348] sm:$0xff] }
 0x13d   :  { %8122 = vtanh.f32 %v1725_v55  ;;  %v1591_v34 = vadd.f32 %v1463_v10, %v819_v60  ;;  %7192 = vmatprep.mubr.bf16.mxu0 %v1962_v14  ;;  %v1047_v47 = vpop.permute.xlu1 %1046 }
 0x13e   :  { %v8111_v26 = vpop.eup %8110  ;;  %v1465_v53 = vmul.f32 %v10161_v46, %v1047_v47  ;;  %v313_v54 = vpop.permute.xlu0 %312  ;;  %1114 = vperm.xlu1 %7947, %v10125_v23   ;;  %8124 = vtanh.f32 %v1727_v12  ;;  %v66_v23 = vld [vmem:[%s12945_s0 + $0x198] sm:$0xff]  ;;  %v12984_v12 = vld [vmem:[#allocation23_spill] sm:$0xff]  ;;  %v9603_v47 = vld [vmem:[%s12945_s0 + $0x350] sm:$0xff] }
 0x13f   :  { %v1726_v50 = vadd.f32 %v10192_v32, %v1591_v34  ;;  %617 = vperm.xlu0 %8017, %v9600_v31   ;;  %v1963_v42 = vpack.c.bf16 %v8109_v13, %v8111_v26  ;;  %v822_v62 = vmul.f32 %v10174_v51, %v313_v54  ;;  %v8113_v19 = vpop.eup %8112  ;;  %v86_v54 = vld [vmem:[%s12945_s0 + $0x238] sm:$0xff] }
 0x140   :  { %v1593_v11 = vadd.f32 %v1465_v53, %v821_v39  ;;  %v124_v53 = vld [vmem:[%s12945_s0 + $0x368] sm:$0xff] }
 0x141   :  { %8126 = vtanh.f32 %v1726_v50  ;;  %v1051_v40 = vpop.permute.xlu1 %1050 }
 0x142   :  { %v8115_v22 = vpop.eup %8114  ;;  %7193 = vmatmul.mubr.bf16.gmra.mxu0 %v1963_v42  ;;  %v1466_v52 = vmul.f32 %v10161_v46, %v1051_v40  ;;  %7948 = vset.pattern.permute.xlu1 %v12974_v17  ;;  %v1728_v35 = vadd.f32 %v10192_v32, %v1593_v11  ;;  %v318_v4 = vpop.permute.xlu0 %317 }
 0x143   :  { %632 = vperm.xlu0 %8017, %v112_v41   ;;  %402 = vperm.xlu1 %7948, %v66_v23   ;;  %v1964_v30 = vpack.c.bf16 %v8115_v22, %v8113_v19  ;;  %v823_v1 = vmul.f32 %v10174_v51, %v318_v4  ;;  %v9604_v4 = vld [vmem:[%s12945_s0 + $0x370] sm:$0xff] }
 0x144   :  { %v1594_v57 = vadd.f32 %v1466_v52, %v822_v62  ;;  %8128 = vtanh.f32 %v1728_v35  ;;  %v12985_v62 = vld [vmem:[#allocation2_spill] sm:$0xff] }
 0x145   :  { %7196 = vmatprep.mubr.bf16.mxu0 %v1964_v30  ;;  %v1595_v63 = vadd.f32 %v1467_v48, %v823_v1  ;;  %v1471_v41 = vmul.f32 %v10161_v46, %v12985_v62  ;;  %v67_v1 = vld [vmem:[%s12945_s0 + $0x1a0] sm:$0xff] }
 0x146   :  { %v8117_v61 = vpop.eup %8116  ;;  %v1729_v5 = vadd.f32 %v10192_v32, %v1594_v57  ;;  %v323_v49 = vpop.permute.xlu1 %322  ;;  %v128_v57 = vld [vmem:[%s12945_s0 + $0x388] sm:$0xff] }
 0x147   :  { %v8119_v25 = vpop.eup %8118  ;;  %637 = vperm.xlu0 %8017, %v9601_v16   ;;  %7949 = vset.pattern.permute.xlu1 %v12976_v7  ;;  %v1730_v6 = vadd.f32 %v10192_v32, %v1595_v63  ;;  %v824_v9 = vmul.f32 %v10174_v51, %v323_v49  ;;  %v333_v55 = vpop.permute.xlu0 %332  ;;  %v9605_v63 = vld [vmem:[%s12945_s0 + $0x390] sm:$0xff] }
 0x148   :  { %8130 = vtanh.f32 %v1729_v5  ;;  %1122 = vperm.xlu1 %7949, %v66_v23   ;;  %v1965_v37 = vpack.c.bf16 %v8119_v25, %v8117_v61  ;;  %v8121_v45 = vpop.eup %8120  ;;  %v826_v26 = vmul.f32 %v10174_v51, %v333_v55  ;;  %v12987_v55 = vld [vmem:[#allocation3_spill] sm:$0xff] }
 0x149   :  { %8132 = vtanh.f32 %v1730_v6 }
 0x14a   :  { %v8123_v15 = vpop.eup %8122  ;;  %7197 = vmatmul.mubr.bf16.gmra.mxu0 %v1965_v37 }
 0x14b   :  { %652 = vperm.xlu0 %8017, %v116_v8   ;;  %v1059_v24 = vpop.permute.xlu1 %1058  ;;  %v1966_v58 = vpack.c.bf16 %v8123_v15, %v8121_v45  ;;  %v8125_v44 = vpop.eup %8124  ;;  %v132_v45 = vld [vmem:[%s12945_s0 + $0x3a8] sm:$0xff] }
 0x14c   :  { %v1468_v18 = vmul.f32 %v10161_v46, %v1059_v24  ;;  %7950 = vset.pattern.permute.xlu1 %v12974_v17  ;;  %v338_v42 = vpop.permute.xlu0 %337 }
 0x14d   :  { %487 = vperm.xlu1 %7950, %v83_v29   ;;  %7200 = vmatprep.mubr.bf16.mxu0 %v1966_v58  ;;  %v827_v23 = vmul.f32 %v10174_v51, %v338_v42 }
 0x14e   :  { %v8127_v21 = vpop.eup %8126  ;;  %v1596_v28 = vadd.f32 %v1468_v18, %v824_v9  ;;  %v12986_v18 = vld [vmem:[#allocation26_spill] sm:$0xff] }
 0x14f   :  { %657 = vperm.xlu0 %8017, %v9602_v33   ;;  %v1967_v27 = vpack.c.bf16 %v8125_v44, %v8127_v21  ;;  %v1599_v30 = vadd.f32 %v1471_v41, %v827_v23  ;;  %v9606_v21 = vld [vmem:[%s12945_s0 + $0x3b0] sm:$0xff] }
 0x150   :  { %v1731_v59 = vadd.f32 %v10192_v32, %v1596_v28  ;;  %v328_v10 = vpop.permute.xlu1 %327  ;;  %v353_v24 = vpop.permute.xlu0 %352  ;;  %v141_v23 = vld [vmem:[%s12945_s0 + $0x3f0] sm:$0xff] }
 0x151   :  { %7951 = vset.pattern.permute.xlu1 %v12976_v7  ;;  %v8129_v43 = vpop.eup %8128  ;;  %v825_v14 = vmul.f32 %v10174_v51, %v328_v10  ;;  %v1734_v5 = vadd.f32 %v10192_v32, %v1599_v30  ;;  %v830_v28 = vmul.f32 %v10174_v51, %v353_v24 }
 0x152   :  { %8134 = vtanh.f32 %v1731_v59  ;;  %7201 = vmatmul.mubr.bf16.gmra.mxu0 %v1967_v27  ;;  %1190 = vperm.xlu1 %7951, %v83_v29   ;;  %v136_v27 = vld [vmem:[%s12945_s0 + $0x3c8] sm:$0xff]  ;;  %v70_v59 = vld [vmem:[%s12945_s0 + $0x1b8] sm:$0xff] }
 0x153   :  { %672 = vperm.xlu0 %8017, %v120_v0  }
 0x155   :  { %v8131_v36 = vpop.eup %8130  ;;  %v1063_v60 = vpop.permute.xlu1 %1062 }
 0x156   :  { %v1469_v13 = vmul.f32 %v10161_v46, %v1063_v60  ;;  %1194 = vperm.xlu1 %7951, %v12984_v12   ;;  %v1968_v34 = vpack.c.bf16 %v8131_v36, %v8129_v43  ;;  %v8133_v40 = vpop.eup %8132  ;;  %v358_v43 = vpop.permute.xlu0 %357  ;;  %v1475_v60 = vmul.f32 %v10161_v46, %v12987_v55 }
 0x157   :  { %677 = vperm.xlu0 %8017, %v9603_v47  }
 0x158   :  { %v1597_v39 = vadd.f32 %v1469_v13, %v825_v14  ;;  %7204 = vmatprep.mubr.bf16.mxu0 %v1968_v34  ;;  %v831_v14 = vmul.f32 %v10174_v51, %v358_v43 }
 0x159   :  { %v1067_v50 = vpop.permute.xlu1 %1066 }
 0x15a   :  { %v1470_v31 = vmul.f32 %v10161_v46, %v1067_v50  ;;  %7952 = vset.pattern.permute.xlu1 %v12974_v17  ;;  %v1732_v11 = vadd.f32 %v10192_v32, %v1597_v39  ;;  %v9607_v39 = vld [vmem:[%s12945_s0 + $0x3d0] sm:$0xff]  ;;  %v140_v50 = vld [vmem:[%s12945_s0 + $0x3e8] sm:$0xff] }
 0x15b   :  { %692 = vperm.xlu0 %8017, %v124_v53   ;;  %502 = vperm.xlu1 %7952, %v86_v54   ;;  %v1603_v53 = vadd.f32 %v1475_v60, %v831_v14 }
 0x15c   :  { %v1598_v19 = vadd.f32 %v1470_v31, %v826_v26  ;;  %8136 = vtanh.f32 %v1732_v11  ;;  %v87_v31 = vld [vmem:[%s12945_s0 + $0x240] sm:$0xff] }
 0x15d   :  { %v1738_v11 = vadd.f32 %v10192_v32, %v1603_v53 }
 0x15e   :  { %v1733_v22 = vadd.f32 %v10192_v32, %v1598_v19  ;;  %v343_v52 = vpop.permute.xlu1 %342 }
 0x15f   :  { %v8135_v35 = vpop.eup %8134  ;;  %697 = vperm.xlu0 %8017, %v9604_v4   ;;  %7953 = vset.pattern.permute.xlu1 %v12976_v7  ;;  %v828_v49 = vmul.f32 %v10174_v51, %v343_v52  ;;  %v373_v4 = vpop.permute.xlu0 %372 }
 0x160   :  { %8138 = vtanh.f32 %v1733_v22  ;;  %1202 = vperm.xlu1 %7953, %v86_v54   ;;  %v1969_v48 = vpack.c.bf16 %v8135_v35, %v8133_v40 }
 0x161   :  { %8140 = vtanh.f32 %v1734_v5 }
 0x162   :  { %7205 = vmatmul.mubr.bf16.gmra.mxu0 %v1969_v48 }
 0x163   :  { %712 = vperm.xlu0 %8017, %v128_v57   ;;  %v1075_v61 = vpop.permute.xlu1 %1074 }
 0x164   :  { %v1472_v25 = vmul.f32 %v10161_v46, %v1075_v61  ;;  %7954 = vset.pattern.permute.xlu1 %v12974_v17  ;;  %v834_v61 = vmul.f32 %v10174_v51, %v373_v4 }
 0x165   :  { %407 = vperm.xlu1 %7954, %v67_v1  }
 0x166   :  { %v1600_v16 = vadd.f32 %v1472_v25, %v828_v49  ;;  %v90_v49 = vld [vmem:[%s12945_s0 + $0x258] sm:$0xff] }
 0x167   :  { %717 = vperm.xlu0 %8017, %v9605_v63   ;;  %v378_v63 = vpop.permute.xlu0 %377 }
 0x168   :  { %v1735_v37 = vadd.f32 %v10192_v32, %v1600_v16  ;;  %v348_v8 = vpop.permute.xlu1 %347 }
 0x169   :  { %7955 = vset.pattern.permute.xlu1 %v12976_v7  ;;  %v8137_v15 = vpop.eup %8136  ;;  %v829_v6 = vmul.f32 %v10174_v51, %v348_v8  ;;  %v12988_v8 = vld [vmem:[#allocation4_spill] sm:$0xff] }
 0x16a   :  { %8142 = vtanh.f32 %v1735_v37  ;;  %1126 = vperm.xlu1 %7955, %v67_v1  }
 0x16b   :  { %732 = vperm.xlu0 %8017, %v132_v45   ;;  %v835_v45 = vmul.f32 %v10174_v51, %v378_v63  ;;  %v473_v55 = vpop.permute.xlu0 %472 }
 0x16d   :  { %v8139_v29 = vpop.eup %8138  ;;  %v1079_v58 = vpop.permute.xlu1 %1078 }
 0x16e   :  { %v1473_v9 = vmul.f32 %v10161_v46, %v1079_v58  ;;  %1130 = vperm.xlu1 %7955, %v12986_v18   ;;  %v1970_v44 = vpack.c.bf16 %v8139_v29, %v8137_v15  ;;  %v8141_v12 = vpop.eup %8140 }
 0x16f   :  { %737 = vperm.xlu0 %8017, %v9606_v21   ;;  %v478_v53 = vpop.permute.xlu0 %477 }
 0x170   :  { %v1601_v33 = vadd.f32 %v1473_v9, %v829_v6  ;;  %7208 = vmatprep.mubr.bf16.mxu0 %v1970_v44  ;;  %v71_v44 = vld [vmem:[%s12945_s0 + $0x1c0] sm:$0xff] }
 0x171   :  { %v1083_v10 = vpop.permute.xlu1 %1082 }
 0x172   :  { %v1474_v0 = vmul.f32 %v10161_v46, %v1083_v10  ;;  %7956 = vset.pattern.permute.xlu1 %v12974_v17  ;;  %v1736_v36 = vadd.f32 %v10192_v32, %v1601_v33 }
 0x173   :  { %752 = vperm.xlu0 %8017, %v136_v27   ;;  %422 = vperm.xlu1 %7956, %v70_v59  }
 0x174   :  { %v1602_v13 = vadd.f32 %v1474_v0, %v830_v28  ;;  %8144 = vtanh.f32 %v1736_v36 }
 0x176   :  { %v1737_v34 = vadd.f32 %v10192_v32, %v1602_v13  ;;  %v363_v47 = vpop.permute.xlu1 %362 }
 0x177   :  { %v8143_v26 = vpop.eup %8142  ;;  %757 = vperm.xlu0 %8017, %v9607_v39   ;;  %7957 = vset.pattern.permute.xlu1 %v12976_v7  ;;  %v832_v62 = vmul.f32 %v10174_v51, %v363_v47 }
 0x178   :  { %8146 = vtanh.f32 %v1737_v34  ;;  %1138 = vperm.xlu1 %7957, %v70_v59   ;;  %v1971_v54 = vpack.c.bf16 %v8143_v26, %v8141_v12  ;;  %v854_v34 = vmul.f32 %v10174_v51, %v473_v55 }
 0x179   :  { %8148 = vtanh.f32 %v1738_v11 }
 0x17a   :  { %7209 = vmatmul.mubr.bf16.gmra.mxu0 %v1971_v54  ;;  %v10575_v54 = vld [vmem:[%s12947_s2] ss:$0 sm:$0xff] }
 0x17b   :  { %v1091_v42 = vpop.permute.xlu1 %1090  ;;  %772 = vperm.xlu0 %8017, %v140_v50   ;;  %v12989_v50 = vld [vmem:[#allocation5_spill] sm:$0xff] }
 0x17c   :  { %v1476_v41 = vmul.f32 %v10161_v46, %v1091_v42  ;;  %7958 = vset.pattern.permute.xlu1 %v12974_v17  ;;  %v855_v42 = vmul.f32 %v10174_v51, %v478_v53 }
 0x17d   :  { %507 = vperm.xlu1 %7958, %v87_v31  }
 0x17e   :  { %v1604_v19 = vadd.f32 %v1476_v41, %v832_v62 }
 0x17f   :  { %777 = vperm.xlu0 %8017, %v141_v23  }
 0x180   :  { %v1739_v40 = vadd.f32 %v10192_v32, %v1604_v19  ;;  %v368_v22 = vpop.permute.xlu1 %367 }
 0x181   :  { %7959 = vset.pattern.permute.xlu1 %v12976_v7  ;;  %v8145_v52 = vpop.eup %8144  ;;  %v833_v48 = vmul.f32 %v10174_v51, %v368_v22 }
 0x182   :  { %8150 = vtanh.f32 %v1739_v40  ;;  %1206 = vperm.xlu1 %7959, %v87_v31   ;;  %v1499_v31 = vmul.f32 %v10161_v46, %v12989_v50 }
 0x183   :  { %8022 = vset.pattern.permute.xlu0 %v12976_v7 }
 0x184   :  { %1422 = vperm.xlu0 %8022, %v141_v23   ;;  %v1627_v40 = vadd.f32 %v1499_v31, %v855_v42  ;;  %v78_v42 = vld [vmem:[%s12945_s0 + $0x1f8] sm:$0xff] }
 0x185   :  { %v8147_v35 = vpop.eup %8146  ;;  %v1095_v30 = vpop.permute.xlu1 %1094 }
 0x186   :  { %v1477_v57 = vmul.f32 %v10161_v46, %v1095_v30  ;;  %1210 = vperm.xlu1 %7959, %v10205_v56   ;;  %v1972_v1 = vpack.c.bf16 %v8147_v35, %v8145_v52  ;;  %v1479_v56 = vmul.f32 %v10161_v46, %v12988_v8  ;;  %v8149_v29 = vpop.eup %8148  ;;  %v91_v52 = vld [vmem:[%s12945_s0 + $0x260] sm:$0xff]  ;;  %v1762_v4 = vadd.f32 %v10575_v54, %v1627_v40 }
 0x188   :  { %v1605_v5 = vadd.f32 %v1477_v57, %v833_v48  ;;  %7212 = vmatprep.mubr.bf16.mxu0 %v1972_v1  ;;  %v1607_v9 = vadd.f32 %v1479_v56, %v835_v45 }
 0x189   :  { %v1099_v25 = vpop.permute.xlu1 %1098 }
 0x18a   :  { %v1478_v16 = vmul.f32 %v10161_v46, %v1099_v25  ;;  %7960 = vset.pattern.permute.xlu1 %v12974_v17  ;;  %v1740_v37 = vadd.f32 %v10192_v32, %v1605_v5  ;;  %v1742_v28 = vadd.f32 %v10192_v32, %v1607_v9  ;;  %v393_v25 = vpop.permute.xlu0 %392  ;;  %v12990_v9 = vld [vmem:[#allocation6_spill] sm:$0xff] }
 0x18b   :  { %522 = vperm.xlu1 %7960, %v90_v49   ;;  %v838_v56 = vmul.f32 %v10174_v51, %v393_v25 }
 0x18c   :  { %v1606_v15 = vadd.f32 %v1478_v16, %v834_v61  ;;  %8152 = vtanh.f32 %v1740_v37 }
 0x18e   :  { %v1741_v24 = vadd.f32 %v10192_v32, %v1606_v15  ;;  %v383_v58 = vpop.permute.xlu1 %382  ;;  %v94_v15 = vld [vmem:[%s12945_s0 + $0x278] sm:$0xff] }
 0x18f   :  { %v8151_v6 = vpop.eup %8150  ;;  %7961 = vset.pattern.permute.xlu1 %v12976_v7  ;;  %v836_v33 = vmul.f32 %v10174_v51, %v383_v58  ;;  %v398_v58 = vpop.permute.xlu0 %397 }
 0x190   :  { %8154 = vtanh.f32 %v1741_v24  ;;  %1218 = vperm.xlu1 %7961, %v90_v49   ;;  %v1973_v18 = vpack.c.bf16 %v8151_v6, %v8149_v29 }
 0x191   :  { %8156 = vtanh.f32 %v1742_v28 }
 0x192   :  { %7213 = vmatmul.mubr.bf16.gmra.mxu0 %v1973_v18  ;;  %v839_v18 = vmul.f32 %v10174_v51, %v398_v58 }
 0x193   :  { %v1107_v21 = vpop.permute.xlu1 %1106 }
 0x194   :  { %v1480_v27 = vmul.f32 %v10161_v46, %v1107_v21  ;;  %7962 = vset.pattern.permute.xlu1 %v12974_v17 }
 0x195   :  { %427 = vperm.xlu1 %7962, %v71_v44  }
 0x196   :  { %v1608_v59 = vadd.f32 %v1480_v27, %v836_v33 }
 0x198   :  { %v1743_v10 = vadd.f32 %v10192_v32, %v1608_v59  ;;  %v468_v0 = vpop.permute.xlu1 %467  ;;  %v74_v32 = vld [vmem:[%s12945_s0 + $0x1d8] sm:$0xff] }
 0x199   :  { %7963 = vset.pattern.permute.xlu1 %v12976_v7  ;;  %v8153_v43 = vpop.eup %8152  ;;  %v853_v14 = vmul.f32 %v10174_v51, %v468_v0  ;;  %v75_v0 = vld [vmem:[%s12945_s0 + $0x1e0] sm:$0xff] }
 0x19a   :  { %8158 = vtanh.f32 %v1743_v10  ;;  %1142 = vperm.xlu1 %7963, %v71_v44  }
 0x19d   :  { %v8155_v36 = vpop.eup %8154  ;;  %v1175_v60 = vpop.permute.xlu1 %1174 }
 0x19e   :  { %v1497_v13 = vmul.f32 %v10161_v46, %v1175_v60  ;;  %1146 = vperm.xlu1 %7963, %v10238_v38   ;;  %v1974_v12 = vpack.c.bf16 %v8155_v36, %v8153_v43  ;;  %v8157_v62 = vpop.eup %8156 }
 0x1a0   :  { %v1625_v47 = vadd.f32 %v1497_v13, %v853_v14  ;;  %7216 = vmatprep.mubr.bf16.mxu0 %v1974_v12 }
 0x1a1   :  { %v1179_v26 = vpop.permute.xlu1 %1178 }
 0x1a2   :  { %v1498_v39 = vmul.f32 %v10161_v46, %v1179_v26  ;;  %7964 = vset.pattern.permute.xlu1 %v12974_v17  ;;  %v1760_v38 = vadd.f32 %v10575_v54, %v1625_v47 }
 0x1a3   :  { %442 = vperm.xlu1 %7964, %v74_v32  }
 0x1a4   :  { %v1626_v11 = vadd.f32 %v1498_v39, %v854_v34  ;;  %8160 = vtanh.f32 %v1760_v38 }
 0x1a6   :  { %v1761_v41 = vadd.f32 %v10575_v54, %v1626_v11  ;;  %v483_v23 = vpop.permute.xlu1 %482 }
 0x1a7   :  { %v8159_v19 = vpop.eup %8158  ;;  %7965 = vset.pattern.permute.xlu1 %v12976_v7  ;;  %v856_v30 = vmul.f32 %v10174_v51, %v483_v23 }
 0x1a8   :  { %8162 = vtanh.f32 %v1761_v41  ;;  %1154 = vperm.xlu1 %7965, %v74_v32   ;;  %v1975_v22 = vpack.c.bf16 %v8159_v19, %v8157_v62  ;;  %v493_v32 = vpop.permute.xlu0 %492  ;;  %v12991_v19 = vld [vmem:[#allocation7_spill] sm:$0xff] }
 0x1a9   :  { %8164 = vtanh.f32 %v1762_v4  ;;  %v858_v50 = vmul.f32 %v10174_v51, %v493_v32 }
 0x1aa   :  { %7217 = vmatmul.mubr.bf16.gmra.mxu0 %v1975_v22 }
 0x1ab   :  { %v1187_v35 = vpop.permute.xlu1 %1186 }
 0x1ac   :  { %v1500_v48 = vmul.f32 %v10161_v46, %v1187_v35  ;;  %7966 = vset.pattern.permute.xlu1 %v12974_v17  ;;  %v498_v41 = vpop.permute.xlu0 %497 }
 0x1ad   :  { %527 = vperm.xlu1 %7966, %v91_v52   ;;  %v859_v40 = vmul.f32 %v10174_v51, %v498_v41 }
 0x1ae   :  { %v1628_v57 = vadd.f32 %v1500_v48, %v856_v30 }
 0x1b0   :  { %v1763_v1 = vadd.f32 %v10575_v54, %v1628_v57  ;;  %v388_v61 = vpop.permute.xlu1 %387 }
 0x1b1   :  { %7967 = vset.pattern.permute.xlu1 %v12976_v7  ;;  %v8161_v5 = vpop.eup %8160  ;;  %v837_v63 = vmul.f32 %v10174_v51, %v388_v61 }
 0x1b2   :  { %8166 = vtanh.f32 %v1763_v1  ;;  %1222 = vperm.xlu1 %7967, %v91_v52   ;;  %v95_v1 = vld [vmem:[%s12945_s0 + $0x280] sm:$0xff] }
 0x1b5   :  { %v8163_v49 = vpop.eup %8162  ;;  %v1111_v16 = vpop.permute.xlu1 %1110 }
 0x1b6   :  { %v1481_v37 = vmul.f32 %v10161_v46, %v1111_v16  ;;  %1226 = vperm.xlu1 %7967, %v10267_v3   ;;  %v1984_v8 = vpack.c.bf16 %v8163_v49, %v8161_v5  ;;  %v1483_v3 = vmul.f32 %v10161_v46, %v12990_v9  ;;  %v8165_v21 = vpop.eup %8164 }
 0x1b8   :  { %v1609_v45 = vadd.f32 %v1481_v37, %v837_v63  ;;  %7236 = vmatprep.mubr.bf16.mxu1 %v1984_v8  ;;  %v1611_v59 = vadd.f32 %v1483_v3, %v839_v18  ;;  %v98_v3 = vld [vmem:[%s12945_s0 + $0x298] sm:$0xff] }
 0x1b9   :  { %v1115_v29 = vpop.permute.xlu1 %1114 }
 0x1ba   :  { %v1482_v24 = vmul.f32 %v10161_v46, %v1115_v29  ;;  %7968 = vset.pattern.permute.xlu1 %v12974_v17  ;;  %v1744_v6 = vadd.f32 %v10575_v54, %v1609_v45  ;;  %v1746_v36 = vadd.f32 %v10575_v54, %v1611_v59 }
 0x1bb   :  { %542 = vperm.xlu1 %7968, %v94_v15  }
 0x1bc   :  { %v1610_v44 = vadd.f32 %v1482_v24, %v838_v56  ;;  %8168 = vtanh.f32 %v1744_v6 }
 0x1be   :  { %v1745_v28 = vadd.f32 %v10575_v54, %v1610_v44  ;;  %v403_v33 = vpop.permute.xlu1 %402 }
 0x1bf   :  { %v8167_v27 = vpop.eup %8166  ;;  %7969 = vset.pattern.permute.xlu1 %v12976_v7  ;;  %v840_v55 = vmul.f32 %v10174_v51, %v403_v33 }
 0x1c0   :  { %8170 = vtanh.f32 %v1745_v28  ;;  %1234 = vperm.xlu1 %7969, %v94_v15   ;;  %v1985_v10 = vpack.c.bf16 %v8167_v27, %v8165_v21  ;;  %v413_v15 = vpop.permute.xlu0 %412  ;;  %v12992_v27 = vld [vmem:[#allocation8_spill] sm:$0xff] }
 0x1c1   :  { %8172 = vtanh.f32 %v1746_v36  ;;  %v842_v6 = vmul.f32 %v10174_v51, %v413_v15  ;;  %v1487_v59 = vmul.f32 %v10161_v46, %v12992_v27  ;;  %v106_v27 = vld [vmem:[%s12945_s0 + $0x2d8] sm:$0xff] }
 0x1c2   :  { %7237 = vmatmul.mubr.bf16.vlgmr.msra.gmra.mxu1 %v1985_v10 }
 0x1c3   :  { %v1123_v43 = vpop.permute.xlu1 %1122 }
 0x1c4   :  { %v1484_v60 = vmul.f32 %v10161_v46, %v1123_v43  ;;  %7970 = vset.pattern.permute.xlu1 %v12974_v17  ;;  %v418_v28 = vpop.permute.xlu0 %417 }
 0x1c5   :  { %447 = vperm.xlu1 %7970, %v75_v0   ;;  %v843_v10 = vmul.f32 %v10174_v51, %v418_v28 }
 0x1c6   :  { %v1612_v14 = vadd.f32 %v1484_v60, %v840_v55 }
 0x1c7   :  { %v1615_v60 = vadd.f32 %v1487_v59, %v843_v10 }
 0x1c8   :  { %v1747_v13 = vadd.f32 %v10575_v54, %v1612_v14  ;;  %v488_v12 = vpop.permute.xlu1 %487  ;;  %v99_v14 = vld [vmem:[%s12945_s0 + $0x2a0] sm:$0xff] }
 0x1c9   :  { %7971 = vset.pattern.permute.xlu1 %v12976_v7  ;;  %v8169_v34 = vpop.eup %8168  ;;  %v857_v39 = vmul.f32 %v10174_v51, %v488_v12 }
 0x1ca   :  { %8174 = vtanh.f32 %v1747_v13  ;;  %1158 = vperm.xlu1 %7971, %v75_v0  }
 0x1cd   :  { %v8171_v47 = vpop.eup %8170  ;;  %v1191_v26 = vpop.permute.xlu1 %1190 }
 0x1ce   :  { %v1501_v53 = vmul.f32 %v10161_v46, %v1191_v26  ;;  %1162 = vperm.xlu1 %7971, %v10301_v2   ;;  %v1976_v38 = vpack.c.bf16 %v8171_v47, %v8169_v34  ;;  %v1503_v2 = vmul.f32 %v10161_v46, %v12991_v19  ;;  %v8173_v52 = vpop.eup %8172  ;;  %v1750_v47 = vadd.f32 %v10575_v54, %v1615_v60 }
 0x1d0   :  { %v1629_v31 = vadd.f32 %v1501_v53, %v857_v39  ;;  %7220 = vmatprep.mubr.bf16.mxu0 %v1976_v38  ;;  %v1631_v48 = vadd.f32 %v1503_v2, %v859_v40  ;;  %v102_v2 = vld [vmem:[%s12945_s0 + $0x2b8] sm:$0xff] }
 0x1d1   :  { %v1195_v11 = vpop.permute.xlu1 %1194 }
 0x1d2   :  { %v1502_v62 = vmul.f32 %v10161_v46, %v1195_v11  ;;  %7972 = vset.pattern.permute.xlu1 %v12974_v17  ;;  %v1764_v23 = vadd.f32 %v10575_v54, %v1629_v31  ;;  %v1766_v5 = vadd.f32 %v10575_v54, %v1631_v48  ;;  %v513_v31 = vpop.permute.xlu0 %512 }
 0x1d3   :  { %462 = vperm.xlu1 %7972, %v78_v42  }
 0x1d4   :  { %v1630_v22 = vadd.f32 %v1502_v62, %v858_v50  ;;  %8176 = vtanh.f32 %v1764_v23  ;;  %v9609_v62 = vld [vmem:[%s12945_s0 + $0x2a8] sm:$0xff]  ;;  %v862_v23 = vmul.f32 %v10174_v51, %v513_v31 }
 0x1d6   :  { %v1765_v35 = vadd.f32 %v10575_v54, %v1630_v22  ;;  %v503_v4 = vpop.permute.xlu1 %502 }
 0x1d7   :  { %v8175_v30 = vpop.eup %8174  ;;  %7973 = vset.pattern.permute.xlu1 %v12976_v7  ;;  %v860_v49 = vmul.f32 %v10174_v51, %v503_v4 }
 0x1d8   :  { %8178 = vtanh.f32 %v1765_v35  ;;  %1170 = vperm.xlu1 %7973, %v78_v42   ;;  %v1977_v57 = vpack.c.bf16 %v8175_v30, %v8173_v52  ;;  %v518_v35 = vpop.permute.xlu0 %517  ;;  %v12993_v30 = vld [vmem:[#allocation9_spill] sm:$0xff] }
 0x1d9   :  { %8180 = vtanh.f32 %v1766_v5  ;;  %v1507_v48 = vmul.f32 %v10161_v46, %v12993_v30 }
 0x1da   :  { %7221 = vmatmul.mubr.bf16.gmra.mxu0 %v1977_v57  ;;  %v863_v57 = vmul.f32 %v10174_v51, %v518_v35 }
 0x1db   :  { %v1203_v61 = vpop.permute.xlu1 %1202 }
 0x1dc   :  { %v1504_v25 = vmul.f32 %v10161_v46, %v1203_v61  ;;  %7974 = vset.pattern.permute.xlu1 %v12974_v17 }
 0x1dd   :  { %547 = vperm.xlu1 %7974, %v95_v1  }
 0x1de   :  { %v1632_v16 = vadd.f32 %v1504_v25, %v860_v49 }
 0x1e0   :  { %v1767_v63 = vadd.f32 %v10575_v54, %v1632_v16  ;;  %v408_v37 = vpop.permute.xlu1 %407  ;;  %v1635_v16 = vadd.f32 %v1507_v48, %v863_v57  ;;  %v110_v48 = vld [vmem:[%s12945_s0 + $0x2f8] sm:$0xff] }
 0x1e1   :  { %7975 = vset.pattern.permute.xlu1 %v12976_v7  ;;  %v8177_v8 = vpop.eup %8176  ;;  %v841_v29 = vmul.f32 %v10174_v51, %v408_v37 }
 0x1e2   :  { %8182 = vtanh.f32 %v1767_v63  ;;  %1238 = vperm.xlu1 %7975, %v95_v1   ;;  %v103_v63 = vld [vmem:[%s12945_s0 + $0x2c0] sm:$0xff] }
 0x1e5   :  { %v8179_v56 = vpop.eup %8178  ;;  %v1127_v45 = vpop.permute.xlu1 %1126 }
 0x1e6   :  { %v1485_v24 = vmul.f32 %v10161_v46, %v1127_v45  ;;  %1242 = vperm.xlu1 %7975, %v10334_v20   ;;  %v1986_v58 = vpack.c.bf16 %v8179_v56, %v8177_v8  ;;  %v8181_v20 = vpop.eup %8180  ;;  %v1770_v45 = vadd.f32 %v10575_v54, %v1635_v16 }
 0x1e8   :  { %v1613_v9 = vadd.f32 %v1485_v24, %v841_v29  ;;  %7240 = vmatprep.mubr.bf16.mxu1 %v1986_v58 }
 0x1e9   :  { %v1131_v18 = vpop.permute.xlu1 %1130 }
 0x1ea   :  { %v1486_v44 = vmul.f32 %v10161_v46, %v1131_v18  ;;  %7976 = vset.pattern.permute.xlu1 %v12974_v17  ;;  %v1748_v21 = vadd.f32 %v10575_v54, %v1613_v9 }
 0x1eb   :  { %562 = vperm.xlu1 %7976, %v98_v3  }
 0x1ec   :  { %v1614_v33 = vadd.f32 %v1486_v44, %v842_v6  ;;  %8184 = vtanh.f32 %v1748_v21  ;;  %v9610_v21 = vld [vmem:[%s12945_s0 + $0x2c8] sm:$0xff] }
 0x1ee   :  { %v1749_v0 = vadd.f32 %v10575_v54, %v1614_v33  ;;  %v423_v36 = vpop.permute.xlu1 %422 }
 0x1ef   :  { %v8183_v43 = vpop.eup %8182  ;;  %7977 = vset.pattern.permute.xlu1 %v12976_v7  ;;  %v844_v12 = vmul.f32 %v10174_v51, %v423_v36 }
 0x1f0   :  { %8186 = vtanh.f32 %v1749_v0  ;;  %1250 = vperm.xlu1 %7977, %v98_v3   ;;  %v1987_v55 = vpack.c.bf16 %v8183_v43, %v8181_v20  ;;  %v433_v3 = vpop.permute.xlu0 %432 }
 0x1f1   :  { %8188 = vtanh.f32 %v1750_v47  ;;  %v846_v33 = vmul.f32 %v10174_v51, %v433_v3 }
 0x1f2   :  { %7241 = vmatmul.mubr.bf16.gmra.mxu1 %v1987_v55  ;;  %v12994_v55 = vld [vmem:[#allocation10_spill] sm:$0xff] }
 0x1f3   :  { %v1139_v13 = vpop.permute.xlu1 %1138  ;;  %v1491_v60 = vmul.f32 %v10161_v46, %v12994_v55 }
 0x1f4   :  { %v1488_v34 = vmul.f32 %v10161_v46, %v1139_v13  ;;  %7978 = vset.pattern.permute.xlu1 %v12974_v17  ;;  %v438_v43 = vpop.permute.xlu0 %437 }
 0x1f5   :  { %567 = vperm.xlu1 %7978, %v99_v14  }
 0x1f6   :  { %v1616_v32 = vadd.f32 %v1488_v34, %v844_v12 }
 0x1f8   :  { %v1751_v26 = vadd.f32 %v10575_v54, %v1616_v32  ;;  %v508_v39 = vpop.permute.xlu1 %507 }
 0x1f9   :  { %7979 = vset.pattern.permute.xlu1 %v12976_v7  ;;  %v8185_v53 = vpop.eup %8184  ;;  %v861_v42 = vmul.f32 %v10174_v51, %v508_v39  ;;  %v107_v39 = vld [vmem:[%s12945_s0 + $0x2e0] sm:$0xff] }
 0x1fa   :  { %8190 = vtanh.f32 %v1751_v26  ;;  %1254 = vperm.xlu1 %7979, %v99_v14   ;;  %v847_v14 = vmul.f32 %v10174_v51, %v438_v43 }
 0x1fc   :  { %v1619_v26 = vadd.f32 %v1491_v60, %v847_v14  ;;  %v114_v60 = vld [vmem:[%s12945_s0 + $0x318] sm:$0xff] }
 0x1fd   :  { %v8187_v38 = vpop.eup %8186  ;;  %v1207_v50 = vpop.permute.xlu1 %1206 }
 0x1fe   :  { %v1505_v11 = vmul.f32 %v10161_v46, %v1207_v50  ;;  %1258 = vperm.xlu1 %7979, %v9609_v62   ;;  %v1978_v41 = vpack.c.bf16 %v8187_v38, %v8185_v53  ;;  %v8189_v1 = vpop.eup %8188  ;;  %v1754_v31 = vadd.f32 %v10575_v54, %v1619_v26 }
 0x200   :  { %v1633_v19 = vadd.f32 %v1505_v11, %v861_v42  ;;  %7224 = vmatprep.mubr.bf16.mxu0 %v1978_v41 }
 0x201   :  { %v1211_v40 = vpop.permute.xlu1 %1210 }
 0x202   :  { %v1506_v22 = vmul.f32 %v10161_v46, %v1211_v40  ;;  %7980 = vset.pattern.permute.xlu1 %v12974_v17  ;;  %v1768_v52 = vadd.f32 %v10575_v54, %v1633_v19 }
 0x203   :  { %582 = vperm.xlu1 %7980, %v102_v2  }
 0x204   :  { %v1634_v4 = vadd.f32 %v1506_v22, %v862_v23  ;;  %8192 = vtanh.f32 %v1768_v52  ;;  %v9611_v52 = vld [vmem:[%s12945_s0 + $0x2e8] sm:$0xff] }
 0x206   :  { %v1769_v61 = vadd.f32 %v10575_v54, %v1634_v4  ;;  %v523_v5 = vpop.permute.xlu1 %522 }
 0x207   :  { %v8191_v49 = vpop.eup %8190  ;;  %7981 = vset.pattern.permute.xlu1 %v12976_v7  ;;  %v864_v8 = vmul.f32 %v10174_v51, %v523_v5 }
 0x208   :  { %8194 = vtanh.f32 %v1769_v61  ;;  %1266 = vperm.xlu1 %7981, %v102_v2   ;;  %v1979_v25 = vpack.c.bf16 %v8191_v49, %v8189_v1  ;;  %v533_v2 = vpop.permute.xlu0 %532 }
 0x209   :  { %8196 = vtanh.f32 %v1770_v45  ;;  %v866_v4 = vmul.f32 %v10174_v51, %v533_v2 }
 0x20a   :  { %7225 = vmatmul.mubr.bf16.gmra.mxu0 %v1979_v25  ;;  %v12995_v25 = vld [vmem:[#allocation11_spill] sm:$0xff] }
 0x20b   :  { %v1219_v37 = vpop.permute.xlu1 %1218  ;;  %v1511_v16 = vmul.f32 %v10161_v46, %v12995_v25 }
 0x20c   :  { %v1508_v56 = vmul.f32 %v10161_v46, %v1219_v37  ;;  %7982 = vset.pattern.permute.xlu1 %v12974_v17  ;;  %v538_v5 = vpop.permute.xlu0 %537 }
 0x20d   :  { %587 = vperm.xlu1 %7982, %v103_v63  }
 0x20e   :  { %v1636_v15 = vadd.f32 %v1508_v56, %v864_v8 }
 0x210   :  { %v1771_v29 = vadd.f32 %v10575_v54, %v1636_v15  ;;  %v428_v24 = vpop.permute.xlu1 %427 }
 0x211   :  { %7983 = vset.pattern.permute.xlu1 %v12976_v7  ;;  %v8193_v58 = vpop.eup %8192  ;;  %v845_v18 = vmul.f32 %v10174_v51, %v428_v24  ;;  %v111_v24 = vld [vmem:[%s12945_s0 + $0x300] sm:$0xff] }
 0x212   :  { %8198 = vtanh.f32 %v1771_v29  ;;  %1270 = vperm.xlu1 %7983, %v103_v63   ;;  %v867_v63 = vmul.f32 %v10174_v51, %v538_v5 }
 0x214   :  { %v1639_v29 = vadd.f32 %v1511_v16, %v867_v63  ;;  %v118_v16 = vld [vmem:[%s12945_s0 + $0x338] sm:$0xff] }
 0x215   :  { %v8195_v6 = vpop.eup %8194  ;;  %v1143_v9 = vpop.permute.xlu1 %1142 }
 0x216   :  { %v1489_v44 = vmul.f32 %v10161_v46, %v1143_v9  ;;  %1274 = vperm.xlu1 %7983, %v9610_v21   ;;  %v1988_v28 = vpack.c.bf16 %v8195_v6, %v8193_v58  ;;  %v8197_v13 = vpop.eup %8196  ;;  %v1774_v3 = vadd.f32 %v10575_v54, %v1639_v29 }
 0x218   :  { %v1617_v20 = vadd.f32 %v1489_v44, %v845_v18  ;;  %7244 = vmatprep.mubr.bf16.mxu1 %v1988_v28 }
 0x219   :  { %v1147_v59 = vpop.permute.xlu1 %1146 }
 0x21a   :  { %v1490_v10 = vmul.f32 %v10161_v46, %v1147_v59  ;;  %7984 = vset.pattern.permute.xlu1 %v12974_v17  ;;  %v1752_v0 = vadd.f32 %v10575_v54, %v1617_v20 }
 0x21b   :  { %602 = vperm.xlu1 %7984, %v106_v27  }
 0x21c   :  { %v1618_v36 = vadd.f32 %v1490_v10, %v846_v33  ;;  %8200 = vtanh.f32 %v1752_v0  ;;  %v9612_v0 = vld [vmem:[%s12945_s0 + $0x308] sm:$0xff] }
 0x21e   :  { %v1753_v12 = vadd.f32 %v10575_v54, %v1618_v36  ;;  %v443_v34 = vpop.permute.xlu1 %442 }
 0x21f   :  { %v8199_v47 = vpop.eup %8198  ;;  %7985 = vset.pattern.permute.xlu1 %v12976_v7  ;;  %v848_v38 = vmul.f32 %v10174_v51, %v443_v34 }
 0x220   :  { %8202 = vtanh.f32 %v1753_v12  ;;  %1282 = vperm.xlu1 %7985, %v106_v27   ;;  %v1989_v32 = vpack.c.bf16 %v8199_v47, %v8197_v13  ;;  %v453_v27 = vpop.permute.xlu0 %452 }
 0x221   :  { %8204 = vtanh.f32 %v1754_v31  ;;  %v850_v36 = vmul.f32 %v10174_v51, %v453_v27 }
 0x222   :  { %7245 = vmatmul.mubr.bf16.gmra.mxu1 %v1989_v32  ;;  %v12996_v32 = vld [vmem:[#allocation12_spill] sm:$0xff] }
 0x223   :  { %v1155_v53 = vpop.permute.xlu1 %1154  ;;  %v1495_v26 = vmul.f32 %v10161_v46, %v12996_v32  ;;  %v122_v32 = vld [vmem:[%s12945_s0 + $0x358] sm:$0xff] }
 0x224   :  { %v1492_v50 = vmul.f32 %v10161_v46, %v1155_v53  ;;  %7986 = vset.pattern.permute.xlu1 %v12974_v17  ;;  %v458_v34 = vpop.permute.xlu0 %457 }
 0x225   :  { %607 = vperm.xlu1 %7986, %v107_v39  }
 0x226   :  { %v1620_v42 = vadd.f32 %v1492_v50, %v848_v38 }
 0x228   :  { %v1755_v11 = vadd.f32 %v10575_v54, %v1620_v42  ;;  %v528_v62 = vpop.permute.xlu1 %527 }
 0x229   :  { %7987 = vset.pattern.permute.xlu1 %v12976_v7  ;;  %v8201_v41 = vpop.eup %8200  ;;  %v865_v40 = vmul.f32 %v10174_v51, %v528_v62  ;;  %v115_v62 = vld [vmem:[%s12945_s0 + $0x320] sm:$0xff] }
 0x22a   :  { %8206 = vtanh.f32 %v1755_v11  ;;  %1286 = vperm.xlu1 %7987, %v107_v39   ;;  %v851_v39 = vmul.f32 %v10174_v51, %v458_v34 }
 0x22c   :  { %v1623_v11 = vadd.f32 %v1495_v26, %v851_v39 }
 0x22d   :  { %v8203_v23 = vpop.eup %8202  ;;  %v1223_v19 = vpop.permute.xlu1 %1222 }
 0x22e   :  { %v1509_v22 = vmul.f32 %v10161_v46, %v1223_v19  ;;  %1290 = vperm.xlu1 %7987, %v9611_v52   ;;  %v1980_v35 = vpack.c.bf16 %v8203_v23, %v8201_v41  ;;  %v8205_v37 = vpop.eup %8204  ;;  %v1758_v2 = vadd.f32 %v10575_v54, %v1623_v11 }
 0x230   :  { %v1637_v30 = vadd.f32 %v1509_v22, %v865_v40  ;;  %7228 = vmatprep.mubr.bf16.mxu0 %v1980_v35 }
 0x231   :  { %v1227_v57 = vpop.permute.xlu1 %1226 }
 0x232   :  { %v1510_v1 = vmul.f32 %v10161_v46, %v1227_v57  ;;  %7988 = vset.pattern.permute.xlu1 %v12974_v17  ;;  %v1772_v61 = vadd.f32 %v10575_v54, %v1637_v30 }
 0x233   :  { %622 = vperm.xlu1 %7988, %v110_v48  }
 0x234   :  { %v1638_v49 = vadd.f32 %v1510_v1, %v866_v4  ;;  %8208 = vtanh.f32 %v1772_v61  ;;  %v9613_v61 = vld [vmem:[%s12945_s0 + $0x328] sm:$0xff] }
 0x236   :  { %v1773_v8 = vadd.f32 %v10575_v54, %v1638_v49  ;;  %v543_v56 = vpop.permute.xlu1 %542 }
 0x237   :  { %v8207_v45 = vpop.eup %8206  ;;  %7989 = vset.pattern.permute.xlu1 %v12976_v7  ;;  %v868_v6 = vmul.f32 %v10174_v51, %v543_v56 }
 0x238   :  { %8210 = vtanh.f32 %v1773_v8  ;;  %1298 = vperm.xlu1 %7989, %v110_v48   ;;  %v1981_v15 = vpack.c.bf16 %v8207_v45, %v8205_v37  ;;  %v553_v48 = vpop.permute.xlu0 %552 }
 0x239   :  { %8212 = vtanh.f32 %v1774_v3  ;;  %v870_v49 = vmul.f32 %v10174_v51, %v553_v48 }
 0x23a   :  { %7229 = vmatmul.mubr.bf16.gmra.mxu0 %v1981_v15  ;;  %v12997_v15 = vld [vmem:[#allocation13_spill] sm:$0xff] }
 0x23b   :  { %v1235_v58 = vpop.permute.xlu1 %1234  ;;  %v1515_v29 = vmul.f32 %v10161_v46, %v12997_v15  ;;  %v126_v15 = vld [vmem:[%s12945_s0 + $0x378] sm:$0xff] }
 0x23c   :  { %v1512_v9 = vmul.f32 %v10161_v46, %v1235_v58  ;;  %7990 = vset.pattern.permute.xlu1 %v12974_v17  ;;  %v558_v56 = vpop.permute.xlu0 %557 }
 0x23d   :  { %627 = vperm.xlu1 %7990, %v111_v24  }
 0x23e   :  { %v1640_v18 = vadd.f32 %v1512_v9, %v868_v6 }
 0x240   :  { %v1775_v44 = vadd.f32 %v10575_v54, %v1640_v18  ;;  %v448_v21 = vpop.permute.xlu1 %447 }
 0x241   :  { %7991 = vset.pattern.permute.xlu1 %v12976_v7  ;;  %v8209_v28 = vpop.eup %8208  ;;  %v849_v59 = vmul.f32 %v10174_v51, %v448_v21  ;;  %v119_v21 = vld [vmem:[%s12945_s0 + $0x340] sm:$0xff] }
 0x242   :  { %8214 = vtanh.f32 %v1775_v44  ;;  %1302 = vperm.xlu1 %7991, %v111_v24   ;;  %v871_v24 = vmul.f32 %v10174_v51, %v558_v56 }
 0x244   :  { %v1643_v44 = vadd.f32 %v1515_v29, %v871_v24  ;;  %v8032_v29 = vld [vmem:[%s12946_s1 + $0xb8] sm:$0xff]  }
 0x245   :  { %v8211_v33 = vpop.eup %8210  ;;  %v1159_v20 = vpop.permute.xlu1 %1158  ;;  %7300 = vmatprep.subr.bf16.mxu1 %v8032_v29 }
 0x246   :  { %v1493_v10 = vmul.f32 %v10161_v46, %v1159_v20  ;;  %1306 = vperm.xlu1 %7991, %v9612_v0   ;;  %v1990_v43 = vpack.c.bf16 %v8211_v33, %v8209_v28  ;;  %v8213_v53 = vpop.eup %8212  ;;  %v1778_v27 = vadd.f32 %v10575_v54, %v1643_v44  ;;  %7301 = vmatpush3.bf16.msra.mxu1 %v8032_v29  ;;  %v12999_v44 = vld [vmem:[#allocation15_spill] sm:$0xff] }
 0x248   :  { %v1621_v55 = vadd.f32 %v1493_v10, %v849_v59  ;;  %7248 = vmatprep.mubr.bf16.mxu1 %v1990_v43 }
 0x249   :  { %v1163_v14 = vpop.permute.xlu1 %1162 }
 0x24a   :  { %v1494_v13 = vmul.f32 %v10161_v46, %v1163_v14  ;;  %7992 = vset.pattern.permute.xlu1 %v12974_v17  ;;  %v1756_v12 = vadd.f32 %v10575_v54, %v1621_v55 }
 0x24b   :  { %642 = vperm.xlu1 %7992, %v114_v60  }
 0x24c   :  { %v1622_v47 = vadd.f32 %v1494_v13, %v850_v36  ;;  %8216 = vtanh.f32 %v1756_v12  ;;  %v9614_v12 = vld [vmem:[%s12945_s0 + $0x348] sm:$0xff] }
 0x24e   :  { %v1757_v38 = vadd.f32 %v10575_v54, %v1622_v47  ;;  %v463_v50 = vpop.permute.xlu1 %462 }
 0x24f   :  { %v8215_v31 = vpop.eup %8214  ;;  %7993 = vset.pattern.permute.xlu1 %v12976_v7  ;;  %v852_v23 = vmul.f32 %v10174_v51, %v463_v50 }
 0x250   :  { %8218 = vtanh.f32 %v1757_v38  ;;  %1314 = vperm.xlu1 %7993, %v114_v60   ;;  %v1991_v42 = vpack.c.bf16 %v8215_v31, %v8213_v53  ;;  %v573_v60 = vpop.permute.xlu0 %572 }
 0x251   :  { %8220 = vtanh.f32 %v1758_v2  ;;  %v874_v39 = vmul.f32 %v10174_v51, %v573_v60 }
 0x252   :  { %7249 = vmatmul.mubr.bf16.gmra.mxu1 %v1991_v42  ;;  %v12998_v42 = vld [vmem:[#allocation14_spill] sm:$0xff] }
 0x253   :  { %v1171_v41 = vpop.permute.xlu1 %1170  ;;  %v1519_v11 = vmul.f32 %v10161_v46, %v12998_v42 }
 0x254   :  { %v1496_v19 = vmul.f32 %v10161_v46, %v1171_v41  ;;  %7994 = vset.pattern.permute.xlu1 %v12974_v17  ;;  %v578_v50 = vpop.permute.xlu0 %577 }
 0x255   :  { %647 = vperm.xlu1 %7994, %v115_v62  }
 0x256   :  { %v1624_v40 = vadd.f32 %v1496_v19, %v852_v23 }
 0x258   :  { %v1759_v22 = vadd.f32 %v10575_v54, %v1624_v40  ;;  %v548_v52 = vpop.permute.xlu1 %547 }
 0x259   :  { %7995 = vset.pattern.permute.xlu1 %v12976_v7  ;;  %v8217_v35 = vpop.eup %8216  ;;  %v869_v57 = vmul.f32 %v10174_v51, %v548_v52  ;;  %v123_v52 = vld [vmem:[%s12945_s0 + $0x360] sm:$0xff] }
 0x25a   :  { %8222 = vtanh.f32 %v1759_v22  ;;  %1318 = vperm.xlu1 %7995, %v115_v62   ;;  %v875_v62 = vmul.f32 %v10174_v51, %v578_v50 }
 0x25c   :  { %v1647_v22 = vadd.f32 %v1519_v11, %v875_v62  ;;  %v130_v62 = vld [vmem:[%s12945_s0 + $0x398] sm:$0xff] }
 0x25d   :  { %v8219_v4 = vpop.eup %8218  ;;  %v1239_v30 = vpop.permute.xlu1 %1238 }
 0x25e   :  { %v1513_v1 = vmul.f32 %v10161_v46, %v1239_v30  ;;  %1322 = vperm.xlu1 %7995, %v9613_v61   ;;  %v1982_v5 = vpack.c.bf16 %v8219_v4, %v8217_v35  ;;  %v8221_v58 = vpop.eup %8220  ;;  %v1782_v48 = vadd.f32 %v10575_v54, %v1647_v22 }
 0x260   :  { %v1641_v25 = vadd.f32 %v1513_v1, %v869_v57  ;;  %7232 = vmatprep.mubr.bf16.mxu0 %v1982_v5 }
 0x261   :  { %v1243_v63 = vpop.permute.xlu1 %1242 }
 0x262   :  { %v1514_v37 = vmul.f32 %v10161_v46, %v1243_v63  ;;  %7996 = vset.pattern.permute.xlu1 %v12974_v17  ;;  %v1776_v8 = vadd.f32 %v10575_v54, %v1641_v25 }
 0x263   :  { %662 = vperm.xlu1 %7996, %v118_v16  }
 0x264   :  { %v1642_v45 = vadd.f32 %v1514_v37, %v870_v49  ;;  %8224 = vtanh.f32 %v1776_v8  ;;  %v9615_v8 = vld [vmem:[%s12945_s0 + $0x368] sm:$0xff] }
 0x266   :  { %v1777_v6 = vadd.f32 %v10575_v54, %v1642_v45  ;;  %v563_v9 = vpop.permute.xlu1 %562 }
 0x267   :  { %v8223_v3 = vpop.eup %8222  ;;  %7997 = vset.pattern.permute.xlu1 %v12976_v7  ;;  %v872_v33 = vmul.f32 %v10174_v51, %v563_v9 }
 0x268   :  { %8226 = vtanh.f32 %v1777_v6  ;;  %1330 = vperm.xlu1 %7997, %v118_v16   ;;  %v1983_v18 = vpack.c.bf16 %v8223_v3, %v8221_v58  ;;  %v593_v16 = vpop.permute.xlu0 %592 }
 0x269   :  { %8228 = vtanh.f32 %v1778_v27  ;;  %v878_v58 = vmul.f32 %v10174_v51, %v593_v16  ;;  %v8034_v16 = vld [vmem:[%s12946_s1 + $0xa8] sm:$0xff]  }
 0x26a   :  { %7233 = vmatmul.mubr.bf16.gmra.mxu0 %v1983_v18 }
 0x26b   :  { %v1251_v28 = vpop.permute.xlu1 %1250 }
 0x26c   :  { %v1516_v20 = vmul.f32 %v10161_v46, %v1251_v28  ;;  %7998 = vset.pattern.permute.xlu1 %v12974_v17  ;;  %v598_v3 = vpop.permute.xlu0 %597 }
 0x26d   :  { %667 = vperm.xlu1 %7998, %v119_v21   ;;  %v879_v28 = vmul.f32 %v10174_v51, %v598_v3 }
 0x26e   :  { %v1644_v59 = vadd.f32 %v1516_v20, %v872_v33 }
 0x270   :  { %v1779_v10 = vadd.f32 %v10575_v54, %v1644_v59  ;;  %v568_v0 = vpop.permute.xlu1 %567 }
 0x271   :  { %7999 = vset.pattern.permute.xlu1 %v12976_v7  ;;  %v8225_v43 = vpop.eup %8224  ;;  %v873_v14 = vmul.f32 %v10174_v51, %v568_v0 }
 0x272   :  { %8230 = vtanh.f32 %v1779_v10  ;;  %1334 = vperm.xlu1 %7999, %v119_v21   ;;  %v1523_v21 = vmul.f32 %v10161_v46, %v12999_v44 }
 0x274   :  { %v1651_v0 = vadd.f32 %v1523_v21, %v879_v28  ;;  %v134_v28 = vld [vmem:[%s12945_s0 + $0x3b8] sm:$0xff] }
 0x275   :  { %v8227_v36 = vpop.eup %8226  ;;  %v1255_v55 = vpop.permute.xlu1 %1254 }
 0x276   :  { %v1517_v13 = vmul.f32 %v10161_v46, %v1255_v55  ;;  %1338 = vperm.xlu1 %7999, %v9614_v12   ;;  %v1992_v34 = vpack.c.bf16 %v8227_v36, %v8225_v43  ;;  %v8229_v41 = vpop.eup %8228  ;;  %v127_v43 = vld [vmem:[%s12945_s0 + $0x380] sm:$0xff] }
 0x278   :  { %v1645_v47 = vadd.f32 %v1517_v13, %v873_v14  ;;  %7252 = vmatprep.mubr.bf16.mxu1 %v1992_v34  ;;  %v1786_v14 = vadd.f32 %v10575_v54, %v1651_v0 }
 0x279   :  { %v1259_v26 = vpop.permute.xlu1 %1258 }
 0x27a   :  { %v1518_v53 = vmul.f32 %v10161_v46, %v1259_v26  ;;  %8000 = vset.pattern.permute.xlu1 %v12974_v17  ;;  %v1780_v38 = vadd.f32 %v10575_v54, %v1645_v47 }
 0x27b   :  { %682 = vperm.xlu1 %8000, %v122_v32  }
 0x27c   :  { %v1646_v31 = vadd.f32 %v1518_v53, %v874_v39  ;;  %8232 = vtanh.f32 %v1780_v38  ;;  %v613_v53 = vpop.permute.xlu0 %612 }
 0x27e   :  { %v1781_v23 = vadd.f32 %v10575_v54, %v1646_v31  ;;  %v583_v19 = vpop.permute.xlu1 %582  ;;  %v9616_v31 = vld [vmem:[%s12945_s0 + $0x388] sm:$0xff] }
 0x27f   :  { %v8231_v2 = vpop.eup %8230  ;;  %8001 = vset.pattern.permute.xlu1 %v12976_v7  ;;  %v876_v4 = vmul.f32 %v10174_v51, %v583_v19 }
 0x280   :  { %8234 = vtanh.f32 %v1781_v23  ;;  %1346 = vperm.xlu1 %8001, %v122_v32   ;;  %v1993_v40 = vpack.c.bf16 %v8231_v2, %v8229_v41  ;;  %v8033_v32 = vld [vmem:[%s12946_s1 + $0xb0] sm:$0xff]   ;;  %v882_v23 = vmul.f32 %v10174_v51, %v613_v53 }
 0x281   :  { %8236 = vtanh.f32 %v1782_v48  ;;  %7302 = vmatprep.subr.bf16.mxu1 %v8033_v32  ;;  %v10870_v48 = vld [vmem:[%s12947_s2] ss:$0 sm:$0xff] }
 0x282   :  { %7253 = vmatmul.mubr.bf16.gmra.mxu1 %v1993_v40  ;;  %v618_v40 = vpop.permute.xlu0 %617 }
 0x283   :  { %v1267_v35 = vpop.permute.xlu1 %1266  ;;  %7303 = vmatpush3.bf16.msra.mxu1 %v8033_v32 }
 0x284   :  { %v1520_v30 = vmul.f32 %v10161_v46, %v1267_v35  ;;  %8002 = vset.pattern.permute.xlu1 %v12974_v17  ;;  %7304 = vmatprep.subr.bf16.mxu1 %v8034_v16 }
 0x285   :  { %687 = vperm.xlu1 %8002, %v123_v52  }
 0x286   :  { %v1648_v57 = vadd.f32 %v1520_v30, %v876_v4  ;;  %v883_v4 = vmul.f32 %v10174_v51, %v618_v40 }
 0x287   :  { %7305 = vmatpush3.bf16.msra.mxu1 %v8034_v16 }
 0x288   :  { %v1783_v1 = vadd.f32 %v10575_v54, %v1648_v57  ;;  %v588_v61 = vpop.permute.xlu1 %587 }
 0x289   :  { %8003 = vset.pattern.permute.xlu1 %v12976_v7  ;;  %v8233_v5 = vpop.eup %8232  ;;  %v877_v63 = vmul.f32 %v10174_v51, %v588_v61 }
 0x28a   :  { %8238 = vtanh.f32 %v1783_v1  ;;  %1350 = vperm.xlu1 %8003, %v123_v52   ;;  %v13000_v52 = vld [vmem:[#allocation16_spill] sm:$0xff] }
 0x28b   :  { %v1527_v35 = vmul.f32 %v10161_v46, %v13000_v52  ;;  %v9619_v52 = vld [vmem:[%s12945_s0 + $0x3c8] sm:$0xff] }
 0x28d   :  { %v8235_v49 = vpop.eup %8234  ;;  %v1271_v25 = vpop.permute.xlu1 %1270 }
 0x28e   :  { %v1521_v37 = vmul.f32 %v10161_v46, %v1271_v25  ;;  %1354 = vperm.xlu1 %8003, %v9615_v8   ;;  %v1994_v56 = vpack.c.bf16 %v8235_v49, %v8233_v5  ;;  %v8237_v33 = vpop.eup %8236  ;;  %v1655_v5 = vadd.f32 %v1527_v35, %v883_v4  ;;  %v131_v49 = vld [vmem:[%s12945_s0 + $0x3a0] sm:$0xff] }
 0x290   :  { %v1649_v45 = vadd.f32 %v1521_v37, %v877_v63  ;;  %7256 = vmatprep.mubr.bf16.mxu1 %v1994_v56  ;;  %v1790_v8 = vadd.f32 %v10870_v48, %v1655_v5 }
 0x291   :  { %v1275_v24 = vpop.permute.xlu1 %1274 }
 0x292   :  { %v1522_v6 = vmul.f32 %v10161_v46, %v1275_v24  ;;  %8004 = vset.pattern.permute.xlu1 %v12974_v17  ;;  %v1784_v9 = vadd.f32 %v10575_v54, %v1649_v45 }
 0x293   :  { %702 = vperm.xlu1 %8004, %v126_v15  }
 0x294   :  { %v1650_v18 = vadd.f32 %v1522_v6, %v878_v58  ;;  %8240 = vtanh.f32 %v1784_v9  ;;  %v633_v6 = vpop.permute.xlu0 %632 }
 0x296   :  { %v1785_v20 = vadd.f32 %v10575_v54, %v1650_v18  ;;  %v603_v27 = vpop.permute.xlu1 %602  ;;  %v9618_v18 = vld [vmem:[%s12945_s0 + $0x3a8] sm:$0xff] }
 0x297   :  { %v8239_v59 = vpop.eup %8238  ;;  %8005 = vset.pattern.permute.xlu1 %v12976_v7  ;;  %v880_v55 = vmul.f32 %v10174_v51, %v603_v27  ;;  %v886_v27 = vmul.f32 %v10174_v51, %v633_v6  ;;  %v8037_v6 = vld [vmem:[%s12946_s1 + $0x90] sm:$0xff]  }
 0x298   :  { %8242 = vtanh.f32 %v1785_v20  ;;  %1362 = vperm.xlu1 %8005, %v126_v15   ;;  %v1995_v10 = vpack.c.bf16 %v8239_v59, %v8237_v33  ;;  %v8035_v33 = vld [vmem:[%s12946_s1 + $0xa0] sm:$0xff]   ;;  %v638_v0 = vpop.permute.xlu0 %637 }
 0x299   :  { %8244 = vtanh.f32 %v1786_v14  ;;  %7306 = vmatprep.subr.bf16.mxu1 %v8035_v33 }
 0x29a   :  { %7257 = vmatmul.mubr.bf16.gmra.mxu1 %v1995_v10 }
 0x29b   :  { %v1283_v36 = vpop.permute.xlu1 %1282  ;;  %7307 = vmatpush3.bf16.msra.mxu1 %v8035_v33 }
 0x29c   :  { %v1524_v60 = vmul.f32 %v10161_v46, %v1283_v36  ;;  %8006 = vset.pattern.permute.xlu1 %v12974_v17  ;;  %v13001_v36 = vld [vmem:[#allocation17_spill] sm:$0xff] }
 0x29d   :  { %707 = vperm.xlu1 %8006, %v127_v43  }
 0x29e   :  { %v1652_v13 = vadd.f32 %v1524_v60, %v880_v55  ;;  %v1531_v55 = vmul.f32 %v10161_v46, %v13001_v36  ;;  %v887_v60 = vmul.f32 %v10174_v51, %v638_v0 }
 0x2a0   :  { %v1787_v12 = vadd.f32 %v10575_v54, %v1652_v13  ;;  %v608_v34 = vpop.permute.xlu1 %607  ;;  %v1659_v32 = vadd.f32 %v1531_v55, %v887_v60  ;;  %v142_v60 = vld [vmem:[%s12945_s0 + $0x3f8] sm:$0xff] }
 0x2a1   :  { %8007 = vset.pattern.permute.xlu1 %v12976_v7  ;;  %v8241_v47 = vpop.eup %8240  ;;  %v881_v38 = vmul.f32 %v10174_v51, %v608_v34 }
 0x2a2   :  { %8246 = vtanh.f32 %v1787_v12  ;;  %1366 = vperm.xlu1 %8007, %v127_v43  }
 0x2a5   :  { %v8243_v26 = vpop.eup %8242  ;;  %v1287_v39 = vpop.permute.xlu1 %1286 }
 0x2a6   :  { %v1525_v50 = vmul.f32 %v10161_v46, %v1287_v39  ;;  %1370 = vperm.xlu1 %8007, %v9616_v31   ;;  %v1996_v42 = vpack.c.bf16 %v8243_v26, %v8241_v47  ;;  %v8245_v30 = vpop.eup %8244  ;;  %v135_v26 = vld [vmem:[%s12945_s0 + $0x3c0] sm:$0xff] }
 0x2a8   :  { %v1653_v11 = vadd.f32 %v1525_v50, %v881_v38  ;;  %7260 = vmatprep.mubr.bf16.mxu1 %v1996_v42  ;;  %v1794_v50 = vadd.f32 %v10870_v48, %v1659_v32 }
 0x2a9   :  { %v1291_v41 = vpop.permute.xlu1 %1290 }
 0x2aa   :  { %v1526_v19 = vmul.f32 %v10161_v46, %v1291_v41  ;;  %8008 = vset.pattern.permute.xlu1 %v12974_v17  ;;  %v1788_v2 = vadd.f32 %v10575_v54, %v1653_v11  ;;  %v8036_v41 = vld [vmem:[%s12946_s1 + $0x98] sm:$0xff]  }
 0x2ab   :  { %722 = vperm.xlu1 %8008, %v130_v62   ;;  %7308 = vmatprep.subr.bf16.mxu1 %v8036_v41 }
 0x2ac   :  { %v1654_v22 = vadd.f32 %v1526_v19, %v882_v23  ;;  %8248 = vtanh.f32 %v1788_v2  ;;  %v653_v2 = vpop.permute.xlu0 %652  ;;  %7309 = vmatpush3.bf16.msra.mxu1 %v8036_v41 }
 0x2ad   :  { %7310 = vmatprep.subr.bf16.mxu1 %v8037_v6 }
 0x2ae   :  { %v1789_v57 = vadd.f32 %v10870_v48, %v1654_v22  ;;  %v623_v1 = vpop.permute.xlu1 %622 }
 0x2af   :  { %v8247_v61 = vpop.eup %8246  ;;  %8009 = vset.pattern.permute.xlu1 %v12976_v7  ;;  %v884_v63 = vmul.f32 %v10174_v51, %v623_v1  ;;  %v890_v1 = vmul.f32 %v10174_v51, %v653_v2 }
 0x2b0   :  { %8250 = vtanh.f32 %v1789_v57  ;;  %1378 = vperm.xlu1 %8009, %v130_v62   ;;  %v1997_v54 = vpack.c.bf16 %v8247_v61, %v8245_v30  ;;  %v138_v30 = vld [vmem:[%s12945_s0 + $0x3d8] sm:$0xff]  ;;  %v658_v5 = vpop.permute.xlu0 %657  ;;  %7311 = vmatpush3.bf16.msra.mxu1 %v8037_v6 }
 0x2b1   :  { %8252 = vtanh.f32 %v1790_v8 }
 0x2b2   :  { %7261 = vmatmul.mubr.bf16.gmra.mxu1 %v1997_v54 }
 0x2b3   :  { %v1299_v25 = vpop.permute.xlu1 %1298 }
 0x2b4   :  { %v1528_v37 = vmul.f32 %v10161_v46, %v1299_v25  ;;  %8010 = vset.pattern.permute.xlu1 %v12974_v17  ;;  %v13002_v25 = vld [vmem:[#allocation18_spill] sm:$0xff] }
 0x2b5   :  { %727 = vperm.xlu1 %8010, %v131_v49   ;;  %v1535_v16 = vmul.f32 %v10161_v46, %v13002_v25 }
 0x2b6   :  { %v1656_v56 = vadd.f32 %v1528_v37, %v884_v63  ;;  %v891_v63 = vmul.f32 %v10174_v51, %v658_v5 }
 0x2b8   :  { %v1791_v45 = vadd.f32 %v10870_v48, %v1656_v56  ;;  %v628_v15 = vpop.permute.xlu1 %627 }
 0x2b9   :  { %8011 = vset.pattern.permute.xlu1 %v12976_v7  ;;  %v8249_v29 = vpop.eup %8248  ;;  %v885_v9 = vmul.f32 %v10174_v51, %v628_v15 }
 0x2ba   :  { %8254 = vtanh.f32 %v1791_v45  ;;  %1382 = vperm.xlu1 %8011, %v131_v49  }
 0x2bd   :  { %v8251_v24 = vpop.eup %8250  ;;  %v1303_v58 = vpop.permute.xlu1 %1302 }
 0x2be   :  { %v1529_v3 = vmul.f32 %v10161_v46, %v1303_v58  ;;  %1386 = vperm.xlu1 %8011, %v9618_v18   ;;  %v1998_v44 = vpack.c.bf16 %v8251_v24, %v8249_v29  ;;  %v8253_v14 = vpop.eup %8252  ;;  %v1663_v29 = vadd.f32 %v1535_v16, %v891_v63  ;;  %v139_v24 = vld [vmem:[%s12945_s0 + $0x3e0] sm:$0xff] }
 0x2c0   :  { %v1657_v21 = vadd.f32 %v1529_v3, %v885_v9  ;;  %7264 = vmatprep.mubr.bf16.mxu1 %v1998_v44  ;;  %v1798_v18 = vadd.f32 %v10870_v48, %v1663_v29 }
 0x2c1   :  { %v1307_v20 = vpop.permute.xlu1 %1306 }
 0x2c2   :  { %v1530_v59 = vmul.f32 %v10161_v46, %v1307_v20  ;;  %8012 = vset.pattern.permute.xlu1 %v12974_v17  ;;  %v1792_v10 = vadd.f32 %v10870_v48, %v1657_v21 }
 0x2c3   :  { %742 = vperm.xlu1 %8012, %v134_v28  }
 0x2c4   :  { %v1658_v43 = vadd.f32 %v1530_v59, %v886_v27  ;;  %8256 = vtanh.f32 %v1792_v10  ;;  %v673_v59 = vpop.permute.xlu0 %672 }
 0x2c6   :  { %v1793_v13 = vadd.f32 %v10870_v48, %v1658_v43  ;;  %v643_v12 = vpop.permute.xlu1 %642  ;;  %v9620_v43 = vld [vmem:[%s12945_s0 + $0x3e8] sm:$0xff] }
 0x2c7   :  { %v8255_v34 = vpop.eup %8254  ;;  %8013 = vset.pattern.permute.xlu1 %v12976_v7  ;;  %v888_v53 = vmul.f32 %v10174_v51, %v643_v12  ;;  %v894_v12 = vmul.f32 %v10174_v51, %v673_v59 }
 0x2c8   :  { %8258 = vtanh.f32 %v1793_v13  ;;  %1394 = vperm.xlu1 %8013, %v134_v28   ;;  %v1999_v47 = vpack.c.bf16 %v8255_v34, %v8253_v14  ;;  %v8038_v14 = vld [vmem:[%s12946_s1 + $0x88] sm:$0xff]   ;;  %v678_v32 = vpop.permute.xlu0 %677 }
 0x2c9   :  { %8260 = vtanh.f32 %v1794_v50  ;;  %7312 = vmatprep.subr.bf16.mxu1 %v8038_v14 }
 0x2ca   :  { %7265 = vmatmul.mubr.bf16.gmra.mxu1 %v1999_v47 }
 0x2cb   :  { %v1315_v39 = vpop.permute.xlu1 %1314  ;;  %7313 = vmatpush3.bf16.msra.mxu1 %v8038_v14 }
 0x2cc   :  { %v1532_v38 = vmul.f32 %v10161_v46, %v1315_v39  ;;  %8014 = vset.pattern.permute.xlu1 %v12974_v17  ;;  %v13003_v39 = vld [vmem:[#allocation19_spill] sm:$0xff] }
 0x2cd   :  { %747 = vperm.xlu1 %8014, %v135_v26  }
 0x2ce   :  { %v1660_v31 = vadd.f32 %v1532_v38, %v888_v53  ;;  %v1539_v53 = vmul.f32 %v10161_v46, %v13003_v39  ;;  %v895_v38 = vmul.f32 %v10174_v51, %v678_v32 }
 0x2d0   :  { %v1795_v42 = vadd.f32 %v10870_v48, %v1660_v31  ;;  %v648_v11 = vpop.permute.xlu1 %647 }
 0x2d1   :  { %8015 = vset.pattern.permute.xlu1 %v12976_v7  ;;  %v8257_v62 = vpop.eup %8256  ;;  %v889_v40 = vmul.f32 %v10174_v51, %v648_v11 }
 0x2d2   :  { %8262 = vtanh.f32 %v1795_v42  ;;  %1398 = vperm.xlu1 %8015, %v135_v26  }
 0x2d5   :  { %v8259_v23 = vpop.eup %8258  ;;  %v1319_v19 = vpop.permute.xlu1 %1318 }
 0x2d6   :  { %v1533_v22 = vmul.f32 %v10161_v46, %v1319_v19  ;;  %1402 = vperm.xlu1 %8015, %v9619_v52   ;;  %v2000_v35 = vpack.c.bf16 %v8259_v23, %v8257_v62  ;;  %v8261_v37 = vpop.eup %8260  ;;  %v1667_v62 = vadd.f32 %v1539_v53, %v895_v38 }
 0x2d8   :  { %v1661_v4 = vadd.f32 %v1533_v22, %v889_v40  ;;  %7268 = vmatprep.mubr.bf16.mxu1 %v2000_v35  ;;  %v1802_v2 = vadd.f32 %v10870_v48, %v1667_v62  ;;  %v10970_v40 = vpop.f32.mrf.mxu0 }
 0x2d9   :  { %v1323_v57 = vpop.permute.xlu1 %1322 }
 0x2da   :  { %v1534_v61 = vmul.f32 %v10161_v46, %v1323_v57  ;;  %8016 = vset.pattern.permute.xlu1 %v12974_v17  ;;  %v1796_v54 = vadd.f32 %v10870_v48, %v1661_v4  ;;  %v10976_v4 = vpop.f32.mrf.mxu0 }
 0x2db   :  { %762 = vperm.xlu1 %8016, %v138_v30  }
 0x2dc   :  { %v1662_v49 = vadd.f32 %v1534_v61, %v890_v1  ;;  %8264 = vtanh.f32 %v1796_v54  ;;  %v693_v61 = vpop.permute.xlu0 %692  ;;  %v10978_v54 = vpop.f32.mrf.mxu0 }
 0x2de   :  { %v1797_v8 = vadd.f32 %v10870_v48, %v1662_v49  ;;  %v663_v56 = vpop.permute.xlu1 %662 }
 0x2df   :  { %v8263_v45 = vpop.eup %8262  ;;  %8018 = vset.pattern.permute.xlu1 %v12976_v7  ;;  %v892_v9 = vmul.f32 %v10174_v51, %v663_v56 }
 0x2e0   :  { %8266 = vtanh.f32 %v1797_v8  ;;  %1410 = vperm.xlu1 %8018, %v138_v30   ;;  %v2001_v15 = vpack.c.bf16 %v8263_v45, %v8261_v37  ;;  %v898_v37 = vmul.f32 %v10174_v51, %v693_v61  ;;  %v10983_v8 = vpop.f32.mrf.mxu0 }
 0x2e1   :  { %8268 = vtanh.f32 %v1798_v18 }
 0x2e2   :  { %7269 = vmatmul.mubr.bf16.gmra.mxu1 %v2001_v15  ;;  %v698_v15 = vpop.permute.xlu0 %697 }
 0x2e3   :  { %v1331_v58 = vpop.permute.xlu1 %1330  ;;  %v899_v6 = vmul.f32 %v10174_v51, %v698_v15 }
 0x2e4   :  { %v1536_v3 = vmul.f32 %v10161_v46, %v1331_v58  ;;  %8019 = vset.pattern.permute.xlu1 %v12974_v17 }
 0x2e5   :  { %767 = vperm.xlu1 %8019, %v139_v24  }
 0x2e6   :  { %v1664_v44 = vadd.f32 %v1536_v3, %v892_v9  ;;  %v10990_v3 = vpop.f32.mrf.mxu0 }
 0x2e8   :  { %v1799_v21 = vadd.f32 %v10870_v48, %v1664_v44  ;;  %v668_v28 = vpop.permute.xlu1 %667 }
 0x2e9   :  { %8020 = vset.pattern.permute.xlu1 %v12976_v7  ;;  %v8265_v33 = vpop.eup %8264  ;;  %v893_v10 = vmul.f32 %v10174_v51, %v668_v28 }
 0x2ea   :  { %8270 = vtanh.f32 %v1799_v21  ;;  %1414 = vperm.xlu1 %8020, %v139_v24   ;;  %v13004_v24 = vld [vmem:[#allocation20_spill] sm:$0xff] }
 0x2eb   :  { %v1543_v58 = vmul.f32 %v10161_v46, %v13004_v24 }
 0x2ed   :  { %v8267_v20 = vpop.eup %8266  ;;  %v1335_v27 = vpop.permute.xlu1 %1334 }
 0x2ee   :  { %v1537_v0 = vmul.f32 %v10161_v46, %v1335_v27  ;;  %1418 = vperm.xlu1 %8020, %v9620_v43   ;;  %v2002_v36 = vpack.c.bf16 %v8267_v20, %v8265_v33  ;;  %v8269_v50 = vpop.eup %8268  ;;  %v1671_v33 = vadd.f32 %v1543_v58, %v899_v6  ;;  %v10993_v20 = vpop.f32.mrf.mxu0 }
 0x2f0   :  { %v1665_v55 = vadd.f32 %v1537_v0, %v893_v10  ;;  %7272 = vmatprep.mubr.bf16.mxu1 %v2002_v36  ;;  %v1806_v0 = vadd.f32 %v10870_v48, %v1671_v33  ;;  %v10998_v43 = vpop.f32.mrf.mxu0 }
 0x2f1   :  { %v1339_v13 = vpop.permute.xlu1 %1338 }
 0x2f2   :  { %v1538_v34 = vmul.f32 %v10161_v46, %v1339_v13  ;;  %8021 = vset.pattern.permute.xlu1 %v12974_v17  ;;  %v1800_v47 = vadd.f32 %v10870_v48, %v1665_v55  ;;  %v11001_v14 = vpop.f32.mrf.mxu0 }
 0x2f3   :  { %782 = vperm.xlu1 %8021, %v142_v60  }
 0x2f4   :  { %v1666_v26 = vadd.f32 %v1538_v34, %v894_v12  ;;  %8272 = vtanh.f32 %v1800_v47  ;;  %v713_v47 = vpop.permute.xlu0 %712  ;;  %v11003_v32 = vpop.f32.mrf.mxu0 }
 0x2f6   :  { %v1801_v31 = vadd.f32 %v10870_v48, %v1666_v26  ;;  %v683_v42 = vpop.permute.xlu1 %682 }
 0x2f7   :  { %v8271_v11 = vpop.eup %8270  ;;  %8023 = vset.pattern.permute.xlu1 %v12976_v7  ;;  %v896_v23 = vmul.f32 %v10174_v51, %v683_v42  ;;  %v8039_v7 = vld [vmem:[%s12946_s1 + $0x80] sm:$0xff]   ;;  %v11008_v42 = vpop.f32.mrf.mxu0 }
 0x2f8   :  { %8274 = vtanh.f32 %v1801_v31  ;;  %1426 = vperm.xlu1 %8023, %v142_v60   ;;  %v2003_v17 = vpack.c.bf16 %v8271_v11, %v8269_v50  ;;  %7314 = vmatprep.subr.bf16.mxu1 %v8039_v7  ;;  %v902_v31 = vmul.f32 %v10174_v51, %v713_v47  ;;  %v718_v62 = vpop.permute.xlu0 %717 }
 0x2f9   :  { %8276 = vtanh.f32 %v1802_v2  ;;  %7315 = vmatpush3.bf16.msra.mxu1 %v8039_v7  ;;  %v903_v2 = vmul.f32 %v10174_v51, %v718_v62 }
 0x2fa   :  { %7273 = vmatmul.mubr.bf16.gmra.mxu1 %v2003_v17 }
 0x2fb   :  { %v1347_v41 = vpop.permute.xlu1 %1346 }
 0x2fc   :  { %v1540_v19 = vmul.f32 %v10161_v46, %v1347_v41  ;;  %v733_v6 = vpop.permute.xlu0 %732 }
 0x2fe   :  { %v1668_v22 = vadd.f32 %v1540_v19, %v896_v23  ;;  %v13005_v23 = vld [vmem:[#allocation21_spill] sm:$0xff] }
 0x2ff   :  { %v1547_v19 = vmul.f32 %v10161_v46, %v13005_v23 }
 0x300   :  { %v1803_v52 = vadd.f32 %v10870_v48, %v1668_v22  ;;  %v688_v35 = vpop.permute.xlu1 %687 }
 0x301   :  { %v8273_v30 = vpop.eup %8272  ;;  %v897_v5 = vmul.f32 %v10174_v51, %v688_v35 }
 0x302   :  { %8278 = vtanh.f32 %v1803_v52  ;;  %v11015_v52 = vpop.f32.mrf.mxu0 }
 0x304   :  { %v11018_v61 = vpop.f32.mrf.mxu0 }
 0x305   :  { %v8275_v57 = vpop.eup %8274  ;;  %v1351_v1 = vpop.permute.xlu1 %1350 }
 0x306   :  { %v1541_v49 = vmul.f32 %v10161_v46, %v1351_v1  ;;  %v2004_v25 = vpack.c.bf16 %v8275_v57, %v8273_v30  ;;  %v8277_v9 = vpop.eup %8276  ;;  %v1675_v1 = vadd.f32 %v1547_v19, %v903_v2 }
 0x308   :  { %v1669_v16 = vadd.f32 %v1541_v49, %v897_v5  ;;  %7276 = vmatprep.mubr.bf16.mxu1 %v2004_v25 }
 0x309   :  { %v1355_v63 = vpop.permute.xlu1 %1354 }
 0x30a   :  { %v1542_v56 = vmul.f32 %v10161_v46, %v1355_v63  ;;  %v1804_v45 = vadd.f32 %v10870_v48, %v1669_v16  ;;  %v1810_v16 = vadd.f32 %v10870_v48, %v1675_v1  ;;  %v11023_v63 = vpop.f32.mrf.mxu0 }
 0x30c   :  { %v1670_v29 = vadd.f32 %v1542_v56, %v898_v37  ;;  %8280 = vtanh.f32 %v1804_v45  ;;  %v11026_v15 = vpop.f32.mrf.mxu0 }
 0x30e   :  { %v1805_v18 = vadd.f32 %v10870_v48, %v1670_v29  ;;  %v703_v44 = vpop.permute.xlu1 %702 }
 0x30f   :  { %v8279_v21 = vpop.eup %8278  ;;  %v900_v59 = vmul.f32 %v10174_v51, %v703_v44 }
 0x310   :  { %8282 = vtanh.f32 %v1805_v18  ;;  %v2005_v28 = vpack.c.bf16 %v8279_v21, %v8277_v9  ;;  %v11028_v9 = vpop.f32.mrf.mxu0 }
 0x311   :  { %8284 = vtanh.f32 %v1806_v0 }
 0x312   :  { %7277 = vmatmul.mubr.bf16.gmra.mxu1 %v2005_v28 }
 0x313   :  { %v1363_v27 = vpop.permute.xlu1 %1362 }
 0x314   :  { %v1544_v10 = vmul.f32 %v10161_v46, %v1363_v27  ;;  %v906_v27 = vmul.f32 %v10174_v51, %v733_v6 }
 0x316   :  { %v1672_v36 = vadd.f32 %v1544_v10, %v900_v59  ;;  %v11033_v59 = vpop.f32.mrf.mxu0 }
 0x318   :  { %v1807_v55 = vadd.f32 %v10870_v48, %v1672_v36  ;;  %v708_v60 = vpop.permute.xlu1 %707  ;;  %v738_v36 = vpop.permute.xlu0 %737 }
 0x319   :  { %v8281_v13 = vpop.eup %8280  ;;  %v901_v26 = vmul.f32 %v10174_v51, %v708_v60  ;;  %v13006_v60 = vld [vmem:[#allocation24_spill] sm:$0xff]  ;;  %v11040_v47 = vpop.f32.mrf.mxu0 }
 0x31a   :  { %8286 = vtanh.f32 %v1807_v55 }
 0x31d   :  { %v8283_v12 = vpop.eup %8282  ;;  %v1367_v34 = vpop.permute.xlu1 %1366 }
 0x31e   :  { %v1545_v39 = vmul.f32 %v10161_v46, %v1367_v34  ;;  %v2006_v53 = vpack.c.bf16 %v8283_v12, %v8281_v13  ;;  %v8285_v22 = vpop.eup %8284  ;;  %v1551_v13 = vmul.f32 %v10161_v46, %v13006_v60  ;;  %v907_v12 = vmul.f32 %v10174_v51, %v738_v36 }
 0x320   :  { %v1673_v38 = vadd.f32 %v1545_v39, %v901_v26  ;;  %7280 = vmatprep.mubr.bf16.mxu1 %v2006_v53 }
 0x321   :  { %v1371_v50 = vpop.permute.xlu1 %1370 }
 0x322   :  { %v1546_v11 = vmul.f32 %v10161_v46, %v1371_v50  ;;  %v1808_v17 = vadd.f32 %v10870_v48, %v1673_v38  ;;  %v1679_v50 = vadd.f32 %v1551_v13, %v907_v12 }
 0x324   :  { %v1674_v41 = vadd.f32 %v1546_v11, %v902_v31  ;;  %8288 = vtanh.f32 %v1808_v17  ;;  %v11043_v31 = vpop.f32.mrf.mxu0 }
 0x326   :  { %v1809_v35 = vadd.f32 %v10870_v48, %v1674_v41  ;;  %v723_v7 = vpop.permute.xlu1 %722  ;;  %v1814_v41 = vadd.f32 %v10870_v48, %v1679_v50  ;;  %v11048_v23 = vpop.f32.mrf.mxu0 }
 0x327   :  { %v8287_v30 = vpop.eup %8286  ;;  %v904_v49 = vmul.f32 %v10174_v51, %v723_v7 }
 0x328   :  { %8290 = vtanh.f32 %v1809_v35  ;;  %v2007_v57 = vpack.c.bf16 %v8287_v30, %v8285_v22  ;;  %v11051_v35 = vpop.f32.mrf.mxu0  ;;  %v753_v30 = vpop.permute.xlu0 %752 }
 0x329   :  { %8292 = vtanh.f32 %v1810_v16 }
 0x32a   :  { %7281 = vmatmul.mubr.bf16.gmra.mxu1 %v2007_v57 }
 0x32b   :  { %v1379_v5 = vpop.permute.xlu1 %1378 }
 0x32c   :  { %v1548_v25 = vmul.f32 %v10161_v46, %v1379_v5  ;;  %v11053_v5 = vpop.f32.mrf.mxu0 }
 0x32e   :  { %v1676_v37 = vadd.f32 %v1548_v25, %v904_v49 }
 0x330   :  { %v1811_v56 = vadd.f32 %v10870_v48, %v1676_v37  ;;  %v728_v45 = vpop.permute.xlu1 %727 }
 0x331   :  { %v8289_v29 = vpop.eup %8288  ;;  %v905_v18 = vmul.f32 %v10174_v51, %v728_v45  ;;  %v910_v45 = vmul.f32 %v10174_v51, %v753_v30 }
 0x332   :  { %8294 = vtanh.f32 %v1811_v56 }
 0x335   :  { %v8291_v24 = vpop.eup %8290  ;;  %v1383_v58 = vpop.permute.xlu1 %1382 }
 0x336   :  { %v1549_v44 = vmul.f32 %v10161_v46, %v1383_v58  ;;  %v2008_v21 = vpack.c.bf16 %v8291_v24, %v8289_v29  ;;  %v8293_v34 = vpop.eup %8292  ;;  %v758_v29 = vpop.permute.xlu0 %757 }
 0x337   :  { %v11058_v24 = vpop.f32.mrf.mxu0 }
 0x338   :  { %v1677_v28 = vadd.f32 %v1549_v44, %v905_v18  ;;  %7284 = vmatprep.mubr.bf16.mxu1 %v2008_v21  ;;  %v13007_v44 = vld [vmem:[#allocation25_spill] sm:$0xff] }
 0x339   :  { %v1387_v33 = vpop.permute.xlu1 %1386  ;;  %v1555_v21 = vmul.f32 %v10161_v46, %v13007_v44  ;;  %v8040_v44 = vld [vmem:[%s12946_s1 + $0xf8] sm:$0xff]  }
 0x33a   :  { %v1550_v10 = vmul.f32 %v10161_v46, %v1387_v33  ;;  %v1812_v0 = vadd.f32 %v10870_v48, %v1677_v28  ;;  %v911_v28 = vmul.f32 %v10174_v51, %v758_v29  ;;  %7444 = vmatprep.subr.bf16.mxu0 %v8040_v44 }
 0x33b   :  { %7445 = vmatpush3.bf16.msra.mxu0 %v8040_v44 }
 0x33c   :  { %v1678_v55 = vadd.f32 %v1550_v10, %v906_v27  ;;  %8296 = vtanh.f32 %v1812_v0  ;;  %v11065_v27 = vpop.f32.mrf.mxu0  ;;  %v1683_v60 = vadd.f32 %v1555_v21, %v911_v28 }
 0x33e   :  { %v1813_v26 = vadd.f32 %v10870_v48, %v1678_v55  ;;  %v743_v39 = vpop.permute.xlu1 %742  ;;  %v11068_v13 = vpop.f32.mrf.mxu0 }
 0x33f   :  { %v8295_v53 = vpop.eup %8294  ;;  %v908_v17 = vmul.f32 %v10174_v51, %v743_v39  ;;  %v1818_v39 = vadd.f32 %v10870_v48, %v1683_v60 }
 0x340   :  { %8298 = vtanh.f32 %v1813_v26  ;;  %v2009_v38 = vpack.c.bf16 %v8295_v53, %v8293_v34  ;;  %v11073_v53 = vpop.f32.mrf.mxu0 }
 0x341   :  { %8300 = vtanh.f32 %v1814_v41 }
 0x342   :  { %7285 = vmatmul.mubr.bf16.gmra.mxu1 %v2009_v38  ;;  %v773_v38 = vpop.permute.xlu0 %772 }
 0x343   :  { %v1395_v11 = vpop.permute.xlu1 %1394 }
 0x344   :  { %v1552_v62 = vmul.f32 %v10161_v46, %v1395_v11 }
 0x346   :  { %v1680_v19 = vadd.f32 %v1552_v62, %v908_v17  ;;  %v11076_v62 = vpop.f32.mrf.mxu0 }
 0x348   :  { %v1815_v2 = vadd.f32 %v10870_v48, %v1680_v19  ;;  %v748_v22 = vpop.permute.xlu1 %747  ;;  %v778_v19 = vpop.permute.xlu0 %777 }
 0x349   :  { %v8297_v7 = vpop.eup %8296  ;;  %v909_v49 = vmul.f32 %v10174_v51, %v748_v22 }
 0x34a   :  { %8302 = vtanh.f32 %v1815_v2 }
 0x34d   :  { %v8299_v57 = vpop.eup %8298  ;;  %v1399_v1 = vpop.permute.xlu1 %1398 }
 0x34e   :  { %v1553_v25 = vmul.f32 %v10161_v46, %v1399_v1  ;;  %v2010_v16 = vpack.c.bf16 %v8299_v57, %v8297_v7  ;;  %v8301_v33 = vpop.eup %8300  ;;  %v11078_v7 = vpop.f32.mrf.mxu0 }
 0x350   :  { %v1681_v37 = vadd.f32 %v1553_v25, %v909_v49  ;;  %7288 = vmatprep.mubr.bf16.mxu1 %v2010_v16  ;;  %v11082_v16 = vpop.f32.mrf.mxu0 }
 0x351   :  { %v1403_v56 = vpop.permute.xlu1 %1402 }
 0x352   :  { %v1554_v58 = vmul.f32 %v10161_v46, %v1403_v56  ;;  %v1816_v6 = vadd.f32 %v10870_v48, %v1681_v37  ;;  %v914_v37 = vmul.f32 %v10174_v51, %v773_v38  ;;  %v1423_v56 = vpop.permute.xlu0 %1422  ;;  %v11092_v28 = vpop.f32.mrf.mxu0 }
 0x354   :  { %v1682_v18 = vadd.f32 %v1554_v58, %v910_v45  ;;  %8304 = vtanh.f32 %v1816_v6  ;;  %v915_v6 = vmul.f32 %v10174_v51, %v778_v19  ;;  %v11095_v60 = vpop.f32.mrf.mxu0  ;;  %v11111_v19 = vpop.f32.mrf.mxu1 }
 0x356   :  { %v1817_v10 = vadd.f32 %v10870_v48, %v1682_v18  ;;  %v763_v0 = vpop.permute.xlu1 %762  ;;  %v1559_v18 = vmul.f32 %v10161_v46, %v1423_v56 }
 0x357   :  { %v8303_v36 = vpop.eup %8302  ;;  %v912_v34 = vmul.f32 %v10174_v51, %v763_v0 }
 0x358   :  { %8306 = vtanh.f32 %v1817_v10  ;;  %v2011_v55 = vpack.c.bf16 %v8303_v36, %v8301_v33 }
 0x359   :  { %8308 = vtanh.f32 %v1818_v39 }
 0x35a   :  { %7289 = vmatmul.mubr.bf16.gmra.mxu1 %v2011_v55  ;;  %v1687_v55 = vadd.f32 %v1559_v18, %v915_v6 }
 0x35b   :  { %v1411_v12 = vpop.permute.xlu1 %1410 }
 0x35c   :  { %v1556_v26 = vmul.f32 %v10161_v46, %v1411_v12  ;;  %v11100_v12 = vld [vmem:[%s12947_s2 + $0x1] ss:$0 sm:$0xff] }
 0x35d   :  { %v2156_v44 = vadd.f32 %v11100_v12, %v11008_v42  ;;  %v2167_v42 = vadd.f32 %v11015_v52, %v11100_v12 }
 0x35e   :  { %v1684_v50 = vadd.f32 %v1556_v26, %v912_v34  ;;  %v2127_v26 = vadd.f32 %v11100_v12, %v10983_v8  ;;  %v2135_v8 = vadd.f32 %v10978_v54, %v11100_v12 }
 0x360   :  { %v1819_v11 = vadd.f32 %v10870_v48, %v1684_v50  ;;  %v768_v17 = vpop.permute.xlu1 %767  ;;  %v1822_v50 = vadd.f32 %v10870_v48, %v1687_v55  ;;  %v2175_v55 = vadd.f32 %v11100_v12, %v11033_v59 }
 0x361   :  { %v8305_v41 = vpop.eup %8304  ;;  %v913_v30 = vmul.f32 %v10174_v51, %v768_v17 }
 0x362   :  { %8310 = vtanh.f32 %v1819_v11  ;;  %v11107_v11 = vpop.f32.mrf.mxu0 }
 0x365   :  { %v8307_v2 = vpop.eup %8306  ;;  %v1415_v22 = vpop.permute.xlu1 %1414 }
 0x366   :  { %v1557_v57 = vmul.f32 %v10161_v46, %v1415_v22  ;;  %v2012_v1 = vpack.c.bf16 %v8307_v2, %v8305_v41  ;;  %v8309_v21 = vpop.eup %8308  ;;  %v2124_v41 = vadd.f32 %v11100_v12, %v10976_v4  ;;  %v11114_v22 = vpop.f32.mrf.mxu0 }
 0x367   :  { %v11123_v4 = vpop.f32.mrf.mxu1 }
 0x368   :  { %v1685_v49 = vadd.f32 %v1557_v57, %v913_v30  ;;  %7292 = vmatprep.mubr.bf16.mxu1 %v2012_v1  ;;  %v11121_v30 = vpop.f32.mrf.mxu0  ;;  %v2132_v1 = vadd.f32 %v10970_v40, %v11100_v12 }
 0x369   :  { %v1419_v25 = vpop.permute.xlu1 %1418  ;;  %v11133_v54 = vpop.f32.mrf.mxu1 }
 0x36a   :  { %v1558_v45 = vmul.f32 %v10161_v46, %v1419_v25  ;;  %v1820_v29 = vadd.f32 %v10870_v48, %v1685_v49  ;;  %v2140_v25 = vadd.f32 %v11100_v12, %v10993_v20  ;;  %v2159_v20 = vadd.f32 %v11100_v12, %v11018_v61 }
 0x36b   :  { %v11139_v40 = vpop.f32.mrf.mxu1 }
 0x36c   :  { %v1686_v58 = vadd.f32 %v1558_v45, %v914_v37  ;;  %8312 = vtanh.f32 %v1820_v29  ;;  %v11131_v37 = vpop.f32.mrf.mxu0 }
 0x36d   :  { %v11145_v6 = vpop.f32.mrf.mxu1 }
 0x36e   :  { %v1821_v33 = vadd.f32 %v10870_v48, %v1686_v58  ;;  %v783_v10 = vpop.permute.xlu1 %782  ;;  %v11137_v56 = vpop.f32.mrf.mxu0  ;;  %v2148_v58 = vadd.f32 %v10990_v3, %v11100_v12  ;;  %v8042_v3 = vld [vmem:[%s12946_s1 + $0xe8] sm:$0xff]  }
 0x36f   :  { %v8311_v0 = vpop.eup %8310  ;;  %v916_v39 = vmul.f32 %v10174_v51, %v783_v10  ;;  %v11153_v61 = vpop.f32.mrf.mxu1 }
 0x370   :  { %8314 = vtanh.f32 %v1821_v33  ;;  %v2013_v36 = vpack.c.bf16 %v8311_v0, %v8309_v21 }
 0x371   :  { %8316 = vtanh.f32 %v2127_v26  ;;  %v2164_v26 = vadd.f32 %v11003_v32, %v11100_v12  ;;  %v2183_v32 = vadd.f32 %v11028_v9, %v11100_v12 }
 0x372   :  { %7293 = vmatmul.mubr.bf16.gmra.mxu1 %v2013_v36  ;;  %8318 = vtanh.f32 %v1822_v50 }
 0x373   :  { %v1427_v34 = vpop.permute.xlu1 %1426 }
 0x374   :  { %v1560_v38 = vmul.f32 %v10161_v46, %v1427_v34  ;;  %v8041_v46 = vld [vmem:[%s12946_s1 + $0xf0] sm:$0xff]  }
 0x375   :  { %7446 = vmatprep.subr.bf16.mxu0 %v8041_v46 }
 0x376   :  { %v1688_v17 = vadd.f32 %v1560_v38, %v916_v39  ;;  %7447 = vmatpush3.bf16.msra.mxu0 %v8041_v46  ;;  %v11166_v38 = vpop.f32.mrf.mxu1 }
 0x377   :  { %7448 = vmatprep.subr.bf16.mxu0 %v8042_v3 }
 0x378   :  { %v1823_v2 = vadd.f32 %v10870_v48, %v1688_v17  ;;  %v2143_v48 = vadd.f32 %v11100_v12, %v11001_v14  ;;  %v2151_v14 = vadd.f32 %v10998_v43, %v11100_v12  ;;  %v11149_v43 = vpop.f32.mrf.mxu0  ;;  %v2172_v17 = vadd.f32 %v11100_v12, %v11026_v15  ;;  %v11172_v46 = vpop.f32.mrf.mxu1 }
 0x379   :  { %v8313_v51 = vpop.eup %8312  ;;  %v2191_v15 = vadd.f32 %v11100_v12, %v11051_v35 }
 0x37a   :  { %8320 = vtanh.f32 %v1823_v2  ;;  %v11151_v0 = vpop.f32.mrf.mxu0  ;;  %7449 = vmatpush3.bf16.msra.mxu0 %v8042_v3 }
 0x37b   :  { %8322 = vtanh.f32 %v2124_v41 }
 0x37c   :  { %8324 = vtanh.f32 %v2135_v8  ;;  %v11164_v39 = vpop.f32.mrf.mxu0 }
 0x37d   :  { %v8315_v57 = vpop.eup %8314  ;;  %8326 = vtanh.f32 %v2143_v48  ;;  %v2180_v48 = vadd.f32 %v11023_v63, %v11100_v12  ;;  %v2199_v63 = vadd.f32 %v11048_v23, %v11100_v12  ;;  %v2204_v23 = vadd.f32 %v11100_v12, %v11058_v24 }
 0x37e   :  { %v2014_v49 = vpack.c.bf16 %v8315_v57, %v8313_v51  ;;  %8328 = vtanh.f32 %v2132_v1  ;;  %v8317_v45 = vpop.eup %8316  ;;  %v11170_v59 = vpop.f32.mrf.mxu0 }
 0x37f   :  { %8330 = vtanh.f32 %v2140_v25  ;;  %v8319_v29 = vpop.eup %8318  ;;  %v11176_v51 = vpop.f32.mrf.mxu1  ;;  %v2188_v25 = vadd.f32 %v11100_v12, %v11043_v31 }
 0x380   :  { %7296 = vmatprep.mubr.bf16.mxu1 %v2014_v49  ;;  %8332 = vtanh.f32 %v2151_v14  ;;  %v11182_v1 = vpop.f32.mrf.mxu0 }
 0x381   :  { %8334 = vtanh.f32 %v2159_v20  ;;  %v11188_v9 = vpop.f32.mrf.mxu1 }
 0x382   :  { %8336 = vtanh.f32 %v2148_v58 }
 0x383   :  { %8338 = vtanh.f32 %v2156_v44  ;;  %v11194_v58 = vpop.f32.mrf.mxu1  ;;  %v8043_v44 = vld [vmem:[%s12946_s1 + $0xe0] sm:$0xff]  }
 0x384   :  { %8340 = vtanh.f32 %v2167_v42  ;;  %7450 = vmatprep.subr.bf16.mxu0 %v8043_v44 }
 0x385   :  { %8342 = vtanh.f32 %v2175_v55  ;;  %7451 = vmatpush3.bf16.msra.mxu0 %v8043_v44 }
 0x386   :  { %8344 = vtanh.f32 %v2164_v26 }
 0x387   :  { %v8321_v18 = vpop.eup %8320  ;;  %8346 = vtanh.f32 %v2172_v17 }
 0x388   :  { %v8323_v21 = vpop.eup %8322  ;;  %v2015_v33 = vpack.c.bf16 %v8321_v18, %v8319_v29  ;;  %8348 = vtanh.f32 %v2183_v32  ;;  %v2207_v18 = vadd.f32 %v11100_v12, %v11068_v13 }
 0x389   :  { %v2762_v10 = vpack.c.bf16 %v8317_v45, %v8323_v21  ;;  %v8325_v36 = vpop.eup %8324  ;;  %v11186_v45 = vpop.f32.mrf.mxu0  ;;  %8350 = vtanh.f32 %v2191_v15 }
 0x38a   :  { %7297 = vmatmul.mubr.bf16.gmra.mxu1 %v2015_v33  ;;  %v8327_v34 = vpop.eup %8326  ;;  %8352 = vtanh.f32 %v2180_v48  ;;  %v2196_v33 = vadd.f32 %v11040_v47, %v11100_v12  ;;  %v2215_v47 = vadd.f32 %v11065_v27, %v11100_v12 }
 0x38b   :  { %7316 = vmatprep.mubr.bf16.mxu1 %v2762_v10  ;;  %v8329_v50 = vpop.eup %8328  ;;  %8354 = vtanh.f32 %v2188_v25  ;;  %v11192_v35 = vpop.f32.mrf.mxu0  ;;  %v2239_v25 = vadd.f32 %v11100_v12, %v11114_v22 }
 0x38c   :  { %v8331_v41 = vpop.eup %8330  ;;  %v2763_v52 = vpack.c.bf16 %v8325_v36, %v8329_v50  ;;  %8356 = vtanh.f32 %v2199_v63  ;;  %v11207_v36 = vpop.f32.mrf.mxu1  ;;  %v2223_v50 = vadd.f32 %v11100_v12, %v11082_v16 }
 0x38d   :  { %v2764_v2 = vpack.c.bf16 %v8327_v34, %v8331_v41  ;;  %v8333_v8 = vpop.eup %8332  ;;  %v11205_v42 = vpop.f32.mrf.mxu0  ;;  %8358 = vtanh.f32 %v2207_v18  ;;  %v2212_v41 = vadd.f32 %v11053_v5, %v11100_v12  ;;  %v8044_v5 = vld [vmem:[%s12946_s1 + $0xd8] sm:$0xff]   ;;  %v2236_v18 = vadd.f32 %v11100_v12, %v11095_v60 }
 0x38e   :  { %v8335_v57 = vpop.eup %8334  ;;  %8360 = vtanh.f32 %v2196_v33  ;;  %v11209_v34 = vpop.f32.mrf.mxu1  ;;  %7452 = vmatprep.subr.bf16.mxu0 %v8044_v5 }
 0x38f   :  { %v8337_v49 = vpop.eup %8336  ;;  %8362 = vtanh.f32 %v2204_v23  ;;  %v11213_v24 = vpop.f32.mrf.mxu0  ;;  %7453 = vmatpush3.bf16.msra.mxu0 %v8044_v5  ;;  %v2260_v5 = vadd.f32 %v11121_v30, %v11100_v12  ;;  %v8046_v30 = vld [vmem:[%s12946_s1 + $0x138] sm:$0xff]  }
 0x390   :  { %v8339_v14 = vpop.eup %8338  ;;  %v2765_v20 = vpack.c.bf16 %v8333_v8, %v8337_v49  ;;  %v2220_v8 = vadd.f32 %v11100_v12, %v11076_v62  ;;  %8364 = vtanh.f32 %v2215_v47  ;;  %v2231_v62 = vadd.f32 %v11078_v7, %v11100_v12  ;;  %7588 = vmatprep.subr.bf16.mxu1 %v8046_v30 }
 0x391   :  { %v2766_v29 = vpack.c.bf16 %v8335_v57, %v8339_v14  ;;  %v8341_v31 = vpop.eup %8340  ;;  %8366 = vtanh.f32 %v2223_v50 }
 0x392   :  { %7317 = vmatmul.mubr.bf16.vlgmr.msra.gmra.mxu1 %v2763_v52  ;;  %v8343_v21 = vpop.eup %8342  ;;  %v11219_v52 = vpop.f32.mrf.mxu0  ;;  %8368 = vtanh.f32 %v2212_v41 }
 0x393   :  { %7320 = vmatprep.mubr.bf16.mxu1 %v2764_v2  ;;  %v8345_v10 = vpop.eup %8344  ;;  %v11221_v2 = vpop.f32.mrf.mxu1  ;;  %8370 = vtanh.f32 %v2220_v8  ;;  %7589 = vmatpush3.bf16.msra.mxu1 %v8046_v30 }
 0x394   :  { %v8347_v3 = vpop.eup %8346  ;;  %v2767_v13 = vpack.c.bf16 %v8341_v31, %v8345_v10  ;;  %v11225_v48 = vpop.f32.mrf.mxu0  ;;  %8372 = vtanh.f32 %v2231_v62 }
 0x395   :  { %v2768_v55 = vpack.c.bf16 %v8343_v21, %v8347_v3  ;;  %v8349_v26 = vpop.eup %8348  ;;  %v11227_v16 = vpop.f32.mrf.mxu1  ;;  %8374 = vtanh.f32 %v2239_v25  ;;  %v2255_v3 = vadd.f32 %v11100_v12, %v11149_v43 }
 0x396   :  { %v8351_v17 = vpop.eup %8350 }
 0x397   :  { %v8353_v32 = vpop.eup %8352  ;;  %v11240_v63 = vpop.f32.mrf.mxu1 }
 0x398   :  { %v8355_v15 = vpop.eup %8354  ;;  %v2769_v27 = vpack.c.bf16 %v8349_v26, %v8353_v32  ;;  %v2252_v26 = vadd.f32 %v11100_v12, %v11131_v37  ;;  %v2263_v37 = vadd.f32 %v11137_v56, %v11100_v12  ;;  %v2268_v56 = vadd.f32 %v11100_v12, %v11164_v39 }
 0x399   :  { %v2770_v57 = vpack.c.bf16 %v8351_v17, %v8355_v15  ;;  %v8357_v49 = vpop.eup %8356  ;;  %v11244_v7 = vpop.f32.mrf.mxu1  ;;  %v2279_v39 = vadd.f32 %v11170_v59, %v11100_v12 }
 0x39a   :  { %7321 = vmatmul.mubr.bf16.gmra.mxu1 %v2765_v20  ;;  %v8359_v14 = vpop.eup %8358  ;;  %v2228_v20 = vadd.f32 %v11073_v53, %v11100_v12  ;;  %v2247_v53 = vadd.f32 %v11107_v11, %v11100_v12 }
 0x39b   :  { %7324 = vmatprep.mubr.bf16.mxu1 %v2766_v29  ;;  %v11238_v29 = vpop.f32.mrf.mxu0  ;;  %v8361_v31 = vpop.eup %8360 }
 0x39c   :  { %v8363_v44 = vpop.eup %8362  ;;  %v2771_v21 = vpack.c.bf16 %v8357_v49, %v8361_v31  ;;  %8376 = vtanh.f32 %v2228_v20  ;;  %v11252_v23 = vpop.f32.mrf.mxu1 }
 0x39d   :  { %v2772_v22 = vpack.c.bf16 %v8359_v14, %v8363_v44  ;;  %v11246_v33 = vpop.f32.mrf.mxu0  ;;  %8378 = vtanh.f32 %v2236_v18  ;;  %v8365_v60 = vpop.eup %8364 }
 0x39e   :  { %8380 = vtanh.f32 %v2247_v53  ;;  %v11262_v11 = vpop.f32.mrf.mxu1  ;;  %v2276_v53 = vadd.f32 %v11151_v0, %v11100_v12  ;;  %v2295_v0 = vadd.f32 %v11205_v42, %v11100_v12 }
 0x39f   :  { %v11250_v10 = vpop.f32.mrf.mxu0  ;;  %8382 = vtanh.f32 %v2255_v3 }
 0x3a0   :  { %v11271_v8 = vpop.f32.mrf.mxu1 }
 0x3a1   :  { %v11260_v17 = vpop.f32.mrf.mxu0 }
 0x3a2   :  { %7325 = vmatmul.mubr.bf16.gmra.mxu1 %v2767_v13  ;;  %v8367_v13 = vpop.eup %8366  ;;  %v11277_v62 = vpop.f32.mrf.mxu1 }
 0x3a3   :  { %7328 = vmatprep.mubr.bf16.mxu1 %v2768_v55  ;;  %v2244_v55 = vadd.f32 %v11092_v28, %v11100_v12  ;;  %v8369_v47 = vpop.eup %8368  ;;  %v8045_v28 = vld [vmem:[%s12946_s1 + $0xd0] sm:$0xff]   ;;  %v11269_v43 = vpop.f32.mrf.mxu0 }
 0x3a4   :  { %v8371_v50 = vpop.eup %8370  ;;  %v2773_v41 = vpack.c.bf16 %v8365_v60, %v8369_v47  ;;  %7454 = vmatprep.subr.bf16.mxu0 %v8045_v28  ;;  %v11283_v18 = vpop.f32.mrf.mxu1 }
 0x3a5   :  { %v2774_v32 = vpack.c.bf16 %v8367_v13, %v8371_v50  ;;  %8384 = vtanh.f32 %v2244_v55  ;;  %v8373_v15 = vpop.eup %8372  ;;  %7455 = vmatpush3.bf16.msra.mxu0 %v8045_v28  ;;  %v2318_v14 = vpop.f32.mrf.mxu0  ;;  %v2284_v55 = vadd.f32 %v11100_v12, %v11192_v35  ;;  %v2303_v35 = vadd.f32 %v11100_v12, %v11246_v33  ;;  %v8047_v28 = vld [vmem:[%s12946_s1 + $0xc8] sm:$0xff]  }
 0x3a6   :  { %8386 = vtanh.f32 %v2252_v26  ;;  %v11296_v3 = vpop.f32.mrf.mxu1  ;;  %7456 = vmatprep.subr.bf16.mxu0 %v8047_v28  ;;  %v2319_v30 = vadd.f32 %v11100_v12, %v2318_v14 }
 0x3a7   :  { %8388 = vtanh.f32 %v2263_v37 }
 0x3a8   :  { %v11302_v50 = vpop.f32.mrf.mxu1 }
 0x3a9   :  { %7457 = vmatpush3.bf16.msra.mxu0 %v8047_v28 }
 0x3aa   :  { %7329 = vmatmul.mubr.bf16.gmra.mxu1 %v2769_v27  ;;  %v2271_v27 = vadd.f32 %v11100_v12, %v11182_v1  ;;  %v11281_v1 = vpop.f32.mrf.mxu0 }
 0x3ab   :  { %7332 = vmatprep.mubr.bf16.mxu1 %v2770_v57  ;;  %v8375_v57 = vpop.eup %8374 }
 0x3ac   :  { %v8377_v49 = vpop.eup %8376  ;;  %8390 = vtanh.f32 %v2271_v27  ;;  %v11294_v60 = vpop.f32.mrf.mxu0 }
 0x3ad   :  { %v8379_v25 = vpop.eup %8378  ;;  %v2775_v20 = vpack.c.bf16 %v8373_v15, %v8377_v49  ;;  %8392 = vtanh.f32 %v2260_v5  ;;  %v2292_v15 = vadd.f32 %v11186_v45, %v11100_v12  ;;  %v2300_v5 = vadd.f32 %v11100_v12, %v11225_v48 }
 0x3ae   :  { %v2776_v31 = vpack.c.bf16 %v8375_v57, %v8379_v25  ;;  %8394 = vtanh.f32 %v2268_v56  ;;  %v8381_v44 = vpop.eup %8380  ;;  %v2311_v45 = vadd.f32 %v11238_v29, %v11100_v12 }
 0x3af   :  { %8396 = vtanh.f32 %v2279_v39 }
 0x3b2   :  { %7333 = vmatmul.mubr.bf16.gmra.mxu1 %v2771_v21  ;;  %v2287_v21 = vadd.f32 %v11100_v12, %v11213_v24  ;;  %v11300_v24 = vpop.f32.mrf.mxu0 }
 0x3b3   :  { %7336 = vmatprep.mubr.bf16.mxu1 %v2772_v22  ;;  %v8383_v22 = vpop.eup %8382 }
 0x3b4   :  { %v8385_v13 = vpop.eup %8384  ;;  %8398 = vtanh.f32 %v2287_v21  ;;  %v2334_v27 = vpop.f32.mrf.mxu0 }
 0x3b5   :  { %v8387_v47 = vpop.eup %8386  ;;  %v2777_v59 = vpack.c.bf16 %v8381_v44, %v8385_v13  ;;  %8400 = vtanh.f32 %v2276_v53  ;;  %v2308_v44 = vadd.f32 %v11219_v52, %v11100_v12  ;;  %v2327_v52 = vadd.f32 %v11269_v43, %v11100_v12 }
 0x3b6   :  { %v2778_v26 = vpack.c.bf16 %v8383_v22, %v8387_v47  ;;  %8402 = vtanh.f32 %v2284_v55  ;;  %v11317_v49 = vpop.f32.mrf.mxu0  ;;  %v2316_v22 = vadd.f32 %v11100_v12, %v11260_v17  ;;  %v2335_v17 = vadd.f32 %v11100_v12, %v2334_v27 }
 0x3b7   :  { %8404 = vtanh.f32 %v2295_v0  ;;  %v8048_v0 = vld [vmem:[%s12946_s1 + $0xc0] sm:$0xff]   ;;  %v2332_v43 = vadd.f32 %v11100_v12, %v11294_v60 }
 0x3b8   :  { %8406 = vtanh.f32 %v2303_v35  ;;  %v2324_v35 = vadd.f32 %v11250_v10, %v11100_v12  ;;  %7458 = vmatprep.subr.bf16.mxu0 %v8048_v0  ;;  %v2343_v10 = vadd.f32 %v11300_v24, %v11100_v12 }
 0x3b9   :  { %8408 = vtanh.f32 %v2292_v15  ;;  %7459 = vmatpush3.bf16.msra.mxu0 %v8048_v0  ;;  %v2356_v0 = vadd.f32 %v11317_v49, %v11100_v12  ;;  %v2383_v49 = vadd.f32 %v11100_v12, %v11139_v40  ;;  %v2391_v40 = vadd.f32 %v11133_v54, %v11100_v12 }
 0x3ba   :  { %7337 = vmatmul.mubr.bf16.gmra.mxu1 %v2773_v41  ;;  %v11306_v41 = vpop.f32.mrf.mxu1  ;;  %8410 = vtanh.f32 %v2300_v5 }
 0x3bb   :  { %7340 = vmatprep.mubr.bf16.mxu1 %v2774_v32  ;;  %v8389_v32 = vpop.eup %8388  ;;  %8412 = vtanh.f32 %v2311_v45 }
 0x3bc   :  { %v8391_v37 = vpop.eup %8390  ;;  %v11319_v56 = vpop.f32.mrf.mxu1  ;;  %8414 = vtanh.f32 %v2319_v30 }
 0x3bd   :  { %v8393_v57 = vpop.eup %8392  ;;  %8416 = vtanh.f32 %v2308_v44 }
 0x3be   :  { %v8395_v42 = vpop.eup %8394  ;;  %v2779_v33 = vpack.c.bf16 %v8389_v32, %v8393_v57  ;;  %v11323_v48 = vpop.f32.mrf.mxu1  ;;  %8418 = vtanh.f32 %v2316_v22  ;;  %v8049_v22 = vld [vmem:[%s12946_s1 + $0x130] sm:$0xff]  }
 0x3bf   :  { %v2780_v25 = vpack.c.bf16 %v8391_v37, %v8395_v42  ;;  %8420 = vtanh.f32 %v2327_v52  ;;  %7590 = vmatprep.subr.bf16.mxu1 %v8049_v22 }
 0x3c0   :  { %v11330_v55 = vpop.f32.mrf.mxu1  ;;  %8422 = vtanh.f32 %v2335_v17  ;;  %7591 = vmatpush3.bf16.msra.mxu1 %v8049_v22 }
 0x3c1   :  { %8424 = vtanh.f32 %v2324_v35 }
 0x3c2   :  { %7341 = vmatmul.mubr.bf16.gmra.mxu1 %v2775_v20  ;;  %v2347_v20 = vpop.f32.mrf.mxu0  ;;  %8426 = vtanh.f32 %v2332_v43 }
 0x3c3   :  { %7344 = vmatprep.mubr.bf16.mxu1 %v2776_v31  ;;  %v8397_v31 = vpop.eup %8396  ;;  %8428 = vtanh.f32 %v2343_v10 }
 0x3c4   :  { %v8399_v39 = vpop.eup %8398  ;;  %v7231_v13 = vpop.f32.mrf.mxu0 }
 0x3c5   :  { %v8401_v21 = vpop.eup %8400 }
 0x3c6   :  { %v8403_v53 = vpop.eup %8402  ;;  %v2781_v29 = vpack.c.bf16 %v8397_v31, %v8401_v21  ;;  %v2350_v14 = vpop.f32.mrf.mxu0  ;;  %v2340_v31 = vadd.f32 %v11281_v1, %v11100_v12  ;;  %v2348_v21 = vadd.f32 %v11100_v12, %v2347_v20  ;;  %v2359_v20 = vadd.f32 %v7231_v13, %v11100_v12 }
 0x3c7   :  { %v2782_v47 = vpack.c.bf16 %v8399_v39, %v8403_v53  ;;  %v2351_v60 = vadd.f32 %v11100_v12, %v2350_v14 }
 0x3c8   :  { %v11342_v28 = vpop.f32.mrf.mxu0 }
 0x3c9   :  { %8430 = vtanh.f32 %v2351_v60 }
 0x3ca   :  { %7345 = vmatmul.mubr.bf16.gmra.mxu1 %v2777_v59  ;;  %v11332_v59 = vpop.f32.mrf.mxu1  ;;  %v2363_v42 = vpop.f32.mrf.mxu0  ;;  %8432 = vtanh.f32 %v2340_v31  ;;  %v2380_v31 = vadd.f32 %v11100_v12, %v11123_v4  ;;  %v2388_v4 = vadd.f32 %v11111_v19, %v11100_v12  ;;  %v2407_v19 = vadd.f32 %v11166_v38, %v11100_v12 }
 0x3cb   :  { %7348 = vmatprep.mubr.bf16.mxu1 %v2778_v26  ;;  %v8405_v26 = vpop.eup %8404  ;;  %8434 = vtanh.f32 %v2348_v21  ;;  %v2364_v35 = vadd.f32 %v11100_v12, %v2363_v42 }
 0x3cc   :  { %v8407_v32 = vpop.eup %8406  ;;  %v11344_v37 = vpop.f32.mrf.mxu1  ;;  %8436 = vtanh.f32 %v2359_v20  ;;  %v2396_v20 = vadd.f32 %v11100_v12, %v11153_v61  ;;  %v2415_v61 = vadd.f32 %v11100_v12, %v11207_v36 }
 0x3cd   :  { %v8409_v15 = vpop.eup %8408  ;;  %v7235_v30 = vpop.f32.mrf.mxu0 }
 0x3ce   :  { %v8411_v57 = vpop.eup %8410  ;;  %v2783_v27 = vpack.c.bf16 %v8405_v26, %v8409_v15  ;;  %v2375_v13 = vadd.f32 %v7235_v30, %v11100_v12 }
 0x3cf   :  { %v2784_v5 = vpack.c.bf16 %v8407_v32, %v8411_v57  ;;  %v2366_v1 = vpop.f32.mrf.mxu0 }
 0x3d0   :  { %v2367_v26 = vadd.f32 %v11100_v12, %v2366_v1 }
 0x3d2   :  { %7349 = vmatmul.mubr.bf16.gmra.mxu1 %v2779_v33  ;;  %v11348_v33 = vpop.f32.mrf.mxu1  ;;  %8438 = vtanh.f32 %v2367_v26 }
 0x3d3   :  { %7352 = vmatprep.mubr.bf16.mxu1 %v2780_v25  ;;  %v8413_v25 = vpop.eup %8412  ;;  %8440 = vtanh.f32 %v2356_v0 }
 0x3d4   :  { %v8415_v45 = vpop.eup %8414  ;;  %v11355_v39 = vpop.f32.mrf.mxu1  ;;  %8442 = vtanh.f32 %v2364_v35  ;;  %v2404_v35 = vadd.f32 %v11145_v6, %v11100_v12  ;;  %v2423_v6 = vadd.f32 %v11194_v58, %v11100_v12 }
 0x3d5   :  { %v8417_v44 = vpop.eup %8416  ;;  %8444 = vtanh.f32 %v2375_v13 }
 0x3d6   :  { %v8419_v53 = vpop.eup %8418  ;;  %v11361_v24 = vpop.f32.mrf.mxu1  ;;  %8446 = vtanh.f32 %v2383_v49 }
 0x3d7   :  { %v8421_v14 = vpop.eup %8420 }
 0x3d8   :  { %v11364_v52 = vpop.f32.mrf.mxu1  ;;  %v8423_v17 = vpop.eup %8422 }
 0x3d9   :  { %v8425_v32 = vpop.eup %8424 }
 0x3da   :  { %7353 = vmatmul.mubr.bf16.gmra.mxu1 %v2781_v29  ;;  %v2785_v29 = vpack.c.bf16 %v8413_v25, %v8417_v44  ;;  %v8427_v15 = vpop.eup %8426  ;;  %v11370_v43 = vpop.f32.mrf.mxu1  ;;  %v2787_v57 = vpack.c.bf16 %v8421_v14, %v8425_v32  ;;  %v2372_v25 = vadd.f32 %v11342_v28, %v11100_v12 }
 0x3db   :  { %7356 = vmatprep.mubr.bf16.mxu1 %v2782_v47  ;;  %v2786_v47 = vpack.c.bf16 %v8415_v45, %v8419_v53  ;;  %v8429_v10 = vpop.eup %8428  ;;  %v2399_v53 = vadd.f32 %v11100_v12, %v11172_v46 }
 0x3dc   :  { %v8431_v42 = vpop.eup %8430  ;;  %8448 = vtanh.f32 %v2372_v25 }
 0x3dd   :  { %v8433_v45 = vpop.eup %8432  ;;  %8450 = vtanh.f32 %v2380_v31 }
 0x3de   :  { %v8435_v44 = vpop.eup %8434  ;;  %v2789_v21 = vpack.c.bf16 %v8429_v10, %v8433_v45  ;;  %8452 = vtanh.f32 %v2391_v40  ;;  %v2420_v45 = vadd.f32 %v11176_v51, %v11100_v12  ;;  %v2439_v51 = vadd.f32 %v11227_v16, %v11100_v12 }
 0x3df   :  { %v2790_v30 = vpack.c.bf16 %v8431_v42, %v8435_v44  ;;  %v8437_v28 = vpop.eup %8436  ;;  %8454 = vtanh.f32 %v2399_v53  ;;  %v2431_v42 = vadd.f32 %v11100_v12, %v11240_v63  ;;  %v2428_v44 = vadd.f32 %v11100_v12, %v11221_v2 }
 0x3e0   :  { %8456 = vtanh.f32 %v2388_v4  ;;  %v2447_v2 = vadd.f32 %v11100_v12, %v11271_v8 }
 0x3e1   :  { %8458 = vtanh.f32 %v2396_v20  ;;  %v2444_v20 = vadd.f32 %v11100_v12, %v11252_v23  ;;  %v2452_v23 = vadd.f32 %v11244_v7, %v11100_v12  ;;  %v2471_v7 = vadd.f32 %v11296_v3, %v11100_v12 }
 0x3e2   :  { %7357 = vmatmul.mubr.bf16.gmra.mxu1 %v2783_v27  ;;  %v2788_v27 = vpack.c.bf16 %v8423_v17, %v8427_v15  ;;  %8460 = vtanh.f32 %v2407_v19  ;;  %v2463_v19 = vadd.f32 %v11100_v12, %v11302_v50 }
 0x3e3   :  { %7360 = vmatprep.mubr.bf16.mxu1 %v2784_v5  ;;  %v11373_v5 = vpop.f32.mrf.mxu1  ;;  %8462 = vtanh.f32 %v2415_v61 }
 0x3e4   :  { %8464 = vtanh.f32 %v2404_v35  ;;  %v2460_v35 = vadd.f32 %v11100_v12, %v11283_v18  ;;  %v2479_v18 = vadd.f32 %v11100_v12, %v11330_v55 }
 0x3e5   :  { %v11379_v60 = vpop.f32.mrf.mxu1 }
 0x3e7   :  { %v11383_v22 = vpop.f32.mrf.mxu1 }
 0x3ea   :  { %7361 = vmatmul.mubr.bf16.gmra.mxu1 %v2785_v29  ;;  %v8439_v29 = vpop.eup %8438 }
 0x3eb   :  { %7364 = vmatprep.mubr.bf16.mxu1 %v2786_v47  ;;  %v11391_v47 = vpop.f32.mrf.mxu1  ;;  %v8441_v1 = vpop.eup %8440 }
 0x3ec   :  { %v8443_v14 = vpop.eup %8442  ;;  %v2791_v26 = vpack.c.bf16 %v8437_v28, %v8441_v1 }
 0x3ed   :  { %v2792_v17 = vpack.c.bf16 %v8439_v29, %v8443_v14  ;;  %v11395_v54 = vpop.f32.mrf.mxu1  ;;  %v8445_v0 = vpop.eup %8444  ;;  %v2436_v29 = vadd.f32 %v11209_v34, %v11100_v12  ;;  %v2455_v34 = vadd.f32 %v11262_v11, %v11100_v12 }
 0x3ee   :  { %v8447_v32 = vpop.eup %8446 }
 0x3ef   :  { %v11399_v46 = vpop.f32.mrf.mxu1  ;;  %v8449_v15 = vpop.eup %8448 }
 0x3f0   :  { %v8451_v13 = vpop.eup %8450  ;;  %v2793_v10 = vpack.c.bf16 %v8445_v0, %v8449_v15 }
 0x3f1   :  { %v11410_v38 = vpop.f32.mrf.mxu1  ;;  %v2794_v49 = vpack.c.bf16 %v8447_v32, %v8451_v13  ;;  %v8453_v36 = vpop.eup %8452 }
 0x3f2   :  { %7365 = vmatmul.mubr.bf16.gmra.mxu1 %v2787_v57  ;;  %v2412_v57 = vadd.f32 %v11100_v12, %v11188_v9  ;;  %v8455_v25 = vpop.eup %8454 }
 0x3f3   :  { %7368 = vmatprep.mubr.bf16.mxu1 %v2788_v27  ;;  %v8050_v27 = vld [vmem:[%s12946_s1 + $0x128] sm:$0xff]   ;;  %v11414_v9 = vpop.f32.mrf.mxu1  ;;  %v8457_v31 = vpop.eup %8456 }
 0x3f4   :  { %7592 = vmatprep.subr.bf16.mxu1 %v8050_v27  ;;  %8466 = vtanh.f32 %v2412_v57  ;;  %v2795_v40 = vpack.c.bf16 %v8453_v36, %v8457_v31  ;;  %v2476_v36 = vadd.f32 %v11100_v12, %v11319_v56 }
 0x3f5   :  { %7593 = vmatpush3.bf16.msra.mxu1 %v8050_v27  ;;  %8468 = vtanh.f32 %v2423_v6 }
 0x3f6   :  { %8470 = vtanh.f32 %v2431_v42  ;;  %v8051_v42 = vld [vmem:[%s12946_s1 + $0x120] sm:$0xff]  }
 0x3f7   :  { %8472 = vtanh.f32 %v2420_v45  ;;  %7594 = vmatprep.subr.bf16.mxu1 %v8051_v42 }
 0x3f8   :  { %8474 = vtanh.f32 %v2428_v44  ;;  %v2495_v44 = vadd.f32 %v11100_v12, %v11355_v39 }
 0x3f9   :  { %8476 = vtanh.f32 %v2439_v51  ;;  %7595 = vmatpush3.bf16.msra.mxu1 %v8051_v42 }
 0x3fa   :  { %7369 = vmatmul.mubr.bf16.gmra.mxu1 %v2789_v21  ;;  %v8459_v21 = vpop.eup %8458  ;;  %8478 = vtanh.f32 %v2447_v2 }
 0x3fb   :  { %7372 = vmatprep.mubr.bf16.mxu1 %v2790_v30  ;;  %v11422_v30 = vpop.f32.mrf.mxu1  ;;  %v2796_v58 = vpack.c.bf16 %v8455_v25, %v8459_v21  ;;  %v8461_v63 = vpop.eup %8460  ;;  %8480 = vtanh.f32 %v2436_v29 }
 0x3fc   :  { %v8463_v53 = vpop.eup %8462  ;;  %8482 = vtanh.f32 %v2444_v20 }
 0x3fd   :  { %v11424_v28 = vpop.f32.mrf.mxu1  ;;  %v8465_v1 = vpop.eup %8464  ;;  %8484 = vtanh.f32 %v2455_v34 }
 0x3fe   :  { %8486 = vtanh.f32 %v2463_v19 }
 0x3ff   :  { %v11432_v4 = vpop.f32.mrf.mxu1  ;;  %8488 = vtanh.f32 %v2452_v23 }
 0x400   :  { %8490 = vtanh.f32 %v2460_v35 }
 0x401   :  { %v8467_v14 = vpop.eup %8466  ;;  %v11436_v16 = vpop.f32.mrf.mxu1  ;;  %8492 = vtanh.f32 %v2471_v7 }
 0x402   :  { %7373 = vmatmul.mubr.bf16.gmra.mxu1 %v2791_v26  ;;  %v2797_v26 = vpack.c.bf16 %v8461_v63, %v8465_v1  ;;  %v8469_v8 = vpop.eup %8468  ;;  %8494 = vtanh.f32 %v2479_v18  ;;  %v2492_v63 = vadd.f32 %v11100_v12, %v11344_v37  ;;  %v2511_v1 = vadd.f32 %v11100_v12, %v11373_v5 }
 0x403   :  { %7376 = vmatprep.mubr.bf16.mxu1 %v2792_v17  ;;  %v2798_v17 = vpack.c.bf16 %v8463_v53, %v8467_v14  ;;  %v8471_v0 = vpop.eup %8470  ;;  %v11444_v61 = vpop.f32.mrf.mxu1  ;;  %v2500_v37 = vadd.f32 %v11332_v59, %v11100_v12  ;;  %v11494_v59 = vld [vmem:[%s12947_s2 + $0x1] ss:$0 sm:$0xff] }
 0x404   :  { %v8473_v32 = vpop.eup %8472  ;;  %v2519_v5 = vadd.f32 %v11494_v59, %v11370_v43 }
 0x405   :  { %v8475_v15 = vpop.eup %8474  ;;  %v11448_v57 = vpop.f32.mrf.mxu1  ;;  %v2799_v27 = vpack.c.bf16 %v8469_v8, %v8473_v32  ;;  %v2516_v32 = vadd.f32 %v11494_v59, %v11361_v24 }
 0x406   :  { %v2800_v11 = vpack.c.bf16 %v8471_v0, %v8475_v15  ;;  %v8477_v13 = vpop.eup %8476  ;;  %v2527_v0 = vadd.f32 %v11494_v59, %v11395_v54  ;;  %v2524_v15 = vadd.f32 %v11494_v59, %v11383_v22  ;;  %v2535_v54 = vadd.f32 %v11494_v59, %v11391_v47 }
 0x407   :  { %v11452_v50 = vpop.f32.mrf.mxu1  ;;  %v2543_v22 = vadd.f32 %v11494_v59, %v11422_v30 }
 0x409   :  { %v11463_v3 = vpop.f32.mrf.mxu1 }
 0x40a   :  { %7377 = vmatmul.mubr.bf16.gmra.mxu1 %v2793_v10  ;;  %v8479_v10 = vpop.eup %8478 }
 0x40b   :  { %7380 = vmatprep.mubr.bf16.mxu1 %v2794_v49  ;;  %v2468_v49 = vadd.f32 %v11277_v62, %v11100_v12  ;;  %v8481_v6 = vpop.eup %8480  ;;  %v2487_v62 = vadd.f32 %v11323_v48, %v11100_v12  ;;  %v11467_v56 = vpop.f32.mrf.mxu1 }
 0x40c   :  { %v8483_v25 = vpop.eup %8482  ;;  %v2801_v45 = vpack.c.bf16 %v8477_v13, %v8481_v6  ;;  %v2540_v6 = vadd.f32 %v11494_v59, %v11410_v38 }
 0x40d   :  { %v2802_v31 = vpack.c.bf16 %v8479_v10, %v8483_v25  ;;  %8496 = vtanh.f32 %v2468_v49  ;;  %v8485_v55 = vpop.eup %8484  ;;  %v2532_v10 = vadd.f32 %v11494_v59, %v11379_v60  ;;  %v2551_v60 = vadd.f32 %v11494_v59, %v11414_v9 }
 0x40e   :  { %8498 = vtanh.f32 %v2476_v36  ;;  %v8487_v21 = vpop.eup %8486  ;;  %v8052_v36 = vld [vmem:[%s12946_s1 + $0x118] sm:$0xff]  }
 0x40f   :  { %v8489_v51 = vpop.eup %8488  ;;  %8500 = vtanh.f32 %v2487_v62  ;;  %7596 = vmatprep.subr.bf16.mxu1 %v8052_v36  ;;  %v2559_v62 = vadd.f32 %v11494_v59, %v11444_v61 }
 0x410   :  { %v8491_v2 = vpop.eup %8490  ;;  %v2803_v53 = vpack.c.bf16 %v8485_v55, %v8489_v51  ;;  %8502 = vtanh.f32 %v2495_v44  ;;  %7597 = vmatpush3.bf16.msra.mxu1 %v8052_v36  ;;  %v2548_v44 = vadd.f32 %v11494_v59, %v11399_v46  ;;  %v2556_v51 = vadd.f32 %v11494_v59, %v11432_v4 }
 0x411   :  { %v2804_v48 = vpack.c.bf16 %v8487_v21, %v8491_v2  ;;  %v8493_v39 = vpop.eup %8492  ;;  %v2567_v46 = vadd.f32 %v11494_v59, %v11436_v16  ;;  %v2572_v4 = vadd.f32 %v11494_v59, %v11452_v50 }
 0x412   :  { %7381 = vmatmul.mubr.bf16.gmra.mxu1 %v2795_v40  ;;  %v2484_v40 = vadd.f32 %v11306_v41, %v11100_v12  ;;  %v2503_v41 = vadd.f32 %v11348_v33, %v11100_v12  ;;  %v8495_v20 = vpop.eup %8494 }
 0x413   :  { %7384 = vmatprep.mubr.bf16.mxu1 %v2796_v58 }
 0x414   :  { %8504 = vtanh.f32 %v2484_v40 }
 0x415   :  { %8506 = vtanh.f32 %v2492_v63 }
 0x416   :  { %8508 = vtanh.f32 %v2503_v41  ;;  %v2575_v41 = vadd.f32 %v11494_v59, %v11467_v56 }
 0x417   :  { %8510 = vtanh.f32 %v2511_v1 }
 0x418   :  { %8512 = vtanh.f32 %v2500_v37 }
 0x41a   :  { %7385 = vmatmul.mubr.bf16.gmra.mxu1 %v2797_v26  ;;  %v11473_v58 = vpop.f32.mrf.mxu1  ;;  %v8497_v26 = vpop.eup %8496 }
 0x41b   :  { %7388 = vmatprep.mubr.bf16.mxu1 %v2798_v17  ;;  %v2508_v17 = vadd.f32 %v11100_v12, %v11364_v52  ;;  %v8499_v34 = vpop.eup %8498  ;;  %v2805_v8 = vpack.c.bf16 %v8493_v39, %v8497_v26 }
 0x41c   :  { %v11477_v29 = vpop.f32.mrf.mxu1  ;;  %v2806_v19 = vpack.c.bf16 %v8495_v20, %v8499_v34  ;;  %v8501_v52 = vpop.eup %8500 }
 0x41d   :  { %8514 = vtanh.f32 %v2508_v17  ;;  %v8503_v23 = vpop.eup %8502 }
 0x41e   :  { %v11485_v14 = vpop.f32.mrf.mxu1  ;;  %8516 = vtanh.f32 %v2519_v5 }
 0x41f   :  { %8518 = vtanh.f32 %v2527_v0  ;;  %v2583_v0 = vadd.f32 %v11494_v59, %v11463_v3  ;;  %v2599_v36 = vadd.f32 %v11494_v59, %v11485_v14 }
 0x420   :  { %v11489_v33 = vpop.f32.mrf.mxu1  ;;  %8520 = vtanh.f32 %v2516_v32  ;;  %v2588_v32 = vadd.f32 %v11494_v59, %v11477_v29 }
 0x421   :  { %v8505_v35 = vpop.eup %8504  ;;  %8522 = vtanh.f32 %v2524_v15 }
 0x422   :  { %7389 = vmatmul.mubr.bf16.gmra.mxu1 %v2799_v27  ;;  %v8507_v27 = vpop.eup %8506  ;;  %v2807_v7 = vpack.c.bf16 %v8501_v52, %v8505_v35  ;;  %8524 = vtanh.f32 %v2535_v54  ;;  %v2591_v35 = vadd.f32 %v11494_v59, %v11489_v33  ;;  %v2596_v33 = vadd.f32 %v11494_v59, %v11473_v58 }
 0x423   :  { %7392 = vmatprep.mubr.bf16.mxu1 %v2800_v11  ;;  %v2808_v43 = vpack.c.bf16 %v8503_v23, %v8507_v27  ;;  %v8509_v24 = vpop.eup %8508  ;;  %8526 = vtanh.f32 %v2543_v22 }
 0x424   :  { %v8511_v18 = vpop.eup %8510  ;;  %8528 = vtanh.f32 %v2532_v10 }
 0x425   :  { %v8513_v49 = vpop.eup %8512  ;;  %8530 = vtanh.f32 %v2540_v6 }
 0x426   :  { %v2809_v25 = vpack.c.bf16 %v8509_v24, %v8513_v49  ;;  %8532 = vtanh.f32 %v2551_v60 }
 0x427   :  { %8534 = vtanh.f32 %v2559_v62 }
 0x428   :  { %8536 = vtanh.f32 %v2548_v44 }
 0x429   :  { %8538 = vtanh.f32 %v2556_v51 }
 0x42a   :  { %7393 = vmatmul.mubr.bf16.gmra.mxu1 %v2801_v45  ;;  %v8515_v42 = vpop.eup %8514 }
 0x42b   :  { %7396 = vmatprep.mubr.bf16.mxu1 %v2802_v31  ;;  %v2810_v45 = vpack.c.bf16 %v8511_v18, %v8515_v42  ;;  %v8517_v31 = vpop.eup %8516 }
 0x42c   :  { %v8519_v55 = vpop.eup %8518 }
 0x42d   :  { %v8521_v40 = vpop.eup %8520 }
 0x42e   :  { %v8523_v63 = vpop.eup %8522  ;;  %v2811_v9 = vpack.c.bf16 %v8517_v31, %v8521_v40 }
 0x42f   :  { %v2812_v61 = vpack.c.bf16 %v8519_v55, %v8523_v63  ;;  %v8525_v1 = vpop.eup %8524 }
 0x430   :  { %v8527_v20 = vpop.eup %8526 }
 0x431   :  { %v8529_v26 = vpop.eup %8528 }
 0x432   :  { %7397 = vmatmul.mubr.bf16.gmra.mxu1 %v2803_v53  ;;  %v11498_v12 = vpop.f32.mrf.mxu1  ;;  %v2564_v53 = vadd.f32 %v11494_v59, %v11424_v28  ;;  %v11550_v28 = vld [vmem:[%s12947_s2 + $0x2] ss:$0 sm:$0xff]  ;;  %v8531_v17 = vpop.eup %8530 }
 0x433   :  { %7400 = vmatprep.mubr.bf16.mxu1 %v2804_v48  ;;  %v2814_v52 = vpack.c.bf16 %v8527_v20, %v8531_v17  ;;  %v8533_v15 = vpop.eup %8532 }
 0x434   :  { %v11506_v11 = vpop.f32.mrf.mxu1  ;;  %8540 = vtanh.f32 %v2564_v53 }
 0x435   :  { %8542 = vtanh.f32 %v2567_v46 }
 0x436   :  { %v11510_v13 = vpop.f32.mrf.mxu1  ;;  %8544 = vtanh.f32 %v2572_v4 }
 0x437   :  { %8546 = vtanh.f32 %v2575_v41 }
 0x438   :  { %v11521_v47 = vpop.f32.mrf.mxu1 }
 0x439   :  { %v2607_v58 = vadd.f32 %v11494_v59, %v11521_v47 }
 0x43a   :  { %7401 = vmatmul.mubr.bf16.gmra.mxu1 %v2805_v8  ;;  %v2813_v8 = vpack.c.bf16 %v8525_v1, %v8529_v26  ;;  %v2615_v1 = vadd.f32 %v11494_v59, %v11510_v13 }
 0x43b   :  { %7404 = vmatprep.mubr.bf16.mxu1 %v2806_v19  ;;  %v2580_v19 = vadd.f32 %v11494_v59, %v11448_v57 }
 0x442   :  { %7405 = vmatmul.mubr.bf16.gmra.mxu1 %v2807_v7  ;;  %v8535_v7 = vpop.eup %8534 }
 0x443   :  { %7408 = vmatprep.mubr.bf16.mxu1 %v2808_v43  ;;  %v8537_v43 = vpop.eup %8536 }
 0x444   :  { %v8539_v24 = vpop.eup %8538  ;;  %v2815_v18 = vpack.c.bf16 %v8533_v15, %v8537_v43 }
 0x445   :  { %v2816_v49 = vpack.c.bf16 %v8535_v7, %v8539_v24  ;;  %v8541_v6 = vpop.eup %8540 }
 0x44a   :  { %v11523_v30 = vpop.f32.mrf.mxu1  ;;  %7409 = vmatmul.mubr.bf16.gmra.mxu1 %v2809_v25  ;;  %v8543_v25 = vpop.eup %8542 }
 0x44b   :  { %7412 = vmatprep.mubr.bf16.mxu1 %v2810_v45  ;;  %v2604_v45 = vadd.f32 %v11494_v59, %v11506_v11  ;;  %v8545_v60 = vpop.eup %8544  ;;  %v8053_v11 = vld [vmem:[%s12946_s1 + $0x110] sm:$0xff]   ;;  %v2817_v53 = vpack.c.bf16 %v8543_v25, %v8541_v6  ;;  %v2628_v43 = vadd.f32 %v11494_v59, %v11523_v30 }
 0x44c   :  { %v11527_v38 = vpop.f32.mrf.mxu1  ;;  %v8547_v62 = vpop.eup %8546  ;;  %7598 = vmatprep.subr.bf16.mxu1 %v8053_v11 }
 0x44d   :  { %v2620_v26 = vadd.f32 %v11494_v59, %v11527_v38  ;;  %7599 = vmatpush3.bf16.msra.mxu1 %v8053_v11 }
 0x44e   :  { %v11533_v21 = vpop.f32.mrf.mxu1 }
 0x44f   :  { %v2631_v24 = vadd.f32 %v11494_v59, %v11533_v21 }
 0x450   :  { %v11537_v2 = vpop.f32.mrf.mxu1 }
 0x452   :  { %v7318_v48 = vpop.f32.mrf.mxu1  ;;  %7413 = vmatmul.mubr.bf16.gmra.mxu1 %v2811_v9 }
 0x453   :  { %7416 = vmatprep.mubr.bf16.mxu1 %v2812_v61  ;;  %v2942_v56 = vadd.f32 %v7318_v48, %v11550_v28  ;;  %v2818_v61 = vpack.c.bf16 %v8547_v62, %v8545_v60  ;;  %v2612_v48 = vadd.f32 %v11494_v59, %v11498_v12 }
 0x454   :  { %v2933_v39 = vpop.f32.mrf.mxu1 }
 0x455   :  { %v2934_v16 = vadd.f32 %v11550_v28, %v2933_v39 }
 0x456   :  { %v7319_v37 = vpop.f32.mrf.mxu1 }
 0x457   :  { %v2945_v50 = vadd.f32 %v7319_v37, %v11550_v28  ;;  %8548 = vtanh.f32 %v2934_v16 }
 0x458   :  { %v2936_v34 = vpop.f32.mrf.mxu1 }
 0x459   :  { %v2937_v5 = vadd.f32 %v11550_v28, %v2936_v34  ;;  %8550 = vtanh.f32 %v2945_v50  ;;  %v2623_v50 = vadd.f32 %v11494_v59, %v11537_v2 }
 0x45a   :  { %v7322_v23 = vpop.f32.mrf.mxu1  ;;  %7417 = vmatmul.mubr.bf16.gmra.mxu1 %v2813_v8 }
 0x45b   :  { %8552 = vtanh.f32 %v2937_v5  ;;  %7420 = vmatprep.mubr.bf16.mxu1 %v2814_v52  ;;  %v2958_v29 = vadd.f32 %v7322_v23, %v11550_v28 }
 0x45c   :  { %8554 = vtanh.f32 %v2942_v56  ;;  %v2949_v57 = vpop.f32.mrf.mxu1 }
 0x45d   :  { %8556 = vtanh.f32 %v2580_v19  ;;  %v2950_v27 = vadd.f32 %v11550_v28, %v2949_v57 }
 0x45e   :  { %8558 = vtanh.f32 %v2583_v0  ;;  %v7323_v3 = vpop.f32.mrf.mxu1 }
 0x45f   :  { %8560 = vtanh.f32 %v2588_v32  ;;  %v2961_v54 = vadd.f32 %v7323_v3, %v11550_v28 }
 0x460   :  { %8562 = vtanh.f32 %v2591_v35  ;;  %v2952_v22 = vpop.f32.mrf.mxu1 }
 0x461   :  { %8564 = vtanh.f32 %v2950_v27  ;;  %v2953_v10 = vadd.f32 %v11550_v28, %v2952_v22 }
 0x462   :  { %8566 = vtanh.f32 %v2961_v54  ;;  %v7326_v42 = vpop.f32.mrf.mxu1  ;;  %7421 = vmatmul.mubr.bf16.gmra.mxu1 %v2815_v18 }
 0x463   :  { %8568 = vtanh.f32 %v2953_v10  ;;  %7424 = vmatprep.mubr.bf16.mxu1 %v2816_v49  ;;  %v2974_v47 = vadd.f32 %v7326_v42, %v11550_v28 }
 0x464   :  { %8570 = vtanh.f32 %v2958_v29  ;;  %v2965_v31 = vpop.f32.mrf.mxu1  ;;  %v8549_v14 = vpop.eup %8548 }
 0x465   :  { %8572 = vtanh.f32 %v2596_v33  ;;  %v2966_v55 = vadd.f32 %v11550_v28, %v2965_v31 }
 0x466   :  { %8574 = vtanh.f32 %v2599_v36  ;;  %v7327_v44 = vpop.f32.mrf.mxu1  ;;  %v8551_v40 = vpop.eup %8550 }
 0x467   :  { %8576 = vtanh.f32 %v2604_v45  ;;  %v2977_v51 = vadd.f32 %v7327_v44, %v11550_v28 }
 0x468   :  { %v8553_v63 = vpop.eup %8552  ;;  %8578 = vtanh.f32 %v2607_v58  ;;  %v2968_v9 = vpop.f32.mrf.mxu1 }
 0x469   :  { %v8555_v46 = vpop.eup %8554  ;;  %8580 = vtanh.f32 %v2966_v55  ;;  %v2969_v4 = vadd.f32 %v11550_v28, %v2968_v9  ;;  %v3572_v41 = vpack.c.bf16 %v8553_v63, %v8549_v14 }
 0x46a   :  { %v8557_v39 = vpop.eup %8556  ;;  %8582 = vtanh.f32 %v2977_v51  ;;  %v7330_v16 = vpop.f32.mrf.mxu1  ;;  %7425 = vmatmul.mubr.bf16.gmra.mxu1 %v2817_v53  ;;  %v3573_v20 = vpack.c.bf16 %v8551_v40, %v8555_v46 }
 0x46b   :  { %v8559_v37 = vpop.eup %8558  ;;  %8584 = vtanh.f32 %v2969_v4  ;;  %7428 = vmatprep.mubr.bf16.mxu1 %v2818_v61  ;;  %7460 = vmatprep.mubr.bf16.mxu0 %v3572_v41  ;;  %v2990_v52 = vadd.f32 %v7330_v16, %v11550_v28 }
 0x46c   :  { %v8561_v12 = vpop.eup %8560  ;;  %8586 = vtanh.f32 %v2974_v47  ;;  %v2981_v17 = vpop.f32.mrf.mxu1  ;;  %7461 = vmatmul.mubr.bf16.vlgmr.msra.gmra.mxu0 %v3573_v20  ;;  %v2819_v0 = vpack.c.bf16 %v8559_v37, %v8557_v39 }
 0x46d   :  { %v8563_v13 = vpop.eup %8562  ;;  %8588 = vtanh.f32 %v2612_v48  ;;  %v2982_v56 = vadd.f32 %v11550_v28, %v2981_v17 }
 0x46e   :  { %v8565_v34 = vpop.eup %8564  ;;  %8590 = vtanh.f32 %v2615_v1  ;;  %v7331_v8 = vpop.f32.mrf.mxu1  ;;  %v2820_v35 = vpack.c.bf16 %v8563_v13, %v8561_v12 }
 0x46f   :  { %v8567_v19 = vpop.eup %8566  ;;  %8592 = vtanh.f32 %v2620_v26  ;;  %v2993_v38 = vadd.f32 %v7331_v8, %v11550_v28  ;;  %v8054_v8 = vld [vmem:[%s12946_s1 + $0x108] sm:$0xff]  }
 0x470   :  { %v8569_v5 = vpop.eup %8568  ;;  %8594 = vtanh.f32 %v2623_v50  ;;  %v2984_v2 = vpop.f32.mrf.mxu1  ;;  %7600 = vmatprep.subr.bf16.mxu1 %v8054_v8 }
 0x471   :  { %v8571_v23 = vpop.eup %8570  ;;  %8596 = vtanh.f32 %v2982_v56  ;;  %v2985_v32 = vadd.f32 %v11550_v28, %v2984_v2  ;;  %v3574_v57 = vpack.c.bf16 %v8569_v5, %v8565_v34  ;;  %7601 = vmatpush3.bf16.msra.mxu1 %v8054_v8 }
 0x472   :  { %v8573_v15 = vpop.eup %8572  ;;  %8598 = vtanh.f32 %v2993_v38  ;;  %v7334_v27 = vpop.f32.mrf.mxu1  ;;  %7429 = vmatmul.mubr.bf16.gmra.mxu1 %v2819_v0  ;;  %v3575_v7 = vpack.c.bf16 %v8567_v19, %v8571_v23 }
 0x473   :  { %v8575_v3 = vpop.eup %8574  ;;  %8600 = vtanh.f32 %v2985_v32  ;;  %7432 = vmatprep.mubr.bf16.mxu1 %v2820_v35  ;;  %7464 = vmatprep.mubr.bf16.mxu0 %v3574_v57  ;;  %v3006_v36 = vadd.f32 %v7334_v27, %v11550_v28 }
 0x474   :  { %v8577_v54 = vpop.eup %8576  ;;  %8602 = vtanh.f32 %v2990_v52  ;;  %v2997_v29 = vpop.f32.mrf.mxu1  ;;  %7465 = vmatmul.mubr.bf16.gmra.mxu0 %v3575_v7  ;;  %v2821_v25 = vpack.c.bf16 %v8575_v3, %v8573_v15 }
 0x475   :  { %v8579_v22 = vpop.eup %8578  ;;  %v2998_v18 = vadd.f32 %v11550_v28, %v2997_v29  ;;  %8604 = vtanh.f32 %v2628_v43 }
 0x476   :  { %v8581_v33 = vpop.eup %8580  ;;  %v7335_v10 = vpop.f32.mrf.mxu1  ;;  %8606 = vtanh.f32 %v2631_v24  ;;  %v2822_v21 = vpack.c.bf16 %v8579_v22, %v8577_v54 }
 0x477   :  { %v8583_v49 = vpop.eup %8582  ;;  %v3009_v6 = vadd.f32 %v7335_v10, %v11550_v28  ;;  %8608 = vtanh.f32 %v2998_v18 }
 0x478   :  { %v8585_v30 = vpop.eup %8584  ;;  %v3000_v42 = vpop.f32.mrf.mxu1 }
 0x479   :  { %v8587_v45 = vpop.eup %8586  ;;  %v3001_v59 = vadd.f32 %v11550_v28, %v3000_v42  ;;  %v3576_v60 = vpack.c.bf16 %v8585_v30, %v8581_v33  ;;  %8610 = vtanh.f32 %v3009_v6 }
 0x47a   :  { %v8589_v58 = vpop.eup %8588  ;;  %v7338_v31 = vpop.f32.mrf.mxu1  ;;  %7433 = vmatmul.mubr.bf16.gmra.mxu1 %v2821_v25  ;;  %v3577_v62 = vpack.c.bf16 %v8583_v49, %v8587_v45 }
 0x47b   :  { %v8591_v55 = vpop.eup %8590  ;;  %8612 = vtanh.f32 %v3001_v59  ;;  %7436 = vmatprep.mubr.bf16.mxu1 %v2822_v21  ;;  %7468 = vmatprep.mubr.bf16.mxu0 %v3576_v60  ;;  %v3022_v61 = vadd.f32 %v7338_v31, %v11550_v28 }
 0x47c   :  { %v8593_v14 = vpop.eup %8592  ;;  %8614 = vtanh.f32 %v3006_v36  ;;  %v3013_v44 = vpop.f32.mrf.mxu1  ;;  %7469 = vmatmul.mubr.bf16.gmra.mxu0 %v3577_v62  ;;  %v2823_v48 = vpack.c.bf16 %v8591_v55, %v8589_v58 }
 0x47d   :  { %v8595_v40 = vpop.eup %8594  ;;  %v3014_v51 = vadd.f32 %v11550_v28, %v3013_v44 }
 0x47e   :  { %v8597_v11 = vpop.eup %8596  ;;  %v7339_v63 = vpop.f32.mrf.mxu1  ;;  %v2824_v39 = vpack.c.bf16 %v8595_v40, %v8593_v14 }
 0x47f   :  { %v8599_v47 = vpop.eup %8598  ;;  %v3025_v9 = vadd.f32 %v7339_v63, %v11550_v28  ;;  %8616 = vtanh.f32 %v3014_v51 }
 0x480   :  { %v8601_v53 = vpop.eup %8600  ;;  %v3016_v46 = vpop.f32.mrf.mxu1 }
 0x481   :  { %v8603_v4 = vpop.eup %8602  ;;  %v3017_v41 = vadd.f32 %v11550_v28, %v3016_v46  ;;  %v3578_v1 = vpack.c.bf16 %v8601_v53, %v8597_v11  ;;  %8618 = vtanh.f32 %v3025_v9 }
 0x482   :  { %v7342_v16 = vpop.f32.mrf.mxu1  ;;  %7437 = vmatmul.mubr.bf16.gmra.mxu1 %v2823_v48  ;;  %v3579_v20 = vpack.c.bf16 %v8599_v47, %v8603_v4  ;;  %v8605_v37 = vpop.eup %8604 }
 0x483   :  { %8620 = vtanh.f32 %v3017_v41  ;;  %7440 = vmatprep.mubr.bf16.mxu1 %v2824_v39  ;;  %7472 = vmatprep.mubr.bf16.mxu0 %v3578_v1  ;;  %v8607_v12 = vpop.eup %8606  ;;  %v3038_v38 = vadd.f32 %v7342_v16, %v11550_v28  ;;  %v8055_v41 = vld [vmem:[%s12946_s1 + $0x178] sm:$0xff]  }
 0x484   :  { %8622 = vtanh.f32 %v3022_v61  ;;  %v3029_v26 = vpop.f32.mrf.mxu1  ;;  %7473 = vmatmul.mubr.bf16.gmra.mxu0 %v3579_v20  ;;  %v8609_v17 = vpop.eup %8608  ;;  %v2825_v52 = vpack.c.bf16 %v8607_v12, %v8605_v37  ;;  %7732 = vmatprep.subr.bf16.mxu0 %v8055_v41 }
 0x485   :  { %v3030_v50 = vadd.f32 %v11550_v28, %v3029_v26  ;;  %7733 = vmatpush3.bf16.msra.mxu0 %v8055_v41 }
 0x486   :  { %v7343_v13 = vpop.f32.mrf.mxu1  ;;  %v8611_v56 = vpop.eup %8610 }
 0x487   :  { %v3041_v34 = vadd.f32 %v7343_v13, %v11550_v28  ;;  %8624 = vtanh.f32 %v3030_v50 }
 0x488   :  { %v8613_v19 = vpop.eup %8612  ;;  %v3032_v5 = vpop.f32.mrf.mxu1 }
 0x489   :  { %v8615_v2 = vpop.eup %8614  ;;  %v3033_v0 = vadd.f32 %v11550_v28, %v3032_v5  ;;  %v3580_v23 = vpack.c.bf16 %v8613_v19, %v8609_v17  ;;  %8626 = vtanh.f32 %v3041_v34  ;;  %v8056_v17 = vld [vmem:[%s12946_s1 + $0x100] sm:$0xff]  }
 0x48a   :  { %v7346_v32 = vpop.f32.mrf.mxu1  ;;  %7441 = vmatmul.mubr.bf16.gmra.mxu1 %v2825_v52  ;;  %v3581_v35 = vpack.c.bf16 %v8611_v56, %v8615_v2  ;;  %7602 = vmatprep.subr.bf16.mxu1 %v8056_v17 }
 0x48b   :  { %8628 = vtanh.f32 %v3033_v0  ;;  %7476 = vmatprep.mubr.bf16.mxu0 %v3580_v23  ;;  %v3054_v24 = vadd.f32 %v7346_v32, %v11550_v28  ;;  %7603 = vmatpush3.bf16.msra.mxu1 %v8056_v17 }
 0x48c   :  { %8630 = vtanh.f32 %v3038_v38  ;;  %v3045_v57 = vpop.f32.mrf.mxu1  ;;  %7477 = vmatmul.mubr.bf16.gmra.mxu0 %v3581_v35  ;;  %v8617_v27 = vpop.eup %8616 }
 0x48d   :  { %v3046_v15 = vadd.f32 %v11550_v28, %v3045_v57 }
 0x48e   :  { %v7347_v7 = vpop.f32.mrf.mxu1  ;;  %v8619_v3 = vpop.eup %8618 }
 0x48f   :  { %v3057_v43 = vadd.f32 %v7347_v7, %v11550_v28  ;;  %8632 = vtanh.f32 %v3046_v15 }
 0x490   :  { %v8621_v54 = vpop.eup %8620  ;;  %v3048_v29 = vpop.f32.mrf.mxu1 }
 0x491   :  { %v8623_v22 = vpop.eup %8622  ;;  %v3049_v18 = vadd.f32 %v11550_v28, %v3048_v29  ;;  %v3582_v33 = vpack.c.bf16 %v8621_v54, %v8617_v27  ;;  %8634 = vtanh.f32 %v3057_v43 }
 0x492   :  { %v7350_v10 = vpop.f32.mrf.mxu1  ;;  %v3583_v49 = vpack.c.bf16 %v8619_v3, %v8623_v22 }
 0x493   :  { %8636 = vtanh.f32 %v3049_v18  ;;  %7480 = vmatprep.mubr.bf16.mxu0 %v3582_v33  ;;  %v3070_v21 = vadd.f32 %v7350_v10, %v11550_v28 }
 0x494   :  { %8638 = vtanh.f32 %v3054_v24  ;;  %v3061_v6 = vpop.f32.mrf.mxu1  ;;  %7481 = vmatmul.mubr.bf16.gmra.mxu0 %v3583_v49  ;;  %v8625_v36 = vpop.eup %8624 }
 0x495   :  { %v3062_v30 = vadd.f32 %v11550_v28, %v3061_v6 }
 0x496   :  { %v7351_v42 = vpop.f32.mrf.mxu1  ;;  %v8627_v25 = vpop.eup %8626 }
 0x497   :  { %v3073_v45 = vadd.f32 %v7351_v42, %v11550_v28  ;;  %8640 = vtanh.f32 %v3062_v30 }
 0x498   :  { %v8629_v59 = vpop.eup %8628  ;;  %v3064_v60 = vpop.f32.mrf.mxu1 }
 0x499   :  { %v8631_v58 = vpop.eup %8630  ;;  %v3065_v31 = vadd.f32 %v11550_v28, %v3064_v60  ;;  %v3584_v62 = vpack.c.bf16 %v8629_v59, %v8625_v36  ;;  %8642 = vtanh.f32 %v3073_v45 }
 0x49a   :  { %v7354_v55 = vpop.f32.mrf.mxu1  ;;  %v3585_v14 = vpack.c.bf16 %v8627_v25, %v8631_v58 }
 0x49b   :  { %8644 = vtanh.f32 %v3065_v31  ;;  %7484 = vmatprep.mubr.bf16.mxu0 %v3584_v62  ;;  %v3086_v53 = vadd.f32 %v7354_v55, %v11550_v28 }
 0x49c   :  { %8646 = vtanh.f32 %v3070_v21  ;;  %v3077_v44 = vpop.f32.mrf.mxu1  ;;  %7485 = vmatmul.mubr.bf16.gmra.mxu0 %v3585_v14  ;;  %v8633_v51 = vpop.eup %8632 }
 0x49d   :  { %v3078_v40 = vadd.f32 %v11550_v28, %v3077_v44 }
 0x49e   :  { %v7355_v11 = vpop.f32.mrf.mxu1  ;;  %v8635_v63 = vpop.eup %8634 }
 0x49f   :  { %v3089_v47 = vadd.f32 %v7355_v11, %v11550_v28  ;;  %8648 = vtanh.f32 %v3078_v40 }
 0x4a0   :  { %v8637_v9 = vpop.eup %8636  ;;  %v3080_v61 = vpop.f32.mrf.mxu1 }
 0x4a1   :  { %v8639_v46 = vpop.eup %8638  ;;  %v3081_v48 = vadd.f32 %v11550_v28, %v3080_v61  ;;  %v3586_v4 = vpack.c.bf16 %v8637_v9, %v8633_v51  ;;  %8650 = vtanh.f32 %v3089_v47 }
 0x4a2   :  { %v7358_v39 = vpop.f32.mrf.mxu1  ;;  %v3587_v1 = vpack.c.bf16 %v8635_v63, %v8639_v46  ;;  %v8057_v46 = vld [vmem:[%s12946_s1 + $0x170] sm:$0xff]  }
 0x4a3   :  { %8652 = vtanh.f32 %v3081_v48  ;;  %7488 = vmatprep.mubr.bf16.mxu0 %v3586_v4  ;;  %v3102_v56 = vadd.f32 %v7358_v39, %v11550_v28  ;;  %7734 = vmatprep.subr.bf16.mxu0 %v8057_v46 }
 0x4a4   :  { %8654 = vtanh.f32 %v3086_v53  ;;  %v3093_v16 = vpop.f32.mrf.mxu1  ;;  %7489 = vmatmul.mubr.bf16.gmra.mxu0 %v3587_v1  ;;  %v8641_v37 = vpop.eup %8640 }
 0x4a5   :  { %v3094_v20 = vadd.f32 %v11550_v28, %v3093_v16  ;;  %7735 = vmatpush3.bf16.msra.mxu0 %v8057_v46 }
 0x4a6   :  { %v7359_v26 = vpop.f32.mrf.mxu1  ;;  %v8643_v12 = vpop.eup %8642 }
 0x4a7   :  { %v3105_v50 = vadd.f32 %v7359_v26, %v11550_v28  ;;  %8656 = vtanh.f32 %v3094_v20 }
 0x4a8   :  { %v8645_v13 = vpop.eup %8644  ;;  %v3096_v34 = vpop.f32.mrf.mxu1 }
 0x4a9   :  { %v8647_v8 = vpop.eup %8646  ;;  %v3097_v19 = vadd.f32 %v11550_v28, %v3096_v34  ;;  %v3588_v38 = vpack.c.bf16 %v8645_v13, %v8641_v37  ;;  %8658 = vtanh.f32 %v3105_v50 }
 0x4aa   :  { %v7362_v5 = vpop.f32.mrf.mxu1  ;;  %v3589_v52 = vpack.c.bf16 %v8643_v12, %v8647_v8 }
 0x4ab   :  { %8660 = vtanh.f32 %v3097_v19  ;;  %7492 = vmatprep.mubr.bf16.mxu0 %v3588_v38  ;;  %v3118_v27 = vadd.f32 %v7362_v5, %v11550_v28 }
 0x4ac   :  { %8662 = vtanh.f32 %v3102_v56  ;;  %v3109_v2 = vpop.f32.mrf.mxu1  ;;  %7493 = vmatmul.mubr.bf16.gmra.mxu0 %v3589_v52  ;;  %v8649_v23 = vpop.eup %8648 }
 0x4ad   :  { %v3110_v0 = vadd.f32 %v11550_v28, %v3109_v2 }
 0x4ae   :  { %v7363_v32 = vpop.f32.mrf.mxu1  ;;  %v8651_v35 = vpop.eup %8650 }
 0x4af   :  { %v3121_v57 = vadd.f32 %v7363_v32, %v11550_v28  ;;  %8664 = vtanh.f32 %v3110_v0 }
 0x4b0   :  { %v8653_v15 = vpop.eup %8652  ;;  %v3112_v7 = vpop.f32.mrf.mxu1 }
 0x4b1   :  { %v8655_v3 = vpop.eup %8654  ;;  %v3113_v43 = vadd.f32 %v11550_v28, %v3112_v7  ;;  %v3590_v54 = vpack.c.bf16 %v8653_v15, %v8649_v23  ;;  %8666 = vtanh.f32 %v3121_v57 }
 0x4b2   :  { %v7366_v24 = vpop.f32.mrf.mxu1  ;;  %v3591_v29 = vpack.c.bf16 %v8651_v35, %v8655_v3 }
 0x4b3   :  { %8668 = vtanh.f32 %v3113_v43  ;;  %7496 = vmatprep.mubr.bf16.mxu0 %v3590_v54  ;;  %v3134_v36 = vadd.f32 %v7366_v24, %v11550_v28 }
 0x4b4   :  { %8670 = vtanh.f32 %v3118_v27  ;;  %v3125_v22 = vpop.f32.mrf.mxu1  ;;  %7497 = vmatmul.mubr.bf16.gmra.mxu0 %v3591_v29  ;;  %v8657_v33 = vpop.eup %8656 }
 0x4b5   :  { %v3126_v18 = vadd.f32 %v11550_v28, %v3125_v22 }
 0x4b6   :  { %v7367_v10 = vpop.f32.mrf.mxu1  ;;  %v8659_v49 = vpop.eup %8658 }
 0x4b7   :  { %v3137_v6 = vadd.f32 %v7367_v10, %v11550_v28  ;;  %8672 = vtanh.f32 %v3126_v18 }
 0x4b8   :  { %v8661_v30 = vpop.eup %8660  ;;  %v3128_v42 = vpop.f32.mrf.mxu1 }
 0x4b9   :  { %v8663_v25 = vpop.eup %8662  ;;  %v3129_v45 = vadd.f32 %v11550_v28, %v3128_v42  ;;  %v3592_v59 = vpack.c.bf16 %v8661_v30, %v8657_v33  ;;  %8674 = vtanh.f32 %v3137_v6 }
 0x4ba   :  { %v7370_v21 = vpop.f32.mrf.mxu1  ;;  %v3593_v60 = vpack.c.bf16 %v8659_v49, %v8663_v25 }
 0x4bb   :  { %8676 = vtanh.f32 %v3129_v45  ;;  %7500 = vmatprep.mubr.bf16.mxu0 %v3592_v59  ;;  %v3150_v51 = vadd.f32 %v7370_v21, %v11550_v28 }
 0x4bc   :  { %8678 = vtanh.f32 %v3134_v36  ;;  %v3141_v58 = vpop.f32.mrf.mxu1  ;;  %7501 = vmatmul.mubr.bf16.gmra.mxu0 %v3593_v60  ;;  %v8665_v62 = vpop.eup %8664 }
 0x4bd   :  { %v3142_v31 = vadd.f32 %v11550_v28, %v3141_v58 }
 0x4be   :  { %v7371_v55 = vpop.f32.mrf.mxu1  ;;  %v8667_v14 = vpop.eup %8666 }
 0x4bf   :  { %v3153_v44 = vadd.f32 %v7371_v55, %v11550_v28  ;;  %8680 = vtanh.f32 %v3142_v31 }
 0x4c0   :  { %v8669_v40 = vpop.eup %8668  ;;  %v3144_v11 = vpop.f32.mrf.mxu1 }
 0x4c1   :  { %v8671_v63 = vpop.eup %8670  ;;  %v3145_v47 = vadd.f32 %v11550_v28, %v3144_v11  ;;  %v3594_v9 = vpack.c.bf16 %v8669_v40, %v8665_v62  ;;  %8682 = vtanh.f32 %v3153_v44  ;;  %v8058_v40 = vld [vmem:[%s12946_s1 + $0x168] sm:$0xff]  }
 0x4c2   :  { %v7374_v53 = vpop.f32.mrf.mxu1  ;;  %v3595_v61 = vpack.c.bf16 %v8667_v14, %v8671_v63  ;;  %7736 = vmatprep.subr.bf16.mxu0 %v8058_v40 }
 0x4c3   :  { %8684 = vtanh.f32 %v3145_v47  ;;  %7504 = vmatprep.mubr.bf16.mxu0 %v3594_v9  ;;  %v3166_v37 = vadd.f32 %v7374_v53, %v11550_v28  ;;  %7737 = vmatpush3.bf16.msra.mxu0 %v8058_v40 }
 0x4c4   :  { %8686 = vtanh.f32 %v3150_v51  ;;  %v3157_v48 = vpop.f32.mrf.mxu1  ;;  %7505 = vmatmul.mubr.bf16.gmra.mxu0 %v3595_v61  ;;  %v8673_v41 = vpop.eup %8672 }
 0x4c5   :  { %v3158_v4 = vadd.f32 %v11550_v28, %v3157_v48 }
 0x4c6   :  { %v7375_v39 = vpop.f32.mrf.mxu1  ;;  %v8675_v1 = vpop.eup %8674 }
 0x4c7   :  { %v3169_v16 = vadd.f32 %v7375_v39, %v11550_v28  ;;  %8688 = vtanh.f32 %v3158_v4 }
 0x4c8   :  { %v8677_v20 = vpop.eup %8676  ;;  %v3160_v26 = vpop.f32.mrf.mxu1 }
 0x4c9   :  { %v8679_v12 = vpop.eup %8678  ;;  %v3161_v50 = vadd.f32 %v11550_v28, %v3160_v26  ;;  %v3596_v17 = vpack.c.bf16 %v8677_v20, %v8673_v41  ;;  %8690 = vtanh.f32 %v3169_v16 }
 0x4ca   :  { %v7378_v13 = vpop.f32.mrf.mxu1  ;;  %v3597_v56 = vpack.c.bf16 %v8675_v1, %v8679_v12 }
 0x4cb   :  { %8692 = vtanh.f32 %v3161_v50  ;;  %7508 = vmatprep.mubr.bf16.mxu0 %v3596_v17  ;;  %v3182_v0 = vadd.f32 %v7378_v13, %v11550_v28 }
 0x4cc   :  { %8694 = vtanh.f32 %v3166_v37  ;;  %v3173_v34 = vpop.f32.mrf.mxu1  ;;  %7509 = vmatmul.mubr.bf16.gmra.mxu0 %v3597_v56  ;;  %v8681_v19 = vpop.eup %8680 }
 0x4cd   :  { %v3174_v8 = vadd.f32 %v11550_v28, %v3173_v34 }
 0x4ce   :  { %v7379_v38 = vpop.f32.mrf.mxu1  ;;  %v8683_v5 = vpop.eup %8682 }
 0x4cf   :  { %v3185_v52 = vadd.f32 %v7379_v38, %v11550_v28  ;;  %8696 = vtanh.f32 %v3174_v8 }
 0x4d0   :  { %v8685_v2 = vpop.eup %8684  ;;  %v3176_v23 = vpop.f32.mrf.mxu1 }
 0x4d1   :  { %v8687_v32 = vpop.eup %8686  ;;  %v3177_v35 = vadd.f32 %v11550_v28, %v3176_v23  ;;  %v3598_v57 = vpack.c.bf16 %v8685_v2, %v8681_v19  ;;  %8698 = vtanh.f32 %v3185_v52 }
 0x4d2   :  { %v7382_v15 = vpop.f32.mrf.mxu1  ;;  %v3599_v27 = vpack.c.bf16 %v8683_v5, %v8687_v32 }
 0x4d3   :  { %8700 = vtanh.f32 %v3177_v35  ;;  %7512 = vmatprep.mubr.bf16.mxu0 %v3598_v57  ;;  %v3198_v18 = vadd.f32 %v7382_v15, %v11550_v28 }
 0x4d4   :  { %8702 = vtanh.f32 %v3182_v0  ;;  %v3189_v7 = vpop.f32.mrf.mxu1  ;;  %7513 = vmatmul.mubr.bf16.gmra.mxu0 %v3599_v27  ;;  %v8689_v43 = vpop.eup %8688 }
 0x4d5   :  { %v3190_v3 = vadd.f32 %v11550_v28, %v3189_v7 }
 0x4d6   :  { %v7383_v54 = vpop.f32.mrf.mxu1  ;;  %v8691_v24 = vpop.eup %8690 }
 0x4d7   :  { %v3201_v29 = vadd.f32 %v7383_v54, %v11550_v28  ;;  %8704 = vtanh.f32 %v3190_v3 }
 0x4d8   :  { %v8693_v22 = vpop.eup %8692  ;;  %v3192_v33 = vpop.f32.mrf.mxu1 }
 0x4d9   :  { %v8695_v10 = vpop.eup %8694  ;;  %v3193_v49 = vadd.f32 %v11550_v28, %v3192_v33  ;;  %v3600_v6 = vpack.c.bf16 %v8693_v22, %v8689_v43  ;;  %8706 = vtanh.f32 %v3201_v29 }
 0x4da   :  { %v7386_v30 = vpop.f32.mrf.mxu1  ;;  %v3601_v36 = vpack.c.bf16 %v8691_v24, %v8695_v10 }
 0x4db   :  { %8708 = vtanh.f32 %v3193_v49  ;;  %7516 = vmatprep.mubr.bf16.mxu0 %v3600_v6  ;;  %v3214_v31 = vadd.f32 %v7386_v30, %v11550_v28 }
 0x4dc   :  { %8710 = vtanh.f32 %v3198_v18  ;;  %v3205_v42 = vpop.f32.mrf.mxu1  ;;  %7517 = vmatmul.mubr.bf16.gmra.mxu0 %v3601_v36  ;;  %v8697_v45 = vpop.eup %8696  ;;  %v11686_v36 = vld [vmem:[%s12947_s2 + $0x2] ss:$0 sm:$0xff] }
 0x4dd   :  { %v3206_v25 = vadd.f32 %v11550_v28, %v3205_v42 }
 0x4de   :  { %v7387_v59 = vpop.f32.mrf.mxu1  ;;  %v8699_v21 = vpop.eup %8698 }
 0x4df   :  { %v3217_v60 = vadd.f32 %v7387_v59, %v11550_v28  ;;  %8712 = vtanh.f32 %v3206_v25 }
 0x4e0   :  { %v8701_v58 = vpop.eup %8700  ;;  %v3208_v62 = vpop.f32.mrf.mxu1 }
 0x4e1   :  { %v8703_v55 = vpop.eup %8702  ;;  %v3209_v14 = vadd.f32 %v11550_v28, %v3208_v62  ;;  %v3602_v44 = vpack.c.bf16 %v8701_v58, %v8697_v45  ;;  %8714 = vtanh.f32 %v3217_v60 }
 0x4e2   :  { %v7390_v51 = vpop.f32.mrf.mxu1  ;;  %v3603_v11 = vpack.c.bf16 %v8699_v21, %v8703_v55 }
 0x4e3   :  { %8716 = vtanh.f32 %v3209_v14  ;;  %7520 = vmatprep.mubr.bf16.mxu0 %v3602_v44  ;;  %v3230_v4 = vadd.f32 %v7390_v51, %v11550_v28 }
 0x4e4   :  { %8718 = vtanh.f32 %v3214_v31  ;;  %v3221_v63 = vpop.f32.mrf.mxu1  ;;  %7521 = vmatmul.mubr.bf16.gmra.mxu0 %v3603_v11  ;;  %v8705_v9 = vpop.eup %8704 }
 0x4e5   :  { %v3222_v47 = vadd.f32 %v11550_v28, %v3221_v63 }
 0x4e6   :  { %v7391_v53 = vpop.f32.mrf.mxu1  ;;  %v8707_v61 = vpop.eup %8706 }
 0x4e7   :  { %v3233_v46 = vadd.f32 %v7391_v53, %v11550_v28  ;;  %8720 = vtanh.f32 %v3222_v47 }
 0x4e8   :  { %v8709_v48 = vpop.eup %8708  ;;  %v3224_v41 = vpop.f32.mrf.mxu1 }
 0x4e9   :  { %v8711_v39 = vpop.eup %8710  ;;  %v3225_v1 = vadd.f32 %v11550_v28, %v3224_v41  ;;  %v3604_v16 = vpack.c.bf16 %v8709_v48, %v8705_v9  ;;  %8722 = vtanh.f32 %v3233_v46 }
 0x4ea   :  { %v7394_v20 = vpop.f32.mrf.mxu1  ;;  %v3605_v37 = vpack.c.bf16 %v8707_v61, %v8711_v39 }
 0x4eb   :  { %8724 = vtanh.f32 %v3225_v1  ;;  %7524 = vmatprep.mubr.bf16.mxu0 %v3604_v16  ;;  %v3246_v8 = vadd.f32 %v7394_v20, %v11550_v28 }
 0x4ec   :  { %8726 = vtanh.f32 %v3230_v4  ;;  %v3237_v26 = vpop.f32.mrf.mxu1  ;;  %7525 = vmatmul.mubr.bf16.gmra.mxu0 %v3605_v37  ;;  %v8713_v50 = vpop.eup %8712 }
 0x4ed   :  { %v3238_v12 = vadd.f32 %v11550_v28, %v3237_v26 }
 0x4ee   :  { %v7395_v17 = vpop.f32.mrf.mxu1  ;;  %v8715_v13 = vpop.eup %8714 }
 0x4ef   :  { %v3249_v56 = vadd.f32 %v7395_v17, %v11550_v28  ;;  %8728 = vtanh.f32 %v3238_v12 }
 0x4f0   :  { %v8717_v34 = vpop.eup %8716  ;;  %v3240_v19 = vpop.f32.mrf.mxu1 }
 0x4f1   :  { %v8719_v38 = vpop.eup %8718  ;;  %v3241_v5 = vadd.f32 %v11550_v28, %v3240_v19  ;;  %v3606_v52 = vpack.c.bf16 %v8717_v34, %v8713_v50  ;;  %8730 = vtanh.f32 %v3249_v56 }
 0x4f2   :  { %v7398_v2 = vpop.f32.mrf.mxu1  ;;  %v3607_v0 = vpack.c.bf16 %v8715_v13, %v8719_v38 }
 0x4f3   :  { %8732 = vtanh.f32 %v3241_v5  ;;  %7528 = vmatprep.mubr.bf16.mxu0 %v3606_v52  ;;  %v3262_v3 = vadd.f32 %v7398_v2, %v11550_v28 }
 0x4f4   :  { %8734 = vtanh.f32 %v3246_v8  ;;  %v3253_v23 = vpop.f32.mrf.mxu1  ;;  %7529 = vmatmul.mubr.bf16.gmra.mxu0 %v3607_v0  ;;  %v8721_v35 = vpop.eup %8720 }
 0x4f5   :  { %v3254_v32 = vadd.f32 %v11550_v28, %v3253_v23 }
 0x4f6   :  { %v7399_v57 = vpop.f32.mrf.mxu1  ;;  %v8723_v15 = vpop.eup %8722 }
 0x4f7   :  { %v3265_v27 = vadd.f32 %v7399_v57, %v11550_v28  ;;  %8736 = vtanh.f32 %v3254_v32 }
 0x4f8   :  { %v8725_v7 = vpop.eup %8724  ;;  %v3256_v43 = vpop.f32.mrf.mxu1 }
 0x4f9   :  { %v8727_v54 = vpop.eup %8726  ;;  %v3257_v24 = vadd.f32 %v11550_v28, %v3256_v43  ;;  %v3608_v29 = vpack.c.bf16 %v8725_v7, %v8721_v35  ;;  %8738 = vtanh.f32 %v3265_v27 }
 0x4fa   :  { %v7402_v22 = vpop.f32.mrf.mxu1  ;;  %v3609_v18 = vpack.c.bf16 %v8723_v15, %v8727_v54 }
 0x4fb   :  { %8740 = vtanh.f32 %v3257_v24  ;;  %7532 = vmatprep.mubr.bf16.mxu0 %v3608_v29  ;;  %v3278_v45 = vadd.f32 %v11686_v36, %v7402_v22 }
 0x4fc   :  { %8742 = vtanh.f32 %v3262_v3  ;;  %v3269_v33 = vpop.f32.mrf.mxu1  ;;  %7533 = vmatmul.mubr.bf16.gmra.mxu0 %v3609_v18  ;;  %v8729_v49 = vpop.eup %8728 }
 0x4fd   :  { %v3270_v10 = vadd.f32 %v11550_v28, %v3269_v33  ;;  %v8059_v28 = vld [vmem:[%s12946_s1 + $0x160] sm:$0xff]  }
 0x4fe   :  { %v7403_v6 = vpop.f32.mrf.mxu1  ;;  %v8731_v30 = vpop.eup %8730  ;;  %7738 = vmatprep.subr.bf16.mxu0 %v8059_v28 }
 0x4ff   :  { %v3281_v42 = vadd.f32 %v11686_v36, %v7403_v6  ;;  %8744 = vtanh.f32 %v3270_v10  ;;  %7739 = vmatpush3.bf16.msra.mxu0 %v8059_v28 }
 0x500   :  { %v8733_v25 = vpop.eup %8732  ;;  %v3272_v59 = vpop.f32.mrf.mxu1 }
 0x501   :  { %v8735_v21 = vpop.eup %8734  ;;  %v3273_v60 = vadd.f32 %v11686_v36, %v3272_v59  ;;  %v3610_v58 = vpack.c.bf16 %v8733_v25, %v8729_v49  ;;  %8746 = vtanh.f32 %v3281_v42  ;;  %v8060_v25 = vld [vmem:[%s12946_s1 + $0x158] sm:$0xff]  }
 0x502   :  { %v7406_v31 = vpop.f32.mrf.mxu1  ;;  %v3611_v62 = vpack.c.bf16 %v8731_v30, %v8735_v21  ;;  %7740 = vmatprep.subr.bf16.mxu0 %v8060_v25 }
 0x503   :  { %8748 = vtanh.f32 %v3273_v60  ;;  %7536 = vmatprep.mubr.bf16.mxu0 %v3610_v58  ;;  %v3294_v47 = vadd.f32 %v11686_v36, %v7406_v31  ;;  %7741 = vmatpush3.bf16.msra.mxu0 %v8060_v25 }
 0x504   :  { %8750 = vtanh.f32 %v3278_v45  ;;  %v3285_v55 = vpop.f32.mrf.mxu1  ;;  %7537 = vmatmul.mubr.bf16.gmra.mxu0 %v3611_v62  ;;  %v8737_v44 = vpop.eup %8736 }
 0x505   :  { %v3286_v14 = vadd.f32 %v11686_v36, %v3285_v55 }
 0x506   :  { %v7407_v40 = vpop.f32.mrf.mxu1  ;;  %v8739_v51 = vpop.eup %8738 }
 0x507   :  { %v3297_v11 = vadd.f32 %v11686_v36, %v7407_v40  ;;  %8752 = vtanh.f32 %v3286_v14 }
 0x508   :  { %v8741_v63 = vpop.eup %8740  ;;  %v3288_v9 = vpop.f32.mrf.mxu1 }
 0x509   :  { %v8743_v53 = vpop.eup %8742  ;;  %v3289_v61 = vadd.f32 %v11686_v36, %v3288_v9  ;;  %v3612_v46 = vpack.c.bf16 %v8741_v63, %v8737_v44  ;;  %8754 = vtanh.f32 %v3297_v11 }
 0x50a   :  { %v7410_v48 = vpop.f32.mrf.mxu1  ;;  %v3613_v4 = vpack.c.bf16 %v8739_v51, %v8743_v53 }
 0x50b   :  { %8756 = vtanh.f32 %v3289_v61  ;;  %7540 = vmatprep.mubr.bf16.mxu0 %v3612_v46  ;;  %v3310_v12 = vadd.f32 %v11686_v36, %v7410_v48 }
 0x50c   :  { %8758 = vtanh.f32 %v3294_v47  ;;  %v3301_v41 = vpop.f32.mrf.mxu1  ;;  %7541 = vmatmul.mubr.bf16.gmra.mxu0 %v3613_v4  ;;  %v8745_v1 = vpop.eup %8744  ;;  %v11720_v47 = vld [vmem:[%s12947_s2 + $0x3] ss:$0 sm:$0xff] }
 0x50d   :  { %v3302_v39 = vadd.f32 %v11686_v36, %v3301_v41 }
 0x50e   :  { %v7411_v16 = vpop.f32.mrf.mxu1  ;;  %v8747_v20 = vpop.eup %8746 }
 0x50f   :  { %v3313_v37 = vadd.f32 %v11686_v36, %v7411_v16  ;;  %8760 = vtanh.f32 %v3302_v39 }
 0x510   :  { %v8749_v26 = vpop.eup %8748  ;;  %v3304_v50 = vpop.f32.mrf.mxu1 }
 0x511   :  { %v8751_v17 = vpop.eup %8750  ;;  %v3305_v13 = vadd.f32 %v11686_v36, %v3304_v50  ;;  %v3614_v56 = vpack.c.bf16 %v8749_v26, %v8745_v1  ;;  %8762 = vtanh.f32 %v3313_v37 }
 0x512   :  { %v7414_v34 = vpop.f32.mrf.mxu1  ;;  %v3615_v8 = vpack.c.bf16 %v8747_v20, %v8751_v17 }
 0x513   :  { %8764 = vtanh.f32 %v3305_v13  ;;  %7544 = vmatprep.mubr.bf16.mxu0 %v3614_v56  ;;  %v3326_v32 = vadd.f32 %v11686_v36, %v7414_v34 }
 0x514   :  { %8766 = vtanh.f32 %v3310_v12  ;;  %v3317_v19 = vpop.f32.mrf.mxu1  ;;  %7545 = vmatmul.mubr.bf16.gmra.mxu0 %v3615_v8  ;;  %v8753_v5 = vpop.eup %8752 }
 0x515   :  { %v3318_v38 = vadd.f32 %v11686_v36, %v3317_v19 }
 0x516   :  { %v7415_v52 = vpop.f32.mrf.mxu1  ;;  %v8755_v2 = vpop.eup %8754 }
 0x517   :  { %v3329_v0 = vadd.f32 %v11686_v36, %v7415_v52  ;;  %8768 = vtanh.f32 %v3318_v38 }
 0x518   :  { %v8757_v23 = vpop.eup %8756  ;;  %v3320_v35 = vpop.f32.mrf.mxu1 }
 0x519   :  { %v8759_v57 = vpop.eup %8758  ;;  %v3321_v15 = vadd.f32 %v11686_v36, %v3320_v35  ;;  %v3616_v27 = vpack.c.bf16 %v8757_v23, %v8753_v5  ;;  %8770 = vtanh.f32 %v3329_v0 }
 0x51a   :  { %v7418_v7 = vpop.f32.mrf.mxu1  ;;  %v3617_v3 = vpack.c.bf16 %v8755_v2, %v8759_v57 }
 0x51b   :  { %8772 = vtanh.f32 %v3321_v15  ;;  %7548 = vmatprep.mubr.bf16.mxu0 %v3616_v27  ;;  %v3342_v10 = vadd.f32 %v11686_v36, %v7418_v7 }
 0x51c   :  { %8774 = vtanh.f32 %v3326_v32  ;;  %v3333_v43 = vpop.f32.mrf.mxu1  ;;  %7549 = vmatmul.mubr.bf16.gmra.mxu0 %v3617_v3  ;;  %v8761_v24 = vpop.eup %8760 }
 0x51d   :  { %v3334_v54 = vadd.f32 %v11686_v36, %v3333_v43 }
 0x51e   :  { %v7419_v29 = vpop.f32.mrf.mxu1  ;;  %v8763_v22 = vpop.eup %8762 }
 0x51f   :  { %v3345_v18 = vadd.f32 %v11686_v36, %v7419_v29  ;;  %8776 = vtanh.f32 %v3334_v54 }
 0x520   :  { %v8765_v33 = vpop.eup %8764  ;;  %v3336_v49 = vpop.f32.mrf.mxu1 }
 0x521   :  { %v8767_v6 = vpop.eup %8766  ;;  %v3337_v30 = vadd.f32 %v11686_v36, %v3336_v49  ;;  %v3618_v42 = vpack.c.bf16 %v8765_v33, %v8761_v24  ;;  %8778 = vtanh.f32 %v3345_v18 }
 0x522   :  { %v7422_v45 = vpop.f32.mrf.mxu1  ;;  %v3619_v59 = vpack.c.bf16 %v8763_v22, %v8767_v6 }
 0x523   :  { %8780 = vtanh.f32 %v3337_v30  ;;  %7552 = vmatprep.mubr.bf16.mxu0 %v3618_v42  ;;  %v3358_v14 = vadd.f32 %v11686_v36, %v7422_v45 }
 0x524   :  { %8782 = vtanh.f32 %v3342_v10  ;;  %v3349_v21 = vpop.f32.mrf.mxu1  ;;  %7553 = vmatmul.mubr.bf16.gmra.mxu0 %v3619_v59  ;;  %v8769_v58 = vpop.eup %8768 }
 0x525   :  { %v3350_v60 = vadd.f32 %v11686_v36, %v3349_v21 }
 0x526   :  { %v7423_v28 = vpop.f32.mrf.mxu1  ;;  %v8771_v31 = vpop.eup %8770 }
 0x527   :  { %v3361_v62 = vadd.f32 %v11686_v36, %v7423_v28  ;;  %8784 = vtanh.f32 %v3350_v60 }
 0x528   :  { %v8773_v55 = vpop.eup %8772  ;;  %v3352_v44 = vpop.f32.mrf.mxu1 }
 0x529   :  { %v8775_v40 = vpop.eup %8774  ;;  %v3353_v51 = vadd.f32 %v11686_v36, %v3352_v44  ;;  %v3620_v11 = vpack.c.bf16 %v8773_v55, %v8769_v58  ;;  %8786 = vtanh.f32 %v3361_v62 }
 0x52a   :  { %v7426_v63 = vpop.f32.mrf.mxu1  ;;  %v3621_v9 = vpack.c.bf16 %v8771_v31, %v8775_v40 }
 0x52b   :  { %8788 = vtanh.f32 %v3353_v51  ;;  %v3374_v53 = vadd.f32 %v11686_v36, %v7426_v63  ;;  %7556 = vmatprep.mubr.bf16.mxu0 %v3620_v11 }
 0x52c   :  { %8790 = vtanh.f32 %v3358_v14  ;;  %v3365_v61 = vpop.f32.mrf.mxu1  ;;  %v7462_v46 = vpop.f32.mrf.mxu0  ;;  %7557 = vmatmul.mubr.bf16.gmra.mxu0 %v3621_v9 }
 0x52d   :  { %v3366_v48 = vadd.f32 %v11686_v36, %v3365_v61  ;;  %v3752_v4 = vadd.f32 %v7462_v46, %v11720_v47  ;;  %v8777_v41 = vpop.eup %8776  ;;  %8792 = vtanh.f32 %v3374_v53  ;;  %v8061_v46 = vld [vmem:[%s12946_s1 + $0x150] sm:$0xff]  }
 0x52e   :  { %v7427_v39 = vpop.f32.mrf.mxu1  ;;  %v3743_v1 = vpop.f32.mrf.mxu0  ;;  %7742 = vmatprep.subr.bf16.mxu0 %v8061_v46 }
 0x52f   :  { %v8779_v16 = vpop.eup %8778  ;;  %v3377_v20 = vadd.f32 %v11686_v36, %v7427_v39  ;;  %8794 = vtanh.f32 %v3366_v48  ;;  %v3744_v26 = vadd.f32 %v11720_v47, %v3743_v1  ;;  %7743 = vmatpush3.bf16.msra.mxu0 %v8061_v46 }
 0x530   :  { %v8781_v37 = vpop.eup %8780  ;;  %v3368_v12 = vpop.f32.mrf.mxu1  ;;  %8796 = vtanh.f32 %v3752_v4 }
 0x531   :  { %v7463_v50 = vpop.f32.mrf.mxu0  ;;  %v8783_v17 = vpop.eup %8782  ;;  %v3369_v13 = vadd.f32 %v11686_v36, %v3368_v12  ;;  %v3622_v34 = vpack.c.bf16 %v8781_v37, %v8777_v41  ;;  %8798 = vtanh.f32 %v3377_v20 }
 0x532   :  { %v3755_v56 = vadd.f32 %v7463_v50, %v11720_v47  ;;  %v7430_v8 = vpop.f32.mrf.mxu1  ;;  %v3623_v38 = vpack.c.bf16 %v8779_v16, %v8783_v17 }
 0x533   :  { %v3746_v19 = vpop.f32.mrf.mxu0  ;;  %8800 = vtanh.f32 %v3369_v13  ;;  %v3390_v5 = vadd.f32 %v11686_v36, %v7430_v8  ;;  %7560 = vmatprep.mubr.bf16.mxu0 %v3622_v34 }
 0x534   :  { %v3747_v52 = vadd.f32 %v11720_v47, %v3746_v19  ;;  %8802 = vtanh.f32 %v3744_v26  ;;  %v3381_v2 = vpop.f32.mrf.mxu1  ;;  %7561 = vmatmul.mubr.bf16.gmra.mxu0 %v3623_v38  ;;  %v8785_v35 = vpop.eup %8784 }
 0x535   :  { %v7466_v0 = vpop.f32.mrf.mxu0  ;;  %8804 = vtanh.f32 %v3755_v56  ;;  %v3382_v23 = vadd.f32 %v11686_v36, %v3381_v2 }
 0x536   :  { %v3768_v32 = vadd.f32 %v7466_v0, %v11720_v47  ;;  %8806 = vtanh.f32 %v3747_v52  ;;  %v7431_v57 = vpop.f32.mrf.mxu1  ;;  %v8787_v27 = vpop.eup %8786 }
 0x537   :  { %v3759_v15 = vpop.f32.mrf.mxu0  ;;  %8808 = vtanh.f32 %v3390_v5  ;;  %v3393_v7 = vadd.f32 %v11686_v36, %v7431_v57 }
 0x538   :  { %v8789_v3 = vpop.eup %8788  ;;  %8810 = vtanh.f32 %v3382_v23  ;;  %v3760_v43 = vadd.f32 %v11720_v47, %v3759_v15  ;;  %v3384_v54 = vpop.f32.mrf.mxu1 }
 0x539   :  { %v7467_v24 = vpop.f32.mrf.mxu0  ;;  %v8791_v29 = vpop.eup %8790  ;;  %8812 = vtanh.f32 %v3768_v32  ;;  %v3385_v22 = vadd.f32 %v11686_v36, %v3384_v54  ;;  %v3624_v33 = vpack.c.bf16 %v8789_v3, %v8785_v35 }
 0x53a   :  { %v3771_v18 = vadd.f32 %v7467_v24, %v11720_v47  ;;  %8814 = vtanh.f32 %v3393_v7  ;;  %v7434_v10 = vpop.f32.mrf.mxu1  ;;  %v3625_v6 = vpack.c.bf16 %v8787_v27, %v8791_v29  ;;  %v8793_v25 = vpop.eup %8792 }
 0x53b   :  { %v3762_v49 = vpop.f32.mrf.mxu0  ;;  %8816 = vtanh.f32 %v3385_v22  ;;  %v3406_v30 = vadd.f32 %v11686_v36, %v7434_v10  ;;  %7564 = vmatprep.mubr.bf16.mxu0 %v3624_v33 }
 0x53c   :  { %v3763_v42 = vadd.f32 %v11720_v47, %v3762_v49  ;;  %8818 = vtanh.f32 %v3760_v43  ;;  %v3397_v45 = vpop.f32.mrf.mxu1  ;;  %7565 = vmatmul.mubr.bf16.gmra.mxu0 %v3625_v6  ;;  %v8795_v21 = vpop.eup %8794 }
 0x53d   :  { %v7470_v59 = vpop.f32.mrf.mxu0  ;;  %8820 = vtanh.f32 %v3771_v18  ;;  %v3398_v60 = vadd.f32 %v11686_v36, %v3397_v45  ;;  %v8797_v28 = vpop.eup %8796 }
 0x53e   :  { %v3784_v58 = vadd.f32 %v7470_v59, %v11720_v47  ;;  %8822 = vtanh.f32 %v3763_v42  ;;  %v7435_v31 = vpop.f32.mrf.mxu1  ;;  %v8799_v55 = vpop.eup %8798 }
 0x53f   :  { %v3775_v62 = vpop.f32.mrf.mxu0  ;;  %8824 = vtanh.f32 %v3406_v30  ;;  %v3409_v14 = vadd.f32 %v11686_v36, %v7435_v31  ;;  %v3627_v39 = vpack.c.bf16 %v8799_v55, %v8793_v25 }
 0x540   :  { %v8801_v44 = vpop.eup %8800  ;;  %8826 = vtanh.f32 %v3398_v60  ;;  %v3776_v40 = vadd.f32 %v11720_v47, %v3775_v62  ;;  %v3400_v51 = vpop.f32.mrf.mxu1 }
 0x541   :  { %v7471_v11 = vpop.f32.mrf.mxu0  ;;  %v8803_v63 = vpop.eup %8802  ;;  %8828 = vtanh.f32 %v3784_v58  ;;  %v3401_v9 = vadd.f32 %v11686_v36, %v3400_v51  ;;  %v3626_v61 = vpack.c.bf16 %v8801_v44, %v8795_v21 }
 0x542   :  { %v3787_v53 = vadd.f32 %v7471_v11, %v11720_v47  ;;  %v8805_v48 = vpop.eup %8804  ;;  %8830 = vtanh.f32 %v3409_v14  ;;  %v7438_v4 = vpop.f32.mrf.mxu1 }
 0x543   :  { %v3778_v41 = vpop.f32.mrf.mxu0  ;;  %v8807_v1 = vpop.eup %8806  ;;  %8832 = vtanh.f32 %v3401_v9  ;;  %v3422_v16 = vadd.f32 %v11686_v36, %v7438_v4  ;;  %7568 = vmatprep.mubr.bf16.mxu0 %v3626_v61  ;;  %v4383_v13 = vpack.c.bf16 %v8805_v48, %v8797_v28 }
 0x544   :  { %v3779_v20 = vadd.f32 %v11720_v47, %v3778_v41  ;;  %v8809_v37 = vpop.eup %8808  ;;  %8834 = vtanh.f32 %v3776_v40  ;;  %v3413_v26 = vpop.f32.mrf.mxu1  ;;  %7569 = vmatmul.mubr.bf16.gmra.mxu0 %v3627_v39  ;;  %v4382_v50 = vpack.c.bf16 %v8807_v1, %v8803_v63 }
 0x545   :  { %v7474_v12 = vpop.f32.mrf.mxu0  ;;  %v8811_v17 = vpop.eup %8810  ;;  %8836 = vtanh.f32 %v3787_v53  ;;  %v3414_v56 = vadd.f32 %v11686_v36, %v3413_v26 }
 0x546   :  { %v3800_v34 = vadd.f32 %v7474_v12, %v11720_v47  ;;  %v8813_v8 = vpop.eup %8812  ;;  %8838 = vtanh.f32 %v3779_v20  ;;  %7604 = vmatprep.mubr.bf16.mxu1 %v4382_v50  ;;  %v7439_v19 = vpop.f32.mrf.mxu1 }
 0x547   :  { %v3791_v38 = vpop.f32.mrf.mxu0  ;;  %v8815_v5 = vpop.eup %8814  ;;  %8840 = vtanh.f32 %v3422_v16  ;;  %v3425_v52 = vadd.f32 %v11686_v36, %v7439_v19  ;;  %7605 = vmatmul.mubr.bf16.vlgmr.msra.gmra.mxu1 %v4383_v13 }
 0x548   :  { %v8817_v2 = vpop.eup %8816  ;;  %8842 = vtanh.f32 %v3414_v56  ;;  %v3792_v0 = vadd.f32 %v11720_v47, %v3791_v38  ;;  %v3416_v23 = vpop.f32.mrf.mxu1  ;;  %v3629_v54 = vpack.c.bf16 %v8815_v5, %v8809_v37 }
 0x549   :  { %v7475_v32 = vpop.f32.mrf.mxu0  ;;  %v8819_v35 = vpop.eup %8818  ;;  %8844 = vtanh.f32 %v3800_v34  ;;  %v3417_v57 = vadd.f32 %v11686_v36, %v3416_v23  ;;  %v3628_v27 = vpack.c.bf16 %v8817_v2, %v8811_v17 }
 0x54a   :  { %v3803_v15 = vadd.f32 %v7475_v32, %v11720_v47  ;;  %v8821_v7 = vpop.eup %8820  ;;  %8846 = vtanh.f32 %v3425_v52  ;;  %v7442_v3 = vpop.f32.mrf.mxu1 }
 0x54b   :  { %v3794_v43 = vpop.f32.mrf.mxu0  ;;  %v8823_v24 = vpop.eup %8822  ;;  %8848 = vtanh.f32 %v3417_v57  ;;  %v3438_v29 = vadd.f32 %v11686_v36, %v7442_v3  ;;  %7572 = vmatprep.mubr.bf16.mxu0 %v3628_v27  ;;  %v4385_v42 = vpack.c.bf16 %v8821_v7, %v8813_v8 }
 0x54c   :  { %v3795_v22 = vadd.f32 %v11720_v47, %v3794_v43  ;;  %v8825_v18 = vpop.eup %8824  ;;  %8850 = vtanh.f32 %v3792_v0  ;;  %v3429_v33 = vpop.f32.mrf.mxu1  ;;  %7573 = vmatmul.mubr.bf16.gmra.mxu0 %v3629_v54  ;;  %v4384_v49 = vpack.c.bf16 %v8823_v24, %v8819_v35  ;;  %v8062_v24 = vld [vmem:[%s12946_s1 + $0x148] sm:$0xff]  }
 0x54d   :  { %v7478_v10 = vpop.f32.mrf.mxu0  ;;  %v8827_v6 = vpop.eup %8826  ;;  %8852 = vtanh.f32 %v3803_v15  ;;  %v3430_v30 = vadd.f32 %v11686_v36, %v3429_v33  ;;  %7744 = vmatprep.subr.bf16.mxu0 %v8062_v24 }
 0x54e   :  { %v8829_v25 = vpop.eup %8828  ;;  %8854 = vtanh.f32 %v3795_v22  ;;  %7608 = vmatprep.mubr.bf16.mxu1 %v4384_v49  ;;  %v7443_v45 = vpop.f32.mrf.mxu1  ;;  %v3816_v53 = vadd.f32 %v7478_v10, %v11720_v47  ;;  %7745 = vmatpush3.bf16.msra.mxu0 %v8062_v24 }
 0x54f   :  { %v3807_v59 = vpop.f32.mrf.mxu0  ;;  %v8831_v21 = vpop.eup %8830  ;;  %8856 = vtanh.f32 %v3438_v29  ;;  %v3441_v60 = vadd.f32 %v11686_v36, %v7443_v45  ;;  %7609 = vmatmul.mubr.bf16.gmra.mxu1 %v4385_v42 }
 0x550   :  { %v3808_v58 = vadd.f32 %v11720_v47, %v3807_v59  ;;  %v8833_v28 = vpop.eup %8832  ;;  %8858 = vtanh.f32 %v3430_v30  ;;  %v3432_v31 = vpop.f32.mrf.mxu1  ;;  %v3631_v63 = vpack.c.bf16 %v8831_v21, %v8825_v18 }
 0x551   :  { %v7479_v62 = vpop.f32.mrf.mxu0  ;;  %v8835_v55 = vpop.eup %8834  ;;  %8860 = vtanh.f32 %v3441_v60  ;;  %v3433_v14 = vadd.f32 %v11686_v36, %v3432_v31  ;;  %v3630_v40 = vpack.c.bf16 %v8833_v28, %v8827_v6 }
 0x552   :  { %v3819_v44 = vadd.f32 %v7479_v62, %v11720_v47  ;;  %v8837_v51 = vpop.eup %8836  ;;  %8862 = vtanh.f32 %v3808_v58 }
 0x553   :  { %v3810_v11 = vpop.f32.mrf.mxu0  ;;  %v8839_v9 = vpop.eup %8838  ;;  %8864 = vtanh.f32 %v3433_v14  ;;  %7576 = vmatprep.mubr.bf16.mxu0 %v3630_v40  ;;  %v4387_v41 = vpack.c.bf16 %v8837_v51, %v8829_v25 }
 0x554   :  { %v3811_v61 = vadd.f32 %v11720_v47, %v3810_v11  ;;  %v8841_v46 = vpop.eup %8840  ;;  %8866 = vtanh.f32 %v3819_v44  ;;  %7577 = vmatmul.mubr.bf16.gmra.mxu0 %v3631_v63  ;;  %v4386_v4 = vpack.c.bf16 %v8839_v9, %v8835_v55 }
 0x555   :  { %v7482_v48 = vpop.f32.mrf.mxu0  ;;  %v8843_v36 = vpop.eup %8842 }
 0x556   :  { %8868 = vtanh.f32 %v3811_v61  ;;  %v8845_v39 = vpop.eup %8844  ;;  %7612 = vmatprep.mubr.bf16.mxu1 %v4386_v4  ;;  %v3832_v19 = vadd.f32 %v7482_v48, %v11720_v47 }
 0x557   :  { %v3823_v1 = vpop.f32.mrf.mxu0  ;;  %v8847_v16 = vpop.eup %8846  ;;  %8870 = vtanh.f32 %v3816_v53  ;;  %7613 = vmatmul.mubr.bf16.gmra.mxu1 %v4387_v41 }
 0x558   :  { %v3824_v20 = vadd.f32 %v11720_v47, %v3823_v1  ;;  %v8849_v37 = vpop.eup %8848  ;;  %v3633_v34 = vpack.c.bf16 %v8847_v16, %v8841_v46 }
 0x559   :  { %v7483_v26 = vpop.f32.mrf.mxu0  ;;  %v8851_v12 = vpop.eup %8850  ;;  %v3632_v17 = vpack.c.bf16 %v8849_v37, %v8843_v36 }
 0x55a   :  { %v3835_v50 = vadd.f32 %v7483_v26, %v11720_v47  ;;  %v8853_v13 = vpop.eup %8852  ;;  %8872 = vtanh.f32 %v3824_v20 }
 0x55b   :  { %v3826_v56 = vpop.f32.mrf.mxu0  ;;  %v8855_v8 = vpop.eup %8854  ;;  %7580 = vmatprep.mubr.bf16.mxu0 %v3632_v17  ;;  %v4389_v23 = vpack.c.bf16 %v8853_v13, %v8845_v39 }
 0x55c   :  { %v3827_v38 = vadd.f32 %v11720_v47, %v3826_v56  ;;  %v8857_v5 = vpop.eup %8856  ;;  %8874 = vtanh.f32 %v3835_v50  ;;  %7581 = vmatmul.mubr.bf16.gmra.mxu0 %v3633_v34  ;;  %v4388_v2 = vpack.c.bf16 %v8855_v8, %v8851_v12 }
 0x55d   :  { %v7486_v52 = vpop.f32.mrf.mxu0  ;;  %v8859_v0 = vpop.eup %8858 }
 0x55e   :  { %8876 = vtanh.f32 %v3827_v38  ;;  %v8861_v32 = vpop.eup %8860  ;;  %7616 = vmatprep.mubr.bf16.mxu1 %v4388_v2  ;;  %v3848_v33 = vadd.f32 %v7486_v52, %v11720_v47 }
 0x55f   :  { %v3839_v35 = vpop.f32.mrf.mxu0  ;;  %v8863_v57 = vpop.eup %8862  ;;  %8878 = vtanh.f32 %v3832_v19  ;;  %7617 = vmatmul.mubr.bf16.gmra.mxu1 %v4389_v23  ;;  %v3635_v18 = vpack.c.bf16 %v8861_v32, %v8857_v5 }
 0x560   :  { %v3840_v15 = vadd.f32 %v11720_v47, %v3839_v35  ;;  %v8865_v27 = vpop.eup %8864 }
 0x561   :  { %v7487_v7 = vpop.f32.mrf.mxu0  ;;  %v8867_v3 = vpop.eup %8866  ;;  %v3634_v54 = vpack.c.bf16 %v8865_v27, %v8859_v0  ;;  %v8063_v27 = vld [vmem:[%s12946_s1 + $0x140] sm:$0xff]  }
 0x562   :  { %v3851_v43 = vadd.f32 %v7487_v7, %v11720_v47  ;;  %8880 = vtanh.f32 %v3840_v15  ;;  %7746 = vmatprep.subr.bf16.mxu0 %v8063_v27 }
 0x563   :  { %v8869_v29 = vpop.eup %8868  ;;  %v3842_v22 = vpop.f32.mrf.mxu0  ;;  %7584 = vmatprep.mubr.bf16.mxu0 %v3634_v54  ;;  %7747 = vmatpush3.bf16.msra.mxu0 %v8063_v27 }
 0x564   :  { %v3843_v10 = vadd.f32 %v11720_v47, %v3842_v22  ;;  %v4390_v49 = vpack.c.bf16 %v8869_v29, %v8863_v57  ;;  %v8871_v6 = vpop.eup %8870  ;;  %8882 = vtanh.f32 %v3851_v43  ;;  %7585 = vmatmul.mubr.bf16.gmra.mxu0 %v3635_v18 }
 0x565   :  { %v7490_v30 = vpop.f32.mrf.mxu0  ;;  %v4391_v42 = vpack.c.bf16 %v8867_v3, %v8871_v6 }
 0x566   :  { %8884 = vtanh.f32 %v3843_v10  ;;  %7620 = vmatprep.mubr.bf16.mxu1 %v4390_v49  ;;  %v3864_v62 = vadd.f32 %v7490_v30, %v11720_v47 }
 0x567   :  { %v3855_v25 = vpop.f32.mrf.mxu0  ;;  %8886 = vtanh.f32 %v3848_v33  ;;  %7621 = vmatmul.mubr.bf16.gmra.mxu1 %v4391_v42  ;;  %v8873_v59 = vpop.eup %8872 }
 0x568   :  { %v3856_v45 = vadd.f32 %v11720_v47, %v3855_v25 }
 0x569   :  { %v7491_v21 = vpop.f32.mrf.mxu0  ;;  %v8875_v60 = vpop.eup %8874 }
 0x56a   :  { %v3867_v58 = vadd.f32 %v7491_v21, %v11720_v47  ;;  %8888 = vtanh.f32 %v3856_v45 }
 0x56b   :  { %v8877_v28 = vpop.eup %8876  ;;  %v3858_v31 = vpop.f32.mrf.mxu0 }
 0x56c   :  { %v3859_v55 = vadd.f32 %v11720_v47, %v3858_v31  ;;  %v4392_v14 = vpack.c.bf16 %v8877_v28, %v8873_v59  ;;  %v8879_v44 = vpop.eup %8878  ;;  %8890 = vtanh.f32 %v3867_v58 }
 0x56d   :  { %v7494_v40 = vpop.f32.mrf.mxu0  ;;  %v4393_v51 = vpack.c.bf16 %v8875_v60, %v8879_v44 }
 0x56e   :  { %8892 = vtanh.f32 %v3859_v55  ;;  %7624 = vmatprep.mubr.bf16.mxu1 %v4392_v14  ;;  %v3880_v36 = vadd.f32 %v7494_v40, %v11720_v47 }
 0x56f   :  { %v3871_v11 = vpop.f32.mrf.mxu0  ;;  %8894 = vtanh.f32 %v3864_v62  ;;  %7625 = vmatmul.mubr.bf16.gmra.mxu1 %v4393_v51  ;;  %v8881_v9 = vpop.eup %8880 }
 0x570   :  { %v3872_v63 = vadd.f32 %v11720_v47, %v3871_v11 }
 0x571   :  { %v7495_v53 = vpop.f32.mrf.mxu0  ;;  %v8883_v61 = vpop.eup %8882 }
 0x572   :  { %v3883_v46 = vadd.f32 %v7495_v53, %v11720_v47  ;;  %8896 = vtanh.f32 %v3872_v63 }
 0x573   :  { %v8885_v48 = vpop.eup %8884  ;;  %v3874_v4 = vpop.f32.mrf.mxu0 }
 0x574   :  { %v3875_v41 = vadd.f32 %v11720_v47, %v3874_v4  ;;  %v4394_v39 = vpack.c.bf16 %v8885_v48, %v8881_v9  ;;  %v8887_v1 = vpop.eup %8886  ;;  %8898 = vtanh.f32 %v3883_v46 }
 0x575   :  { %v7498_v16 = vpop.f32.mrf.mxu0  ;;  %v4395_v20 = vpack.c.bf16 %v8883_v61, %v8887_v1 }
 0x576   :  { %8900 = vtanh.f32 %v3875_v41  ;;  %7628 = vmatprep.mubr.bf16.mxu1 %v4394_v39  ;;  %v3896_v8 = vadd.f32 %v7498_v16, %v11720_v47 }
 0x577   :  { %v3887_v37 = vpop.f32.mrf.mxu0  ;;  %8902 = vtanh.f32 %v3880_v36  ;;  %7629 = vmatmul.mubr.bf16.gmra.mxu1 %v4395_v20  ;;  %v8889_v12 = vpop.eup %8888 }
 0x578   :  { %v3888_v26 = vadd.f32 %v11720_v47, %v3887_v37 }
 0x579   :  { %v7499_v50 = vpop.f32.mrf.mxu0  ;;  %v8891_v17 = vpop.eup %8890 }
 0x57a   :  { %v3899_v13 = vadd.f32 %v7499_v50, %v11720_v47  ;;  %8904 = vtanh.f32 %v3888_v26 }
 0x57b   :  { %v8893_v56 = vpop.eup %8892  ;;  %v3890_v34 = vpop.f32.mrf.mxu0 }
 0x57c   :  { %v3891_v19 = vadd.f32 %v11720_v47, %v3890_v34  ;;  %v4396_v38 = vpack.c.bf16 %v8893_v56, %v8889_v12  ;;  %v8895_v5 = vpop.eup %8894  ;;  %8906 = vtanh.f32 %v3899_v13 }
 0x57d   :  { %v7502_v52 = vpop.f32.mrf.mxu0  ;;  %v4397_v2 = vpack.c.bf16 %v8891_v17, %v8895_v5 }
 0x57e   :  { %8908 = vtanh.f32 %v3891_v19  ;;  %7632 = vmatprep.mubr.bf16.mxu1 %v4396_v38  ;;  %v3912_v43 = vadd.f32 %v7502_v52, %v11720_v47 }
 0x57f   :  { %v3903_v0 = vpop.f32.mrf.mxu0  ;;  %8910 = vtanh.f32 %v3896_v8  ;;  %7633 = vmatmul.mubr.bf16.gmra.mxu1 %v4397_v2  ;;  %v8897_v32 = vpop.eup %8896 }
 0x580   :  { %v3904_v23 = vadd.f32 %v11720_v47, %v3903_v0 }
 0x581   :  { %v7503_v35 = vpop.f32.mrf.mxu0  ;;  %v8899_v57 = vpop.eup %8898 }
 0x582   :  { %v3915_v15 = vadd.f32 %v7503_v35, %v11720_v47  ;;  %8912 = vtanh.f32 %v3904_v23 }
 0x583   :  { %v8901_v7 = vpop.eup %8900  ;;  %v3906_v3 = vpop.f32.mrf.mxu0 }
 0x584   :  { %v3907_v54 = vadd.f32 %v11720_v47, %v3906_v3  ;;  %v4398_v24 = vpack.c.bf16 %v8901_v7, %v8897_v32  ;;  %v8903_v29 = vpop.eup %8902  ;;  %8914 = vtanh.f32 %v3915_v15 }
 0x585   :  { %v7506_v22 = vpop.f32.mrf.mxu0  ;;  %v4399_v18 = vpack.c.bf16 %v8899_v57, %v8903_v29 }
 0x586   :  { %8916 = vtanh.f32 %v3907_v54  ;;  %7636 = vmatprep.mubr.bf16.mxu1 %v4398_v24  ;;  %v3928_v59 = vadd.f32 %v7506_v22, %v11720_v47 }
 0x587   :  { %v3919_v33 = vpop.f32.mrf.mxu0  ;;  %8918 = vtanh.f32 %v3912_v43  ;;  %7637 = vmatmul.mubr.bf16.gmra.mxu1 %v4399_v18  ;;  %v8905_v49 = vpop.eup %8904 }
 0x588   :  { %v3920_v10 = vadd.f32 %v11720_v47, %v3919_v33 }
 0x589   :  { %v7507_v6 = vpop.f32.mrf.mxu0  ;;  %v8907_v30 = vpop.eup %8906 }
 0x58a   :  { %v3931_v42 = vadd.f32 %v7507_v6, %v11720_v47  ;;  %8920 = vtanh.f32 %v3920_v10 }
 0x58b   :  { %v8909_v25 = vpop.eup %8908  ;;  %v3922_v45 = vpop.f32.mrf.mxu0 }
 0x58c   :  { %v3923_v21 = vadd.f32 %v11720_v47, %v3922_v45  ;;  %v4400_v60 = vpack.c.bf16 %v8909_v25, %v8905_v49  ;;  %v8911_v58 = vpop.eup %8910  ;;  %8922 = vtanh.f32 %v3931_v42 }
 0x58d   :  { %v7510_v28 = vpop.f32.mrf.mxu0  ;;  %v4401_v31 = vpack.c.bf16 %v8907_v30, %v8911_v58 }
 0x58e   :  { %8924 = vtanh.f32 %v3923_v21  ;;  %7640 = vmatprep.mubr.bf16.mxu1 %v4400_v60  ;;  %v3944_v9 = vadd.f32 %v7510_v28, %v11720_v47 }
 0x58f   :  { %v3935_v62 = vpop.f32.mrf.mxu0  ;;  %8926 = vtanh.f32 %v3928_v59  ;;  %7641 = vmatmul.mubr.bf16.gmra.mxu1 %v4401_v31  ;;  %v8913_v14 = vpop.eup %8912 }
 0x590   :  { %v3936_v55 = vadd.f32 %v11720_v47, %v3935_v62 }
 0x591   :  { %v7511_v44 = vpop.f32.mrf.mxu0  ;;  %v8915_v40 = vpop.eup %8914 }
 0x592   :  { %v3947_v51 = vadd.f32 %v7511_v44, %v11720_v47  ;;  %8928 = vtanh.f32 %v3936_v55 }
 0x593   :  { %v8917_v11 = vpop.eup %8916  ;;  %v3938_v63 = vpop.f32.mrf.mxu0 }
 0x594   :  { %v3939_v53 = vadd.f32 %v11720_v47, %v3938_v63  ;;  %v4402_v61 = vpack.c.bf16 %v8917_v11, %v8913_v14  ;;  %v8919_v46 = vpop.eup %8918  ;;  %8930 = vtanh.f32 %v3947_v51 }
 0x595   :  { %v7514_v48 = vpop.f32.mrf.mxu0  ;;  %v4403_v4 = vpack.c.bf16 %v8915_v40, %v8919_v46 }
 0x596   :  { %8932 = vtanh.f32 %v3939_v53  ;;  %7644 = vmatprep.mubr.bf16.mxu1 %v4402_v61  ;;  %v3960_v12 = vadd.f32 %v7514_v48, %v11720_v47 }
 0x597   :  { %v3951_v36 = vpop.f32.mrf.mxu0  ;;  %8934 = vtanh.f32 %v3944_v9  ;;  %7645 = vmatmul.mubr.bf16.gmra.mxu1 %v4403_v4  ;;  %v8921_v39 = vpop.eup %8920 }
 0x598   :  { %v3952_v41 = vadd.f32 %v11720_v47, %v3951_v36 }
 0x599   :  { %v7515_v1 = vpop.f32.mrf.mxu0  ;;  %v8923_v16 = vpop.eup %8922 }
 0x59a   :  { %v3963_v20 = vadd.f32 %v7515_v1, %v11720_v47  ;;  %8936 = vtanh.f32 %v3952_v41 }
 0x59b   :  { %v8925_v37 = vpop.eup %8924  ;;  %v3954_v26 = vpop.f32.mrf.mxu0 }
 0x59c   :  { %v3955_v50 = vadd.f32 %v11720_v47, %v3954_v26  ;;  %v4404_v17 = vpack.c.bf16 %v8925_v37, %v8921_v39  ;;  %v8927_v13 = vpop.eup %8926  ;;  %8938 = vtanh.f32 %v3963_v20 }
 0x59d   :  { %v7518_v56 = vpop.f32.mrf.mxu0  ;;  %v4405_v34 = vpack.c.bf16 %v8923_v16, %v8927_v13 }
 0x59e   :  { %8940 = vtanh.f32 %v3955_v50  ;;  %7648 = vmatprep.mubr.bf16.mxu1 %v4404_v17  ;;  %v3976_v32 = vadd.f32 %v7518_v56, %v11720_v47 }
 0x59f   :  { %v3967_v8 = vpop.f32.mrf.mxu0  ;;  %8942 = vtanh.f32 %v3960_v12  ;;  %7649 = vmatmul.mubr.bf16.gmra.mxu1 %v4405_v34  ;;  %v8929_v38 = vpop.eup %8928 }
 0x5a0   :  { %v3968_v19 = vadd.f32 %v11720_v47, %v3967_v8 }
 0x5a1   :  { %v7519_v5 = vpop.f32.mrf.mxu0  ;;  %v8931_v52 = vpop.eup %8930 }
 0x5a2   :  { %v3979_v2 = vadd.f32 %v7519_v5, %v11720_v47  ;;  %8944 = vtanh.f32 %v3968_v19 }
 0x5a3   :  { %v8933_v0 = vpop.eup %8932  ;;  %v3970_v23 = vpop.f32.mrf.mxu0 }
 0x5a4   :  { %v3971_v35 = vadd.f32 %v11720_v47, %v3970_v23  ;;  %v4406_v57 = vpack.c.bf16 %v8933_v0, %v8929_v38  ;;  %v8935_v15 = vpop.eup %8934  ;;  %8946 = vtanh.f32 %v3979_v2 }
 0x5a5   :  { %v7522_v27 = vpop.f32.mrf.mxu0  ;;  %v4407_v7 = vpack.c.bf16 %v8931_v52, %v8935_v15 }
 0x5a6   :  { %8948 = vtanh.f32 %v3971_v35  ;;  %7652 = vmatprep.mubr.bf16.mxu1 %v4406_v57  ;;  %v3992_v10 = vadd.f32 %v7522_v27, %v11720_v47 }
 0x5a7   :  { %v3983_v3 = vpop.f32.mrf.mxu0  ;;  %8950 = vtanh.f32 %v3976_v32  ;;  %7653 = vmatmul.mubr.bf16.gmra.mxu1 %v4407_v7  ;;  %v8937_v54 = vpop.eup %8936 }
 0x5a8   :  { %v3984_v43 = vadd.f32 %v11720_v47, %v3983_v3 }
 0x5a9   :  { %v7523_v24 = vpop.f32.mrf.mxu0  ;;  %v8939_v29 = vpop.eup %8938 }
 0x5aa   :  { %v3995_v22 = vadd.f32 %v7523_v24, %v11720_v47  ;;  %8952 = vtanh.f32 %v3984_v43 }
 0x5ab   :  { %v8941_v18 = vpop.eup %8940  ;;  %v3986_v33 = vpop.f32.mrf.mxu0 }
 0x5ac   :  { %v3987_v49 = vadd.f32 %v11720_v47, %v3986_v33  ;;  %v4408_v6 = vpack.c.bf16 %v8941_v18, %v8937_v54  ;;  %v8943_v30 = vpop.eup %8942  ;;  %8954 = vtanh.f32 %v3995_v22 }
 0x5ad   :  { %v7526_v42 = vpop.f32.mrf.mxu0  ;;  %v4409_v25 = vpack.c.bf16 %v8939_v29, %v8943_v30 }
 0x5ae   :  { %8956 = vtanh.f32 %v3987_v49  ;;  %7656 = vmatprep.mubr.bf16.mxu1 %v4408_v6  ;;  %v4008_v55 = vadd.f32 %v7526_v42, %v11720_v47 }
 0x5af   :  { %v3999_v45 = vpop.f32.mrf.mxu0  ;;  %8958 = vtanh.f32 %v3992_v10  ;;  %7657 = vmatmul.mubr.bf16.gmra.mxu1 %v4409_v25  ;;  %v8945_v21 = vpop.eup %8944  ;;  %v11834_v10 = vld [vmem:[%s12947_s2 + $0x3] ss:$0 sm:$0xff] }
 0x5b0   :  { %v4000_v59 = vadd.f32 %v11720_v47, %v3999_v45 }
 0x5b1   :  { %v7527_v60 = vpop.f32.mrf.mxu0  ;;  %v8947_v58 = vpop.eup %8946 }
 0x5b2   :  { %v4011_v28 = vadd.f32 %v7527_v60, %v11720_v47  ;;  %8960 = vtanh.f32 %v4000_v59 }
 0x5b3   :  { %v8949_v31 = vpop.eup %8948  ;;  %v4002_v62 = vpop.f32.mrf.mxu0 }
 0x5b4   :  { %v4003_v14 = vadd.f32 %v11720_v47, %v4002_v62  ;;  %v4410_v44 = vpack.c.bf16 %v8949_v31, %v8945_v21  ;;  %v8951_v40 = vpop.eup %8950  ;;  %8962 = vtanh.f32 %v4011_v28 }
 0x5b5   :  { %v7530_v51 = vpop.f32.mrf.mxu0  ;;  %v4411_v11 = vpack.c.bf16 %v8947_v58, %v8951_v40 }
 0x5b6   :  { %8964 = vtanh.f32 %v4003_v14  ;;  %7660 = vmatprep.mubr.bf16.mxu1 %v4410_v44  ;;  %v4024_v41 = vadd.f32 %v7530_v51, %v11720_v47 }
 0x5b7   :  { %v4015_v63 = vpop.f32.mrf.mxu0  ;;  %8966 = vtanh.f32 %v4008_v55  ;;  %7661 = vmatmul.mubr.bf16.gmra.mxu1 %v4411_v11  ;;  %v8953_v53 = vpop.eup %8952 }
 0x5b8   :  { %v4016_v9 = vadd.f32 %v11720_v47, %v4015_v63 }
 0x5b9   :  { %v7531_v61 = vpop.f32.mrf.mxu0  ;;  %v8955_v46 = vpop.eup %8954 }
 0x5ba   :  { %v4027_v48 = vadd.f32 %v7531_v61, %v11720_v47  ;;  %8968 = vtanh.f32 %v4016_v9 }
 0x5bb   :  { %v8957_v4 = vpop.eup %8956  ;;  %v4018_v36 = vpop.f32.mrf.mxu0 }
 0x5bc   :  { %v4019_v39 = vadd.f32 %v11720_v47, %v4018_v36  ;;  %v4412_v1 = vpack.c.bf16 %v8957_v4, %v8953_v53  ;;  %v8959_v16 = vpop.eup %8958  ;;  %8970 = vtanh.f32 %v4027_v48 }
 0x5bd   :  { %v7534_v20 = vpop.f32.mrf.mxu0  ;;  %v4413_v37 = vpack.c.bf16 %v8955_v46, %v8959_v16 }
 0x5be   :  { %8972 = vtanh.f32 %v4019_v39  ;;  %7664 = vmatprep.mubr.bf16.mxu1 %v4412_v1  ;;  %v4040_v19 = vadd.f32 %v7534_v20, %v11720_v47 }
 0x5bf   :  { %v4031_v26 = vpop.f32.mrf.mxu0  ;;  %8974 = vtanh.f32 %v4024_v41  ;;  %7665 = vmatmul.mubr.bf16.gmra.mxu1 %v4413_v37  ;;  %v8961_v50 = vpop.eup %8960 }
 0x5c0   :  { %v4032_v12 = vadd.f32 %v11720_v47, %v4031_v26 }
 0x5c1   :  { %v7535_v17 = vpop.f32.mrf.mxu0  ;;  %v8963_v13 = vpop.eup %8962 }
 0x5c2   :  { %v4043_v56 = vadd.f32 %v7535_v17, %v11720_v47  ;;  %8976 = vtanh.f32 %v4032_v12 }
 0x5c3   :  { %v8965_v34 = vpop.eup %8964  ;;  %v4034_v8 = vpop.f32.mrf.mxu0 }
 0x5c4   :  { %v4035_v38 = vadd.f32 %v11720_v47, %v4034_v8  ;;  %v4414_v5 = vpack.c.bf16 %v8965_v34, %v8961_v50  ;;  %v8967_v52 = vpop.eup %8966  ;;  %8978 = vtanh.f32 %v4043_v56 }
 0x5c5   :  { %v7538_v2 = vpop.f32.mrf.mxu0  ;;  %v4415_v0 = vpack.c.bf16 %v8963_v13, %v8967_v52 }
 0x5c6   :  { %8980 = vtanh.f32 %v4035_v38  ;;  %7668 = vmatprep.mubr.bf16.mxu1 %v4414_v5  ;;  %v4056_v43 = vadd.f32 %v7538_v2, %v11720_v47 }
 0x5c7   :  { %v4047_v23 = vpop.f32.mrf.mxu0  ;;  %8982 = vtanh.f32 %v4040_v19  ;;  %7669 = vmatmul.mubr.bf16.gmra.mxu1 %v4415_v0  ;;  %v8969_v35 = vpop.eup %8968 }
 0x5c8   :  { %v4048_v32 = vadd.f32 %v11720_v47, %v4047_v23 }
 0x5c9   :  { %v7539_v57 = vpop.f32.mrf.mxu0  ;;  %v8971_v15 = vpop.eup %8970 }
 0x5ca   :  { %v4059_v27 = vadd.f32 %v7539_v57, %v11720_v47  ;;  %8984 = vtanh.f32 %v4048_v32 }
 0x5cb   :  { %v8973_v7 = vpop.eup %8972  ;;  %v4050_v3 = vpop.f32.mrf.mxu0 }
 0x5cc   :  { %v4051_v54 = vadd.f32 %v11720_v47, %v4050_v3  ;;  %v4416_v24 = vpack.c.bf16 %v8973_v7, %v8969_v35  ;;  %v8975_v29 = vpop.eup %8974  ;;  %8986 = vtanh.f32 %v4059_v27 }
 0x5cd   :  { %v7542_v22 = vpop.f32.mrf.mxu0  ;;  %v4417_v18 = vpack.c.bf16 %v8971_v15, %v8975_v29 }
 0x5ce   :  { %8988 = vtanh.f32 %v4051_v54  ;;  %7672 = vmatprep.mubr.bf16.mxu1 %v4416_v24  ;;  %v4072_v59 = vadd.f32 %v11834_v10, %v7542_v22 }
 0x5cf   :  { %v4063_v33 = vpop.f32.mrf.mxu0  ;;  %8990 = vtanh.f32 %v4056_v43  ;;  %7673 = vmatmul.mubr.bf16.gmra.mxu1 %v4417_v18  ;;  %v8977_v6 = vpop.eup %8976 }
 0x5d0   :  { %v4064_v49 = vadd.f32 %v11834_v10, %v4063_v33 }
 0x5d1   :  { %v7543_v30 = vpop.f32.mrf.mxu0  ;;  %v8979_v47 = vpop.eup %8978 }
 0x5d2   :  { %v4075_v42 = vadd.f32 %v11834_v10, %v7543_v30  ;;  %8992 = vtanh.f32 %v4064_v49 }
 0x5d3   :  { %v8981_v25 = vpop.eup %8980  ;;  %v4066_v45 = vpop.f32.mrf.mxu0 }
 0x5d4   :  { %v4067_v21 = vadd.f32 %v11834_v10, %v4066_v45  ;;  %v4418_v60 = vpack.c.bf16 %v8981_v25, %v8977_v6  ;;  %v8983_v58 = vpop.eup %8982  ;;  %8994 = vtanh.f32 %v4075_v42 }
 0x5d5   :  { %v7546_v28 = vpop.f32.mrf.mxu0  ;;  %v4419_v31 = vpack.c.bf16 %v8979_v47, %v8983_v58 }
 0x5d6   :  { %8996 = vtanh.f32 %v4067_v21  ;;  %7676 = vmatprep.mubr.bf16.mxu1 %v4418_v60  ;;  %v4088_v9 = vadd.f32 %v11834_v10, %v7546_v28 }
 0x5d7   :  { %v4079_v62 = vpop.f32.mrf.mxu0  ;;  %8998 = vtanh.f32 %v4072_v59  ;;  %7677 = vmatmul.mubr.bf16.gmra.mxu1 %v4419_v31  ;;  %v8985_v14 = vpop.eup %8984 }
 0x5d8   :  { %v4080_v55 = vadd.f32 %v11834_v10, %v4079_v62 }
 0x5d9   :  { %v7547_v44 = vpop.f32.mrf.mxu0  ;;  %v8987_v40 = vpop.eup %8986 }
 0x5da   :  { %v4091_v51 = vadd.f32 %v11834_v10, %v7547_v44  ;;  %9000 = vtanh.f32 %v4080_v55 }
 0x5db   :  { %v8989_v11 = vpop.eup %8988  ;;  %v4082_v63 = vpop.f32.mrf.mxu0 }
 0x5dc   :  { %v4083_v53 = vadd.f32 %v11834_v10, %v4082_v63  ;;  %v4420_v61 = vpack.c.bf16 %v8989_v11, %v8985_v14  ;;  %v8991_v46 = vpop.eup %8990  ;;  %9002 = vtanh.f32 %v4091_v51 }
 0x5dd   :  { %v7550_v48 = vpop.f32.mrf.mxu0  ;;  %v4421_v4 = vpack.c.bf16 %v8987_v40, %v8991_v46 }
 0x5de   :  { %9004 = vtanh.f32 %v4083_v53  ;;  %7680 = vmatprep.mubr.bf16.mxu1 %v4420_v61  ;;  %v4104_v12 = vadd.f32 %v11834_v10, %v7550_v48 }
 0x5df   :  { %v4095_v36 = vpop.f32.mrf.mxu0  ;;  %9006 = vtanh.f32 %v4088_v9  ;;  %7681 = vmatmul.mubr.bf16.gmra.mxu1 %v4421_v4  ;;  %v8993_v39 = vpop.eup %8992 }
 0x5e0   :  { %v4096_v41 = vadd.f32 %v11834_v10, %v4095_v36 }
 0x5e1   :  { %v7551_v1 = vpop.f32.mrf.mxu0  ;;  %v8995_v16 = vpop.eup %8994 }
 0x5e2   :  { %v4107_v20 = vadd.f32 %v11834_v10, %v7551_v1  ;;  %9008 = vtanh.f32 %v4096_v41 }
 0x5e3   :  { %v8997_v37 = vpop.eup %8996  ;;  %v4098_v26 = vpop.f32.mrf.mxu0 }
 0x5e4   :  { %v4099_v50 = vadd.f32 %v11834_v10, %v4098_v26  ;;  %v4422_v17 = vpack.c.bf16 %v8997_v37, %v8993_v39  ;;  %v8999_v13 = vpop.eup %8998  ;;  %9010 = vtanh.f32 %v4107_v20 }
 0x5e5   :  { %v7554_v56 = vpop.f32.mrf.mxu0  ;;  %v4423_v34 = vpack.c.bf16 %v8995_v16, %v8999_v13 }
 0x5e6   :  { %9012 = vtanh.f32 %v4099_v50  ;;  %7684 = vmatprep.mubr.bf16.mxu1 %v4422_v17  ;;  %v4120_v32 = vadd.f32 %v11834_v10, %v7554_v56 }
 0x5e7   :  { %v4111_v8 = vpop.f32.mrf.mxu0  ;;  %9014 = vtanh.f32 %v4104_v12  ;;  %7685 = vmatmul.mubr.bf16.gmra.mxu1 %v4423_v34  ;;  %v9001_v38 = vpop.eup %9000 }
 0x5e8   :  { %v4112_v19 = vadd.f32 %v11834_v10, %v4111_v8  ;;  %v11869_v8 = vld [vmem:[%s12947_s2 + $0x4] ss:$0 sm:$0xff] }
 0x5e9   :  { %v7555_v5 = vpop.f32.mrf.mxu0  ;;  %v9003_v52 = vpop.eup %9002 }
 0x5ea   :  { %v4123_v2 = vadd.f32 %v11834_v10, %v7555_v5  ;;  %9016 = vtanh.f32 %v4112_v19 }
 0x5eb   :  { %v9005_v0 = vpop.eup %9004  ;;  %v4114_v23 = vpop.f32.mrf.mxu0 }
 0x5ec   :  { %v4115_v35 = vadd.f32 %v11834_v10, %v4114_v23  ;;  %v4424_v57 = vpack.c.bf16 %v9005_v0, %v9001_v38  ;;  %v9007_v15 = vpop.eup %9006  ;;  %9018 = vtanh.f32 %v4123_v2 }
 0x5ed   :  { %v7558_v27 = vpop.f32.mrf.mxu0  ;;  %v4425_v7 = vpack.c.bf16 %v9003_v52, %v9007_v15 }
 0x5ee   :  { %9020 = vtanh.f32 %v4115_v35  ;;  %7688 = vmatprep.mubr.bf16.mxu1 %v4424_v57  ;;  %v4136_v49 = vadd.f32 %v11834_v10, %v7558_v27 }
 0x5ef   :  { %v4127_v3 = vpop.f32.mrf.mxu0  ;;  %9022 = vtanh.f32 %v4120_v32  ;;  %7689 = vmatmul.mubr.bf16.gmra.mxu1 %v4425_v7  ;;  %v9009_v54 = vpop.eup %9008 }
 0x5f0   :  { %v4128_v43 = vadd.f32 %v11834_v10, %v4127_v3 }
 0x5f1   :  { %v7559_v24 = vpop.f32.mrf.mxu0  ;;  %v9011_v29 = vpop.eup %9010 }
 0x5f2   :  { %v4139_v22 = vadd.f32 %v11834_v10, %v7559_v24  ;;  %9024 = vtanh.f32 %v4128_v43 }
 0x5f3   :  { %v9013_v18 = vpop.eup %9012  ;;  %v4130_v33 = vpop.f32.mrf.mxu0 }
 0x5f4   :  { %v4131_v6 = vadd.f32 %v11834_v10, %v4130_v33  ;;  %v4426_v30 = vpack.c.bf16 %v9013_v18, %v9009_v54  ;;  %v9015_v47 = vpop.eup %9014  ;;  %9026 = vtanh.f32 %v4139_v22 }
 0x5f5   :  { %v7562_v42 = vpop.f32.mrf.mxu0  ;;  %v4427_v25 = vpack.c.bf16 %v9011_v29, %v9015_v47 }
 0x5f6   :  { %9028 = vtanh.f32 %v4131_v6  ;;  %7692 = vmatprep.mubr.bf16.mxu1 %v4426_v30  ;;  %v4152_v55 = vadd.f32 %v11834_v10, %v7562_v42 }
 0x5f7   :  { %v4143_v45 = vpop.f32.mrf.mxu0  ;;  %9030 = vtanh.f32 %v4136_v49  ;;  %7693 = vmatmul.mubr.bf16.gmra.mxu1 %v4427_v25  ;;  %v9017_v21 = vpop.eup %9016 }
 0x5f8   :  { %v4144_v59 = vadd.f32 %v11834_v10, %v4143_v45 }
 0x5f9   :  { %v7563_v60 = vpop.f32.mrf.mxu0  ;;  %v9019_v58 = vpop.eup %9018 }
 0x5fa   :  { %v4155_v28 = vadd.f32 %v11834_v10, %v7563_v60  ;;  %9032 = vtanh.f32 %v4144_v59 }
 0x5fb   :  { %v9021_v31 = vpop.eup %9020  ;;  %v4146_v62 = vpop.f32.mrf.mxu0 }
 0x5fc   :  { %v4147_v14 = vadd.f32 %v11834_v10, %v4146_v62  ;;  %v4428_v44 = vpack.c.bf16 %v9021_v31, %v9017_v21  ;;  %v9023_v40 = vpop.eup %9022  ;;  %9034 = vtanh.f32 %v4155_v28 }
 0x5fd   :  { %v7566_v51 = vpop.f32.mrf.mxu0  ;;  %v4429_v11 = vpack.c.bf16 %v9019_v58, %v9023_v40 }
 0x5fe   :  { %9036 = vtanh.f32 %v4147_v14  ;;  %7696 = vmatprep.mubr.bf16.mxu1 %v4428_v44  ;;  %v4168_v41 = vadd.f32 %v11834_v10, %v7566_v51 }
 0x5ff   :  { %v4159_v63 = vpop.f32.mrf.mxu0  ;;  %9038 = vtanh.f32 %v4152_v55  ;;  %7697 = vmatmul.mubr.bf16.gmra.mxu1 %v4429_v11  ;;  %v9025_v53 = vpop.eup %9024 }
 0x600   :  { %v4160_v9 = vadd.f32 %v11834_v10, %v4159_v63 }
 0x601   :  { %v7567_v61 = vpop.f32.mrf.mxu0  ;;  %v9027_v46 = vpop.eup %9026 }
 0x602   :  { %v4171_v48 = vadd.f32 %v11834_v10, %v7567_v61  ;;  %9040 = vtanh.f32 %v4160_v9 }
 0x603   :  { %v9029_v4 = vpop.eup %9028  ;;  %v4162_v36 = vpop.f32.mrf.mxu0 }
 0x604   :  { %v4163_v39 = vadd.f32 %v11834_v10, %v4162_v36  ;;  %v4430_v1 = vpack.c.bf16 %v9029_v4, %v9025_v53  ;;  %v9031_v16 = vpop.eup %9030  ;;  %9042 = vtanh.f32 %v4171_v48 }
 0x605   :  { %v7570_v20 = vpop.f32.mrf.mxu0  ;;  %v4431_v37 = vpack.c.bf16 %v9027_v46, %v9031_v16 }
 0x606   :  { %9044 = vtanh.f32 %v4163_v39  ;;  %7700 = vmatprep.mubr.bf16.mxu1 %v4430_v1  ;;  %v4184_v26 = vadd.f32 %v11834_v10, %v7570_v20 }
 0x607   :  { %v4175_v12 = vpop.f32.mrf.mxu0  ;;  %9046 = vtanh.f32 %v4168_v41  ;;  %v7606_v17 = vpop.f32.mrf.mxu1  ;;  %7701 = vmatmul.mubr.bf16.gmra.mxu1 %v4431_v37 }
 0x608   :  { %v4176_v50 = vadd.f32 %v11834_v10, %v4175_v12  ;;  %v9033_v13 = vpop.eup %9032  ;;  %9048 = vtanh.f32 %v4184_v26  ;;  %v4562_v27 = vadd.f32 %v7606_v17, %v11869_v8 }
 0x609   :  { %v7571_v56 = vpop.f32.mrf.mxu0  ;;  %v9035_v34 = vpop.eup %9034 }
 0x60a   :  { %v4187_v19 = vadd.f32 %v11834_v10, %v7571_v56  ;;  %v4553_v38 = vpop.f32.mrf.mxu1  ;;  %9050 = vtanh.f32 %v4176_v50 }
 0x60b   :  { %v9037_v5 = vpop.eup %9036  ;;  %v4554_v52 = vadd.f32 %v11869_v8, %v4553_v38  ;;  %v4178_v2 = vpop.f32.mrf.mxu0 }
 0x60c   :  { %v4179_v0 = vadd.f32 %v11834_v10, %v4178_v2  ;;  %v7607_v23 = vpop.f32.mrf.mxu1  ;;  %v4432_v32 = vpack.c.bf16 %v9037_v5, %v9033_v13  ;;  %v9039_v35 = vpop.eup %9038  ;;  %9052 = vtanh.f32 %v4187_v19 }
 0x60d   :  { %v4565_v57 = vadd.f32 %v7607_v23, %v11869_v8  ;;  %v7574_v15 = vpop.f32.mrf.mxu0  ;;  %v4433_v3 = vpack.c.bf16 %v9035_v34, %v9039_v35 }
 0x60e   :  { %9054 = vtanh.f32 %v4179_v0  ;;  %v4556_v7 = vpop.f32.mrf.mxu1  ;;  %7704 = vmatprep.mubr.bf16.mxu1 %v4432_v32  ;;  %v4200_v43 = vadd.f32 %v11834_v10, %v7574_v15 }
 0x60f   :  { %9056 = vtanh.f32 %v4554_v52  ;;  %v4557_v54 = vadd.f32 %v11869_v8, %v4556_v7  ;;  %v4191_v24 = vpop.f32.mrf.mxu0  ;;  %7705 = vmatmul.mubr.bf16.gmra.mxu1 %v4433_v3  ;;  %v9041_v18 = vpop.eup %9040 }
 0x610   :  { %9058 = vtanh.f32 %v4565_v57  ;;  %v4192_v29 = vadd.f32 %v11834_v10, %v4191_v24  ;;  %v7610_v22 = vpop.f32.mrf.mxu1 }
 0x611   :  { %9060 = vtanh.f32 %v4557_v54  ;;  %v7575_v33 = vpop.f32.mrf.mxu0  ;;  %v9043_v49 = vpop.eup %9042  ;;  %v4578_v31 = vadd.f32 %v7610_v22, %v11869_v8 }
 0x612   :  { %9062 = vtanh.f32 %v4562_v27  ;;  %v4203_v6 = vadd.f32 %v11834_v10, %v7575_v33  ;;  %v4569_v30 = vpop.f32.mrf.mxu1 }
 0x613   :  { %v9045_v47 = vpop.eup %9044  ;;  %9064 = vtanh.f32 %v4200_v43  ;;  %v4570_v42 = vadd.f32 %v11869_v8, %v4569_v30  ;;  %v4194_v25 = vpop.f32.mrf.mxu0 }
 0x614   :  { %9066 = vtanh.f32 %v4192_v29  ;;  %v4195_v45 = vadd.f32 %v11834_v10, %v4194_v25  ;;  %v7611_v59 = vpop.f32.mrf.mxu1  ;;  %v4434_v21 = vpack.c.bf16 %v9045_v47, %v9041_v18  ;;  %v9047_v60 = vpop.eup %9046 }
 0x615   :  { %9068 = vtanh.f32 %v4203_v6  ;;  %v4581_v58 = vadd.f32 %v7611_v59, %v11869_v8  ;;  %v7578_v28 = vpop.f32.mrf.mxu0  ;;  %v4435_v55 = vpack.c.bf16 %v9043_v49, %v9047_v60  ;;  %v9049_v51 = vpop.eup %9048 }
 0x616   :  { %9070 = vtanh.f32 %v4195_v45  ;;  %v4572_v62 = vpop.f32.mrf.mxu1  ;;  %7708 = vmatprep.mubr.bf16.mxu1 %v4434_v21  ;;  %v4216_v14 = vadd.f32 %v11834_v10, %v7578_v28 }
 0x617   :  { %9072 = vtanh.f32 %v4570_v42  ;;  %v4573_v44 = vadd.f32 %v11869_v8, %v4572_v62  ;;  %v4207_v40 = vpop.f32.mrf.mxu0  ;;  %7709 = vmatmul.mubr.bf16.gmra.mxu1 %v4435_v55  ;;  %v9051_v9 = vpop.eup %9050 }
 0x618   :  { %9074 = vtanh.f32 %v4581_v58  ;;  %v4208_v11 = vadd.f32 %v11834_v10, %v4207_v40  ;;  %v7614_v63 = vpop.f32.mrf.mxu1 }
 0x619   :  { %9076 = vtanh.f32 %v4573_v44  ;;  %v7579_v53 = vpop.f32.mrf.mxu0  ;;  %v9053_v61 = vpop.eup %9052  ;;  %v4594_v17 = vadd.f32 %v7614_v63, %v11869_v8 }
 0x61a   :  { %9078 = vtanh.f32 %v4578_v31  ;;  %v4219_v46 = vadd.f32 %v11834_v10, %v7579_v53  ;;  %v4585_v48 = vpop.f32.mrf.mxu1  ;;  %v4437_v56 = vpack.c.bf16 %v9053_v61, %v9049_v51 }
 0x61b   :  { %v9055_v4 = vpop.eup %9054  ;;  %9080 = vtanh.f32 %v4216_v14  ;;  %v4586_v36 = vadd.f32 %v11869_v8, %v4585_v48  ;;  %v4210_v41 = vpop.f32.mrf.mxu0 }
 0x61c   :  { %v9057_v39 = vpop.eup %9056  ;;  %9082 = vtanh.f32 %v4208_v11  ;;  %v4211_v1 = vadd.f32 %v11834_v10, %v4210_v41  ;;  %v7615_v16 = vpop.f32.mrf.mxu1  ;;  %v4436_v20 = vpack.c.bf16 %v9055_v4, %v9051_v9 }
 0x61d   :  { %v9059_v37 = vpop.eup %9058  ;;  %9084 = vtanh.f32 %v4219_v46  ;;  %v4597_v26 = vadd.f32 %v7615_v16, %v11869_v8  ;;  %v7582_v12 = vpop.f32.mrf.mxu0 }
 0x61e   :  { %v9061_v50 = vpop.eup %9060  ;;  %9086 = vtanh.f32 %v4211_v1  ;;  %v4588_v13 = vpop.f32.mrf.mxu1  ;;  %7712 = vmatprep.mubr.bf16.mxu1 %v4436_v20  ;;  %v4232_v19 = vadd.f32 %v11834_v10, %v7582_v12 }
 0x61f   :  { %v9063_v34 = vpop.eup %9062  ;;  %9088 = vtanh.f32 %v4586_v36  ;;  %v4589_v38 = vadd.f32 %v11869_v8, %v4588_v13  ;;  %v4223_v5 = vpop.f32.mrf.mxu0  ;;  %v5192_v52 = vpack.c.bf16 %v9061_v50, %v9057_v39  ;;  %7713 = vmatmul.mubr.bf16.gmra.mxu1 %v4437_v56 }
 0x620   :  { %v9065_v2 = vpop.eup %9064  ;;  %v5193_v0 = vpack.c.bf16 %v9059_v37, %v9063_v34  ;;  %9090 = vtanh.f32 %v4597_v26  ;;  %v4224_v23 = vadd.f32 %v11834_v10, %v4223_v5  ;;  %v7618_v32 = vpop.f32.mrf.mxu1 }
 0x621   :  { %v9067_v35 = vpop.eup %9066  ;;  %9092 = vtanh.f32 %v4589_v38  ;;  %7748 = vmatprep.mubr.bf16.mxu0 %v5192_v52  ;;  %v7583_v57 = vpop.f32.mrf.mxu0  ;;  %v4610_v47 = vadd.f32 %v7618_v32, %v11869_v8 }
 0x622   :  { %v9069_v15 = vpop.eup %9068  ;;  %9094 = vtanh.f32 %v4594_v17  ;;  %v4235_v27 = vadd.f32 %v11834_v10, %v7583_v57  ;;  %v4601_v7 = vpop.f32.mrf.mxu1  ;;  %7749 = vmatmul.mubr.bf16.vlgmr.msra.gmra.mxu0 %v5193_v0 }
 0x623   :  { %v9071_v3 = vpop.eup %9070  ;;  %9096 = vtanh.f32 %v4232_v19  ;;  %v4602_v43 = vadd.f32 %v11869_v8, %v4601_v7  ;;  %v4226_v54 = vpop.f32.mrf.mxu0  ;;  %v4439_v25 = vpack.c.bf16 %v9069_v15, %v9065_v2 }
 0x624   :  { %v9073_v24 = vpop.eup %9072  ;;  %9098 = vtanh.f32 %v4224_v23  ;;  %v4227_v29 = vadd.f32 %v11834_v10, %v4226_v54  ;;  %v7619_v22 = vpop.f32.mrf.mxu1  ;;  %v4438_v18 = vpack.c.bf16 %v9071_v3, %v9067_v35 }
 0x625   :  { %v9075_v33 = vpop.eup %9074  ;;  %9100 = vtanh.f32 %v4235_v27  ;;  %v4613_v49 = vadd.f32 %v7619_v22, %v11869_v8  ;;  %v7586_v6 = vpop.f32.mrf.mxu0 }
 0x626   :  { %v9077_v30 = vpop.eup %9076  ;;  %9102 = vtanh.f32 %v4227_v29  ;;  %v4604_v42 = vpop.f32.mrf.mxu1  ;;  %7716 = vmatprep.mubr.bf16.mxu1 %v4438_v18  ;;  %v4248_v59 = vadd.f32 %v11834_v10, %v7586_v6 }
 0x627   :  { %v9079_v45 = vpop.eup %9078  ;;  %9104 = vtanh.f32 %v4602_v43  ;;  %v4605_v21 = vadd.f32 %v11869_v8, %v4604_v42  ;;  %v4239_v60 = vpop.f32.mrf.mxu0  ;;  %v5194_v58 = vpack.c.bf16 %v9077_v30, %v9073_v24  ;;  %7717 = vmatmul.mubr.bf16.gmra.mxu1 %v4439_v25 }
 0x628   :  { %v9081_v28 = vpop.eup %9080  ;;  %9106 = vtanh.f32 %v4613_v49  ;;  %v4240_v31 = vadd.f32 %v11834_v10, %v4239_v60  ;;  %v7622_v62 = vpop.f32.mrf.mxu1  ;;  %v5195_v55 = vpack.c.bf16 %v9075_v33, %v9079_v45 }
 0x629   :  { %v9083_v14 = vpop.eup %9082  ;;  %9108 = vtanh.f32 %v4605_v21  ;;  %7752 = vmatprep.mubr.bf16.mxu0 %v5194_v58  ;;  %v7587_v44 = vpop.f32.mrf.mxu0  ;;  %v4626_v1 = vadd.f32 %v7622_v62, %v11869_v8 }
 0x62a   :  { %v9085_v40 = vpop.eup %9084  ;;  %9110 = vtanh.f32 %v4610_v47  ;;  %v4251_v51 = vadd.f32 %v11834_v10, %v7587_v44  ;;  %v4617_v11 = vpop.f32.mrf.mxu1  ;;  %7753 = vmatmul.mubr.bf16.gmra.mxu0 %v5195_v55 }
 0x62b   :  { %v9087_v63 = vpop.eup %9086  ;;  %9112 = vtanh.f32 %v4248_v59  ;;  %v4618_v9 = vadd.f32 %v11869_v8, %v4617_v11  ;;  %v4242_v53 = vpop.f32.mrf.mxu0  ;;  %v4441_v20 = vpack.c.bf16 %v9085_v40, %v9081_v28 }
 0x62c   :  { %v9089_v61 = vpop.eup %9088  ;;  %9114 = vtanh.f32 %v4240_v31  ;;  %v4243_v46 = vadd.f32 %v11834_v10, %v4242_v53  ;;  %v7623_v48 = vpop.f32.mrf.mxu1  ;;  %v4440_v4 = vpack.c.bf16 %v9087_v63, %v9083_v14 }
 0x62d   :  { %v9091_v36 = vpop.eup %9090  ;;  %9116 = vtanh.f32 %v4251_v51  ;;  %v4629_v41 = vadd.f32 %v7623_v48, %v11869_v8 }
 0x62e   :  { %v9093_v39 = vpop.eup %9092  ;;  %9118 = vtanh.f32 %v4243_v46  ;;  %v4620_v16 = vpop.f32.mrf.mxu1  ;;  %7720 = vmatprep.mubr.bf16.mxu1 %v4440_v4 }
 0x62f   :  { %v9095_v37 = vpop.eup %9094  ;;  %9120 = vtanh.f32 %v4618_v9  ;;  %v4621_v26 = vadd.f32 %v11869_v8, %v4620_v16  ;;  %v5196_v12 = vpack.c.bf16 %v9093_v39, %v9089_v61  ;;  %7721 = vmatmul.mubr.bf16.gmra.mxu1 %v4441_v20 }
 0x630   :  { %v9097_v50 = vpop.eup %9096  ;;  %9122 = vtanh.f32 %v4629_v41  ;;  %v7626_v10 = vpop.f32.mrf.mxu1  ;;  %v5197_v17 = vpack.c.bf16 %v9091_v36, %v9095_v37 }
 0x631   :  { %v9099_v13 = vpop.eup %9098  ;;  %9124 = vtanh.f32 %v4621_v26  ;;  %7756 = vmatprep.mubr.bf16.mxu0 %v5196_v12  ;;  %v4642_v35 = vadd.f32 %v7626_v10, %v11869_v8 }
 0x632   :  { %v9101_v56 = vpop.eup %9100  ;;  %9126 = vtanh.f32 %v4626_v1  ;;  %v4633_v34 = vpop.f32.mrf.mxu1  ;;  %7757 = vmatmul.mubr.bf16.gmra.mxu0 %v5197_v17 }
 0x633   :  { %v9103_v19 = vpop.eup %9102  ;;  %v4634_v38 = vadd.f32 %v11869_v8, %v4633_v34  ;;  %v4443_v15 = vpack.c.bf16 %v9101_v56, %v9097_v50 }
 0x634   :  { %v9105_v5 = vpop.eup %9104  ;;  %v7627_v52 = vpop.f32.mrf.mxu1  ;;  %v4442_v2 = vpack.c.bf16 %v9103_v19, %v9099_v13 }
 0x635   :  { %v9107_v0 = vpop.eup %9106  ;;  %v4645_v23 = vadd.f32 %v7627_v52, %v11869_v8  ;;  %9128 = vtanh.f32 %v4634_v38 }
 0x636   :  { %v9109_v32 = vpop.eup %9108  ;;  %v4636_v57 = vpop.f32.mrf.mxu1  ;;  %7724 = vmatprep.mubr.bf16.mxu1 %v4442_v2 }
 0x637   :  { %v9111_v27 = vpop.eup %9110  ;;  %v4637_v7 = vadd.f32 %v11869_v8, %v4636_v57  ;;  %v5198_v3 = vpack.c.bf16 %v9109_v32, %v9105_v5  ;;  %9130 = vtanh.f32 %v4645_v23  ;;  %7725 = vmatmul.mubr.bf16.gmra.mxu1 %v4443_v15 }
 0x638   :  { %v9113_v43 = vpop.eup %9112  ;;  %v7630_v54 = vpop.f32.mrf.mxu1  ;;  %v5199_v24 = vpack.c.bf16 %v9107_v0, %v9111_v27 }
 0x639   :  { %v9115_v29 = vpop.eup %9114  ;;  %9132 = vtanh.f32 %v4637_v7  ;;  %7760 = vmatprep.mubr.bf16.mxu0 %v5198_v3  ;;  %v4658_v59 = vadd.f32 %v7630_v54, %v11869_v8 }
 0x63a   :  { %v9117_v22 = vpop.eup %9116  ;;  %9134 = vtanh.f32 %v4642_v35  ;;  %v4649_v18 = vpop.f32.mrf.mxu1  ;;  %7761 = vmatmul.mubr.bf16.gmra.mxu0 %v5199_v24 }
 0x63b   :  { %v9119_v33 = vpop.eup %9118  ;;  %v4650_v49 = vadd.f32 %v11869_v8, %v4649_v18  ;;  %v4445_v60 = vpack.c.bf16 %v9117_v22, %v9113_v43 }
 0x63c   :  { %v9121_v6 = vpop.eup %9120  ;;  %v7631_v30 = vpop.f32.mrf.mxu1  ;;  %v4444_v47 = vpack.c.bf16 %v9119_v33, %v9115_v29 }
 0x63d   :  { %v9123_v42 = vpop.eup %9122  ;;  %v4661_v25 = vadd.f32 %v7631_v30, %v11869_v8  ;;  %9136 = vtanh.f32 %v4650_v49 }
 0x63e   :  { %v9125_v45 = vpop.eup %9124  ;;  %v4652_v21 = vpop.f32.mrf.mxu1  ;;  %7728 = vmatprep.mubr.bf16.mxu1 %v4444_v47 }
 0x63f   :  { %v9127_v58 = vpop.eup %9126  ;;  %v4653_v28 = vadd.f32 %v11869_v8, %v4652_v21  ;;  %v5200_v31 = vpack.c.bf16 %v9125_v45, %v9121_v6  ;;  %9138 = vtanh.f32 %v4661_v25  ;;  %7729 = vmatmul.mubr.bf16.gmra.mxu1 %v4445_v60 }
 0x640   :  { %v7634_v62 = vpop.f32.mrf.mxu1  ;;  %v5201_v55 = vpack.c.bf16 %v9123_v42, %v9127_v58 }
 0x641   :  { %9140 = vtanh.f32 %v4653_v28  ;;  %7764 = vmatprep.mubr.bf16.mxu0 %v5200_v31  ;;  %v4674_v53 = vadd.f32 %v7634_v62, %v11869_v8 }
 0x642   :  { %9142 = vtanh.f32 %v4658_v59  ;;  %v4665_v14 = vpop.f32.mrf.mxu1  ;;  %7765 = vmatmul.mubr.bf16.gmra.mxu0 %v5201_v55  ;;  %v9129_v40 = vpop.eup %9128 }
 0x643   :  { %v4666_v44 = vadd.f32 %v11869_v8, %v4665_v14 }
 0x644   :  { %v7635_v51 = vpop.f32.mrf.mxu1  ;;  %v9131_v11 = vpop.eup %9130 }
 0x645   :  { %v4677_v63 = vadd.f32 %v7635_v51, %v11869_v8  ;;  %9144 = vtanh.f32 %v4666_v44 }
 0x646   :  { %v9133_v9 = vpop.eup %9132  ;;  %v4668_v61 = vpop.f32.mrf.mxu1 }
 0x647   :  { %v9135_v46 = vpop.eup %9134  ;;  %v4669_v48 = vadd.f32 %v11869_v8, %v4668_v61  ;;  %v5202_v4 = vpack.c.bf16 %v9133_v9, %v9129_v40  ;;  %9146 = vtanh.f32 %v4677_v63 }
 0x648   :  { %v7638_v36 = vpop.f32.mrf.mxu1  ;;  %v5203_v41 = vpack.c.bf16 %v9131_v11, %v9135_v46 }
 0x649   :  { %9148 = vtanh.f32 %v4669_v48  ;;  %7768 = vmatprep.mubr.bf16.mxu0 %v5202_v4  ;;  %v4690_v50 = vadd.f32 %v7638_v36, %v11869_v8 }
 0x64a   :  { %9150 = vtanh.f32 %v4674_v53  ;;  %v4681_v39 = vpop.f32.mrf.mxu1  ;;  %7769 = vmatmul.mubr.bf16.gmra.mxu0 %v5203_v41  ;;  %v9137_v16 = vpop.eup %9136 }
 0x64b   :  { %v4682_v1 = vadd.f32 %v11869_v8, %v4681_v39 }
 0x64c   :  { %v7639_v20 = vpop.f32.mrf.mxu1  ;;  %v9139_v37 = vpop.eup %9138 }
 0x64d   :  { %v4693_v26 = vadd.f32 %v7639_v20, %v11869_v8  ;;  %9152 = vtanh.f32 %v4682_v1 }
 0x64e   :  { %v9141_v12 = vpop.eup %9140  ;;  %v4684_v10 = vpop.f32.mrf.mxu1 }
 0x64f   :  { %v9143_v17 = vpop.eup %9142  ;;  %v4685_v13 = vadd.f32 %v11869_v8, %v4684_v10  ;;  %v5204_v56 = vpack.c.bf16 %v9141_v12, %v9137_v16  ;;  %9154 = vtanh.f32 %v4693_v26 }
 0x650   :  { %v7642_v34 = vpop.f32.mrf.mxu1  ;;  %v5205_v19 = vpack.c.bf16 %v9139_v37, %v9143_v17 }
 0x651   :  { %9156 = vtanh.f32 %v4685_v13  ;;  %7772 = vmatprep.mubr.bf16.mxu0 %v5204_v56  ;;  %v4706_v35 = vadd.f32 %v7642_v34, %v11869_v8 }
 0x652   :  { %9158 = vtanh.f32 %v4690_v50  ;;  %v4697_v38 = vpop.f32.mrf.mxu1  ;;  %7773 = vmatmul.mubr.bf16.gmra.mxu0 %v5205_v19  ;;  %v9145_v52 = vpop.eup %9144 }
 0x653   :  { %v4698_v5 = vadd.f32 %v11869_v8, %v4697_v38 }
 0x654   :  { %v7643_v2 = vpop.f32.mrf.mxu1  ;;  %v9147_v0 = vpop.eup %9146 }
 0x655   :  { %v4709_v23 = vadd.f32 %v7643_v2, %v11869_v8  ;;  %9160 = vtanh.f32 %v4698_v5 }
 0x656   :  { %v9149_v32 = vpop.eup %9148  ;;  %v4700_v57 = vpop.f32.mrf.mxu1 }
 0x657   :  { %v9151_v15 = vpop.eup %9150  ;;  %v4701_v27 = vadd.f32 %v11869_v8, %v4700_v57  ;;  %v5206_v7 = vpack.c.bf16 %v9149_v32, %v9145_v52  ;;  %9162 = vtanh.f32 %v4709_v23 }
 0x658   :  { %v7646_v3 = vpop.f32.mrf.mxu1  ;;  %v5207_v43 = vpack.c.bf16 %v9147_v0, %v9151_v15 }
 0x659   :  { %9164 = vtanh.f32 %v4701_v27  ;;  %7776 = vmatprep.mubr.bf16.mxu0 %v5206_v7  ;;  %v4722_v6 = vadd.f32 %v7646_v3, %v11869_v8 }
 0x65a   :  { %9166 = vtanh.f32 %v4706_v35  ;;  %v4713_v54 = vpop.f32.mrf.mxu1  ;;  %7777 = vmatmul.mubr.bf16.gmra.mxu0 %v5207_v43  ;;  %v9153_v29 = vpop.eup %9152 }
 0x65b   :  { %v4714_v24 = vadd.f32 %v11869_v8, %v4713_v54 }
 0x65c   :  { %v7647_v22 = vpop.f32.mrf.mxu1  ;;  %v9155_v18 = vpop.eup %9154 }
 0x65d   :  { %v4725_v33 = vadd.f32 %v7647_v22, %v11869_v8  ;;  %9168 = vtanh.f32 %v4714_v24 }
 0x65e   :  { %v9157_v49 = vpop.eup %9156  ;;  %v4716_v30 = vpop.f32.mrf.mxu1 }
 0x65f   :  { %v9159_v47 = vpop.eup %9158  ;;  %v4717_v42 = vadd.f32 %v11869_v8, %v4716_v30  ;;  %v5208_v25 = vpack.c.bf16 %v9157_v49, %v9153_v29  ;;  %9170 = vtanh.f32 %v4725_v33 }
 0x660   :  { %v7650_v45 = vpop.f32.mrf.mxu1  ;;  %v5209_v59 = vpack.c.bf16 %v9155_v18, %v9159_v47 }
 0x661   :  { %9172 = vtanh.f32 %v4717_v42  ;;  %7780 = vmatprep.mubr.bf16.mxu0 %v5208_v25  ;;  %v4738_v14 = vadd.f32 %v7650_v45, %v11869_v8 }
 0x662   :  { %9174 = vtanh.f32 %v4722_v6  ;;  %v4729_v21 = vpop.f32.mrf.mxu1  ;;  %7781 = vmatmul.mubr.bf16.gmra.mxu0 %v5209_v59  ;;  %v9161_v58 = vpop.eup %9160 }
 0x663   :  { %v4730_v60 = vadd.f32 %v11869_v8, %v4729_v21 }
 0x664   :  { %v7651_v28 = vpop.f32.mrf.mxu1  ;;  %v9163_v31 = vpop.eup %9162 }
 0x665   :  { %v4741_v62 = vadd.f32 %v7651_v28, %v11869_v8  ;;  %9176 = vtanh.f32 %v4730_v60 }
 0x666   :  { %v9165_v55 = vpop.eup %9164  ;;  %v4732_v44 = vpop.f32.mrf.mxu1 }
 0x667   :  { %v9167_v40 = vpop.eup %9166  ;;  %v4733_v51 = vadd.f32 %v11869_v8, %v4732_v44  ;;  %v5210_v11 = vpack.c.bf16 %v9165_v55, %v9161_v58  ;;  %9178 = vtanh.f32 %v4741_v62 }
 0x668   :  { %v7654_v63 = vpop.f32.mrf.mxu1  ;;  %v5211_v9 = vpack.c.bf16 %v9163_v31, %v9167_v40 }
 0x669   :  { %9180 = vtanh.f32 %v4733_v51  ;;  %7784 = vmatprep.mubr.bf16.mxu0 %v5210_v11  ;;  %v4754_v39 = vadd.f32 %v7654_v63, %v11869_v8 }
 0x66a   :  { %9182 = vtanh.f32 %v4738_v14  ;;  %v4745_v53 = vpop.f32.mrf.mxu1  ;;  %7785 = vmatmul.mubr.bf16.gmra.mxu0 %v5211_v9  ;;  %v9169_v46 = vpop.eup %9168 }
 0x66b   :  { %v4746_v61 = vadd.f32 %v11869_v8, %v4745_v53 }
 0x66c   :  { %v7655_v48 = vpop.f32.mrf.mxu1  ;;  %v9171_v4 = vpop.eup %9170 }
 0x66d   :  { %v4757_v36 = vadd.f32 %v7655_v48, %v11869_v8  ;;  %9184 = vtanh.f32 %v4746_v61 }
 0x66e   :  { %v9173_v41 = vpop.eup %9172  ;;  %v4748_v1 = vpop.f32.mrf.mxu1 }
 0x66f   :  { %v9175_v16 = vpop.eup %9174  ;;  %v4749_v20 = vadd.f32 %v11869_v8, %v4748_v1  ;;  %v5212_v37 = vpack.c.bf16 %v9173_v41, %v9169_v46  ;;  %9186 = vtanh.f32 %v4757_v36 }
 0x670   :  { %v7658_v26 = vpop.f32.mrf.mxu1  ;;  %v5213_v12 = vpack.c.bf16 %v9171_v4, %v9175_v16 }
 0x671   :  { %9188 = vtanh.f32 %v4749_v20  ;;  %7788 = vmatprep.mubr.bf16.mxu0 %v5212_v37  ;;  %v4770_v38 = vadd.f32 %v7658_v26, %v11869_v8 }
 0x672   :  { %9190 = vtanh.f32 %v4754_v39  ;;  %v4761_v50 = vpop.f32.mrf.mxu1  ;;  %7789 = vmatmul.mubr.bf16.gmra.mxu0 %v5213_v12  ;;  %v9177_v17 = vpop.eup %9176 }
 0x673   :  { %v4762_v10 = vadd.f32 %v11869_v8, %v4761_v50 }
 0x674   :  { %v7659_v13 = vpop.f32.mrf.mxu1  ;;  %v9179_v56 = vpop.eup %9178 }
 0x675   :  { %v4773_v34 = vadd.f32 %v7659_v13, %v11869_v8  ;;  %9192 = vtanh.f32 %v4762_v10 }
 0x676   :  { %v9181_v19 = vpop.eup %9180  ;;  %v4764_v5 = vpop.f32.mrf.mxu1 }
 0x677   :  { %v9183_v52 = vpop.eup %9182  ;;  %v4765_v2 = vadd.f32 %v11869_v8, %v4764_v5  ;;  %v5214_v0 = vpack.c.bf16 %v9181_v19, %v9177_v17  ;;  %9194 = vtanh.f32 %v4773_v34 }
 0x678   :  { %v7662_v23 = vpop.f32.mrf.mxu1  ;;  %v5215_v32 = vpack.c.bf16 %v9179_v56, %v9183_v52 }
 0x679   :  { %9196 = vtanh.f32 %v4765_v2  ;;  %7792 = vmatprep.mubr.bf16.mxu0 %v5214_v0  ;;  %v4786_v54 = vadd.f32 %v7662_v23, %v11869_v8 }
 0x67a   :  { %9198 = vtanh.f32 %v4770_v38  ;;  %v4777_v35 = vpop.f32.mrf.mxu1  ;;  %7793 = vmatmul.mubr.bf16.gmra.mxu0 %v5215_v32  ;;  %v9185_v15 = vpop.eup %9184 }
 0x67b   :  { %v4778_v57 = vadd.f32 %v11869_v8, %v4777_v35 }
 0x67c   :  { %v7663_v27 = vpop.f32.mrf.mxu1  ;;  %v9187_v7 = vpop.eup %9186 }
 0x67d   :  { %v4789_v3 = vadd.f32 %v7663_v27, %v11869_v8  ;;  %9200 = vtanh.f32 %v4778_v57 }
 0x67e   :  { %v9189_v43 = vpop.eup %9188  ;;  %v4780_v24 = vpop.f32.mrf.mxu1 }
 0x67f   :  { %v9191_v29 = vpop.eup %9190  ;;  %v4781_v22 = vadd.f32 %v11869_v8, %v4780_v24  ;;  %v5216_v18 = vpack.c.bf16 %v9189_v43, %v9185_v15  ;;  %9202 = vtanh.f32 %v4789_v3 }
 0x680   :  { %v7666_v33 = vpop.f32.mrf.mxu1  ;;  %v5217_v49 = vpack.c.bf16 %v9187_v7, %v9191_v29 }
 0x681   :  { %9204 = vtanh.f32 %v4781_v22  ;;  %7796 = vmatprep.mubr.bf16.mxu0 %v5216_v18  ;;  %v4802_v21 = vadd.f32 %v7666_v33, %v11869_v8 }
 0x682   :  { %9206 = vtanh.f32 %v4786_v54  ;;  %v4793_v6 = vpop.f32.mrf.mxu1  ;;  %7797 = vmatmul.mubr.bf16.gmra.mxu0 %v5217_v49  ;;  %v9193_v47 = vpop.eup %9192 }
 0x683   :  { %v4794_v30 = vadd.f32 %v11869_v8, %v4793_v6 }
 0x684   :  { %v7667_v42 = vpop.f32.mrf.mxu1  ;;  %v9195_v25 = vpop.eup %9194 }
 0x685   :  { %v4805_v45 = vadd.f32 %v7667_v42, %v11869_v8  ;;  %9208 = vtanh.f32 %v4794_v30 }
 0x686   :  { %v9197_v59 = vpop.eup %9196  ;;  %v4796_v60 = vpop.f32.mrf.mxu1 }
 0x687   :  { %v9199_v58 = vpop.eup %9198  ;;  %v4797_v28 = vadd.f32 %v11869_v8, %v4796_v60  ;;  %v5218_v31 = vpack.c.bf16 %v9197_v59, %v9193_v47  ;;  %9210 = vtanh.f32 %v4805_v45 }
 0x688   :  { %v7670_v62 = vpop.f32.mrf.mxu1  ;;  %v5219_v55 = vpack.c.bf16 %v9195_v25, %v9199_v58 }
 0x689   :  { %9212 = vtanh.f32 %v4797_v28  ;;  %7800 = vmatprep.mubr.bf16.mxu0 %v5218_v31  ;;  %v4818_v53 = vadd.f32 %v7670_v62, %v11869_v8 }
 0x68a   :  { %9214 = vtanh.f32 %v4802_v21  ;;  %v4809_v14 = vpop.f32.mrf.mxu1  ;;  %7801 = vmatmul.mubr.bf16.gmra.mxu0 %v5219_v55  ;;  %v9201_v40 = vpop.eup %9200 }
 0x68b   :  { %v4810_v44 = vadd.f32 %v11869_v8, %v4809_v14 }
 0x68c   :  { %v7671_v51 = vpop.f32.mrf.mxu1  ;;  %v9203_v11 = vpop.eup %9202 }
 0x68d   :  { %v4821_v63 = vadd.f32 %v7671_v51, %v11869_v8  ;;  %9216 = vtanh.f32 %v4810_v44 }
 0x68e   :  { %v9205_v9 = vpop.eup %9204  ;;  %v4812_v61 = vpop.f32.mrf.mxu1 }
 0x68f   :  { %v9207_v46 = vpop.eup %9206  ;;  %v4813_v48 = vadd.f32 %v11869_v8, %v4812_v61  ;;  %v5220_v4 = vpack.c.bf16 %v9205_v9, %v9201_v40  ;;  %9218 = vtanh.f32 %v4821_v63  ;;  %v11976_v61 = vld [vmem:[%s12947_s2 + $0x4] ss:$0 sm:$0xff] }
 0x690   :  { %v7674_v36 = vpop.f32.mrf.mxu1  ;;  %v5221_v41 = vpack.c.bf16 %v9203_v11, %v9207_v46 }
 0x691   :  { %9220 = vtanh.f32 %v4813_v48  ;;  %7804 = vmatprep.mubr.bf16.mxu0 %v5220_v4  ;;  %v4834_v50 = vadd.f32 %v7674_v36, %v11869_v8 }
 0x692   :  { %9222 = vtanh.f32 %v4818_v53  ;;  %v4825_v39 = vpop.f32.mrf.mxu1  ;;  %7805 = vmatmul.mubr.bf16.gmra.mxu0 %v5221_v41  ;;  %v9209_v16 = vpop.eup %9208 }
 0x693   :  { %v4826_v1 = vadd.f32 %v11869_v8, %v4825_v39 }
 0x694   :  { %v7675_v20 = vpop.f32.mrf.mxu1  ;;  %v9211_v37 = vpop.eup %9210 }
 0x695   :  { %v4837_v26 = vadd.f32 %v7675_v20, %v11869_v8  ;;  %9224 = vtanh.f32 %v4826_v1 }
 0x696   :  { %v9213_v12 = vpop.eup %9212  ;;  %v4828_v10 = vpop.f32.mrf.mxu1 }
 0x697   :  { %v9215_v17 = vpop.eup %9214  ;;  %v4829_v13 = vadd.f32 %v11869_v8, %v4828_v10  ;;  %v5222_v56 = vpack.c.bf16 %v9213_v12, %v9209_v16  ;;  %9226 = vtanh.f32 %v4837_v26 }
 0x698   :  { %v7678_v34 = vpop.f32.mrf.mxu1  ;;  %v5223_v19 = vpack.c.bf16 %v9211_v37, %v9215_v17 }
 0x699   :  { %9228 = vtanh.f32 %v4829_v13  ;;  %7808 = vmatprep.mubr.bf16.mxu0 %v5222_v56  ;;  %v4850_v35 = vadd.f32 %v7678_v34, %v11869_v8 }
 0x69a   :  { %9230 = vtanh.f32 %v4834_v50  ;;  %v4841_v38 = vpop.f32.mrf.mxu1  ;;  %7809 = vmatmul.mubr.bf16.gmra.mxu0 %v5223_v19  ;;  %v9217_v52 = vpop.eup %9216 }
 0x69b   :  { %v4842_v5 = vadd.f32 %v11869_v8, %v4841_v38 }
 0x69c   :  { %v7679_v2 = vpop.f32.mrf.mxu1  ;;  %v9219_v0 = vpop.eup %9218 }
 0x69d   :  { %v4853_v23 = vadd.f32 %v7679_v2, %v11869_v8  ;;  %9232 = vtanh.f32 %v4842_v5 }
 0x69e   :  { %v9221_v32 = vpop.eup %9220  ;;  %v4844_v57 = vpop.f32.mrf.mxu1 }
 0x69f   :  { %v9223_v15 = vpop.eup %9222  ;;  %v4845_v27 = vadd.f32 %v11869_v8, %v4844_v57  ;;  %v5224_v7 = vpack.c.bf16 %v9221_v32, %v9217_v52  ;;  %9234 = vtanh.f32 %v4853_v23 }
 0x6a0   :  { %v7682_v3 = vpop.f32.mrf.mxu1  ;;  %v5225_v43 = vpack.c.bf16 %v9219_v0, %v9223_v15 }
 0x6a1   :  { %9236 = vtanh.f32 %v4845_v27  ;;  %7812 = vmatprep.mubr.bf16.mxu0 %v5224_v7  ;;  %v4866_v6 = vadd.f32 %v7682_v3, %v11869_v8 }
 0x6a2   :  { %9238 = vtanh.f32 %v4850_v35  ;;  %v4857_v54 = vpop.f32.mrf.mxu1  ;;  %7813 = vmatmul.mubr.bf16.gmra.mxu0 %v5225_v43  ;;  %v9225_v29 = vpop.eup %9224 }
 0x6a3   :  { %v4858_v24 = vadd.f32 %v11869_v8, %v4857_v54 }
 0x6a4   :  { %v7683_v22 = vpop.f32.mrf.mxu1  ;;  %v9227_v18 = vpop.eup %9226 }
 0x6a5   :  { %v4869_v33 = vadd.f32 %v7683_v22, %v11869_v8  ;;  %9240 = vtanh.f32 %v4858_v24 }
 0x6a6   :  { %v9229_v49 = vpop.eup %9228  ;;  %v4860_v30 = vpop.f32.mrf.mxu1 }
 0x6a7   :  { %v9231_v47 = vpop.eup %9230  ;;  %v4861_v42 = vadd.f32 %v11869_v8, %v4860_v30  ;;  %v5226_v25 = vpack.c.bf16 %v9229_v49, %v9225_v29  ;;  %9242 = vtanh.f32 %v4869_v33 }
 0x6a8   :  { %v7686_v45 = vpop.f32.mrf.mxu1  ;;  %v5227_v59 = vpack.c.bf16 %v9227_v18, %v9231_v47 }
 0x6a9   :  { %9244 = vtanh.f32 %v4861_v42  ;;  %7816 = vmatprep.mubr.bf16.mxu0 %v5226_v25  ;;  %v4882_v14 = vadd.f32 %v7686_v45, %v11869_v8 }
 0x6aa   :  { %9246 = vtanh.f32 %v4866_v6  ;;  %v4873_v21 = vpop.f32.mrf.mxu1  ;;  %7817 = vmatmul.mubr.bf16.gmra.mxu0 %v5227_v59  ;;  %v9233_v58 = vpop.eup %9232 }
 0x6ab   :  { %v4874_v60 = vadd.f32 %v11869_v8, %v4873_v21 }
 0x6ac   :  { %v7687_v28 = vpop.f32.mrf.mxu1  ;;  %v9235_v31 = vpop.eup %9234 }
 0x6ad   :  { %v4885_v62 = vadd.f32 %v7687_v28, %v11869_v8  ;;  %9248 = vtanh.f32 %v4874_v60 }
 0x6ae   :  { %v9237_v55 = vpop.eup %9236  ;;  %v4876_v44 = vpop.f32.mrf.mxu1 }
 0x6af   :  { %v9239_v40 = vpop.eup %9238  ;;  %v4877_v51 = vadd.f32 %v11869_v8, %v4876_v44  ;;  %v5228_v11 = vpack.c.bf16 %v9237_v55, %v9233_v58  ;;  %9250 = vtanh.f32 %v4885_v62 }
 0x6b0   :  { %v7690_v63 = vpop.f32.mrf.mxu1  ;;  %v5229_v9 = vpack.c.bf16 %v9235_v31, %v9239_v40 }
 0x6b1   :  { %9252 = vtanh.f32 %v4877_v51  ;;  %7820 = vmatprep.mubr.bf16.mxu0 %v5228_v11  ;;  %v4898_v39 = vadd.f32 %v11976_v61, %v7690_v63 }
 0x6b2   :  { %9254 = vtanh.f32 %v4882_v14  ;;  %v4889_v53 = vpop.f32.mrf.mxu1  ;;  %7821 = vmatmul.mubr.bf16.gmra.mxu0 %v5229_v9  ;;  %v9241_v48 = vpop.eup %9240 }
 0x6b3   :  { %v4890_v46 = vadd.f32 %v11976_v61, %v4889_v53 }
 0x6b4   :  { %v7691_v4 = vpop.f32.mrf.mxu1  ;;  %v9243_v36 = vpop.eup %9242 }
 0x6b5   :  { %v4901_v8 = vadd.f32 %v11976_v61, %v7691_v4  ;;  %9256 = vtanh.f32 %v4890_v46 }
 0x6b6   :  { %v9245_v41 = vpop.eup %9244  ;;  %v4892_v1 = vpop.f32.mrf.mxu1 }
 0x6b7   :  { %v9247_v16 = vpop.eup %9246  ;;  %v4893_v20 = vadd.f32 %v11976_v61, %v4892_v1  ;;  %v5230_v37 = vpack.c.bf16 %v9245_v41, %v9241_v48  ;;  %9258 = vtanh.f32 %v4901_v8 }
 0x6b8   :  { %v7694_v26 = vpop.f32.mrf.mxu1  ;;  %v5231_v12 = vpack.c.bf16 %v9243_v36, %v9247_v16 }
 0x6b9   :  { %9260 = vtanh.f32 %v4893_v20  ;;  %7824 = vmatprep.mubr.bf16.mxu0 %v5230_v37  ;;  %v4914_v38 = vadd.f32 %v11976_v61, %v7694_v26 }
 0x6ba   :  { %9262 = vtanh.f32 %v4898_v39  ;;  %v4905_v50 = vpop.f32.mrf.mxu1  ;;  %7825 = vmatmul.mubr.bf16.gmra.mxu0 %v5231_v12  ;;  %v9249_v17 = vpop.eup %9248 }
 0x6bb   :  { %v4906_v10 = vadd.f32 %v11976_v61, %v4905_v50 }
 0x6bc   :  { %v7695_v13 = vpop.f32.mrf.mxu1  ;;  %v9251_v56 = vpop.eup %9250 }
 0x6bd   :  { %v4917_v34 = vadd.f32 %v11976_v61, %v7695_v13  ;;  %9264 = vtanh.f32 %v4906_v10 }
 0x6be   :  { %v9253_v19 = vpop.eup %9252  ;;  %v4908_v5 = vpop.f32.mrf.mxu1 }
 0x6bf   :  { %v9255_v52 = vpop.eup %9254  ;;  %v4909_v2 = vadd.f32 %v11976_v61, %v4908_v5  ;;  %v5232_v0 = vpack.c.bf16 %v9253_v19, %v9249_v17  ;;  %9266 = vtanh.f32 %v4917_v34  ;;  %v12005_v19 = vld [vmem:[%s12947_s2 + $0x5] ss:$0 sm:$0xff] }
 0x6c0   :  { %v7698_v23 = vpop.f32.mrf.mxu1  ;;  %v5233_v32 = vpack.c.bf16 %v9251_v56, %v9255_v52 }
 0x6c1   :  { %9268 = vtanh.f32 %v4909_v2  ;;  %7828 = vmatprep.mubr.bf16.mxu0 %v5232_v0  ;;  %v4930_v54 = vadd.f32 %v11976_v61, %v7698_v23 }
 0x6c2   :  { %9270 = vtanh.f32 %v4914_v38  ;;  %v4921_v35 = vpop.f32.mrf.mxu1  ;;  %7829 = vmatmul.mubr.bf16.gmra.mxu0 %v5233_v32  ;;  %v9257_v15 = vpop.eup %9256 }
 0x6c3   :  { %v4922_v57 = vadd.f32 %v11976_v61, %v4921_v35 }
 0x6c4   :  { %v7699_v27 = vpop.f32.mrf.mxu1  ;;  %v9259_v7 = vpop.eup %9258 }
 0x6c5   :  { %v4933_v3 = vadd.f32 %v11976_v61, %v7699_v27  ;;  %9272 = vtanh.f32 %v4922_v57 }
 0x6c6   :  { %v9261_v43 = vpop.eup %9260  ;;  %v4924_v24 = vpop.f32.mrf.mxu1 }
 0x6c7   :  { %v9263_v29 = vpop.eup %9262  ;;  %v4925_v22 = vadd.f32 %v11976_v61, %v4924_v24  ;;  %v5234_v18 = vpack.c.bf16 %v9261_v43, %v9257_v15  ;;  %9274 = vtanh.f32 %v4933_v3 }
 0x6c8   :  { %v7702_v33 = vpop.f32.mrf.mxu1  ;;  %v5235_v49 = vpack.c.bf16 %v9259_v7, %v9263_v29 }
 0x6c9   :  { %9276 = vtanh.f32 %v4925_v22  ;;  %7832 = vmatprep.mubr.bf16.mxu0 %v5234_v18  ;;  %v4946_v21 = vadd.f32 %v11976_v61, %v7702_v33 }
 0x6ca   :  { %9278 = vtanh.f32 %v4930_v54  ;;  %v4937_v6 = vpop.f32.mrf.mxu1  ;;  %7833 = vmatmul.mubr.bf16.gmra.mxu0 %v5235_v49  ;;  %v9265_v47 = vpop.eup %9264 }
 0x6cb   :  { %v4938_v30 = vadd.f32 %v11976_v61, %v4937_v6 }
 0x6cc   :  { %v7703_v42 = vpop.f32.mrf.mxu1  ;;  %v9267_v25 = vpop.eup %9266 }
 0x6cd   :  { %v4949_v45 = vadd.f32 %v11976_v61, %v7703_v42  ;;  %9280 = vtanh.f32 %v4938_v30  ;;  %v6793_v42 = vld [vmem:[%s12946_s1 + $0x180] sm:$0xf] }
 0x6ce   :  { %v9269_v59 = vpop.eup %9268  ;;  %v4940_v60 = vpop.f32.mrf.mxu1 }
 0x6cf   :  { %v9271_v58 = vpop.eup %9270  ;;  %v4941_v28 = vadd.f32 %v11976_v61, %v4940_v60  ;;  %v5236_v31 = vpack.c.bf16 %v9269_v59, %v9265_v47  ;;  %9282 = vtanh.f32 %v4949_v45 }
 0x6d0   :  { %v7706_v62 = vpop.f32.mrf.mxu1  ;;  %v5237_v55 = vpack.c.bf16 %v9267_v25, %v9271_v58 }
 0x6d1   :  { %9284 = vtanh.f32 %v4941_v28  ;;  %7836 = vmatprep.mubr.bf16.mxu0 %v5236_v31  ;;  %v4962_v53 = vadd.f32 %v11976_v61, %v7706_v62  ;;  %v6004_v31 = vunpack.c.l.bf16 %v6793_v42 }
 0x6d2   :  { %9286 = vtanh.f32 %v4946_v21  ;;  %v4953_v14 = vpop.f32.mrf.mxu1  ;;  %7837 = vmatmul.mubr.bf16.gmra.mxu0 %v5237_v55  ;;  %v9273_v40 = vpop.eup %9272 }
 0x6d3   :  { %v4954_v44 = vadd.f32 %v11976_v61, %v4953_v14 }
 0x6d4   :  { %v7707_v51 = vpop.f32.mrf.mxu1  ;;  %v9275_v11 = vpop.eup %9274 }
 0x6d5   :  { %v4965_v63 = vadd.f32 %v11976_v61, %v7707_v51  ;;  %9288 = vtanh.f32 %v4954_v44 }
 0x6d6   :  { %v9277_v9 = vpop.eup %9276  ;;  %v4956_v46 = vpop.f32.mrf.mxu1 }
 0x6d7   :  { %v9279_v48 = vpop.eup %9278  ;;  %v4957_v4 = vadd.f32 %v11976_v61, %v4956_v46  ;;  %v5238_v36 = vpack.c.bf16 %v9277_v9, %v9273_v40  ;;  %9290 = vtanh.f32 %v4965_v63 }
 0x6d8   :  { %v7710_v8 = vpop.f32.mrf.mxu1  ;;  %v5239_v41 = vpack.c.bf16 %v9275_v11, %v9279_v48 }
 0x6d9   :  { %9292 = vtanh.f32 %v4957_v4  ;;  %7840 = vmatprep.mubr.bf16.mxu0 %v5238_v36  ;;  %v4978_v50 = vadd.f32 %v11976_v61, %v7710_v8  ;;  %v13008_v36 = vld [vmem:[#allocation22_spill] sm:$0xff] }
 0x6da   :  { %9294 = vtanh.f32 %v4962_v53  ;;  %v4969_v39 = vpop.f32.mrf.mxu1  ;;  %7841 = vmatmul.mubr.bf16.gmra.mxu0 %v5239_v41  ;;  %v9281_v16 = vpop.eup %9280  ;;  %v13009_v8 = vsub.s32 0, %v13008_v36 }
 0x6db   :  { %v4970_v1 = vadd.f32 %v11976_v61, %v4969_v39 }
 0x6dc   :  { %v7711_v20 = vpop.f32.mrf.mxu1  ;;  %v9283_v37 = vpop.eup %9282  ;;  %v12027_v41 = vrot.slane %v6004_v31, %v13009_v8 }
 0x6dd   :  { %v4981_v26 = vadd.f32 %v11976_v61, %v7711_v20  ;;  %9296 = vtanh.f32 %v4970_v1 }
 0x6de   :  { %v9285_v12 = vpop.eup %9284  ;;  %v4972_v10 = vpop.f32.mrf.mxu1 }
 0x6df   :  { %v9287_v17 = vpop.eup %9286  ;;  %v4973_v13 = vadd.f32 %v11976_v61, %v4972_v10  ;;  %v5240_v56 = vpack.c.bf16 %v9285_v12, %v9281_v16  ;;  %9298 = vtanh.f32 %v4981_v26 }
 0x6e0   :  { %v7714_v34 = vpop.f32.mrf.mxu1  ;;  %v5241_v38 = vpack.c.bf16 %v9283_v37, %v9287_v17 }
 0x6e1   :  { %9300 = vtanh.f32 %v4973_v13  ;;  %v4994_v5 = vadd.f32 %v11976_v61, %v7714_v34  ;;  %7844 = vmatprep.mubr.bf16.mxu0 %v5240_v56 }
 0x6e2   :  { %9302 = vtanh.f32 %v4978_v50  ;;  %v4985_v52 = vpop.f32.mrf.mxu1  ;;  %v7750_v2 = vpop.f32.mrf.mxu0  ;;  %7845 = vmatmul.mubr.bf16.gmra.mxu0 %v5241_v38 }
 0x6e3   :  { %v4986_v0 = vadd.f32 %v11976_v61, %v4985_v52  ;;  %v5372_v23 = vadd.f32 %v7750_v2, %v12005_v19  ;;  %v9289_v32 = vpop.eup %9288  ;;  %9304 = vtanh.f32 %v4994_v5 }
 0x6e4   :  { %v7715_v35 = vpop.f32.mrf.mxu1  ;;  %v5363_v57 = vpop.f32.mrf.mxu0 }
 0x6e5   :  { %v9291_v15 = vpop.eup %9290  ;;  %9306 = vtanh.f32 %v4986_v0  ;;  %v4997_v27 = vadd.f32 %v11976_v61, %v7715_v35  ;;  %v5364_v7 = vadd.f32 %v12005_v19, %v5363_v57 }
 0x6e6   :  { %v9293_v3 = vpop.eup %9292  ;;  %9308 = vtanh.f32 %v5372_v23  ;;  %v4988_v43 = vpop.f32.mrf.mxu1 }
 0x6e7   :  { %v7751_v54 = vpop.f32.mrf.mxu0  ;;  %v9295_v24 = vpop.eup %9294  ;;  %9310 = vtanh.f32 %v4997_v27  ;;  %v4989_v29 = vadd.f32 %v11976_v61, %v4988_v43  ;;  %v5242_v18 = vpack.c.bf16 %v9293_v3, %v9289_v32 }
 0x6e8   :  { %v5375_v22 = vadd.f32 %v7751_v54, %v12005_v19  ;;  %9312 = vtanh.f32 %v5364_v7  ;;  %v7718_v33 = vpop.f32.mrf.mxu1  ;;  %v5243_v6 = vpack.c.bf16 %v9291_v15, %v9295_v24 }
 0x6e9   :  { %v5366_v49 = vpop.f32.mrf.mxu0  ;;  %9314 = vtanh.f32 %v4989_v29  ;;  %v5010_v30 = vadd.f32 %v11976_v61, %v7718_v33  ;;  %7848 = vmatprep.mubr.bf16.mxu0 %v5242_v18 }
 0x6ea   :  { %v5367_v47 = vadd.f32 %v12005_v19, %v5366_v49  ;;  %9316 = vtanh.f32 %v5375_v22  ;;  %v5001_v25 = vpop.f32.mrf.mxu1  ;;  %7849 = vmatmul.mubr.bf16.gmra.mxu0 %v5243_v6  ;;  %v9297_v60 = vpop.eup %9296 }
 0x6eb   :  { %v7754_v45 = vpop.f32.mrf.mxu0  ;;  %9318 = vtanh.f32 %v5010_v30  ;;  %v5002_v59 = vadd.f32 %v11976_v61, %v5001_v25 }
 0x6ec   :  { %v5388_v21 = vadd.f32 %v7754_v45, %v12005_v19  ;;  %9320 = vtanh.f32 %v5367_v47  ;;  %v7719_v58 = vpop.f32.mrf.mxu1  ;;  %v9299_v62 = vpop.eup %9298 }
 0x6ed   :  { %v5379_v28 = vpop.f32.mrf.mxu0  ;;  %9322 = vtanh.f32 %v5002_v59  ;;  %v5013_v55 = vadd.f32 %v11976_v61, %v7719_v58 }
 0x6ee   :  { %v5380_v14 = vadd.f32 %v12005_v19, %v5379_v28  ;;  %v9301_v44 = vpop.eup %9300  ;;  %9324 = vtanh.f32 %v5388_v21  ;;  %v5004_v40 = vpop.f32.mrf.mxu1 }
 0x6ef   :  { %v7755_v51 = vpop.f32.mrf.mxu0  ;;  %v9303_v11 = vpop.eup %9302  ;;  %9326 = vtanh.f32 %v5013_v55  ;;  %v5005_v63 = vadd.f32 %v11976_v61, %v5004_v40  ;;  %v5244_v53 = vpack.c.bf16 %v9301_v44, %v9297_v60 }
 0x6f0   :  { %v5391_v9 = vadd.f32 %v7755_v51, %v12005_v19  ;;  %9328 = vtanh.f32 %v5380_v14  ;;  %v7722_v46 = vpop.f32.mrf.mxu1  ;;  %v5245_v4 = vpack.c.bf16 %v9299_v62, %v9303_v11  ;;  %v9305_v39 = vpop.eup %9304 }
 0x6f1   :  { %v5382_v48 = vpop.f32.mrf.mxu0  ;;  %9330 = vtanh.f32 %v5005_v63  ;;  %v5026_v1 = vadd.f32 %v11976_v61, %v7722_v46  ;;  %7852 = vmatprep.mubr.bf16.mxu0 %v5244_v53 }
 0x6f2   :  { %v5383_v16 = vadd.f32 %v12005_v19, %v5382_v48  ;;  %v9307_v20 = vpop.eup %9306  ;;  %9332 = vtanh.f32 %v5391_v9  ;;  %v5017_v37 = vpop.f32.mrf.mxu1  ;;  %7853 = vmatmul.mubr.bf16.gmra.mxu0 %v5245_v4 }
 0x6f3   :  { %v7758_v26 = vpop.f32.mrf.mxu0  ;;  %v9309_v12 = vpop.eup %9308  ;;  %9334 = vtanh.f32 %v5026_v1  ;;  %v5018_v50 = vadd.f32 %v11976_v61, %v5017_v37 }
 0x6f4   :  { %v5404_v10 = vadd.f32 %v7758_v26, %v12005_v19  ;;  %v9311_v17 = vpop.eup %9310  ;;  %9336 = vtanh.f32 %v5383_v16  ;;  %v7723_v13 = vpop.f32.mrf.mxu1  ;;  %v6011_v34 = vmul.f32 %v9309_v12, %v12027_v41 }
 0x6f5   :  { %v5395_v56 = vpop.f32.mrf.mxu0  ;;  %v9313_v38 = vpop.eup %9312  ;;  %9338 = vtanh.f32 %v5018_v50  ;;  %v5029_v5 = vadd.f32 %v11976_v61, %v7723_v13  ;;  %v5247_v54 = vpack.c.bf16 %v9311_v17, %v9305_v39 }
 0x6f6   :  { %v5396_v52 = vadd.f32 %v12005_v19, %v5395_v56  ;;  %v9315_v2 = vpop.eup %9314  ;;  %9340 = vtanh.f32 %v5404_v10  ;;  %6141 = vadd.xlane.f32.xlu0 %v6011_v34  ;;  %v5020_v0 = vpop.f32.mrf.mxu1  ;;  %v6009_v32 = vmul.f32 %v9313_v38, %v12027_v41 }
 0x6f7   :  { %v7759_v23 = vpop.f32.mrf.mxu0  ;;  %v9317_v35 = vpop.eup %9316  ;;  %9342 = vtanh.f32 %v5029_v5  ;;  %v5021_v57 = vadd.f32 %v11976_v61, %v5020_v0  ;;  %v5246_v27 = vpack.c.bf16 %v9315_v2, %v9307_v20 }
 0x6f8   :  { %v5407_v15 = vadd.f32 %v7759_v23, %v12005_v19  ;;  %v9319_v7 = vpop.eup %9318  ;;  %9344 = vtanh.f32 %v5396_v52  ;;  %6137 = vadd.xlane.f32.xlu1 %v6009_v32  ;;  %v7726_v3 = vpop.f32.mrf.mxu1  ;;  %v6012_v30 = vmul.f32 %v9317_v35, %v12027_v41 }
 0x6f9   :  { %v5398_v43 = vpop.f32.mrf.mxu0  ;;  %v9321_v24 = vpop.eup %9320  ;;  %9346 = vtanh.f32 %v5021_v57  ;;  %v5042_v29 = vadd.f32 %v11976_v61, %v7726_v3  ;;  %7856 = vmatprep.mubr.bf16.mxu0 %v5246_v27 }
 0x6fa   :  { %v5399_v22 = vadd.f32 %v12005_v19, %v5398_v43  ;;  %v9323_v18 = vpop.eup %9322  ;;  %9348 = vtanh.f32 %v5407_v15  ;;  %v5033_v33 = vpop.f32.mrf.mxu1  ;;  %7857 = vmatmul.mubr.bf16.gmra.mxu0 %v5247_v54  ;;  %v6010_v6 = vmul.f32 %v9321_v24, %v12027_v41 }
 0x6fb   :  { %v7762_v49 = vpop.f32.mrf.mxu0  ;;  %v9325_v47 = vpop.eup %9324  ;;  %9350 = vtanh.f32 %v5042_v29  ;;  %v5034_v42 = vadd.f32 %v11976_v61, %v5033_v33 }
 0x6fc   :  { %v5420_v25 = vadd.f32 %v7762_v49, %v12005_v19  ;;  %v9327_v45 = vpop.eup %9326  ;;  %9352 = vtanh.f32 %v5399_v22  ;;  %6139 = vadd.xlane.f32.xlu0 %v6010_v6  ;;  %6143 = vadd.xlane.f32.xlu1 %v6012_v30  ;;  %v7727_v59 = vpop.f32.mrf.mxu1  ;;  %v6015_v14 = vmul.f32 %v9325_v47, %v12027_v41 }
 0x6fd   :  { %v5411_v21 = vpop.f32.mrf.mxu0  ;;  %v9329_v60 = vpop.eup %9328  ;;  %9354 = vtanh.f32 %v5034_v42  ;;  %v5045_v58 = vadd.f32 %v11976_v61, %v7727_v59  ;;  %v5249_v48 = vpack.c.bf16 %v9327_v45, %v9319_v7 }
 0x6fe   :  { %v5412_v28 = vadd.f32 %v12005_v19, %v5411_v21  ;;  %v9331_v31 = vpop.eup %9330  ;;  %9356 = vtanh.f32 %v5420_v25  ;;  %v5036_v62 = vpop.f32.mrf.mxu1  ;;  %v6013_v20 = vmul.f32 %v9329_v60, %v12027_v41 }
 0x6ff   :  { %v7763_v55 = vpop.f32.mrf.mxu0  ;;  %v9333_v44 = vpop.eup %9332  ;;  %9358 = vtanh.f32 %v5045_v58  ;;  %v5037_v40 = vadd.f32 %v11976_v61, %v5036_v62  ;;  %v5248_v11 = vpack.c.bf16 %v9331_v31, %v9323_v18 }
 0x700   :  { %v5423_v51 = vadd.f32 %v7763_v55, %v12005_v19  ;;  %v9335_v63 = vpop.eup %9334  ;;  %9360 = vtanh.f32 %v5412_v28  ;;  %6149 = vadd.xlane.f32.xlu0 %v6015_v14  ;;  %v7730_v9 = vpop.f32.mrf.mxu1  ;;  %v6016_v46 = vmul.f32 %v9333_v44, %v12027_v41 }
 0x701   :  { %v5414_v53 = vpop.f32.mrf.mxu0  ;;  %v9337_v4 = vpop.eup %9336  ;;  %9362 = vtanh.f32 %v5037_v40  ;;  %v5058_v36 = vadd.f32 %v11976_v61, %v7730_v9  ;;  %7860 = vmatprep.mubr.bf16.mxu0 %v5248_v11 }
 0x702   :  { %v5415_v8 = vadd.f32 %v12005_v19, %v5414_v53  ;;  %v9339_v39 = vpop.eup %9338  ;;  %9364 = vtanh.f32 %v5423_v51  ;;  %6151 = vadd.xlane.f32.xlu1 %v6016_v46  ;;  %v5049_v1 = vpop.f32.mrf.mxu1  ;;  %7861 = vmatmul.mubr.bf16.gmra.mxu0 %v5249_v48  ;;  %v6014_v13 = vmul.f32 %v9337_v4, %v12027_v41 }
 0x703   :  { %v7766_v16 = vpop.f32.mrf.mxu0  ;;  %v9341_v37 = vpop.eup %9340  ;;  %9366 = vtanh.f32 %v5058_v36  ;;  %v5050_v26 = vadd.f32 %v11976_v61, %v5049_v1 }
 0x704   :  { %v5436_v12 = vadd.f32 %v7766_v16, %v12005_v19  ;;  %v9343_v50 = vpop.eup %9342  ;;  %9368 = vtanh.f32 %v5415_v8  ;;  %6145 = vadd.xlane.f32.xlu0 %v6013_v20  ;;  %v7731_v10 = vpop.f32.mrf.mxu1  ;;  %v6019_v0 = vmul.f32 %v9341_v37, %v12027_v41 }
 0x705   :  { %v5427_v17 = vpop.f32.mrf.mxu0  ;;  %v9345_v56 = vpop.eup %9344  ;;  %9370 = vtanh.f32 %v5050_v26  ;;  %v5061_v34 = vadd.f32 %v11976_v61, %v7731_v10  ;;  %v5251_v3 = vpack.c.bf16 %v9343_v50, %v9335_v63 }
 0x706   :  { %v5428_v38 = vadd.f32 %v12005_v19, %v5427_v17  ;;  %v9347_v5 = vpop.eup %9346  ;;  %9372 = vtanh.f32 %v5436_v12  ;;  %6147 = vadd.xlane.f32.xlu1 %v6014_v13  ;;  %v5052_v52 = vpop.f32.mrf.mxu1 }
 0x707   :  { %v7767_v2 = vpop.f32.mrf.mxu0  ;;  %v9349_v23 = vpop.eup %9348  ;;  %9374 = vtanh.f32 %v5061_v34  ;;  %v5053_v32 = vadd.f32 %v11976_v61, %v5052_v52  ;;  %v5250_v57 = vpack.c.bf16 %v9347_v5, %v9339_v39  ;;  %v6017_v61 = vmul.f32 %v9345_v56, %v12027_v41 }
 0x708   :  { %v5439_v35 = vadd.f32 %v7767_v2, %v12005_v19  ;;  %v9351_v15 = vpop.eup %9350  ;;  %9376 = vtanh.f32 %v5428_v38  ;;  %6157 = vadd.xlane.f32.xlu0 %v6019_v0  ;;  %v6020_v7 = vmul.f32 %v9349_v23, %v12027_v41 }
 0x709   :  { %v5430_v27 = vpop.f32.mrf.mxu0  ;;  %v9353_v43 = vpop.eup %9352  ;;  %9378 = vtanh.f32 %v5053_v32  ;;  %7864 = vmatprep.mubr.bf16.mxu0 %v5250_v57 }
 0x70a   :  { %v5431_v54 = vadd.f32 %v12005_v19, %v5430_v27  ;;  %v9355_v24 = vpop.eup %9354  ;;  %9380 = vtanh.f32 %v5439_v35  ;;  %6159 = vadd.xlane.f32.xlu1 %v6020_v7  ;;  %7865 = vmatmul.mubr.bf16.gmra.mxu0 %v5251_v3  ;;  %v6018_v6 = vmul.f32 %v9353_v43, %v12027_v41 }
 0x70b   :  { %v7770_v29 = vpop.f32.mrf.mxu0  ;;  %v9357_v22 = vpop.eup %9356 }
 0x70c   :  { %v5452_v18 = vadd.f32 %v7770_v29, %v12005_v19  ;;  %v9359_v33 = vpop.eup %9358  ;;  %9382 = vtanh.f32 %v5431_v54  ;;  %6153 = vadd.xlane.f32.xlu0 %v6017_v61  ;;  %v6023_v45 = vmul.f32 %v9357_v22, %v12027_v41 }
 0x70d   :  { %v5443_v49 = vpop.f32.mrf.mxu0  ;;  %v9361_v30 = vpop.eup %9360  ;;  %v5253_v62 = vpack.c.bf16 %v9359_v33, %v9351_v15 }
 0x70e   :  { %v9363_v47 = vpop.eup %9362  ;;  %9384 = vtanh.f32 %v5452_v18  ;;  %v5444_v42 = vadd.f32 %v12005_v19, %v5443_v49  ;;  %6155 = vadd.xlane.f32.xlu1 %v6018_v6  ;;  %v6021_v51 = vmul.f32 %v9361_v30, %v12027_v41 }
 0x70f   :  { %v7771_v25 = vpop.f32.mrf.mxu0  ;;  %v9365_v59 = vpop.eup %9364  ;;  %v5252_v60 = vpack.c.bf16 %v9363_v47, %v9355_v24 }
 0x710   :  { %v5455_v21 = vadd.f32 %v7771_v25, %v12005_v19  ;;  %v9367_v58 = vpop.eup %9366  ;;  %6165 = vadd.xlane.f32.xlu0 %v6023_v45  ;;  %v6024_v31 = vmul.f32 %v9365_v59, %v12027_v41 }
 0x711   :  { %v5446_v28 = vpop.f32.mrf.mxu0  ;;  %v9369_v55 = vpop.eup %9368  ;;  %7868 = vmatprep.mubr.bf16.mxu0 %v5252_v60 }
 0x712   :  { %9386 = vtanh.f32 %v5455_v21  ;;  %v5447_v14 = vadd.f32 %v12005_v19, %v5446_v28  ;;  %v9371_v44 = vpop.eup %9370  ;;  %6167 = vadd.xlane.f32.xlu1 %v6024_v31  ;;  %7869 = vmatmul.mubr.bf16.gmra.mxu0 %v5253_v62  ;;  %v6022_v46 = vmul.f32 %v9369_v55, %v12027_v41 }
 0x713   :  { %9388 = vtanh.f32 %v5444_v42  ;;  %v7774_v40 = vpop.f32.mrf.mxu0  ;;  %v9373_v11 = vpop.eup %9372 }
 0x714   :  { %v5468_v63 = vadd.f32 %v7774_v40, %v12005_v19  ;;  %v9375_v9 = vpop.eup %9374  ;;  %9390 = vtanh.f32 %v5447_v14  ;;  %6161 = vadd.xlane.f32.xlu0 %v6021_v51  ;;  %v6027_v39 = vmul.f32 %v9373_v11, %v12027_v41 }
 0x715   :  { %v5459_v53 = vpop.f32.mrf.mxu0  ;;  %v9377_v48 = vpop.eup %9376  ;;  %v5255_v12 = vpack.c.bf16 %v9375_v9, %v9367_v58 }
 0x716   :  { %v9379_v4 = vpop.eup %9378  ;;  %9392 = vtanh.f32 %v5468_v63  ;;  %v5460_v36 = vadd.f32 %v12005_v19, %v5459_v53  ;;  %6163 = vadd.xlane.f32.xlu1 %v6022_v46  ;;  %v6025_v13 = vmul.f32 %v9377_v48, %v12027_v41 }
 0x717   :  { %v7775_v8 = vpop.f32.mrf.mxu0  ;;  %v9381_v1 = vpop.eup %9380  ;;  %v5254_v20 = vpack.c.bf16 %v9379_v4, %v9371_v44 }
 0x718   :  { %v5471_v16 = vadd.f32 %v7775_v8, %v12005_v19  ;;  %6173 = vadd.xlane.f32.xlu0 %v6027_v39  ;;  %v6028_v26 = vmul.f32 %v9381_v1, %v12027_v41 }
 0x719   :  { %v5462_v37 = vpop.f32.mrf.mxu0  ;;  %v9383_v50 = vpop.eup %9382  ;;  %7872 = vmatprep.mubr.bf16.mxu0 %v5254_v20 }
 0x71a   :  { %9394 = vtanh.f32 %v5471_v16  ;;  %v5463_v10 = vadd.f32 %v12005_v19, %v5462_v37  ;;  %6175 = vadd.xlane.f32.xlu1 %v6028_v26  ;;  %7873 = vmatmul.mubr.bf16.gmra.mxu0 %v5255_v12  ;;  %v6026_v5 = vmul.f32 %v9383_v50, %v12027_v41 }
 0x71b   :  { %9396 = vtanh.f32 %v5460_v36  ;;  %v7778_v17 = vpop.f32.mrf.mxu0  ;;  %v9385_v56 = vpop.eup %9384 }
 0x71c   :  { %v5484_v34 = vadd.f32 %v7778_v17, %v12005_v19  ;;  %9398 = vtanh.f32 %v5463_v10  ;;  %6169 = vadd.xlane.f32.xlu0 %v6025_v13  ;;  %v6031_v23 = vmul.f32 %v9385_v56, %v12027_v41 }
 0x71d   :  { %v5475_v38 = vpop.f32.mrf.mxu0 }
 0x71e   :  { %9400 = vtanh.f32 %v5484_v34  ;;  %v5476_v2 = vadd.f32 %v12005_v19, %v5475_v38  ;;  %6171 = vadd.xlane.f32.xlu1 %v6026_v5 }
 0x71f   :  { %v9387_v52 = vpop.eup %9386  ;;  %v7779_v0 = vpop.f32.mrf.mxu0 }
 0x720   :  { %v9389_v32 = vpop.eup %9388  ;;  %v5487_v35 = vadd.f32 %v7779_v0, %v12005_v19  ;;  %v6032_v57 = vmul.f32 %v9387_v52, %v12027_v41  ;;  %6181 = vadd.xlane.f32.xlu0 %v6031_v23 }
 0x721   :  { %v5478_v15 = vpop.f32.mrf.mxu0  ;;  %v9391_v27 = vpop.eup %9390  ;;  %v6029_v43 = vmul.f32 %v9389_v32, %v12027_v41 }
 0x722   :  { %9402 = vtanh.f32 %v5487_v35  ;;  %v5479_v7 = vadd.f32 %v12005_v19, %v5478_v15  ;;  %6183 = vadd.xlane.f32.xlu1 %v6032_v57  ;;  %v6030_v61 = vmul.f32 %v9391_v27, %v12027_v41 }
 0x723   :  { %9404 = vtanh.f32 %v5476_v2  ;;  %v7782_v3 = vpop.f32.mrf.mxu0  ;;  %v9393_v54 = vpop.eup %9392 }
 0x724   :  { %v5500_v24 = vadd.f32 %v7782_v3, %v12005_v19  ;;  %9406 = vtanh.f32 %v5479_v7  ;;  %6177 = vadd.xlane.f32.xlu0 %v6029_v43  ;;  %v6035_v49 = vmul.f32 %v9393_v54, %v12027_v41 }
 0x725   :  { %v5491_v29 = vpop.f32.mrf.mxu0 }
 0x726   :  { %9408 = vtanh.f32 %v5500_v24  ;;  %v5492_v18 = vadd.f32 %v12005_v19, %v5491_v29  ;;  %6179 = vadd.xlane.f32.xlu1 %v6030_v61 }
 0x727   :  { %v9395_v22 = vpop.eup %9394  ;;  %v7783_v33 = vpop.f32.mrf.mxu0 }
 0x728   :  { %v9397_v6 = vpop.eup %9396  ;;  %v5503_v30 = vadd.f32 %v7783_v33, %v12005_v19  ;;  %v6036_v47 = vmul.f32 %v9395_v22, %v12027_v41  ;;  %6189 = vadd.xlane.f32.xlu0 %v6035_v49 }
 0x729   :  { %v5494_v42 = vpop.f32.mrf.mxu0  ;;  %v9399_v25 = vpop.eup %9398  ;;  %v6033_v21 = vmul.f32 %v9397_v6, %v12027_v41 }
 0x72a   :  { %9410 = vtanh.f32 %v5503_v30  ;;  %v5495_v45 = vadd.f32 %v12005_v19, %v5494_v42  ;;  %6191 = vadd.xlane.f32.xlu1 %v6036_v47  ;;  %v6034_v31 = vmul.f32 %v9399_v25, %v12027_v41 }
 0x72b   :  { %9412 = vtanh.f32 %v5492_v18  ;;  %v7786_v59 = vpop.f32.mrf.mxu0  ;;  %v9401_v60 = vpop.eup %9400 }
 0x72c   :  { %v5516_v58 = vadd.f32 %v7786_v59, %v12005_v19  ;;  %9414 = vtanh.f32 %v5495_v45  ;;  %6185 = vadd.xlane.f32.xlu0 %v6033_v21  ;;  %v6039_v44 = vmul.f32 %v9401_v60, %v12027_v41 }
 0x72d   :  { %v5507_v28 = vpop.f32.mrf.mxu0 }
 0x72e   :  { %9416 = vtanh.f32 %v5516_v58  ;;  %v5508_v55 = vadd.f32 %v12005_v19, %v5507_v28  ;;  %6187 = vadd.xlane.f32.xlu1 %v6034_v31 }
 0x72f   :  { %v9403_v62 = vpop.eup %9402  ;;  %v7787_v14 = vpop.f32.mrf.mxu0 }
 0x730   :  { %v9405_v40 = vpop.eup %9404  ;;  %v5519_v51 = vadd.f32 %v7787_v14, %v12005_v19  ;;  %v6040_v11 = vmul.f32 %v9403_v62, %v12027_v41  ;;  %6197 = vadd.xlane.f32.xlu0 %v6039_v44 }
 0x731   :  { %v5510_v63 = vpop.f32.mrf.mxu0  ;;  %v9407_v9 = vpop.eup %9406  ;;  %v6037_v48 = vmul.f32 %v9405_v40, %v12027_v41 }
 0x732   :  { %9418 = vtanh.f32 %v5519_v51  ;;  %v5511_v53 = vadd.f32 %v12005_v19, %v5510_v63  ;;  %6199 = vadd.xlane.f32.xlu1 %v6040_v11  ;;  %v6038_v39 = vmul.f32 %v9407_v9, %v12027_v41 }
 0x733   :  { %9420 = vtanh.f32 %v5508_v55  ;;  %v7790_v46 = vpop.f32.mrf.mxu0  ;;  %v9409_v4 = vpop.eup %9408 }
 0x734   :  { %v5532_v36 = vadd.f32 %v7790_v46, %v12005_v19  ;;  %9422 = vtanh.f32 %v5511_v53  ;;  %6193 = vadd.xlane.f32.xlu0 %v6037_v48  ;;  %v6043_v37 = vmul.f32 %v9409_v4, %v12027_v41 }
 0x735   :  { %v5523_v8 = vpop.f32.mrf.mxu0 }
 0x736   :  { %9424 = vtanh.f32 %v5532_v36  ;;  %v5524_v16 = vadd.f32 %v12005_v19, %v5523_v8  ;;  %6195 = vadd.xlane.f32.xlu1 %v6038_v39 }
 0x737   :  { %v9411_v1 = vpop.eup %9410  ;;  %v7791_v20 = vpop.f32.mrf.mxu0 }
 0x738   :  { %v9413_v26 = vpop.eup %9412  ;;  %v5535_v12 = vadd.f32 %v7791_v20, %v12005_v19  ;;  %v6044_v50 = vmul.f32 %v9411_v1, %v12027_v41  ;;  %6205 = vadd.xlane.f32.xlu0 %v6043_v37 }
 0x739   :  { %v5526_v10 = vpop.f32.mrf.mxu0  ;;  %v9415_v17 = vpop.eup %9414  ;;  %v6041_v34 = vmul.f32 %v9413_v26, %v12027_v41 }
 0x73a   :  { %9426 = vtanh.f32 %v5535_v12  ;;  %v5527_v13 = vadd.f32 %v12005_v19, %v5526_v10  ;;  %6207 = vadd.xlane.f32.xlu1 %v6044_v50  ;;  %v6042_v2 = vmul.f32 %v9415_v17, %v12027_v41 }
 0x73b   :  { %9428 = vtanh.f32 %v5524_v16  ;;  %v7794_v56 = vpop.f32.mrf.mxu0  ;;  %v9417_v38 = vpop.eup %9416 }
 0x73c   :  { %v5548_v5 = vadd.f32 %v7794_v56, %v12005_v19  ;;  %9430 = vtanh.f32 %v5527_v13  ;;  %6201 = vadd.xlane.f32.xlu0 %v6041_v34  ;;  %v6047_v35 = vmul.f32 %v9417_v38, %v12027_v41 }
 0x73d   :  { %v5539_v52 = vpop.f32.mrf.mxu0 }
 0x73e   :  { %9432 = vtanh.f32 %v5548_v5  ;;  %v5540_v23 = vadd.f32 %v12005_v19, %v5539_v52  ;;  %6203 = vadd.xlane.f32.xlu1 %v6042_v2 }
 0x73f   :  { %v9419_v0 = vpop.eup %9418  ;;  %v7795_v32 = vpop.f32.mrf.mxu0 }
 0x740   :  { %v9421_v57 = vpop.eup %9420  ;;  %v5551_v15 = vadd.f32 %v7795_v32, %v12005_v19  ;;  %v6048_v27 = vmul.f32 %v9419_v0, %v12027_v41  ;;  %6213 = vadd.xlane.f32.xlu0 %v6047_v35 }
 0x741   :  { %v5542_v7 = vpop.f32.mrf.mxu0  ;;  %v9423_v3 = vpop.eup %9422  ;;  %v6045_v24 = vmul.f32 %v9421_v57, %v12027_v41 }
 0x742   :  { %9434 = vtanh.f32 %v5551_v15  ;;  %v5543_v43 = vadd.f32 %v12005_v19, %v5542_v7  ;;  %6215 = vadd.xlane.f32.xlu1 %v6048_v27  ;;  %v6046_v18 = vmul.f32 %v9423_v3, %v12027_v41 }
 0x743   :  { %9436 = vtanh.f32 %v5540_v23  ;;  %v7798_v54 = vpop.f32.mrf.mxu0  ;;  %v9425_v29 = vpop.eup %9424 }
 0x744   :  { %v5564_v61 = vadd.f32 %v7798_v54, %v12005_v19  ;;  %9438 = vtanh.f32 %v5543_v43  ;;  %6209 = vadd.xlane.f32.xlu0 %v6045_v24  ;;  %v6051_v30 = vmul.f32 %v9425_v29, %v12027_v41 }
 0x745   :  { %v5555_v22 = vpop.f32.mrf.mxu0 }
 0x746   :  { %9440 = vtanh.f32 %v5564_v61  ;;  %v5556_v49 = vadd.f32 %v12005_v19, %v5555_v22  ;;  %6211 = vadd.xlane.f32.xlu1 %v6046_v18 }
 0x747   :  { %v9427_v33 = vpop.eup %9426  ;;  %v7799_v6 = vpop.f32.mrf.mxu0 }
 0x748   :  { %v9429_v47 = vpop.eup %9428  ;;  %v5567_v42 = vadd.f32 %v7799_v6, %v12005_v19  ;;  %v6052_v25 = vmul.f32 %v9427_v33, %v12027_v41  ;;  %6221 = vadd.xlane.f32.xlu0 %v6051_v30 }
 0x749   :  { %v5558_v45 = vpop.f32.mrf.mxu0  ;;  %v9431_v59 = vpop.eup %9430  ;;  %v6049_v58 = vmul.f32 %v9429_v47, %v12027_v41 }
 0x74a   :  { %9442 = vtanh.f32 %v5567_v42  ;;  %v5559_v21 = vadd.f32 %v12005_v19, %v5558_v45  ;;  %6223 = vadd.xlane.f32.xlu1 %v6052_v25  ;;  %v6050_v55 = vmul.f32 %v9431_v59, %v12027_v41 }
 0x74b   :  { %9444 = vtanh.f32 %v5556_v49  ;;  %v7802_v60 = vpop.f32.mrf.mxu0  ;;  %v9433_v28 = vpop.eup %9432 }
 0x74c   :  { %v5580_v31 = vadd.f32 %v7802_v60, %v12005_v19  ;;  %9446 = vtanh.f32 %v5559_v21  ;;  %6217 = vadd.xlane.f32.xlu0 %v6049_v58  ;;  %v6055_v51 = vmul.f32 %v9433_v28, %v12027_v41 }
 0x74d   :  { %v5571_v62 = vpop.f32.mrf.mxu0 }
 0x74e   :  { %9448 = vtanh.f32 %v5580_v31  ;;  %v5572_v44 = vadd.f32 %v12005_v19, %v5571_v62  ;;  %6219 = vadd.xlane.f32.xlu1 %v6050_v55 }
 0x74f   :  { %v9435_v14 = vpop.eup %9434  ;;  %v7803_v40 = vpop.f32.mrf.mxu0 }
 0x750   :  { %v9437_v11 = vpop.eup %9436  ;;  %v5583_v63 = vadd.f32 %v7803_v40, %v12005_v19  ;;  %v6056_v9 = vmul.f32 %v9435_v14, %v12027_v41  ;;  %6229 = vadd.xlane.f32.xlu0 %v6055_v51  ;;  %v12166_v51 = vld [vmem:[%s12947_s2 + $0x5] ss:$0 sm:$0xff] }
 0x751   :  { %v5574_v53 = vpop.f32.mrf.mxu0  ;;  %v9439_v46 = vpop.eup %9438  ;;  %v6053_v36 = vmul.f32 %v9437_v11, %v12027_v41 }
 0x752   :  { %9450 = vtanh.f32 %v5583_v63  ;;  %v5575_v48 = vadd.f32 %v12005_v19, %v5574_v53  ;;  %6231 = vadd.xlane.f32.xlu1 %v6056_v9  ;;  %v6054_v16 = vmul.f32 %v9439_v46, %v12027_v41 }
 0x753   :  { %9452 = vtanh.f32 %v5572_v44  ;;  %v7806_v4 = vpop.f32.mrf.mxu0  ;;  %v9441_v8 = vpop.eup %9440 }
 0x754   :  { %v5596_v39 = vadd.f32 %v7806_v4, %v12005_v19  ;;  %9454 = vtanh.f32 %v5575_v48  ;;  %6225 = vadd.xlane.f32.xlu0 %v6053_v36  ;;  %v6059_v12 = vmul.f32 %v9441_v8, %v12027_v41 }
 0x755   :  { %v5587_v1 = vpop.f32.mrf.mxu0 }
 0x756   :  { %9456 = vtanh.f32 %v5596_v39  ;;  %v5588_v37 = vadd.f32 %v12005_v19, %v5587_v1  ;;  %6227 = vadd.xlane.f32.xlu1 %v6054_v16 }
 0x757   :  { %v9443_v20 = vpop.eup %9442  ;;  %v7807_v26 = vpop.f32.mrf.mxu0 }
 0x758   :  { %v9445_v50 = vpop.eup %9444  ;;  %v5599_v10 = vadd.f32 %v7807_v26, %v12005_v19  ;;  %v6060_v17 = vmul.f32 %v9443_v20, %v12027_v41  ;;  %6237 = vadd.xlane.f32.xlu0 %v6059_v12 }
 0x759   :  { %v5590_v13 = vpop.f32.mrf.mxu0  ;;  %v9447_v56 = vpop.eup %9446  ;;  %v6057_v5 = vmul.f32 %v9445_v50, %v12027_v41 }
 0x75a   :  { %9458 = vtanh.f32 %v5599_v10  ;;  %v5591_v34 = vadd.f32 %v12005_v19, %v5590_v13  ;;  %6239 = vadd.xlane.f32.xlu1 %v6060_v17  ;;  %v6058_v23 = vmul.f32 %v9447_v56, %v12027_v41 }
 0x75b   :  { %9460 = vtanh.f32 %v5588_v37  ;;  %v7810_v38 = vpop.f32.mrf.mxu0  ;;  %v9449_v52 = vpop.eup %9448 }
 0x75c   :  { %v5612_v2 = vadd.f32 %v7810_v38, %v12005_v19  ;;  %9462 = vtanh.f32 %v5591_v34  ;;  %6233 = vadd.xlane.f32.xlu0 %v6057_v5  ;;  %v6063_v15 = vmul.f32 %v9449_v52, %v12027_v41 }
 0x75d   :  { %v5603_v0 = vpop.f32.mrf.mxu0 }
 0x75e   :  { %9464 = vtanh.f32 %v5612_v2  ;;  %v5604_v35 = vadd.f32 %v12005_v19, %v5603_v0  ;;  %6235 = vadd.xlane.f32.xlu1 %v6058_v23 }
 0x75f   :  { %v9451_v32 = vpop.eup %9450  ;;  %v7811_v57 = vpop.f32.mrf.mxu0 }
 0x760   :  { %v9453_v27 = vpop.eup %9452  ;;  %v5615_v7 = vadd.f32 %v7811_v57, %v12005_v19  ;;  %v6064_v3 = vmul.f32 %v9451_v32, %v12027_v41  ;;  %6245 = vadd.xlane.f32.xlu0 %v6063_v15  ;;  %v12187_v57 = vld [vmem:[%s12947_s2 + $0x6] ss:$0 sm:$0xff] }
 0x761   :  { %v5606_v43 = vpop.f32.mrf.mxu0  ;;  %v9455_v54 = vpop.eup %9454  ;;  %v6061_v61 = vmul.f32 %v9453_v27, %v12027_v41 }
 0x762   :  { %9466 = vtanh.f32 %v5615_v7  ;;  %v5607_v24 = vadd.f32 %v12005_v19, %v5606_v43  ;;  %6247 = vadd.xlane.f32.xlu1 %v6064_v3  ;;  %v6062_v49 = vmul.f32 %v9455_v54, %v12027_v41 }
 0x763   :  { %9468 = vtanh.f32 %v5604_v35  ;;  %v7814_v29 = vpop.f32.mrf.mxu0  ;;  %v9457_v22 = vpop.eup %9456 }
 0x764   :  { %v5628_v18 = vadd.f32 %v7814_v29, %v12005_v19  ;;  %9470 = vtanh.f32 %v5607_v24  ;;  %6241 = vadd.xlane.f32.xlu0 %v6061_v61  ;;  %v6067_v42 = vmul.f32 %v9457_v22, %v12027_v41 }
 0x765   :  { %v5619_v33 = vpop.f32.mrf.mxu0 }
 0x766   :  { %9472 = vtanh.f32 %v5628_v18  ;;  %v5620_v30 = vadd.f32 %v12005_v19, %v5619_v33  ;;  %6243 = vadd.xlane.f32.xlu1 %v6062_v49 }
 0x767   :  { %v9459_v6 = vpop.eup %9458  ;;  %v7815_v47 = vpop.f32.mrf.mxu0 }
 0x768   :  { %v9461_v25 = vpop.eup %9460  ;;  %v5631_v45 = vadd.f32 %v7815_v47, %v12005_v19  ;;  %v6068_v59 = vmul.f32 %v9459_v6, %v12027_v41  ;;  %6253 = vadd.xlane.f32.xlu0 %v6067_v42 }
 0x769   :  { %v5622_v21 = vpop.f32.mrf.mxu0  ;;  %v9463_v60 = vpop.eup %9462  ;;  %v6065_v31 = vmul.f32 %v9461_v25, %v12027_v41 }
 0x76a   :  { %9474 = vtanh.f32 %v5631_v45  ;;  %v5623_v58 = vadd.f32 %v12005_v19, %v5622_v21  ;;  %6255 = vadd.xlane.f32.xlu1 %v6068_v59  ;;  %v6066_v44 = vmul.f32 %v9463_v60, %v12027_v41 }
 0x76b   :  { %9476 = vtanh.f32 %v5620_v30  ;;  %v7818_v28 = vpop.f32.mrf.mxu0  ;;  %v9465_v62 = vpop.eup %9464 }
 0x76c   :  { %v5644_v55 = vadd.f32 %v7818_v28, %v12005_v19  ;;  %9478 = vtanh.f32 %v5623_v58  ;;  %6249 = vadd.xlane.f32.xlu0 %v6065_v31  ;;  %v6071_v9 = vmul.f32 %v9465_v62, %v12027_v41 }
 0x76d   :  { %v5635_v14 = vpop.f32.mrf.mxu0 }
 0x76e   :  { %9480 = vtanh.f32 %v5644_v55  ;;  %v5636_v11 = vadd.f32 %v12166_v51, %v5635_v14  ;;  %6251 = vadd.xlane.f32.xlu1 %v6066_v44 }
 0x76f   :  { %v9467_v40 = vpop.eup %9466  ;;  %v7819_v63 = vpop.f32.mrf.mxu0 }
 0x770   :  { %v9469_v53 = vpop.eup %9468  ;;  %v5647_v19 = vadd.f32 %v12166_v51, %v7819_v63  ;;  %v6072_v46 = vmul.f32 %v9467_v40, %v12027_v41  ;;  %6261 = vadd.xlane.f32.xlu0 %v6071_v9 }
 0x771   :  { %v5638_v48 = vpop.f32.mrf.mxu0  ;;  %v9471_v4 = vpop.eup %9470  ;;  %v6069_v39 = vmul.f32 %v9469_v53, %v12027_v41 }
 0x772   :  { %9482 = vtanh.f32 %v5647_v19  ;;  %v5639_v36 = vadd.f32 %v12166_v51, %v5638_v48  ;;  %6263 = vadd.xlane.f32.xlu1 %v6072_v46  ;;  %v6070_v37 = vmul.f32 %v9471_v4, %v12027_v41 }
 0x773   :  { %9484 = vtanh.f32 %v5636_v11  ;;  %v7822_v8 = vpop.f32.mrf.mxu0  ;;  %v9473_v1 = vpop.eup %9472 }
 0x774   :  { %v5660_v16 = vadd.f32 %v12166_v51, %v7822_v8  ;;  %9486 = vtanh.f32 %v5639_v36  ;;  %6257 = vadd.xlane.f32.xlu0 %v6069_v39  ;;  %v6075_v10 = vmul.f32 %v9473_v1, %v12027_v41 }
 0x775   :  { %v5651_v20 = vpop.f32.mrf.mxu0 }
 0x776   :  { %9488 = vtanh.f32 %v5660_v16  ;;  %v5652_v12 = vadd.f32 %v12166_v51, %v5651_v20  ;;  %6259 = vadd.xlane.f32.xlu1 %v6070_v37 }
 0x777   :  { %v9475_v26 = vpop.eup %9474  ;;  %v7823_v50 = vpop.f32.mrf.mxu0 }
 0x778   :  { %v9477_v17 = vpop.eup %9476  ;;  %v5663_v13 = vadd.f32 %v12166_v51, %v7823_v50  ;;  %v6076_v56 = vmul.f32 %v9475_v26, %v12027_v41  ;;  %6269 = vadd.xlane.f32.xlu0 %v6075_v10 }
 0x779   :  { %v5654_v34 = vpop.f32.mrf.mxu0  ;;  %v9479_v38 = vpop.eup %9478  ;;  %v6073_v2 = vmul.f32 %v9477_v17, %v12027_v41 }
 0x77a   :  { %9490 = vtanh.f32 %v5663_v13  ;;  %v5655_v5 = vadd.f32 %v12166_v51, %v5654_v34  ;;  %6271 = vadd.xlane.f32.xlu1 %v6076_v56  ;;  %v6074_v35 = vmul.f32 %v9479_v38, %v12027_v41 }
 0x77b   :  { %9492 = vtanh.f32 %v5652_v12  ;;  %v7826_v52 = vpop.f32.mrf.mxu0  ;;  %v9481_v0 = vpop.eup %9480 }
 0x77c   :  { %v5676_v23 = vadd.f32 %v12166_v51, %v7826_v52  ;;  %9494 = vtanh.f32 %v5655_v5  ;;  %6265 = vadd.xlane.f32.xlu0 %v6073_v2  ;;  %v6079_v3 = vmul.f32 %v9481_v0, %v12027_v41 }
 0x77d   :  { %v5667_v32 = vpop.f32.mrf.mxu0 }
 0x77e   :  { %9496 = vtanh.f32 %v5676_v23  ;;  %v5668_v27 = vadd.f32 %v12166_v51, %v5667_v32  ;;  %6267 = vadd.xlane.f32.xlu1 %v6074_v35 }
 0x77f   :  { %v9483_v15 = vpop.eup %9482  ;;  %v7827_v7 = vpop.f32.mrf.mxu0 }
 0x780   :  { %v9485_v43 = vpop.eup %9484  ;;  %v6142_v54 = vpop.xlane.xlu0 %6141  ;;  %v5679_v24 = vadd.f32 %v12166_v51, %v7827_v7  ;;  %v6080_v29 = vmul.f32 %v9483_v15, %v12027_v41  ;;  %6277 = vadd.xlane.f32.xlu0 %v6079_v3 }
 0x781   :  { %v6403_v61 = vadd.f32 %v12187_v57, %v6142_v54  ;;  %v5670_v22 = vpop.f32.mrf.mxu0  ;;  %v9487_v18 = vpop.eup %9486  ;;  %v6077_v42 = vmul.f32 %v9485_v43, %v12027_v41 }
 0x782   :  { %9498 = vtanh.f32 %v5679_v24  ;;  %v5671_v33 = vadd.f32 %v12166_v51, %v5670_v22  ;;  %v6138_v49 = vpop.xlane.xlu1 %6137  ;;  %6279 = vadd.xlane.f32.xlu1 %v6080_v29  ;;  %v6078_v59 = vmul.f32 %v9487_v18, %v12027_v41 }
 0x783   :  { %v9489_v6 = vpop.eup %9488  ;;  %9500 = vtanh.f32 %v5668_v27  ;;  %6532 = vst.msk [vmem:[%s12948_s3 + $0x10] sm:$0xff] %vm6529_vm0, %v6403_v61  ;;  %v6401_v30 = vadd.f32 %v12187_v57, %v6138_v49  ;;  %v7830_v47 = vpop.f32.mrf.mxu0 }
 0x784   :  { %v5692_v25 = vadd.f32 %v12166_v51, %v7830_v47  ;;  %9502 = vtanh.f32 %v5671_v33  ;;  %6273 = vadd.xlane.f32.xlu0 %v6077_v42  ;;  %v6083_v58 = vmul.f32 %v9489_v6, %v12027_v41 }
 0x785   :  { %6530 = vst.msk [vmem:[%s12948_s3] sm:$0xff] %vm6529_vm0, %v6401_v30  ;;  %v5683_v45 = vpop.f32.mrf.mxu0  ;;  %v6140_v21 = vpop.xlane.xlu0 %6139 }
 0x786   :  { %v6144_v60 = vpop.xlane.xlu1 %6143  ;;  %9504 = vtanh.f32 %v5692_v25  ;;  %v5684_v31 = vadd.f32 %v12166_v51, %v5683_v45  ;;  %v6402_v62 = vadd.f32 %v12187_v57, %v6140_v21  ;;  %6275 = vadd.xlane.f32.xlu1 %v6078_v59 }
 0x787   :  { %v9491_v28 = vpop.eup %9490  ;;  %v6404_v55 = vadd.f32 %v12187_v57, %v6144_v60  ;;  %v7831_v14 = vpop.f32.mrf.mxu0 }
 0x788   :  { %v9493_v44 = vpop.eup %9492  ;;  %v5695_v40 = vadd.f32 %v12166_v51, %v7831_v14  ;;  %v6084_v11 = vmul.f32 %v9491_v28, %v12027_v41  ;;  %6531 = vst.msk [vmem:[%s12948_s3 + $0x8] sm:$0xff] %vm6529_vm0, %v6402_v62  ;;  %6285 = vadd.xlane.f32.xlu0 %v6083_v58 }
 0x789   :  { %6533 = vst.msk [vmem:[%s12948_s3 + $0x18] sm:$0xff] %vm6529_vm0, %v6404_v55  ;;  %v5686_v63 = vpop.f32.mrf.mxu0  ;;  %v9495_v9 = vpop.eup %9494  ;;  %v6081_v4 = vmul.f32 %v9493_v44, %v12027_v41 }
 0x78a   :  { %9506 = vtanh.f32 %v5695_v40  ;;  %v5687_v53 = vadd.f32 %v12166_v51, %v5686_v63  ;;  %v6150_v19 = vpop.xlane.xlu0 %6149  ;;  %6287 = vadd.xlane.f32.xlu1 %v6084_v11  ;;  %v6082_v20 = vmul.f32 %v9495_v9, %v12027_v41 }
 0x78b   :  { %9508 = vtanh.f32 %v5684_v31  ;;  %v6407_v46 = vadd.f32 %v12187_v57, %v6150_v19  ;;  %v7834_v48 = vpop.f32.mrf.mxu0  ;;  %v9497_v36 = vpop.eup %9496 }
 0x78c   :  { %v5708_v8 = vadd.f32 %v12166_v51, %v7834_v48  ;;  %v6152_v39 = vpop.xlane.xlu1 %6151  ;;  %9510 = vtanh.f32 %v5687_v53  ;;  %6281 = vadd.xlane.f32.xlu0 %v6081_v4  ;;  %v6087_v17 = vmul.f32 %v9497_v36, %v12027_v41 }
 0x78d   :  { %6536 = vst.msk [vmem:[%s12948_s3 + $0x30] sm:$0xff] %vm6529_vm0, %v6407_v46  ;;  %v6408_v1 = vadd.f32 %v12187_v57, %v6152_v39  ;;  %v5699_v16 = vpop.f32.mrf.mxu0 }
 0x78e   :  { %v6146_v37 = vpop.xlane.xlu0 %6145  ;;  %9512 = vtanh.f32 %v5708_v8  ;;  %v5700_v12 = vadd.f32 %v12166_v51, %v5699_v16  ;;  %6283 = vadd.xlane.f32.xlu1 %v6082_v20 }
 0x78f   :  { %v9499_v26 = vpop.eup %9498  ;;  %6537 = vst.msk [vmem:[%s12948_s3 + $0x38] sm:$0xff] %vm6529_vm0, %v6408_v1  ;;  %v6405_v50 = vadd.f32 %v12187_v57, %v6146_v37  ;;  %v7835_v10 = vpop.f32.mrf.mxu0 }
 0x790   :  { %v9501_v13 = vpop.eup %9500  ;;  %v5711_v56 = vadd.f32 %v12166_v51, %v7835_v10  ;;  %v6148_v34 = vpop.xlane.xlu1 %6147  ;;  %v6088_v38 = vmul.f32 %v9499_v26, %v12027_v41  ;;  %6293 = vadd.xlane.f32.xlu0 %v6087_v17 }
 0x791   :  { %6534 = vst.msk [vmem:[%s12948_s3 + $0x20] sm:$0xff] %vm6529_vm0, %v6405_v50  ;;  %v6406_v5 = vadd.f32 %v12187_v57, %v6148_v34  ;;  %v5702_v52 = vpop.f32.mrf.mxu0  ;;  %v9503_v2 = vpop.eup %9502  ;;  %v6085_v15 = vmul.f32 %v9501_v13, %v12027_v41 }
 0x792   :  { %9514 = vtanh.f32 %v5711_v56  ;;  %v5703_v0 = vadd.f32 %v12166_v51, %v5702_v52  ;;  %v6158_v23 = vpop.xlane.xlu0 %6157  ;;  %6295 = vadd.xlane.f32.xlu1 %v6088_v38  ;;  %v6086_v24 = vmul.f32 %v9503_v2, %v12027_v41 }
 0x793   :  { %9516 = vtanh.f32 %v5700_v12  ;;  %6535 = vst.msk [vmem:[%s12948_s3 + $0x28] sm:$0xff] %vm6529_vm0, %v6406_v5  ;;  %v6411_v32 = vadd.f32 %v12187_v57, %v6158_v23  ;;  %v7838_v35 = vpop.f32.mrf.mxu0  ;;  %v9505_v27 = vpop.eup %9504 }
 0x794   :  { %v5724_v7 = vadd.f32 %v12166_v51, %v7838_v35  ;;  %v6160_v3 = vpop.xlane.xlu1 %6159  ;;  %9518 = vtanh.f32 %v5703_v0  ;;  %6289 = vadd.xlane.f32.xlu0 %v6085_v15  ;;  %v6091_v49 = vmul.f32 %v9505_v27, %v12027_v41 }
 0x795   :  { %6540 = vst.msk [vmem:[%s12948_s3 + $0x50] sm:$0xff] %vm6529_vm0, %v6411_v32  ;;  %v6412_v43 = vadd.f32 %v12187_v57, %v6160_v3  ;;  %v5715_v54 = vpop.f32.mrf.mxu0 }
 0x796   :  { %v6154_v29 = vpop.xlane.xlu0 %6153  ;;  %9520 = vtanh.f32 %v5724_v7  ;;  %v5716_v22 = vadd.f32 %v12166_v51, %v5715_v54  ;;  %6291 = vadd.xlane.f32.xlu1 %v6086_v24 }
 0x797   :  { %v9507_v61 = vpop.eup %9506  ;;  %6541 = vst.msk [vmem:[%s12948_s3 + $0x58] sm:$0xff] %vm6529_vm0, %v6412_v43  ;;  %v6409_v18 = vadd.f32 %v12187_v57, %v6154_v29  ;;  %v7839_v33 = vpop.f32.mrf.mxu0 }
 0x798   :  { %v9509_v6 = vpop.eup %9508  ;;  %v5727_v30 = vadd.f32 %v12166_v51, %v7839_v33  ;;  %v6156_v47 = vpop.xlane.xlu1 %6155  ;;  %v6092_v42 = vmul.f32 %v9507_v61, %v12027_v41  ;;  %6301 = vadd.xlane.f32.xlu0 %v6091_v49 }
 0x799   :  { %6538 = vst.msk [vmem:[%s12948_s3 + $0x40] sm:$0xff] %vm6529_vm0, %v6409_v18  ;;  %v6410_v25 = vadd.f32 %v12187_v57, %v6156_v47  ;;  %v5718_v45 = vpop.f32.mrf.mxu0  ;;  %v9511_v59 = vpop.eup %9510  ;;  %v6089_v31 = vmul.f32 %v9509_v6, %v12027_v41 }
 0x79a   :  { %9522 = vtanh.f32 %v5727_v30  ;;  %v5719_v21 = vadd.f32 %v12166_v51, %v5718_v45  ;;  %v6166_v60 = vpop.xlane.xlu0 %6165  ;;  %6303 = vadd.xlane.f32.xlu1 %v6092_v42  ;;  %v6090_v11 = vmul.f32 %v9511_v59, %v12027_v41 }
 0x79b   :  { %9524 = vtanh.f32 %v5716_v22  ;;  %6539 = vst.msk [vmem:[%s12948_s3 + $0x48] sm:$0xff] %vm6529_vm0, %v6410_v25  ;;  %v6415_v58 = vadd.f32 %v12187_v57, %v6166_v60  ;;  %v7842_v28 = vpop.f32.mrf.mxu0  ;;  %v9513_v62 = vpop.eup %9512 }
 0x79c   :  { %v5740_v55 = vadd.f32 %v12166_v51, %v7842_v28  ;;  %v6168_v14 = vpop.xlane.xlu1 %6167  ;;  %9526 = vtanh.f32 %v5719_v21  ;;  %6297 = vadd.xlane.f32.xlu0 %v6089_v31  ;;  %v6095_v48 = vmul.f32 %v9513_v62, %v12027_v41 }
 0x79d   :  { %6544 = vst.msk [vmem:[%s12948_s3 + $0x70] sm:$0xff] %vm6529_vm0, %v6415_v58  ;;  %v6416_v44 = vadd.f32 %v12187_v57, %v6168_v14  ;;  %v5731_v40 = vpop.f32.mrf.mxu0 }
 0x79e   :  { %v6162_v63 = vpop.xlane.xlu0 %6161  ;;  %9528 = vtanh.f32 %v5740_v55  ;;  %v5732_v53 = vadd.f32 %v12166_v51, %v5731_v40  ;;  %6299 = vadd.xlane.f32.xlu1 %v6090_v11 }
 0x79f   :  { %v9515_v9 = vpop.eup %9514  ;;  %6545 = vst.msk [vmem:[%s12948_s3 + $0x78] sm:$0xff] %vm6529_vm0, %v6416_v44  ;;  %v6413_v19 = vadd.f32 %v12187_v57, %v6162_v63  ;;  %v7843_v46 = vpop.f32.mrf.mxu0 }
 0x7a0   :  { %v9517_v4 = vpop.eup %9516  ;;  %v5743_v36 = vadd.f32 %v12166_v51, %v7843_v46  ;;  %v6164_v8 = vpop.xlane.xlu1 %6163  ;;  %v6096_v39 = vmul.f32 %v9515_v9, %v12027_v41  ;;  %6309 = vadd.xlane.f32.xlu0 %v6095_v48 }
 0x7a1   :  { %6542 = vst.msk [vmem:[%s12948_s3 + $0x60] sm:$0xff] %vm6529_vm0, %v6413_v19  ;;  %v6414_v1 = vadd.f32 %v12187_v57, %v6164_v8  ;;  %v5734_v16 = vpop.f32.mrf.mxu0  ;;  %v9519_v20 = vpop.eup %9518  ;;  %v6093_v10 = vmul.f32 %v9517_v4, %v12027_v41 }
 0x7a2   :  { %9530 = vtanh.f32 %v5743_v36  ;;  %v5735_v37 = vadd.f32 %v12166_v51, %v5734_v16  ;;  %v6174_v26 = vpop.xlane.xlu0 %6173  ;;  %6311 = vadd.xlane.f32.xlu1 %v6096_v39  ;;  %v6094_v5 = vmul.f32 %v9519_v20, %v12027_v41 }
 0x7a3   :  { %9532 = vtanh.f32 %v5732_v53  ;;  %6543 = vst.msk [vmem:[%s12948_s3 + $0x68] sm:$0xff] %vm6529_vm0, %v6414_v1  ;;  %v6419_v12 = vadd.f32 %v12187_v57, %v6174_v26  ;;  %v7846_v50 = vpop.f32.mrf.mxu0  ;;  %v9521_v17 = vpop.eup %9520 }
 0x7a4   :  { %v5756_v13 = vadd.f32 %v12166_v51, %v7846_v50  ;;  %v6176_v56 = vpop.xlane.xlu1 %6175  ;;  %9534 = vtanh.f32 %v5735_v37  ;;  %6305 = vadd.xlane.f32.xlu0 %v6093_v10  ;;  %v6099_v35 = vmul.f32 %v9521_v17, %v12027_v41 }
 0x7a5   :  { %6548 = vst.msk [vmem:[%s12948_s3 + $0x90] sm:$0xff] %vm6529_vm0, %v6419_v12  ;;  %v6420_v34 = vadd.f32 %v12187_v57, %v6176_v56  ;;  %v5747_v38 = vpop.f32.mrf.mxu0 }
 0x7a6   :  { %v6170_v52 = vpop.xlane.xlu0 %6169  ;;  %9536 = vtanh.f32 %v5756_v13  ;;  %v5748_v0 = vadd.f32 %v12166_v51, %v5747_v38  ;;  %6307 = vadd.xlane.f32.xlu1 %v6094_v5 }
 0x7a7   :  { %v9523_v2 = vpop.eup %9522  ;;  %6549 = vst.msk [vmem:[%s12948_s3 + $0x98] sm:$0xff] %vm6529_vm0, %v6420_v34  ;;  %v6417_v23 = vadd.f32 %v12187_v57, %v6170_v52  ;;  %v7847_v32 = vpop.f32.mrf.mxu0 }
 0x7a8   :  { %v9525_v15 = vpop.eup %9524  ;;  %v5759_v27 = vadd.f32 %v12166_v51, %v7847_v32  ;;  %v6172_v7 = vpop.xlane.xlu1 %6171  ;;  %v6100_v3 = vmul.f32 %v9523_v2, %v12027_v41  ;;  %6317 = vadd.xlane.f32.xlu0 %v6099_v35 }
 0x7a9   :  { %6546 = vst.msk [vmem:[%s12948_s3 + $0x80] sm:$0xff] %vm6529_vm0, %v6417_v23  ;;  %v6418_v43 = vadd.f32 %v12187_v57, %v6172_v7  ;;  %v5750_v54 = vpop.f32.mrf.mxu0  ;;  %v9527_v24 = vpop.eup %9526  ;;  %v6097_v33 = vmul.f32 %v9525_v15, %v12027_v41 }
 0x7aa   :  { %9538 = vtanh.f32 %v5759_v27  ;;  %v5751_v29 = vadd.f32 %v12166_v51, %v5750_v54  ;;  %v6182_v61 = vpop.xlane.xlu0 %6181  ;;  %6319 = vadd.xlane.f32.xlu1 %v6100_v3  ;;  %v6098_v25 = vmul.f32 %v9527_v24, %v12027_v41 }
 0x7ab   :  { %9540 = vtanh.f32 %v5748_v0  ;;  %6547 = vst.msk [vmem:[%s12948_s3 + $0x88] sm:$0xff] %vm6529_vm0, %v6418_v43  ;;  %v6423_v22 = vadd.f32 %v12187_v57, %v6182_v61  ;;  %v7850_v18 = vpop.f32.mrf.mxu0  ;;  %v9529_v49 = vpop.eup %9528 }
 0x7ac   :  { %v5772_v6 = vadd.f32 %v12166_v51, %v7850_v18  ;;  %v6184_v30 = vpop.xlane.xlu1 %6183  ;;  %9542 = vtanh.f32 %v5751_v29  ;;  %6313 = vadd.xlane.f32.xlu0 %v6097_v33  ;;  %v6103_v28 = vmul.f32 %v9529_v49, %v12027_v41 }
 0x7ad   :  { %6552 = vst.msk [vmem:[%s12948_s3 + $0xb0] sm:$0xff] %vm6529_vm0, %v6423_v22  ;;  %v6424_v47 = vadd.f32 %v12187_v57, %v6184_v30  ;;  %v5763_v42 = vpop.f32.mrf.mxu0 }
 0x7ae   :  { %v6178_v45 = vpop.xlane.xlu0 %6177  ;;  %9544 = vtanh.f32 %v5772_v6  ;;  %v5764_v21 = vadd.f32 %v12166_v51, %v5763_v42  ;;  %6315 = vadd.xlane.f32.xlu1 %v6098_v25 }
 0x7af   :  { %v9531_v59 = vpop.eup %9530  ;;  %6553 = vst.msk [vmem:[%s12948_s3 + $0xb8] sm:$0xff] %vm6529_vm0, %v6424_v47  ;;  %v6421_v60 = vadd.f32 %v12187_v57, %v6178_v45  ;;  %v7851_v58 = vpop.f32.mrf.mxu0 }
 0x7b0   :  { %v9533_v31 = vpop.eup %9532  ;;  %v5775_v62 = vadd.f32 %v12166_v51, %v7851_v58  ;;  %v6180_v55 = vpop.xlane.xlu1 %6179  ;;  %v6104_v14 = vmul.f32 %v9531_v59, %v12027_v41  ;;  %6325 = vadd.xlane.f32.xlu0 %v6103_v28 }
 0x7b1   :  { %6550 = vst.msk [vmem:[%s12948_s3 + $0xa0] sm:$0xff] %vm6529_vm0, %v6421_v60  ;;  %v6422_v44 = vadd.f32 %v12187_v57, %v6180_v55  ;;  %v5766_v40 = vpop.f32.mrf.mxu0  ;;  %v9535_v11 = vpop.eup %9534  ;;  %v6101_v46 = vmul.f32 %v9533_v31, %v12027_v41 }
 0x7b2   :  { %9546 = vtanh.f32 %v5775_v62  ;;  %v5767_v63 = vadd.f32 %v12166_v51, %v5766_v40  ;;  %v6190_v9 = vpop.xlane.xlu0 %6189  ;;  %6327 = vadd.xlane.f32.xlu1 %v6104_v14  ;;  %v6102_v1 = vmul.f32 %v9535_v11, %v12027_v41 }
 0x7b3   :  { %9548 = vtanh.f32 %v5764_v21  ;;  %6551 = vst.msk [vmem:[%s12948_s3 + $0xa8] sm:$0xff] %vm6529_vm0, %v6422_v44  ;;  %v6427_v53 = vadd.f32 %v12187_v57, %v6190_v9  ;;  %v7854_v19 = vpop.f32.mrf.mxu0  ;;  %v9537_v48 = vpop.eup %9536 }
 0x7b4   :  { %v5788_v4 = vadd.f32 %v12166_v51, %v7854_v19  ;;  %v6192_v36 = vpop.xlane.xlu1 %6191  ;;  %9550 = vtanh.f32 %v5767_v63  ;;  %6321 = vadd.xlane.f32.xlu0 %v6101_v46  ;;  %v6107_v50 = vmul.f32 %v9537_v48, %v12027_v41 }
 0x7b5   :  { %6556 = vst.msk [vmem:[%s12948_s3 + $0xd0] sm:$0xff] %vm6529_vm0, %v6427_v53  ;;  %v6428_v8 = vadd.f32 %v12187_v57, %v6192_v36  ;;  %v5779_v39 = vpop.f32.mrf.mxu0 }
 0x7b6   :  { %v6186_v16 = vpop.xlane.xlu0 %6185  ;;  %9552 = vtanh.f32 %v5788_v4  ;;  %v5780_v37 = vadd.f32 %v12166_v51, %v5779_v39  ;;  %6323 = vadd.xlane.f32.xlu1 %v6102_v1 }
 0x7b7   :  { %v9539_v20 = vpop.eup %9538  ;;  %6557 = vst.msk [vmem:[%s12948_s3 + $0xd8] sm:$0xff] %vm6529_vm0, %v6428_v8  ;;  %v6425_v26 = vadd.f32 %v12187_v57, %v6186_v16  ;;  %v7855_v12 = vpop.f32.mrf.mxu0 }
 0x7b8   :  { %v9541_v10 = vpop.eup %9540  ;;  %v5791_v17 = vadd.f32 %v12166_v51, %v7855_v12  ;;  %v6188_v13 = vpop.xlane.xlu1 %6187  ;;  %v6108_v56 = vmul.f32 %v9539_v20, %v12027_v41  ;;  %6333 = vadd.xlane.f32.xlu0 %v6107_v50 }
 0x7b9   :  { %6554 = vst.msk [vmem:[%s12948_s3 + $0xc0] sm:$0xff] %vm6529_vm0, %v6425_v26  ;;  %v6426_v34 = vadd.f32 %v12187_v57, %v6188_v13  ;;  %v5782_v38 = vpop.f32.mrf.mxu0  ;;  %v9543_v5 = vpop.eup %9542  ;;  %v6105_v32 = vmul.f32 %v9541_v10, %v12027_v41 }
 0x7ba   :  { %9554 = vtanh.f32 %v5791_v17  ;;  %v5783_v52 = vadd.f32 %v12166_v51, %v5782_v38  ;;  %v6198_v2 = vpop.xlane.xlu0 %6197  ;;  %6335 = vadd.xlane.f32.xlu1 %v6108_v56  ;;  %v6106_v43 = vmul.f32 %v9543_v5, %v12027_v41 }
 0x7bb   :  { %9556 = vtanh.f32 %v5780_v37  ;;  %6555 = vst.msk [vmem:[%s12948_s3 + $0xc8] sm:$0xff] %vm6529_vm0, %v6426_v34  ;;  %v6431_v0 = vadd.f32 %v12187_v57, %v6198_v2  ;;  %v7858_v23 = vpop.f32.mrf.mxu0  ;;  %v9545_v35 = vpop.eup %9544 }
 0x7bc   :  { %v5804_v15 = vadd.f32 %v12166_v51, %v7858_v23  ;;  %v6200_v27 = vpop.xlane.xlu1 %6199  ;;  %9558 = vtanh.f32 %v5783_v52  ;;  %6329 = vadd.xlane.f32.xlu0 %v6105_v32  ;;  %v6111_v18 = vmul.f32 %v9545_v35, %v12027_v41 }
 0x7bd   :  { %6560 = vst.msk [vmem:[%s12948_s3 + $0xf0] sm:$0xff] %vm6529_vm0, %v6431_v0  ;;  %v6432_v7 = vadd.f32 %v12187_v57, %v6200_v27  ;;  %v5795_v3 = vpop.f32.mrf.mxu0 }
 0x7be   :  { %v6194_v54 = vpop.xlane.xlu0 %6193  ;;  %9560 = vtanh.f32 %v5804_v15  ;;  %v5796_v29 = vadd.f32 %v12166_v51, %v5795_v3  ;;  %6331 = vadd.xlane.f32.xlu1 %v6106_v43 }
 0x7bf   :  { %v9547_v24 = vpop.eup %9546  ;;  %6561 = vst.msk [vmem:[%s12948_s3 + $0xf8] sm:$0xff] %vm6529_vm0, %v6432_v7  ;;  %v6429_v61 = vadd.f32 %v12187_v57, %v6194_v54  ;;  %v7859_v22 = vpop.f32.mrf.mxu0 }
 0x7c0   :  { %v9549_v33 = vpop.eup %9548  ;;  %v5807_v49 = vadd.f32 %v12166_v51, %v7859_v22  ;;  %v6196_v6 = vpop.xlane.xlu1 %6195  ;;  %v6112_v30 = vmul.f32 %v9547_v24, %v12027_v41  ;;  %6341 = vadd.xlane.f32.xlu0 %v6111_v18 }
 0x7c1   :  { %6558 = vst.msk [vmem:[%s12948_s3 + $0xe0] sm:$0xff] %vm6529_vm0, %v6429_v61  ;;  %v6430_v47 = vadd.f32 %v12187_v57, %v6196_v6  ;;  %v5798_v42 = vpop.f32.mrf.mxu0  ;;  %v9551_v25 = vpop.eup %9550  ;;  %v6109_v58 = vmul.f32 %v9549_v33, %v12027_v41 }
 0x7c2   :  { %9562 = vtanh.f32 %v5807_v49  ;;  %v5799_v45 = vadd.f32 %v12166_v51, %v5798_v42  ;;  %v6206_v59 = vpop.xlane.xlu0 %6205  ;;  %6343 = vadd.xlane.f32.xlu1 %v6112_v30  ;;  %v6110_v44 = vmul.f32 %v9551_v25, %v12027_v41 }
 0x7c3   :  { %9564 = vtanh.f32 %v5796_v29  ;;  %6559 = vst.msk [vmem:[%s12948_s3 + $0xe8] sm:$0xff] %vm6529_vm0, %v6430_v47  ;;  %v6435_v21 = vadd.f32 %v12187_v57, %v6206_v59  ;;  %v7862_v60 = vpop.f32.mrf.mxu0  ;;  %v9553_v28 = vpop.eup %9552 }
 0x7c4   :  { %v5820_v31 = vadd.f32 %v12166_v51, %v7862_v60  ;;  %v6208_v62 = vpop.xlane.xlu1 %6207  ;;  %9566 = vtanh.f32 %v5799_v45  ;;  %6337 = vadd.xlane.f32.xlu0 %v6109_v58  ;;  %v6115_v19 = vmul.f32 %v9553_v28, %v12027_v41 }
 0x7c5   :  { %6564 = vst.msk [vmem:[%s12948_s3 + $0x110] sm:$0xff] %vm6529_vm0, %v6435_v21  ;;  %v6436_v55 = vadd.f32 %v12187_v57, %v6208_v62  ;;  %v5811_v14 = vpop.f32.mrf.mxu0 }
 0x7c6   :  { %v6202_v40 = vpop.xlane.xlu0 %6201  ;;  %9568 = vtanh.f32 %v5820_v31  ;;  %v5812_v63 = vadd.f32 %v12166_v51, %v5811_v14  ;;  %6339 = vadd.xlane.f32.xlu1 %v6110_v44 }
 0x7c7   :  { %v9555_v11 = vpop.eup %9554  ;;  %6565 = vst.msk [vmem:[%s12948_s3 + $0x118] sm:$0xff] %vm6529_vm0, %v6436_v55  ;;  %v6433_v9 = vadd.f32 %v12187_v57, %v6202_v40  ;;  %v7863_v53 = vpop.f32.mrf.mxu0 }
 0x7c8   :  { %v9557_v46 = vpop.eup %9556  ;;  %v5823_v48 = vadd.f32 %v12166_v51, %v7863_v53  ;;  %v6204_v4 = vpop.xlane.xlu1 %6203  ;;  %v6116_v36 = vmul.f32 %v9555_v11, %v12027_v41  ;;  %6349 = vadd.xlane.f32.xlu0 %v6115_v19 }
 0x7c9   :  { %6562 = vst.msk [vmem:[%s12948_s3 + $0x100] sm:$0xff] %vm6529_vm0, %v6433_v9  ;;  %v6434_v8 = vadd.f32 %v12187_v57, %v6204_v4  ;;  %v5814_v39 = vpop.f32.mrf.mxu0  ;;  %v9559_v1 = vpop.eup %9558  ;;  %v6113_v12 = vmul.f32 %v9557_v46, %v12027_v41 }
 0x7ca   :  { %9570 = vtanh.f32 %v5823_v48  ;;  %v5815_v16 = vadd.f32 %v12166_v51, %v5814_v39  ;;  %v6214_v20 = vpop.xlane.xlu0 %6213  ;;  %6351 = vadd.xlane.f32.xlu1 %v6116_v36  ;;  %v6114_v34 = vmul.f32 %v9559_v1, %v12027_v41 }
 0x7cb   :  { %9572 = vtanh.f32 %v5812_v63  ;;  %6563 = vst.msk [vmem:[%s12948_s3 + $0x108] sm:$0xff] %vm6529_vm0, %v6434_v8  ;;  %v6439_v37 = vadd.f32 %v12187_v57, %v6214_v20  ;;  %v7866_v26 = vpop.f32.mrf.mxu0  ;;  %v9561_v50 = vpop.eup %9560 }
 0x7cc   :  { %v5836_v10 = vadd.f32 %v12166_v51, %v7866_v26  ;;  %v6216_v17 = vpop.xlane.xlu1 %6215  ;;  %9574 = vtanh.f32 %v5815_v16  ;;  %6345 = vadd.xlane.f32.xlu0 %v6113_v12  ;;  %v6119_v23 = vmul.f32 %v9561_v50, %v12027_v41 }
 0x7cd   :  { %6568 = vst.msk [vmem:[%s12948_s3 + $0x130] sm:$0xff] %vm6529_vm0, %v6439_v37  ;;  %v6440_v13 = vadd.f32 %v12187_v57, %v6216_v17  ;;  %v5827_v56 = vpop.f32.mrf.mxu0 }
 0x7ce   :  { %v6210_v38 = vpop.xlane.xlu0 %6209  ;;  %9576 = vtanh.f32 %v5836_v10  ;;  %v5828_v52 = vadd.f32 %v12166_v51, %v5827_v56  ;;  %6347 = vadd.xlane.f32.xlu1 %v6114_v34 }
 0x7cf   :  { %v9563_v5 = vpop.eup %9562  ;;  %6569 = vst.msk [vmem:[%s12948_s3 + $0x138] sm:$0xff] %vm6529_vm0, %v6440_v13  ;;  %v6437_v2 = vadd.f32 %v12187_v57, %v6210_v38  ;;  %v7867_v0 = vpop.f32.mrf.mxu0 }
 0x7d0   :  { %v9565_v32 = vpop.eup %9564  ;;  %v5839_v35 = vadd.f32 %v12166_v51, %v7867_v0  ;;  %v6212_v15 = vpop.xlane.xlu1 %6211  ;;  %v6120_v27 = vmul.f32 %v9563_v5, %v12027_v41  ;;  %6357 = vadd.xlane.f32.xlu0 %v6119_v23 }
 0x7d1   :  { %6566 = vst.msk [vmem:[%s12948_s3 + $0x120] sm:$0xff] %vm6529_vm0, %v6437_v2  ;;  %v6438_v7 = vadd.f32 %v12187_v57, %v6212_v15  ;;  %v5830_v3 = vpop.f32.mrf.mxu0  ;;  %v9567_v43 = vpop.eup %9566  ;;  %v6117_v22 = vmul.f32 %v9565_v32, %v12027_v41 }
 0x7d2   :  { %9578 = vtanh.f32 %v5839_v35  ;;  %v5831_v54 = vadd.f32 %v12166_v51, %v5830_v3  ;;  %v6222_v24 = vpop.xlane.xlu0 %6221  ;;  %6359 = vadd.xlane.f32.xlu1 %v6120_v27  ;;  %v6118_v47 = vmul.f32 %v9567_v43, %v12027_v41 }
 0x7d3   :  { %9580 = vtanh.f32 %v5828_v52  ;;  %6567 = vst.msk [vmem:[%s12948_s3 + $0x128] sm:$0xff] %vm6529_vm0, %v6438_v7  ;;  %v6443_v29 = vadd.f32 %v12187_v57, %v6222_v24  ;;  %v7870_v61 = vpop.f32.mrf.mxu0  ;;  %v9569_v18 = vpop.eup %9568 }
 0x7d4   :  { %v5852_v33 = vadd.f32 %v12166_v51, %v7870_v61  ;;  %v6224_v49 = vpop.xlane.xlu1 %6223  ;;  %9582 = vtanh.f32 %v5831_v54  ;;  %6353 = vadd.xlane.f32.xlu0 %v6117_v22  ;;  %v6123_v60 = vmul.f32 %v9569_v18, %v12027_v41 }
 0x7d5   :  { %6572 = vst.msk [vmem:[%s12948_s3 + $0x150] sm:$0xff] %vm6529_vm0, %v6443_v29  ;;  %v6444_v6 = vadd.f32 %v12187_v57, %v6224_v49  ;;  %v5843_v30 = vpop.f32.mrf.mxu0 }
 0x7d6   :  { %v6218_v42 = vpop.xlane.xlu0 %6217  ;;  %9584 = vtanh.f32 %v5852_v33  ;;  %v5844_v45 = vadd.f32 %v12166_v51, %v5843_v30  ;;  %6355 = vadd.xlane.f32.xlu1 %v6118_v47 }
 0x7d7   :  { %v9571_v25 = vpop.eup %9570  ;;  %6573 = vst.msk [vmem:[%s12948_s3 + $0x158] sm:$0xff] %vm6529_vm0, %v6444_v6  ;;  %v6441_v59 = vadd.f32 %v12187_v57, %v6218_v42  ;;  %v7871_v21 = vpop.f32.mrf.mxu0 }
 0x7d8   :  { %v9573_v58 = vpop.eup %9572  ;;  %v5855_v28 = vadd.f32 %v12166_v51, %v7871_v21  ;;  %v6220_v31 = vpop.xlane.xlu1 %6219  ;;  %v6124_v62 = vmul.f32 %v9571_v25, %v12027_v41  ;;  %6365 = vadd.xlane.f32.xlu0 %v6123_v60 }
 0x7d9   :  { %6570 = vst.msk [vmem:[%s12948_s3 + $0x140] sm:$0xff] %vm6529_vm0, %v6441_v59  ;;  %v6442_v55 = vadd.f32 %v12187_v57, %v6220_v31  ;;  %v5846_v14 = vpop.f32.mrf.mxu0  ;;  %v9575_v44 = vpop.eup %9574  ;;  %v6121_v53 = vmul.f32 %v9573_v58, %v12027_v41 }
 0x7da   :  { %9586 = vtanh.f32 %v5855_v28  ;;  %v5847_v40 = vadd.f32 %v12166_v51, %v5846_v14  ;;  %v6230_v11 = vpop.xlane.xlu0 %6229  ;;  %6367 = vadd.xlane.f32.xlu1 %v6124_v62  ;;  %v6122_v36 = vmul.f32 %v9575_v44, %v12027_v41 }
 0x7db   :  { %9588 = vtanh.f32 %v5844_v45  ;;  %6571 = vst.msk [vmem:[%s12948_s3 + $0x148] sm:$0xff] %vm6529_vm0, %v6442_v55  ;;  %v6447_v63 = vadd.f32 %v12187_v57, %v6230_v11  ;;  %v7874_v9 = vpop.f32.mrf.mxu0  ;;  %v9577_v19 = vpop.eup %9576 }
 0x7dc   :  { %v6232_v46 = vpop.xlane.xlu1 %6231  ;;  %9590 = vtanh.f32 %v5847_v40  ;;  %6361 = vadd.xlane.f32.xlu0 %v6121_v53  ;;  %v5868_v16 = vadd.f32 %v12166_v51, %v7874_v9  ;;  %v6127_v26 = vmul.f32 %v9577_v19, %v12027_v41  ;;  %v12598_v53 = vld [vmem:[%s12947_s2 + $0x6] ss:$0 sm:$0xff] }
 0x7dd   :  { %6576 = vst.msk [vmem:[%s12948_s3 + $0x170] sm:$0xff] %vm6529_vm0, %v6447_v63  ;;  %v6448_v48 = vadd.f32 %v12187_v57, %v6232_v46  ;;  %v5859_v4 = vpop.f32.mrf.mxu0 }
 0x7de   :  { %v6226_v8 = vpop.xlane.xlu0 %6225  ;;  %v5860_v39 = vadd.f32 %v12166_v51, %v5859_v4  ;;  %6363 = vadd.xlane.f32.xlu1 %v6122_v36 }
 0x7df   :  { %v9579_v1 = vpop.eup %9578  ;;  %6577 = vst.msk [vmem:[%s12948_s3 + $0x178] sm:$0xff] %vm6529_vm0, %v6448_v48  ;;  %v6445_v20 = vadd.f32 %v12187_v57, %v6226_v8  ;;  %v7875_v37 = vpop.f32.mrf.mxu0 }
 0x7e0   :  { %v9581_v12 = vpop.eup %9580  ;;  %9592 = vtanh.f32 %v5860_v39  ;;  %v6228_v50 = vpop.xlane.xlu1 %6227  ;;  %v6128_v10 = vmul.f32 %v9579_v1, %v12027_v41  ;;  %6373 = vadd.xlane.f32.xlu0 %v6127_v26  ;;  %v5871_v34 = vadd.f32 %v12166_v51, %v7875_v37 }
 0x7e1   :  { %6574 = vst.msk [vmem:[%s12948_s3 + $0x160] sm:$0xff] %vm6529_vm0, %v6445_v20  ;;  %v6446_v17 = vadd.f32 %v12187_v57, %v6228_v50  ;;  %v5862_v13 = vpop.f32.mrf.mxu0  ;;  %v9583_v56 = vpop.eup %9582  ;;  %9594 = vtanh.f32 %v5868_v16  ;;  %v6125_v2 = vmul.f32 %v9581_v12, %v12027_v41 }
 0x7e2   :  { %v6238_v38 = vpop.xlane.xlu0 %6237  ;;  %v5863_v5 = vadd.f32 %v12166_v51, %v5862_v13  ;;  %6375 = vadd.xlane.f32.xlu1 %v6128_v10  ;;  %v6126_v32 = vmul.f32 %v9583_v56, %v12027_v41 }
 0x7e3   :  { %6575 = vst.msk [vmem:[%s12948_s3 + $0x168] sm:$0xff] %vm6529_vm0, %v6446_v17  ;;  %v6451_v52 = vadd.f32 %v12187_v57, %v6238_v38  ;;  %v9585_v0 = vpop.eup %9584 }
 0x7e4   :  { %9596 = vtanh.f32 %v5863_v5  ;;  %v6240_v23 = vpop.xlane.xlu1 %6239  ;;  %6369 = vadd.xlane.f32.xlu0 %v6125_v2  ;;  %v6131_v7 = vmul.f32 %v9585_v0, %v12027_v41 }
 0x7e5   :  { %6580 = vst.msk [vmem:[%s12948_s3 + $0x190] sm:$0xff] %vm6529_vm0, %v6451_v52  ;;  %v6452_v51 = vadd.f32 %v12187_v57, %v6240_v23  ;;  %9598 = vtanh.f32 %v5871_v34 }
 0x7e6   :  { %v6234_v35 = vpop.xlane.xlu0 %6233  ;;  %6371 = vadd.xlane.f32.xlu1 %v6126_v32 }
 0x7e7   :  { %v9587_v15 = vpop.eup %9586  ;;  %6581 = vst.msk [vmem:[%s12948_s3 + $0x198] sm:$0xff] %vm6529_vm0, %v6452_v51  ;;  %v6449_v27 = vadd.f32 %v12187_v57, %v6234_v35 }
 0x7e8   :  { %v9589_v3 = vpop.eup %9588  ;;  %v6236_v43 = vpop.xlane.xlu1 %6235  ;;  %v6132_v54 = vmul.f32 %v9587_v15, %v12027_v41  ;;  %6381 = vadd.xlane.f32.xlu0 %v6131_v7 }
 0x7e9   :  { %6578 = vst.msk [vmem:[%s12948_s3 + $0x180] sm:$0xff] %vm6529_vm0, %v6449_v27  ;;  %v6450_v24 = vadd.f32 %v12187_v57, %v6236_v43  ;;  %v9591_v29 = vpop.eup %9590  ;;  %v6129_v18 = vmul.f32 %v9589_v3, %v12027_v41 }
 0x7ea   :  { %v6246_v61 = vpop.xlane.xlu0 %6245  ;;  %6383 = vadd.xlane.f32.xlu1 %v6132_v54  ;;  %v6130_v30 = vmul.f32 %v9591_v29, %v12027_v41 }
 0x7eb   :  { %6579 = vst.msk [vmem:[%s12948_s3 + $0x188] sm:$0xff] %vm6529_vm0, %v6450_v24  ;;  %v6455_v22 = vadd.f32 %v12187_v57, %v6246_v61 }
 0x7ec   :  { %v6248_v33 = vpop.xlane.xlu1 %6247  ;;  %6377 = vadd.xlane.f32.xlu0 %v6129_v18 }
 0x7ed   :  { %v9593_v49 = vpop.eup %9592  ;;  %6584 = vst.msk [vmem:[%s12948_s3 + $0x1b0] sm:$0xff] %vm6529_vm0, %v6455_v22  ;;  %v6456_v6 = vadd.f32 %v12187_v57, %v6248_v33 }
 0x7ee   :  { %v6242_v47 = vpop.xlane.xlu0 %6241  ;;  %v6133_v42 = vmul.f32 %v9593_v49, %v12027_v41  ;;  %6379 = vadd.xlane.f32.xlu1 %v6130_v30  ;;  %v9595_v45 = vpop.eup %9594 }
 0x7ef   :  { %6585 = vst.msk [vmem:[%s12948_s3 + $0x1b8] sm:$0xff] %vm6529_vm0, %v6456_v6  ;;  %v6453_v25 = vadd.f32 %v12187_v57, %v6242_v47  ;;  %v6135_v55 = vmul.f32 %v9595_v45, %v12027_v41 }
 0x7f0   :  { %v6244_v59 = vpop.xlane.xlu1 %6243  ;;  %6385 = vadd.xlane.f32.xlu0 %v6133_v42 }
 0x7f1   :  { %v9597_v21 = vpop.eup %9596  ;;  %6582 = vst.msk [vmem:[%s12948_s3 + $0x1a0] sm:$0xff] %vm6529_vm0, %v6453_v25  ;;  %v6454_v60 = vadd.f32 %v12187_v57, %v6244_v59 }
 0x7f2   :  { %v6254_v58 = vpop.xlane.xlu0 %6253  ;;  %v6134_v28 = vmul.f32 %v9597_v21, %v12027_v41  ;;  %v9599_v31 = vpop.eup %9598 }
 0x7f3   :  { %6583 = vst.msk [vmem:[%s12948_s3 + $0x1a8] sm:$0xff] %vm6529_vm0, %v6454_v60  ;;  %v6459_v62 = vadd.f32 %v12187_v57, %v6254_v58  ;;  %v6136_v11 = vmul.f32 %v9599_v31, %v12027_v41 }
 0x7f4   :  { %v6256_v14 = vpop.xlane.xlu1 %6255  ;;  %6387 = vadd.xlane.f32.xlu1 %v6134_v28  ;;  %6389 = vadd.xlane.f32.xlu0 %v6135_v55 }
 0x7f5   :  { %6588 = vst.msk [vmem:[%s12948_s3 + $0x1d0] sm:$0xff] %vm6529_vm0, %v6459_v62  ;;  %v6460_v44 = vadd.f32 %v12187_v57, %v6256_v14 }
 0x7f6   :  { %v6250_v40 = vpop.xlane.xlu0 %6249 }
 0x7f7   :  { %6589 = vst.msk [vmem:[%s12948_s3 + $0x1d8] sm:$0xff] %vm6529_vm0, %v6460_v44  ;;  %v6457_v63 = vadd.f32 %v12187_v57, %v6250_v40 }
 0x7f8   :  { %v6252_v9 = vpop.xlane.xlu1 %6251  ;;  %6391 = vadd.xlane.f32.xlu1 %v6136_v11 }
 0x7f9   :  { %6586 = vst.msk [vmem:[%s12948_s3 + $0x1c0] sm:$0xff] %vm6529_vm0, %v6457_v63  ;;  %v6458_v41 = vadd.f32 %v12598_v53, %v6252_v9 }
 0x7fa   :  { %v6262_v19 = vpop.xlane.xlu0 %6261 }
 0x7fb   :  { %6587 = vst.msk [vmem:[%s12948_s3 + $0x1c8] sm:$0xff] %vm6529_vm0, %v6458_v41  ;;  %v6463_v57 = vadd.f32 %v12598_v53, %v6262_v19 }
 0x7fc   :  { %v6264_v46 = vpop.xlane.xlu1 %6263 }
 0x7fd   :  { %6592 = vst.msk [vmem:[%s12948_s3 + $0x1f0] sm:$0xff] %vm6529_vm0, %v6463_v57  ;;  %v6464_v48 = vadd.f32 %v12598_v53, %v6264_v46 }
 0x7fe   :  { %v6258_v4 = vpop.xlane.xlu0 %6257 }
 0x7ff   :  { %6593 = vst.msk [vmem:[%s12948_s3 + $0x1f8] sm:$0xff] %vm6529_vm0, %v6464_v48  ;;  %v6461_v36 = vadd.f32 %v12598_v53, %v6258_v4 }
 0x800   :  { %v6260_v8 = vpop.xlane.xlu1 %6259 }
 0x801   :  { %6590 = vst.msk [vmem:[%s12948_s3 + $0x1e0] sm:$0xff] %vm6529_vm0, %v6461_v36  ;;  %v6462_v39 = vadd.f32 %v12598_v53, %v6260_v8 }
 0x802   :  { %v6270_v1 = vpop.xlane.xlu0 %6269 }
 0x803   :  { %6591 = vst.msk [vmem:[%s12948_s3 + $0x1e8] sm:$0xff] %vm6529_vm0, %v6462_v39  ;;  %v6467_v16 = vadd.f32 %v12598_v53, %v6270_v1 }
 0x804   :  { %v6272_v20 = vpop.xlane.xlu1 %6271 }
 0x805   :  { %6596 = vst.msk [vmem:[%s12948_s3 + $0x210] sm:$0xff] %vm6529_vm0, %v6467_v16  ;;  %v6468_v37 = vadd.f32 %v12598_v53, %v6272_v20 }
 0x806   :  { %v6266_v26 = vpop.xlane.xlu0 %6265 }
 0x807   :  { %6597 = vst.msk [vmem:[%s12948_s3 + $0x218] sm:$0xff] %vm6529_vm0, %v6468_v37  ;;  %v6465_v12 = vadd.f32 %v12598_v53, %v6266_v26 }
 0x808   :  { %v6268_v50 = vpop.xlane.xlu1 %6267 }
 0x809   :  { %6594 = vst.msk [vmem:[%s12948_s3 + $0x200] sm:$0xff] %vm6529_vm0, %v6465_v12  ;;  %v6466_v10 = vadd.f32 %v12598_v53, %v6268_v50 }
 0x80a   :  { %v6278_v17 = vpop.xlane.xlu0 %6277 }
 0x80b   :  { %6595 = vst.msk [vmem:[%s12948_s3 + $0x208] sm:$0xff] %vm6529_vm0, %v6466_v10  ;;  %v6471_v13 = vadd.f32 %v12598_v53, %v6278_v17 }
 0x80c   :  { %v6280_v56 = vpop.xlane.xlu1 %6279 }
 0x80d   :  { %6600 = vst.msk [vmem:[%s12948_s3 + $0x230] sm:$0xff] %vm6529_vm0, %v6471_v13  ;;  %v6472_v34 = vadd.f32 %v12598_v53, %v6280_v56 }
 0x80e   :  { %v6274_v38 = vpop.xlane.xlu0 %6273 }
 0x80f   :  { %6601 = vst.msk [vmem:[%s12948_s3 + $0x238] sm:$0xff] %vm6529_vm0, %v6472_v34  ;;  %v6469_v5 = vadd.f32 %v12598_v53, %v6274_v38 }
 0x810   :  { %v6276_v52 = vpop.xlane.xlu1 %6275 }
 0x811   :  { %6598 = vst.msk [vmem:[%s12948_s3 + $0x220] sm:$0xff] %vm6529_vm0, %v6469_v5  ;;  %v6470_v2 = vadd.f32 %v12598_v53, %v6276_v52 }
 0x812   :  { %v6286_v0 = vpop.xlane.xlu0 %6285 }
 0x813   :  { %6599 = vst.msk [vmem:[%s12948_s3 + $0x228] sm:$0xff] %vm6529_vm0, %v6470_v2  ;;  %v6475_v23 = vadd.f32 %v12598_v53, %v6286_v0 }
 0x814   :  { %v6288_v51 = vpop.xlane.xlu1 %6287 }
 0x815   :  { %6604 = vst.msk [vmem:[%s12948_s3 + $0x250] sm:$0xff] %vm6529_vm0, %v6475_v23  ;;  %v6476_v32 = vadd.f32 %v12598_v53, %v6288_v51 }
 0x816   :  { %v6282_v35 = vpop.xlane.xlu0 %6281 }
 0x817   :  { %6605 = vst.msk [vmem:[%s12948_s3 + $0x258] sm:$0xff] %vm6529_vm0, %v6476_v32  ;;  %v6473_v15 = vadd.f32 %v12598_v53, %v6282_v35 }
 0x818   :  { %v6284_v27 = vpop.xlane.xlu1 %6283 }
 0x819   :  { %6602 = vst.msk [vmem:[%s12948_s3 + $0x240] sm:$0xff] %vm6529_vm0, %v6473_v15  ;;  %v6474_v7 = vadd.f32 %v12598_v53, %v6284_v27 }
 0x81a   :  { %v6294_v3 = vpop.xlane.xlu0 %6293 }
 0x81b   :  { %6603 = vst.msk [vmem:[%s12948_s3 + $0x248] sm:$0xff] %vm6529_vm0, %v6474_v7  ;;  %v6479_v43 = vadd.f32 %v12598_v53, %v6294_v3 }
 0x81c   :  { %v6296_v54 = vpop.xlane.xlu1 %6295 }
 0x81d   :  { %6608 = vst.msk [vmem:[%s12948_s3 + $0x270] sm:$0xff] %vm6529_vm0, %v6479_v43  ;;  %v6480_v24 = vadd.f32 %v12598_v53, %v6296_v54 }
 0x81e   :  { %v6290_v29 = vpop.xlane.xlu0 %6289 }
 0x81f   :  { %6609 = vst.msk [vmem:[%s12948_s3 + $0x278] sm:$0xff] %vm6529_vm0, %v6480_v24  ;;  %v6477_v61 = vadd.f32 %v12598_v53, %v6290_v29 }
 0x820   :  { %v6292_v22 = vpop.xlane.xlu1 %6291 }
 0x821   :  { %6606 = vst.msk [vmem:[%s12948_s3 + $0x260] sm:$0xff] %vm6529_vm0, %v6477_v61  ;;  %v6478_v18 = vadd.f32 %v12598_v53, %v6292_v22 }
 0x822   :  { %v6302_v33 = vpop.xlane.xlu0 %6301 }
 0x823   :  { %6607 = vst.msk [vmem:[%s12948_s3 + $0x268] sm:$0xff] %vm6529_vm0, %v6478_v18  ;;  %v6483_v49 = vadd.f32 %v12598_v53, %v6302_v33 }
 0x824   :  { %v6304_v6 = vpop.xlane.xlu1 %6303 }
 0x825   :  { %6612 = vst.msk [vmem:[%s12948_s3 + $0x290] sm:$0xff] %vm6529_vm0, %v6483_v49  ;;  %v6484_v30 = vadd.f32 %v12598_v53, %v6304_v6 }
 0x826   :  { %v6298_v47 = vpop.xlane.xlu0 %6297 }
 0x827   :  { %6613 = vst.msk [vmem:[%s12948_s3 + $0x298] sm:$0xff] %vm6529_vm0, %v6484_v30  ;;  %v6481_v42 = vadd.f32 %v12598_v53, %v6298_v47 }
 0x828   :  { %v6300_v25 = vpop.xlane.xlu1 %6299 }
 0x829   :  { %6610 = vst.msk [vmem:[%s12948_s3 + $0x280] sm:$0xff] %vm6529_vm0, %v6481_v42  ;;  %v6482_v45 = vadd.f32 %v12598_v53, %v6300_v25 }
 0x82a   :  { %v6310_v59 = vpop.xlane.xlu0 %6309 }
 0x82b   :  { %6611 = vst.msk [vmem:[%s12948_s3 + $0x288] sm:$0xff] %vm6529_vm0, %v6482_v45  ;;  %v6487_v21 = vadd.f32 %v12598_v53, %v6310_v59 }
 0x82c   :  { %v6312_v60 = vpop.xlane.xlu1 %6311 }
 0x82d   :  { %6616 = vst.msk [vmem:[%s12948_s3 + $0x2b0] sm:$0xff] %vm6529_vm0, %v6487_v21  ;;  %v6488_v58 = vadd.f32 %v12598_v53, %v6312_v60 }
 0x82e   :  { %v6306_v28 = vpop.xlane.xlu0 %6305 }
 0x82f   :  { %6617 = vst.msk [vmem:[%s12948_s3 + $0x2b8] sm:$0xff] %vm6529_vm0, %v6488_v58  ;;  %v6485_v31 = vadd.f32 %v12598_v53, %v6306_v28 }
 0x830   :  { %v6308_v62 = vpop.xlane.xlu1 %6307 }
 0x831   :  { %6614 = vst.msk [vmem:[%s12948_s3 + $0x2a0] sm:$0xff] %vm6529_vm0, %v6485_v31  ;;  %v6486_v55 = vadd.f32 %v12598_v53, %v6308_v62 }
 0x832   :  { %v6318_v14 = vpop.xlane.xlu0 %6317 }
 0x833   :  { %6615 = vst.msk [vmem:[%s12948_s3 + $0x2a8] sm:$0xff] %vm6529_vm0, %v6486_v55  ;;  %v6491_v44 = vadd.f32 %v12598_v53, %v6318_v14 }
 0x834   :  { %v6320_v40 = vpop.xlane.xlu1 %6319 }
 0x835   :  { %6620 = vst.msk [vmem:[%s12948_s3 + $0x2d0] sm:$0xff] %vm6529_vm0, %v6491_v44  ;;  %v6492_v11 = vadd.f32 %v12598_v53, %v6320_v40 }
 0x836   :  { %v6314_v63 = vpop.xlane.xlu0 %6313 }
 0x837   :  { %6621 = vst.msk [vmem:[%s12948_s3 + $0x2d8] sm:$0xff] %vm6529_vm0, %v6492_v11  ;;  %v6489_v9 = vadd.f32 %v12598_v53, %v6314_v63 }
 0x838   :  { %v6316_v41 = vpop.xlane.xlu1 %6315 }
 0x839   :  { %6618 = vst.msk [vmem:[%s12948_s3 + $0x2c0] sm:$0xff] %vm6529_vm0, %v6489_v9  ;;  %v6490_v19 = vadd.f32 %v12598_v53, %v6316_v41 }
 0x83a   :  { %v6326_v57 = vpop.xlane.xlu0 %6325 }
 0x83b   :  { %6619 = vst.msk [vmem:[%s12948_s3 + $0x2c8] sm:$0xff] %vm6529_vm0, %v6490_v19  ;;  %v6495_v46 = vadd.f32 %v12598_v53, %v6326_v57 }
 0x83c   :  { %v6328_v48 = vpop.xlane.xlu1 %6327 }
 0x83d   :  { %6624 = vst.msk [vmem:[%s12948_s3 + $0x2f0] sm:$0xff] %vm6529_vm0, %v6495_v46  ;;  %v6496_v4 = vadd.f32 %v12598_v53, %v6328_v48 }
 0x83e   :  { %v6322_v36 = vpop.xlane.xlu0 %6321 }
 0x83f   :  { %6625 = vst.msk [vmem:[%s12948_s3 + $0x2f8] sm:$0xff] %vm6529_vm0, %v6496_v4  ;;  %v6493_v8 = vadd.f32 %v12598_v53, %v6322_v36 }
 0x840   :  { %v6324_v39 = vpop.xlane.xlu1 %6323 }
 0x841   :  { %6622 = vst.msk [vmem:[%s12948_s3 + $0x2e0] sm:$0xff] %vm6529_vm0, %v6493_v8  ;;  %v6494_v1 = vadd.f32 %v12598_v53, %v6324_v39 }
 0x842   :  { %v6334_v16 = vpop.xlane.xlu0 %6333 }
 0x843   :  { %6623 = vst.msk [vmem:[%s12948_s3 + $0x2e8] sm:$0xff] %vm6529_vm0, %v6494_v1  ;;  %v6499_v20 = vadd.f32 %v12598_v53, %v6334_v16 }
 0x844   :  { %v6336_v37 = vpop.xlane.xlu1 %6335 }
 0x845   :  { %6628 = vst.msk [vmem:[%s12948_s3 + $0x310] sm:$0xff] %vm6529_vm0, %v6499_v20  ;;  %v6500_v26 = vadd.f32 %v12598_v53, %v6336_v37 }
 0x846   :  { %v6330_v12 = vpop.xlane.xlu0 %6329 }
 0x847   :  { %6629 = vst.msk [vmem:[%s12948_s3 + $0x318] sm:$0xff] %vm6529_vm0, %v6500_v26  ;;  %v6497_v50 = vadd.f32 %v12598_v53, %v6330_v12 }
 0x848   :  { %v6332_v10 = vpop.xlane.xlu1 %6331 }
 0x849   :  { %6626 = vst.msk [vmem:[%s12948_s3 + $0x300] sm:$0xff] %vm6529_vm0, %v6497_v50  ;;  %v6498_v17 = vadd.f32 %v12598_v53, %v6332_v10 }
 0x84a   :  { %v6342_v13 = vpop.xlane.xlu0 %6341 }
 0x84b   :  { %6627 = vst.msk [vmem:[%s12948_s3 + $0x308] sm:$0xff] %vm6529_vm0, %v6498_v17  ;;  %v6503_v56 = vadd.f32 %v12598_v53, %v6342_v13 }
 0x84c   :  { %v6344_v34 = vpop.xlane.xlu1 %6343 }
 0x84d   :  { %6632 = vst.msk [vmem:[%s12948_s3 + $0x330] sm:$0xff] %vm6529_vm0, %v6503_v56  ;;  %v6504_v38 = vadd.f32 %v12598_v53, %v6344_v34 }
 0x84e   :  { %v6338_v5 = vpop.xlane.xlu0 %6337 }
 0x84f   :  { %6633 = vst.msk [vmem:[%s12948_s3 + $0x338] sm:$0xff] %vm6529_vm0, %v6504_v38  ;;  %v6501_v52 = vadd.f32 %v12598_v53, %v6338_v5 }
 0x850   :  { %v6340_v2 = vpop.xlane.xlu1 %6339 }
 0x851   :  { %6630 = vst.msk [vmem:[%s12948_s3 + $0x320] sm:$0xff] %vm6529_vm0, %v6501_v52  ;;  %v6502_v0 = vadd.f32 %v12598_v53, %v6340_v2 }
 0x852   :  { %v6350_v23 = vpop.xlane.xlu0 %6349 }
 0x853   :  { %6631 = vst.msk [vmem:[%s12948_s3 + $0x328] sm:$0xff] %vm6529_vm0, %v6502_v0  ;;  %v6507_v51 = vadd.f32 %v12598_v53, %v6350_v23 }
 0x854   :  { %v6352_v32 = vpop.xlane.xlu1 %6351 }
 0x855   :  { %6636 = vst.msk [vmem:[%s12948_s3 + $0x350] sm:$0xff] %vm6529_vm0, %v6507_v51  ;;  %v6508_v35 = vadd.f32 %v12598_v53, %v6352_v32 }
 0x856   :  { %v6346_v15 = vpop.xlane.xlu0 %6345 }
 0x857   :  { %6637 = vst.msk [vmem:[%s12948_s3 + $0x358] sm:$0xff] %vm6529_vm0, %v6508_v35  ;;  %v6505_v27 = vadd.f32 %v12598_v53, %v6346_v15 }
 0x858   :  { %v6348_v7 = vpop.xlane.xlu1 %6347 }
 0x859   :  { %6634 = vst.msk [vmem:[%s12948_s3 + $0x340] sm:$0xff] %vm6529_vm0, %v6505_v27  ;;  %v6506_v3 = vadd.f32 %v12598_v53, %v6348_v7 }
 0x85a   :  { %v6358_v43 = vpop.xlane.xlu0 %6357 }
 0x85b   :  { %6635 = vst.msk [vmem:[%s12948_s3 + $0x348] sm:$0xff] %vm6529_vm0, %v6506_v3  ;;  %v6511_v54 = vadd.f32 %v12598_v53, %v6358_v43 }
 0x85c   :  { %v6360_v24 = vpop.xlane.xlu1 %6359 }
 0x85d   :  { %6640 = vst.msk [vmem:[%s12948_s3 + $0x370] sm:$0xff] %vm6529_vm0, %v6511_v54  ;;  %v6512_v29 = vadd.f32 %v12598_v53, %v6360_v24 }
 0x85e   :  { %v6354_v61 = vpop.xlane.xlu0 %6353 }
 0x85f   :  { %6641 = vst.msk [vmem:[%s12948_s3 + $0x378] sm:$0xff] %vm6529_vm0, %v6512_v29  ;;  %v6509_v22 = vadd.f32 %v12598_v53, %v6354_v61 }
 0x860   :  { %v6356_v18 = vpop.xlane.xlu1 %6355 }
 0x861   :  { %6638 = vst.msk [vmem:[%s12948_s3 + $0x360] sm:$0xff] %vm6529_vm0, %v6509_v22  ;;  %v6510_v33 = vadd.f32 %v12598_v53, %v6356_v18 }
 0x862   :  { %v6366_v49 = vpop.xlane.xlu0 %6365 }
 0x863   :  { %6639 = vst.msk [vmem:[%s12948_s3 + $0x368] sm:$0xff] %vm6529_vm0, %v6510_v33  ;;  %v6515_v6 = vadd.f32 %v12598_v53, %v6366_v49 }
 0x864   :  { %v6368_v30 = vpop.xlane.xlu1 %6367 }
 0x865   :  { %6644 = vst.msk [vmem:[%s12948_s3 + $0x390] sm:$0xff] %vm6529_vm0, %v6515_v6  ;;  %v6516_v47 = vadd.f32 %v12598_v53, %v6368_v30 }
 0x866   :  { %v6362_v42 = vpop.xlane.xlu0 %6361 }
 0x867   :  { %6645 = vst.msk [vmem:[%s12948_s3 + $0x398] sm:$0xff] %vm6529_vm0, %v6516_v47  ;;  %v6513_v25 = vadd.f32 %v12598_v53, %v6362_v42 }
 0x868   :  { %v6364_v45 = vpop.xlane.xlu1 %6363 }
 0x869   :  { %6642 = vst.msk [vmem:[%s12948_s3 + $0x380] sm:$0xff] %vm6529_vm0, %v6513_v25  ;;  %v6514_v59 = vadd.f32 %v12598_v53, %v6364_v45 }
 0x86a   :  { %v6374_v21 = vpop.xlane.xlu0 %6373 }
 0x86b   :  { %6643 = vst.msk [vmem:[%s12948_s3 + $0x388] sm:$0xff] %vm6529_vm0, %v6514_v59  ;;  %v6519_v60 = vadd.f32 %v12598_v53, %v6374_v21 }
 0x86c   :  { %v6376_v58 = vpop.xlane.xlu1 %6375 }
 0x86d   :  { %6648 = vst.msk [vmem:[%s12948_s3 + $0x3b0] sm:$0xff] %vm6529_vm0, %v6519_v60  ;;  %v6520_v28 = vadd.f32 %v12598_v53, %v6376_v58 }
 0x86e   :  { %v6370_v31 = vpop.xlane.xlu0 %6369 }
 0x86f   :  { %6649 = vst.msk [vmem:[%s12948_s3 + $0x3b8] sm:$0xff] %vm6529_vm0, %v6520_v28  ;;  %v6517_v62 = vadd.f32 %v12598_v53, %v6370_v31 }
 0x870   :  { %v6372_v55 = vpop.xlane.xlu1 %6371 }
 0x871   :  { %6646 = vst.msk [vmem:[%s12948_s3 + $0x3a0] sm:$0xff] %vm6529_vm0, %v6517_v62  ;;  %v6518_v14 = vadd.f32 %v12598_v53, %v6372_v55 }
 0x872   :  { %v6382_v44 = vpop.xlane.xlu0 %6381 }
 0x873   :  { %6647 = vst.msk [vmem:[%s12948_s3 + $0x3a8] sm:$0xff] %vm6529_vm0, %v6518_v14  ;;  %v6523_v40 = vadd.f32 %v12598_v53, %v6382_v44 }
 0x874   :  { %v6384_v11 = vpop.xlane.xlu1 %6383 }
 0x875   :  { %6652 = vst.msk [vmem:[%s12948_s3 + $0x3d0] sm:$0xff] %vm6529_vm0, %v6523_v40  ;;  %v6524_v63 = vadd.f32 %v12598_v53, %v6384_v11 }
 0x876   :  { %v6378_v9 = vpop.xlane.xlu0 %6377 }
 0x877   :  { %6653 = vst.msk [vmem:[%s12948_s3 + $0x3d8] sm:$0xff] %vm6529_vm0, %v6524_v63  ;;  %v6521_v41 = vadd.f32 %v12598_v53, %v6378_v9 }
 0x878   :  { %v6380_v19 = vpop.xlane.xlu1 %6379 }
 0x879   :  { %6650 = vst.msk [vmem:[%s12948_s3 + $0x3c0] sm:$0xff] %vm6529_vm0, %v6521_v41  ;;  %v6522_v57 = vadd.f32 %v12598_v53, %v6380_v19 }
 0x87a   :  { %v6386_v46 = vpop.xlane.xlu0 %6385 }
 0x87b   :  { %6651 = vst.msk [vmem:[%s12948_s3 + $0x3c8] sm:$0xff] %vm6529_vm0, %v6522_v57  ;;  %v6525_v48 = vadd.f32 %v12598_v53, %v6386_v46 }
 0x87d   :  { %6654 = vst.msk [vmem:[%s12948_s3 + $0x3e0] sm:$0xff] %vm6529_vm0, %v6525_v48  ;;  %v6388_v4 = vpop.xlane.xlu1 %6387 }
 0x87e   :  { %v6526_v36 = vadd.f32 %v12598_v53, %v6388_v4  ;;  %v6390_v8 = vpop.xlane.xlu0 %6389 }
 0x87f   :  { %v6527_v39 = vadd.f32 %v12598_v53, %v6390_v8 }
 0x880   :  { %6655 = vst.msk [vmem:[%s12948_s3 + $0x3e8] sm:$0xff] %vm6529_vm0, %v6526_v36 }
 0x881   :  { %6656 = vst.msk [vmem:[%s12948_s3 + $0x3f0] sm:$0xff] %vm6529_vm0, %v6527_v39  ;;  %v6392_v1 = vpop.xlane.xlu1 %6391 }
 0x882   :  { %v6528_v16 = vadd.f32 %v12598_v53, %v6392_v1 }
 0x884   :  { %6657 = vst.msk [vmem:[%s12948_s3 + $0x3f8] sm:$0xff] %vm6529_vm0, %v6528_v16 }

</bundles_post_ra>
